<compile_context>
chip_gen: v7x
topology: tpu7x:2x2x1
jax: 0.10.0
libtpu: 0.0.40
codegen_flags: <defaults>
</compile_context>

<pallas_src>
import numpy as np
import jax
import jax.numpy as jnp
from jax.experimental import pallas as pl
from jax.experimental.pallas import tpu as pltpu


# ----------------------------------------------------------------------------
# Model geometry (fixed by the PyTorch SimpleNet definition).
# ----------------------------------------------------------------------------
KSIZES = ((3, 3), (2, 2), (4, 4), (4, 1), (1, 4))      # conv1..conv5 kernels
CIN, COUT = 12, 128
H, W = 4, 4                 # spatial size implied by fc1's 2816 input features
BATCH = 2
NCLASS = 4

P_SIZES = tuple((H - kh + 1) * (W - kw + 1) for kh, kw in KSIZES)   # (4,9,1,4,4)
K_SIZES = tuple(CIN * kh * kw for kh, kw in KSIZES)                 # (108,48,192,48,48)
P_OFF = tuple(int(v) for v in np.cumsum((0,) + P_SIZES[:-1]))       # (0,4,13,14,18)
K_OFF = tuple(int(v) for v in np.cumsum((0,) + K_SIZES[:-1]))       # (0,108,156,348,396)
NPOS = sum(P_SIZES)                                                  # 22 output positions
NFEAT = NPOS * COUT                                                  # 2816
FC_DIMS = ((NFEAT, 1024), (1024, 256), (256, NCLASS))                # fc1, fc3, fc4

M_PAD = 8                    # batch rows padded to one (8,128) sublane tile
K_PAD = 512                  # combined im2col K (=444) padded to a lane multiple
CONV_ROWS = NPOS * M_PAD     # 176: one aligned 8-row block per (conv, position)
NOUT_PAD = 128               # lane-dense fc4 output tile (real classes = 4)
BN_EPS = 1e-5


# ----------------------------------------------------------------------------
# The fused Pallas kernel: convs -> feature scatter -> fc1 -> fc3 -> fc4+softmax
# ----------------------------------------------------------------------------
def _simplenet_kernel(patches_ref, wconv_ref, bconv_ref,
                      w1_ref, b1_ref, w3_ref, b3_ref, w4_ref, b4_ref,
                      out_ref, feat_ref):
    f32 = jnp.float32

    # All five convolutions as one block-diagonal matmul (+bias, ReLU).
    # patches: (176, 512), wconv: (512, 128) -> conv: (176, 128); each aligned
    # 8-row block is one (conv, output-position) for all (padded) batch rows.
    conv = jnp.dot(patches_ref[...], wconv_ref[...], preferred_element_type=f32)
    conv = jnp.maximum(conv + bconv_ref[...], 0.0)

    # Scatter the 22 blocks into the fc1 feature layout (M_PAD, 2816).
    # Every copy is a full (8,128) tile at a 128-aligned lane offset.
    for q in range(NPOS):
        feat_ref[:, COUT * q:COUT * (q + 1)] = conv[M_PAD * q:M_PAD * (q + 1), :]

    # fc1 (+folded BatchNorm) + ReLU.  bf16 weights, f32 MXU accumulation.
    h = jnp.dot(feat_ref[...].astype(jnp.bfloat16), w1_ref[...],
                preferred_element_type=f32)
    h = jnp.maximum(h + b1_ref[...], 0.0)                       # (8, 1024)

    # fc3 (+folded BatchNorm) + ReLU.
    h = jnp.dot(h.astype(jnp.bfloat16), w3_ref[...], preferred_element_type=f32)
    h = jnp.maximum(h + b3_ref[...], 0.0)                       # (8, 256)

    # fc4 (+folded BatchNorm, lane-dense 128-wide) + ReLU + masked softmax.
    y = jnp.dot(h, w4_ref[...], preferred_element_type=f32)
    y = jnp.maximum(y + b4_ref[...], 0.0)                       # (8, 128)
    lane = jax.lax.broadcasted_iota(jnp.int32, y.shape, 1)
    y = jnp.where(lane < NCLASS, y, -jnp.inf)                   # mask pad lanes
    y = y - jnp.max(y, axis=-1, keepdims=True)
    e = jnp.exp(y)
    out_ref[...] = (e / jnp.sum(e, axis=-1, keepdims=True)).astype(out_ref.dtype)


# ----------------------------------------------------------------------------
# Host-side im2col glue (a handful of tiny XLA ops on the 1.5 KiB input).
# ----------------------------------------------------------------------------
def _im2col_blocks(x, kh, kw):
    """im2col with rows grouped per output position into aligned 8-row blocks.

    x: (N, C, H, W) -> (P * M_PAD, C*kh*kw).  Row M_PAD*p + n is the patch for
    output position p of batch element n (rows n >= N are zero padding).  The
    contraction axis is ordered (C, kh, kw) to match PyTorch's Conv2d weight.
    """
    n, c, h, w = x.shape
    oh, ow = h - kh + 1, w - kw + 1
    cols = [x[:, :, i:i + oh, j:j + ow] for i in range(kh) for j in range(kw)]
    p = jnp.stack(cols, axis=2)                        # (N, C, kh*kw, oh, ow)
    p = p.reshape(n, c * kh * kw, oh * ow)             # K ordered (c, i, j)
    p = jnp.transpose(p, (2, 0, 1))                    # (P, N, K)
    p = jnp.pad(p, ((0, 0), (0, M_PAD - n), (0, 0)))   # (P, 8, K)
    return p.reshape(oh * ow * M_PAD, c * kh * kw)


def _build_patches(x):
    """Combined block-placed im2col matrix, (CONV_ROWS, K_PAD) f32."""
    blocks = []
    for (kh, kw), koff, ksz in zip(KSIZES, K_OFF, K_SIZES):
        pm = _im2col_blocks(x, kh, kw)
        blocks.append(jnp.pad(pm, ((0, 0), (koff, K_PAD - koff - ksz))))
    return jnp.concatenate(blocks, axis=0)


@jax.jit
def simplenet_forward(kp, x):
    """Fused SimpleNet forward (eval mode).  x: (BATCH, 12, 4, 4) -> (BATCH, 4)."""
    patches = _build_patches(x)
    vmem = pl.BlockSpec(memory_space=pltpu.MemorySpace.VMEM)
    out = pl.pallas_call(
        _simplenet_kernel,
        out_shape=jax.ShapeDtypeStruct((M_PAD, NOUT_PAD), jnp.float32),
        in_specs=[vmem] * 9,
        out_specs=vmem,
        scratch_shapes=[pltpu.VMEM((M_PAD, NFEAT), jnp.float32)],
        # Single grid point; ~7 MiB of operands fit the default scoped VMEM
        # limit on v5e / v6e / v7x, so no vmem_limit_bytes override is needed.
    )(patches, kp["wconv"], kp["bconv"], kp["w1"], kp["b1"],
      kp["w3"], kp["b3"], kp["w4"], kp["b4"])
    return out[:BATCH, :NCLASS]


# ----------------------------------------------------------------------------
# Parameters: PyTorch-layout originals + one-time kernel-side preparation.
# ----------------------------------------------------------------------------
def make_params(key):
    """Random parameters in PyTorch layout (what the torch module would hold)."""
    keys = iter(jax.random.split(key, 64))

    def rnd(shape, scale=0.05):
        return scale * jax.random.normal(next(keys), shape, jnp.float32)

    p = {}
    for i, (kh, kw) in enumerate(KSIZES, start=1):
        p[f"conv{i}_w"] = rnd((COUT, CIN, kh, kw))
        p[f"conv{i}_b"] = rnd((COUT,))
    for name, (din, dout) in zip(("fc1", "fc3", "fc4"), FC_DIMS):
        w = rnd((din, dout))
        if name in ("fc1", "fc3"):
            # Stored/streamed as bf16 by the kernel; round once here so the
            # reference and the kernel share identical parameter values.
            w = w.astype(jnp.bfloat16).astype(jnp.float32)
        p[name + "_w"] = w
        p[name + "_b"] = rnd((dout,))
        p[name + "_gamma"] = 1.0 + 0.1 * jax.random.normal(next(keys), (dout,), jnp.float32)
        p[name + "_beta"] = 0.1 * jax.random.normal(next(keys), (dout,), jnp.float32)
        p[name + "_mean"] = 0.1 * jax.random.normal(next(keys), (dout,), jnp.float32)
        p[name + "_var"] = 1.0 + 0.1 * jax.random.uniform(next(keys), (dout,), jnp.float32)
    return p


def prepare_kernel_params(p):
    """One-time host-side transforms feeding the fused kernel:
      * conv weights -> one block-diagonal (K_PAD, COUT) matrix + per-row bias,
      * fc1 weight rows permuted to (conv, position, channel) feature order,
      * eval-mode BatchNorm folded into fc weights / biases,
      * fc1/fc3 weights cast to bf16 (halves the dominant HBM stream),
      * fc4 padded to a lane-dense 128-wide output tile.
    """
    kp = {}

    wbd = np.zeros((K_PAD, COUT), np.float32)
    brows = np.zeros((CONV_ROWS, COUT), np.float32)
    for i, (koff, ksz, poff, psz) in enumerate(
            zip(K_OFF, K_SIZES, P_OFF, P_SIZES), start=1):
        wbd[koff:koff + ksz, :] = np.asarray(p[f"conv{i}_w"]).reshape(COUT, ksz).T
        brows[M_PAD * poff:M_PAD * (poff + psz), :] = np.asarray(p[f"conv{i}_b"])
    kp["wconv"] = jnp.asarray(wbd)
    kp["bconv"] = jnp.asarray(brows)

    def bn_fold(name, w, b):
        scale = p[name + "_gamma"] / jnp.sqrt(p[name + "_var"] + BN_EPS)
        shift = p[name + "_beta"] - p[name + "_mean"] * scale
        return w * scale[None, :], b * scale + shift

    # fc1: permute rows from PyTorch's (conv, channel, position) flatten order
    # to the kernel's (conv, position, channel) order.
    blocks = []
    for poff, psz in zip(P_OFF, P_SIZES):
        blk = p["fc1_w"][COUT * poff:COUT * (poff + psz)]     # rows = (c, p)
        blocks.append(blk.reshape(COUT, psz, -1).transpose(1, 0, 2)
                      .reshape(psz * COUT, -1))               # rows = (p, c)
    w1, b1 = bn_fold("fc1", jnp.concatenate(blocks, axis=0), p["fc1_b"])
    kp["w1"] = w1.astype(jnp.bfloat16)
    kp["b1"] = b1.reshape(1, -1)

    w3, b3 = bn_fold("fc3", p["fc3_w"], p["fc3_b"])
    kp["w3"] = w3.astype(jnp.bfloat16)
    kp["b3"] = b3.reshape(1, -1)

    w4, b4 = bn_fold("fc4", p["fc4_w"], p["fc4_b"])
    kp["w4"] = jnp.pad(w4, ((0, 0), (0, NOUT_PAD - NCLASS)))
    kp["b4"] = jnp.pad(b4, (0, NOUT_PAD - NCLASS)).reshape(1, -1)
    return kp


# ----------------------------------------------------------------------------
# Pure-JAX reference with PyTorch SimpleNet semantics (eval mode).
# ----------------------------------------------------------------------------
def reference_forward(p, x):
    feats = []
    for i in range(1, 6):
        y = jax.lax.conv_general_dilated(
            x, p[f"conv{i}_w"], window_strides=(1, 1), padding="VALID",
            dimension_numbers=("NCHW", "OIHW", "NCHW"))
        y = jnp.maximum(y + p[f"conv{i}_b"][None, :, None, None], 0.0)
        feats.append(y.reshape(x.shape[0], -1))        # torch .view(N, -1)
    h = jnp.concatenate(feats, axis=1)                 # torch.cat(..., 1)

    def fc_bn_relu(h, name):
        y = h @ p[name + "_w"] + p[name + "_b"]
        scale = p[name + "_gamma"] / jnp.sqrt(p[name + "_var"] + BN_EPS)
        y = (y - p[name + "_mean"]) * scale + p[name + "_beta"]
        return jnp.maximum(y, 0.0)

    h = fc_bn_relu(h, "fc1")        # dropout = identity in eval mode
    h = fc_bn_relu(h, "fc3")
    h = fc_bn_relu(h, "fc4")
    return jax.nn.softmax(h, axis=1)


if __name__ == "__main__":
    key = jax.random.PRNGKey(0)
    pkey, xkey = jax.random.split(key)
    params = make_params(pkey)
    kparams = prepare_kernel_params(params)

    x = jax.random.normal(xkey, (BATCH, CIN, H, W), jnp.float32)

    out = jax.block_until_ready(simplenet_forward(kparams, x))
    ref = jax.block_until_ready(reference_forward(params, x))

    assert out.shape == (BATCH, NCLASS), out.shape
    assert jnp.allclose(jnp.sum(out, axis=1), 1.0, atol=1e-3), out
    # Kernel uses bf16 fc1/fc3 operands (f32 accumulate); reference is f32.
    assert jnp.allclose(out, ref, rtol=2e-2, atol=2e-3), (out, ref)
    print("KERNEL_OK")
</pallas_src>

<mosaic_0001>
module attributes {stable_mosaic.version = 11 : i64} {
  func.func @_simplenet_kernel(%arg0: memref<176x512xf32, #tpu.memory_space<vmem>>, %arg1: memref<512x128xf32, #tpu.memory_space<vmem>>, %arg2: memref<176x128xf32, #tpu.memory_space<vmem>>, %arg3: memref<2816x1024xbf16, #tpu.memory_space<vmem>>, %arg4: memref<1x1024xf32, #tpu.memory_space<vmem>>, %arg5: memref<1024x256xbf16, #tpu.memory_space<vmem>>, %arg6: memref<1x256xf32, #tpu.memory_space<vmem>>, %arg7: memref<256x128xf32, #tpu.memory_space<vmem>>, %arg8: memref<1x128xf32, #tpu.memory_space<vmem>>, %arg9: memref<8x128xf32, #tpu.memory_space<vmem>>, %arg10: memref<8x2816xf32, #tpu.memory_space<vmem>>) attributes {dimension_semantics = [], scalar_prefetch = 0 : i64, scratch_operands = 1 : i64, tpu.core_type = #tpu.core_type<tc>} {
    %c0 = arith.constant 0 : index
    %c0_0 = arith.constant 0 : index
    %0 = vector.load %arg0[%c0, %c0_0] : memref<176x512xf32, #tpu.memory_space<vmem>>, vector<176x512xf32>
    %c0_1 = arith.constant 0 : index
    %c0_2 = arith.constant 0 : index
    %1 = vector.load %arg1[%c0_1, %c0_2] : memref<512x128xf32, #tpu.memory_space<vmem>>, vector<512x128xf32>
    %cst = arith.constant dense<0.000000e+00> : vector<176x128xf32>
    %2 = tpu.matmul %0, %1, %cst {dimension_numbers = #tpu.dot_dimension_numbers<[1], [0], [0], [1], [0, 0, 1, 1], [], []>} : vector<176x512xf32>, vector<512x128xf32>, vector<176x128xf32> -> vector<176x128xf32>
    %c0_3 = arith.constant 0 : index
    %c0_4 = arith.constant 0 : index
    %3 = vector.load %arg2[%c0_3, %c0_4] : memref<176x128xf32, #tpu.memory_space<vmem>>, vector<176x128xf32>
    %4 = arith.addf %2, %3 : vector<176x128xf32>
    %cst_5 = arith.constant 0.000000e+00 : f32
    %5 = vector.broadcast %cst_5 : f32 to vector<176x128xf32>
    %6 = arith.maximumf %4, %5 : vector<176x128xf32>
    %7 = vector.extract_strided_slice %6 {offsets = [0, 0], sizes = [8, 128], strides = [1, 1]} : vector<176x128xf32> to vector<8x128xf32>
    %c0_6 = arith.constant 0 : index
    %c0_7 = arith.constant 0 : index
    %8 = vector.load %arg10[%c0_6, %c0_7] : memref<8x2816xf32, #tpu.memory_space<vmem>>, vector<8x128xf32>
    tpu.vector_store %arg10[%c0_6, %c0_7], %7 {strides = array<i32>} : memref<8x2816xf32, #tpu.memory_space<vmem>>, vector<8x128xf32>,
    %9 = vector.extract_strided_slice %6 {offsets = [8, 0], sizes = [8, 128], strides = [1, 1]} : vector<176x128xf32> to vector<8x128xf32>
    %c0_8 = arith.constant 0 : index
    %c128 = arith.constant 128 : index
    %10 = vector.load %arg10[%c0_8, %c128] : memref<8x2816xf32, #tpu.memory_space<vmem>>, vector<8x128xf32>
    tpu.vector_store %arg10[%c0_8, %c128], %9 {strides = array<i32>} : memref<8x2816xf32, #tpu.memory_space<vmem>>, vector<8x128xf32>,
    %11 = vector.extract_strided_slice %6 {offsets = [16, 0], sizes = [8, 128], strides = [1, 1]} : vector<176x128xf32> to vector<8x128xf32>
    %c0_9 = arith.constant 0 : index
    %c256 = arith.constant 256 : index
    %12 = vector.load %arg10[%c0_9, %c256] : memref<8x2816xf32, #tpu.memory_space<vmem>>, vector<8x128xf32>
    tpu.vector_store %arg10[%c0_9, %c256], %11 {strides = array<i32>} : memref<8x2816xf32, #tpu.memory_space<vmem>>, vector<8x128xf32>,
    %13 = vector.extract_strided_slice %6 {offsets = [24, 0], sizes = [8, 128], strides = [1, 1]} : vector<176x128xf32> to vector<8x128xf32>
    %c0_10 = arith.constant 0 : index
    %c384 = arith.constant 384 : index
    %14 = vector.load %arg10[%c0_10, %c384] : memref<8x2816xf32, #tpu.memory_space<vmem>>, vector<8x128xf32>
    tpu.vector_store %arg10[%c0_10, %c384], %13 {strides = array<i32>} : memref<8x2816xf32, #tpu.memory_space<vmem>>, vector<8x128xf32>,
    %15 = vector.extract_strided_slice %6 {offsets = [32, 0], sizes = [8, 128], strides = [1, 1]} : vector<176x128xf32> to vector<8x128xf32>
    %c0_11 = arith.constant 0 : index
    %c512 = arith.constant 512 : index
    %16 = vector.load %arg10[%c0_11, %c512] : memref<8x2816xf32, #tpu.memory_space<vmem>>, vector<8x128xf32>
    tpu.vector_store %arg10[%c0_11, %c512], %15 {strides = array<i32>} : memref<8x2816xf32, #tpu.memory_space<vmem>>, vector<8x128xf32>,
    %17 = vector.extract_strided_slice %6 {offsets = [40, 0], sizes = [8, 128], strides = [1, 1]} : vector<176x128xf32> to vector<8x128xf32>
    %c0_12 = arith.constant 0 : index
    %c640 = arith.constant 640 : index
    %18 = vector.load %arg10[%c0_12, %c640] : memref<8x2816xf32, #tpu.memory_space<vmem>>, vector<8x128xf32>
    tpu.vector_store %arg10[%c0_12, %c640], %17 {strides = array<i32>} : memref<8x2816xf32, #tpu.memory_space<vmem>>, vector<8x128xf32>,
    %19 = vector.extract_strided_slice %6 {offsets = [48, 0], sizes = [8, 128], strides = [1, 1]} : vector<176x128xf32> to vector<8x128xf32>
    %c0_13 = arith.constant 0 : index
    %c768 = arith.constant 768 : index
    %20 = vector.load %arg10[%c0_13, %c768] : memref<8x2816xf32, #tpu.memory_space<vmem>>, vector<8x128xf32>
    tpu.vector_store %arg10[%c0_13, %c768], %19 {strides = array<i32>} : memref<8x2816xf32, #tpu.memory_space<vmem>>, vector<8x128xf32>,
    %21 = vector.extract_strided_slice %6 {offsets = [56, 0], sizes = [8, 128], strides = [1, 1]} : vector<176x128xf32> to vector<8x128xf32>
    %c0_14 = arith.constant 0 : index
    %c896 = arith.constant 896 : index
    %22 = vector.load %arg10[%c0_14, %c896] : memref<8x2816xf32, #tpu.memory_space<vmem>>, vector<8x128xf32>
    tpu.vector_store %arg10[%c0_14, %c896], %21 {strides = array<i32>} : memref<8x2816xf32, #tpu.memory_space<vmem>>, vector<8x128xf32>,
    %23 = vector.extract_strided_slice %6 {offsets = [64, 0], sizes = [8, 128], strides = [1, 1]} : vector<176x128xf32> to vector<8x128xf32>
    %c0_15 = arith.constant 0 : index
    %c1024 = arith.constant 1024 : index
    %24 = vector.load %arg10[%c0_15, %c1024] : memref<8x2816xf32, #tpu.memory_space<vmem>>, vector<8x128xf32>
    tpu.vector_store %arg10[%c0_15, %c1024], %23 {strides = array<i32>} : memref<8x2816xf32, #tpu.memory_space<vmem>>, vector<8x128xf32>,
    %25 = vector.extract_strided_slice %6 {offsets = [72, 0], sizes = [8, 128], strides = [1, 1]} : vector<176x128xf32> to vector<8x128xf32>
    %c0_16 = arith.constant 0 : index
    %c1152 = arith.constant 1152 : index
    %26 = vector.load %arg10[%c0_16, %c1152] : memref<8x2816xf32, #tpu.memory_space<vmem>>, vector<8x128xf32>
    tpu.vector_store %arg10[%c0_16, %c1152], %25 {strides = array<i32>} : memref<8x2816xf32, #tpu.memory_space<vmem>>, vector<8x128xf32>,
    %27 = vector.extract_strided_slice %6 {offsets = [80, 0], sizes = [8, 128], strides = [1, 1]} : vector<176x128xf32> to vector<8x128xf32>
    %c0_17 = arith.constant 0 : index
    %c1280 = arith.constant 1280 : index
    %28 = vector.load %arg10[%c0_17, %c1280] : memref<8x2816xf32, #tpu.memory_space<vmem>>, vector<8x128xf32>
    tpu.vector_store %arg10[%c0_17, %c1280], %27 {strides = array<i32>} : memref<8x2816xf32, #tpu.memory_space<vmem>>, vector<8x128xf32>,
    %29 = vector.extract_strided_slice %6 {offsets = [88, 0], sizes = [8, 128], strides = [1, 1]} : vector<176x128xf32> to vector<8x128xf32>
    %c0_18 = arith.constant 0 : index
    %c1408 = arith.constant 1408 : index
    %30 = vector.load %arg10[%c0_18, %c1408] : memref<8x2816xf32, #tpu.memory_space<vmem>>, vector<8x128xf32>
    tpu.vector_store %arg10[%c0_18, %c1408], %29 {strides = array<i32>} : memref<8x2816xf32, #tpu.memory_space<vmem>>, vector<8x128xf32>,
    %31 = vector.extract_strided_slice %6 {offsets = [96, 0], sizes = [8, 128], strides = [1, 1]} : vector<176x128xf32> to vector<8x128xf32>
    %c0_19 = arith.constant 0 : index
    %c1536 = arith.constant 1536 : index
    %32 = vector.load %arg10[%c0_19, %c1536] : memref<8x2816xf32, #tpu.memory_space<vmem>>, vector<8x128xf32>
    tpu.vector_store %arg10[%c0_19, %c1536], %31 {strides = array<i32>} : memref<8x2816xf32, #tpu.memory_space<vmem>>, vector<8x128xf32>,
    %33 = vector.extract_strided_slice %6 {offsets = [104, 0], sizes = [8, 128], strides = [1, 1]} : vector<176x128xf32> to vector<8x128xf32>
    %c0_20 = arith.constant 0 : index
    %c1664 = arith.constant 1664 : index
    %34 = vector.load %arg10[%c0_20, %c1664] : memref<8x2816xf32, #tpu.memory_space<vmem>>, vector<8x128xf32>
    tpu.vector_store %arg10[%c0_20, %c1664], %33 {strides = array<i32>} : memref<8x2816xf32, #tpu.memory_space<vmem>>, vector<8x128xf32>,
    %35 = vector.extract_strided_slice %6 {offsets = [112, 0], sizes = [8, 128], strides = [1, 1]} : vector<176x128xf32> to vector<8x128xf32>
    %c0_21 = arith.constant 0 : index
    %c1792 = arith.constant 1792 : index
    %36 = vector.load %arg10[%c0_21, %c1792] : memref<8x2816xf32, #tpu.memory_space<vmem>>, vector<8x128xf32>
    tpu.vector_store %arg10[%c0_21, %c1792], %35 {strides = array<i32>} : memref<8x2816xf32, #tpu.memory_space<vmem>>, vector<8x128xf32>,
    %37 = vector.extract_strided_slice %6 {offsets = [120, 0], sizes = [8, 128], strides = [1, 1]} : vector<176x128xf32> to vector<8x128xf32>
    %c0_22 = arith.constant 0 : index
    %c1920 = arith.constant 1920 : index
    %38 = vector.load %arg10[%c0_22, %c1920] : memref<8x2816xf32, #tpu.memory_space<vmem>>, vector<8x128xf32>
    tpu.vector_store %arg10[%c0_22, %c1920], %37 {strides = array<i32>} : memref<8x2816xf32, #tpu.memory_space<vmem>>, vector<8x128xf32>,
    %39 = vector.extract_strided_slice %6 {offsets = [128, 0], sizes = [8, 128], strides = [1, 1]} : vector<176x128xf32> to vector<8x128xf32>
    %c0_23 = arith.constant 0 : index
    %c2048 = arith.constant 2048 : index
    %40 = vector.load %arg10[%c0_23, %c2048] : memref<8x2816xf32, #tpu.memory_space<vmem>>, vector<8x128xf32>
    tpu.vector_store %arg10[%c0_23, %c2048], %39 {strides = array<i32>} : memref<8x2816xf32, #tpu.memory_space<vmem>>, vector<8x128xf32>,
    %41 = vector.extract_strided_slice %6 {offsets = [136, 0], sizes = [8, 128], strides = [1, 1]} : vector<176x128xf32> to vector<8x128xf32>
    %c0_24 = arith.constant 0 : index
    %c2176 = arith.constant 2176 : index
    %42 = vector.load %arg10[%c0_24, %c2176] : memref<8x2816xf32, #tpu.memory_space<vmem>>, vector<8x128xf32>
    tpu.vector_store %arg10[%c0_24, %c2176], %41 {strides = array<i32>} : memref<8x2816xf32, #tpu.memory_space<vmem>>, vector<8x128xf32>,
    %43 = vector.extract_strided_slice %6 {offsets = [144, 0], sizes = [8, 128], strides = [1, 1]} : vector<176x128xf32> to vector<8x128xf32>
    %c0_25 = arith.constant 0 : index
    %c2304 = arith.constant 2304 : index
    %44 = vector.load %arg10[%c0_25, %c2304] : memref<8x2816xf32, #tpu.memory_space<vmem>>, vector<8x128xf32>
    tpu.vector_store %arg10[%c0_25, %c2304], %43 {strides = array<i32>} : memref<8x2816xf32, #tpu.memory_space<vmem>>, vector<8x128xf32>,
    %45 = vector.extract_strided_slice %6 {offsets = [152, 0], sizes = [8, 128], strides = [1, 1]} : vector<176x128xf32> to vector<8x128xf32>
    %c0_26 = arith.constant 0 : index
    %c2432 = arith.constant 2432 : index
    %46 = vector.load %arg10[%c0_26, %c2432] : memref<8x2816xf32, #tpu.memory_space<vmem>>, vector<8x128xf32>
    tpu.vector_store %arg10[%c0_26, %c2432], %45 {strides = array<i32>} : memref<8x2816xf32, #tpu.memory_space<vmem>>, vector<8x128xf32>,
    %47 = vector.extract_strided_slice %6 {offsets = [160, 0], sizes = [8, 128], strides = [1, 1]} : vector<176x128xf32> to vector<8x128xf32>
    %c0_27 = arith.constant 0 : index
    %c2560 = arith.constant 2560 : index
    %48 = vector.load %arg10[%c0_27, %c2560] : memref<8x2816xf32, #tpu.memory_space<vmem>>, vector<8x128xf32>
    tpu.vector_store %arg10[%c0_27, %c2560], %47 {strides = array<i32>} : memref<8x2816xf32, #tpu.memory_space<vmem>>, vector<8x128xf32>,
    %49 = vector.extract_strided_slice %6 {offsets = [168, 0], sizes = [8, 128], strides = [1, 1]} : vector<176x128xf32> to vector<8x128xf32>
    %c0_28 = arith.constant 0 : index
    %c2688 = arith.constant 2688 : index
    %50 = vector.load %arg10[%c0_28, %c2688] : memref<8x2816xf32, #tpu.memory_space<vmem>>, vector<8x128xf32>
    tpu.vector_store %arg10[%c0_28, %c2688], %49 {strides = array<i32>} : memref<8x2816xf32, #tpu.memory_space<vmem>>, vector<8x128xf32>,
    %c0_29 = arith.constant 0 : index
    %c0_30 = arith.constant 0 : index
    %51 = vector.load %arg10[%c0_29, %c0_30] : memref<8x2816xf32, #tpu.memory_space<vmem>>, vector<8x2816xf32>
    %52 = arith.truncf %51 : vector<8x2816xf32> to vector<8x2816xbf16>
    %c0_31 = arith.constant 0 : index
    %c0_32 = arith.constant 0 : index
    %53 = vector.load %arg3[%c0_31, %c0_32] : memref<2816x1024xbf16, #tpu.memory_space<vmem>>, vector<2816x1024xbf16>
    %cst_33 = arith.constant dense<0.000000e+00> : vector<8x1024xf32>
    %54 = tpu.matmul %52, %53, %cst_33 {dimension_numbers = #tpu.dot_dimension_numbers<[1], [0], [0], [1], [0, 0, 1, 1], [], []>} : vector<8x2816xbf16>, vector<2816x1024xbf16>, vector<8x1024xf32> -> vector<8x1024xf32>
    %c0_34 = arith.constant 0 : index
    %c0_35 = arith.constant 0 : index
    %55 = vector.load %arg4[%c0_34, %c0_35] : memref<1x1024xf32, #tpu.memory_space<vmem>>, vector<1x1024xf32>
    %56 = vector.broadcast %55 : vector<1x1024xf32> to vector<8x1024xf32>
    %57 = arith.addf %54, %56 : vector<8x1024xf32>
    %cst_36 = arith.constant 0.000000e+00 : f32
    %58 = vector.broadcast %cst_36 : f32 to vector<8x1024xf32>
    %59 = arith.maximumf %57, %58 : vector<8x1024xf32>
    %60 = arith.truncf %59 : vector<8x1024xf32> to vector<8x1024xbf16>
    %c0_37 = arith.constant 0 : index
    %c0_38 = arith.constant 0 : index
    %61 = vector.load %arg5[%c0_37, %c0_38] : memref<1024x256xbf16, #tpu.memory_space<vmem>>, vector<1024x256xbf16>
    %cst_39 = arith.constant dense<0.000000e+00> : vector<8x256xf32>
    %62 = tpu.matmul %60, %61, %cst_39 {dimension_numbers = #tpu.dot_dimension_numbers<[1], [0], [0], [1], [0, 0, 1, 1], [], []>} : vector<8x1024xbf16>, vector<1024x256xbf16>, vector<8x256xf32> -> vector<8x256xf32>
    %c0_40 = arith.constant 0 : index
    %c0_41 = arith.constant 0 : index
    %63 = vector.load %arg6[%c0_40, %c0_41] : memref<1x256xf32, #tpu.memory_space<vmem>>, vector<1x256xf32>
    %64 = vector.broadcast %63 : vector<1x256xf32> to vector<8x256xf32>
    %65 = arith.addf %62, %64 : vector<8x256xf32>
    %cst_42 = arith.constant 0.000000e+00 : f32
    %66 = vector.broadcast %cst_42 : f32 to vector<8x256xf32>
    %67 = arith.maximumf %65, %66 : vector<8x256xf32>
    %c0_43 = arith.constant 0 : index
    %c0_44 = arith.constant 0 : index
    %68 = vector.load %arg7[%c0_43, %c0_44] : memref<256x128xf32, #tpu.memory_space<vmem>>, vector<256x128xf32>
    %cst_45 = arith.constant dense<0.000000e+00> : vector<8x128xf32>
    %69 = tpu.matmul %67, %68, %cst_45 {dimension_numbers = #tpu.dot_dimension_numbers<[1], [0], [0], [1], [0, 0, 1, 1], [], []>} : vector<8x256xf32>, vector<256x128xf32>, vector<8x128xf32> -> vector<8x128xf32>
    %c0_46 = arith.constant 0 : index
    %c0_47 = arith.constant 0 : index
    %70 = vector.load %arg8[%c0_46, %c0_47] : memref<1x128xf32, #tpu.memory_space<vmem>>, vector<1x128xf32>
    %71 = vector.broadcast %70 : vector<1x128xf32> to vector<8x128xf32>
    %72 = arith.addf %69, %71 : vector<8x128xf32>
    %cst_48 = arith.constant 0.000000e+00 : f32
    %73 = vector.broadcast %cst_48 : f32 to vector<8x128xf32>
    %74 = arith.maximumf %72, %73 : vector<8x128xf32>
    %75 = tpu.iota {dimensions = array<i32: 1>} : vector<8x128xi32>
    %c4_i32 = arith.constant 4 : i32
    %76 = vector.broadcast %c4_i32 : i32 to vector<8x128xi32>
    %77 = arith.cmpi slt, %75, %76 : vector<8x128xi32>
    %cst_49 = arith.constant 0xFF800000 : f32
    %78 = vector.broadcast %cst_49 : f32 to vector<8x128xf32>
    %79 = arith.select %77, %74, %78 : vector<8x128xi1>, vector<8x128xf32>
    %cst_50 = arith.constant dense<0xFF800000> : vector<8xf32>
    %80 = vector.multi_reduction <maximumf>, %79, %cst_50 [1] : vector<8x128xf32> to vector<8xf32>
    %81 = vector.shape_cast %80 : vector<8xf32> to vector<8x1xf32>
    %82 = vector.broadcast %81 : vector<8x1xf32> to vector<8x128xf32>
    %83 = arith.subf %79, %82 : vector<8x128xf32>
    %84 = math.exp %83 : vector<8x128xf32>
    %cst_51 = arith.constant dense<0.000000e+00> : vector<8xf32>
    %85 = vector.multi_reduction <add>, %84, %cst_51 [1] : vector<8x128xf32> to vector<8xf32>
    %86 = vector.shape_cast %85 : vector<8xf32> to vector<8x1xf32>
    %87 = vector.broadcast %86 : vector<8x1xf32> to vector<8x128xf32>
    %88 = arith.divf %84, %87 : vector<8x128xf32>
    %c0_52 = arith.constant 0 : index
    %c0_53 = arith.constant 0 : index
    %89 = vector.load %arg9[%c0_52, %c0_53] : memref<8x128xf32, #tpu.memory_space<vmem>>, vector<8x128xf32>
    tpu.vector_store %arg9[%c0_52, %c0_53], %88 {strides = array<i32>} : memref<8x128xf32, #tpu.memory_space<vmem>>, vector<8x128xf32>,
    return
  }
}

</mosaic_0001>

<bundles_post_ra>
// kernel: simplenet_forward.1
= control target key start
LH: loop header
LB: loop body
LE: loop exit
PB: predicated region body
PF: predicated region fallthrough
CT: control target
= control target key end

     0   :  { %14 = vsyncpa [#allocation4], 0  ;;  %s15206_s0 = inlined_call_operand.vmem [shape: f32[176,512], index: 0, kind: input, shape index: {}]   ;;  %s15207_s1 = inlined_call_operand.hbm [shape: f32[512,128], index: 1, kind: input, shape index: {}]   ;;  %s15208_s2 = inlined_call_operand.hbm [shape: f32[176,128], index: 2, kind: input, shape index: {}]   ;;  %s15209_s3 = inlined_call_operand.hbm [shape: bf16[2816,1024], index: 3, kind: input, shape index: {}]   ;;  %s15210_s4 = inlined_call_operand.hbm [shape: f32[1,1024], index: 4, kind: input, shape index: {}]   ;;  %s15211_s5 = inlined_call_operand.hbm [shape: bf16[1024,256], index: 5, kind: input, shape index: {}]   ;;  %s15212_s6 = inlined_call_operand.hbm [shape: f32[1,256], index: 6, kind: input, shape index: {}]   ;;  %s15213_s7 = inlined_call_operand.hbm [shape: f32[256,128], index: 7, kind: input, shape index: {}]   ;;  %s15214_s8 = inlined_call_operand.hbm [shape: f32[1,128], index: 8, kind: input, shape index: {}]   ;;  %s15215_s9 = inlined_call_operand.vmem [shape: f32[8,128], index: 9, kind: output, shape index: {}]  }
   0x1   :  { %15 = vsyncpa [#allocation6], 0 }
   0x2   :  { %16 = vsyncpa [#allocation9], 0 }
   0x3   :  { %17 = vsyncpa [#allocation12], 0 }
   0x4   :  { %18 = vsyncpa [#allocation15], 0  ;;  %s14479_s30 = smov [#allocation5]   ;;  %s14480_s11 = smov [#allocation8]  }
   0x5   :  { %s38_s10 = sshll.u32 %s14479_s30, 4  ;;  %s63_s12 = sshll.u32 %s14480_s11, 4  ;;  %s39_s10 = int_to_ptr.vmem [resolvable:$true] %s38_s10  ;;  %s64_s12 = int_to_ptr.vmem [resolvable:$true] %s63_s12 }
   0x6   :  { %s14293_s15 = scalar_lea.hbm %s15208_s2, 2816 }
   0x7   :  { %p14294_p0 = scmp.ne.s32.totalorder %s15208_s2, %s14293_s15  ;;  %p14297_p1 = scmp.lt.u32.totalorder %s14293_s15, %s15208_s2 }
   0x9   :  { %p14299_p2 = pnand %p14297_p1, %p14294_p0 }
   0xb   :  { %14302 = shalt.err (!%p14299_p2)
}
   0xc   :  { %s14303_s20 = scalar_lea.vmem %s39_s10, 2816  ;;  %p14308_p4 = scmp.lt.s32.totalorder %s39_s10, %s39_s10 }
   0xd   :  { %p14304_p3 = scmp.ne.s32.totalorder %s39_s10, %s14303_s20  ;;  %p14309_p5 = scmp.lt.s32.totalorder %s14303_s20, %s14303_s20 }
   0xf   :  { %p14310_p6 = por %p14309_p5, %p14308_p4 }
  0x11   :  { %p14311_p7 = pnand %p14310_p6, %p14304_p3 }
  0x13   :  { %14314 = shalt.err (!%p14311_p7)
}
  0x14   :  { %s14481_s21 = smov 128   ;;  %s14482_s22 = smov 8  }
  0x15   :  { %44 = dma.hbm_to_vmem [thread:$0]  %s15208_s2, 2816, %s39_s10, [#allocation6], %s14481_s21, %s14481_s21, %s14482_s22  }
  0x16   :  { %s14315_s27 = scalar_lea.hbm %s15210_s4, 128 }
  0x17   :  { %p14316_p8 = scmp.ne.s32.totalorder %s15210_s4, %s14315_s27  ;;  %p14319_p9 = scmp.lt.u32.totalorder %s14315_s27, %s15210_s4 }
  0x19   :  { %p14321_p10 = pnand %p14319_p9, %p14316_p8 }
  0x1b   :  { %14324 = shalt.err (!%p14321_p10)
}
  0x1c   :  { %s14325_s13 = scalar_lea.vmem %s64_s12, 128  ;;  %p14330_p12 = scmp.lt.s32.totalorder %s64_s12, %s64_s12 }
  0x1d   :  { %p14326_p11 = scmp.ne.s32.totalorder %s64_s12, %s14325_s13  ;;  %p14331_p13 = scmp.lt.s32.totalorder %s14325_s13, %s14325_s13 }
  0x1f   :  { %p14332_p0 = por %p14331_p13, %p14330_p12 }
  0x21   :  { %p14333_p1 = pnand %p14332_p0, %p14326_p11 }
  0x23   :  { %14336 = shalt.err (!%p14333_p1)
}
  0x24   :  { %66 = dma.hbm_to_vmem [thread:$0]  %s15210_s4, 128, %s64_s12, [#allocation9]  }
  0x25   :  { %s14483_s14 = smov [#allocation11]   ;;  %s14484_s16 = smov [#allocation3]  }
  0x26   :  { %s85_s15 = sshll.u32 %s14483_s14, 4  ;;  %s26_s17 = sshll.u32 %s14484_s16, 4  ;;  %s86_s15 = int_to_ptr.vmem [resolvable:$true] %s85_s15  ;;  %s14569_s17 = int_to_ptr.vmem [resolvable:$true] %s26_s17 }
  0x27   :  { %s14337_s20 = scalar_lea.hbm %s15212_s6, 32 }
  0x28   :  { %p14338_p2 = scmp.ne.s32.totalorder %s15212_s6, %s14337_s20  ;;  %p14341_p3 = scmp.lt.u32.totalorder %s14337_s20, %s15212_s6 }
  0x2a   :  { %p14343_p4 = pnand %p14341_p3, %p14338_p2 }
  0x2c   :  { %14346 = shalt.err (!%p14343_p4)
}
  0x2d   :  { %s14347_s4 = scalar_lea.vmem %s86_s15, 32  ;;  %p14352_p6 = scmp.lt.s32.totalorder %s86_s15, %s86_s15 }
  0x2e   :  { %p14348_p5 = scmp.ne.s32.totalorder %s86_s15, %s14347_s4  ;;  %p14353_p7 = scmp.lt.s32.totalorder %s14347_s4, %s14347_s4 }
  0x30   :  { %p14354_p8 = por %p14353_p7, %p14352_p6 }
  0x32   :  { %p14355_p9 = pnand %p14354_p8, %p14348_p5 }
  0x34   :  { %14358 = shalt.err (!%p14355_p9)
}
  0x35   :  { %88 = dma.hbm_to_vmem [thread:$0]  %s15212_s6, 32, %s86_s15, [#allocation12]  }
  0x36   :  { %s14359_s30 = scalar_lea.hbm %s15207_s1, 8192 }
  0x37   :  { %p14360_p10 = scmp.ne.s32.totalorder %s15207_s1, %s14359_s30  ;;  %p14363_p11 = scmp.lt.u32.totalorder %s14359_s30, %s15207_s1 }
  0x39   :  { %p14365_p12 = pnand %p14363_p11, %p14360_p10 }
  0x3b   :  { %14368 = shalt.err (!%p14365_p12)
}
  0x3c   :  { %s14369_s14 = scalar_lea.vmem %s14569_s17, 8192  ;;  %p14374_p0 = scmp.lt.s32.totalorder %s14569_s17, %s14569_s17 }
  0x3d   :  { %p14370_p13 = scmp.ne.s32.totalorder %s14569_s17, %s14369_s14  ;;  %p14375_p1 = scmp.lt.s32.totalorder %s14369_s14, %s14369_s14 }
  0x3f   :  { %p14376_p2 = por %p14375_p1, %p14374_p0 }
  0x41   :  { %p14377_p3 = pnand %p14376_p2, %p14370_p13 }
  0x43   :  { %14380 = shalt.err (!%p14377_p3)
}
  0x44   :  { %32 = dma.hbm_to_vmem [thread:$0]  %s15207_s1, 8192, %s14569_s17, [#allocation4], %s14481_s21, %s14481_s21, %s14482_s22  }
  0x45   :  { %s14485_s16 = smov [#allocation7]   ;;  %s14381_s23 = scalar_lea.hbm %s15209_s3, 180224 }
  0x46   :  { %s50_s18 = sshll.u32 %s14485_s16, 4  ;;  %p14382_p4 = scmp.ne.s32.totalorder %s15209_s3, %s14381_s23  ;;  %s51_s18 = int_to_ptr.vmem [resolvable:$true] %s50_s18 }
  0x47   :  { %p14385_p5 = scmp.lt.u32.totalorder %s14381_s23, %s15209_s3 }
  0x49   :  { %p14387_p6 = pnand %p14385_p5, %p14382_p4 }
  0x4b   :  { %14390 = shalt.err (!%p14387_p6)
}
  0x4c   :  { %s14391_s12 = scalar_lea.vmem %s51_s18, 180224  ;;  %p14396_p8 = scmp.lt.s32.totalorder %s51_s18, %s51_s18 }
  0x4d   :  { %p14392_p7 = scmp.ne.s32.totalorder %s51_s18, %s14391_s12  ;;  %p14397_p9 = scmp.lt.s32.totalorder %s14391_s12, %s14391_s12 }
  0x4f   :  { %p14398_p10 = por %p14397_p9, %p14396_p8 }
  0x51   :  { %p14399_p11 = pnand %p14398_p10, %p14392_p7 }
  0x53   :  { %14402 = shalt.err (!%p14399_p11)
}
  0x54   :  { %s14486_s1 = smov 512   ;;  %s14487_s17 = smov 32  }
  0x55   :  { %56 = dma.hbm_to_vmem [thread:$0]  %s15209_s3, 180224, %s51_s18, [#allocation6], %s14486_s1, %s14486_s1, %s14487_s17  }
  0x56   :  { %s14488_s29 = smov [#allocation10]   ;;  %s14489_s11 = smov [#allocation13]  }
  0x57   :  { %s72_s30 = sshll.u32 %s14488_s29, 4  ;;  %s94_s13 = sshll.u32 %s14489_s11, 4  ;;  %s73_s30 = int_to_ptr.vmem [resolvable:$true] %s72_s30  ;;  %s95_s13 = int_to_ptr.vmem [resolvable:$true] %s94_s13 }
  0x58   :  { %s14403_s14 = scalar_lea.hbm %s15211_s5, 16384 }
  0x59   :  { %p14404_p12 = scmp.ne.s32.totalorder %s15211_s5, %s14403_s14  ;;  %p14407_p13 = scmp.lt.u32.totalorder %s14403_s14, %s15211_s5 }
  0x5b   :  { %p14409_p0 = pnand %p14407_p13, %p14404_p12 }
  0x5d   :  { %14412 = shalt.err (!%p14409_p0)
}
  0x5e   :  { %s14413_s3 = scalar_lea.vmem %s73_s30, 16384  ;;  %p14418_p2 = scmp.lt.s32.totalorder %s73_s30, %s73_s30 }
  0x5f   :  { %p14414_p1 = scmp.ne.s32.totalorder %s73_s30, %s14413_s3  ;;  %p14419_p3 = scmp.lt.s32.totalorder %s14413_s3, %s14413_s3 }
  0x61   :  { %p14420_p4 = por %p14419_p3, %p14418_p2 }
  0x63   :  { %p14421_p5 = pnand %p14420_p4, %p14414_p1 }
  0x65   :  { %14424 = shalt.err (!%p14421_p5)
}
  0x66   :  { %78 = dma.hbm_to_vmem [thread:$0]  %s15211_s5, 16384, %s73_s30, [#allocation9], %s14481_s21, %s14481_s21, %s14482_s22  }
  0x67   :  { %s14425_s25 = scalar_lea.hbm %s15213_s7, 4096 }
  0x68   :  { %p14426_p6 = scmp.ne.s32.totalorder %s15213_s7, %s14425_s25  ;;  %p14429_p7 = scmp.lt.u32.totalorder %s14425_s25, %s15213_s7 }
  0x6a   :  { %p14431_p8 = pnand %p14429_p7, %p14426_p6 }
  0x6c   :  { %14434 = shalt.err (!%p14431_p8)
}
  0x6d   :  { %s14435_s17 = scalar_lea.vmem %s95_s13, 4096  ;;  %p14440_p10 = scmp.lt.s32.totalorder %s95_s13, %s95_s13 }
  0x6e   :  { %p14436_p9 = scmp.ne.s32.totalorder %s95_s13, %s14435_s17  ;;  %p14441_p11 = scmp.lt.s32.totalorder %s14435_s17, %s14435_s17 }
  0x70   :  { %p14442_p12 = por %p14441_p11, %p14440_p10 }
  0x72   :  { %p14443_p13 = pnand %p14442_p12, %p14436_p9 }
  0x74   :  { %14446 = shalt.err (!%p14443_p13)
}
  0x75   :  { %100 = dma.hbm_to_vmem [thread:$0]  %s15213_s7, 4096, %s95_s13, [#allocation12], %s14481_s21, %s14481_s21, %s14482_s22  }
  0x76   :  { %s14490_s28 = smov [#allocation14]   ;;  %s14447_s2 = scalar_lea.hbm %s15214_s8, 16 }
  0x77   :  { %s107_s29 = sshll.u32 %s14490_s28, 4  ;;  %p14448_p0 = scmp.ne.s32.totalorder %s15214_s8, %s14447_s2  ;;  %s108_s29 = int_to_ptr.vmem [resolvable:$true] %s107_s29 }
  0x78   :  { %p14451_p1 = scmp.lt.u32.totalorder %s14447_s2, %s15214_s8 }
  0x7a   :  { %p14453_p2 = pnand %p14451_p1, %p14448_p0 }
  0x7c   :  { %14456 = shalt.err (!%p14453_p2)
}
  0x7d   :  { %s14457_s16 = scalar_lea.vmem %s108_s29, 16  ;;  %s14461_s7 = scalar_lea.vmem %s108_s29, 32 }
  0x7e   :  { %p14458_p3 = scmp.ne.s32.totalorder %s108_s29, %s14457_s16  ;;  %p14462_p4 = scmp.lt.s32.totalorder %s108_s29, %s108_s29 }
  0x7f   :  { %p14463_p5 = scmp.lt.s32.totalorder %s14461_s7, %s14457_s16 }
  0x81   :  { %p14464_p6 = por %p14463_p5, %p14462_p4 }
  0x83   :  { %p14465_p7 = pnand %p14464_p6, %p14458_p3 }
  0x85   :  { %14468 = shalt.err (!%p14465_p7)
}
  0x86   :  { %110 = dma.hbm_to_vmem [thread:$0]  %s15214_s8, 16, %s108_s29, [#allocation15]  }
  0x87   :  { %14469 = dma.done.wait [#allocation4], 8192  }
  0x88   :  { %14470 = vsyncadd [#allocation4], 4294959104 }
  0x89   :  { %14471 = dma.done.wait [#allocation6], 183040  }
  0x8a   :  { %14472 = vsyncadd [#allocation6], 4294784256 }
  0x8b   :  { %14473 = dma.done.wait [#allocation9], 16512  }
  0x8c   :  { %14474 = vsyncadd [#allocation9], 4294950784 }
  0x8d   :  { %14475 = dma.done.wait [#allocation12], 4128  }
  0x8e   :  { %14476 = vsyncadd [#allocation12], 4294963168 }
  0x8f   :  { %14477 = dma.done.wait [#allocation15], 16  }
  0x90   :  { %14478 = vsyncadd [#allocation15], 4294967280  ;;  %v14491_v0 = vmov 0.0|0.0   ;;  %v223_v1 = vld [vmem:[#allocation3] sm:$0xff]  ;;  %v224_v2 = vld [vmem:[#allocation3 + $0x8] sm:$0xff] }
  0x91   :  { %13708 = vmatprep.subr.bf16.mxu0 %v14491_v0  ;;  %v225_v3 = vld [vmem:[#allocation3 + $0x10] sm:$0xff]  ;;  %v13709_v4 = vpack.c.bf16 %v224_v2, %v223_v1  ;;  %v226_v5 = vld [vmem:[#allocation3 + $0x18] sm:$0xff]  ;;  %v227_v7 = vld [vmem:[#allocation3 + $0x20] sm:$0xff] }
  0x92   :  { %v13712_v6 = vpack.c.bf16 %v226_v5, %v225_v3  ;;  %v228_v8 = vld [vmem:[#allocation3 + $0x28] sm:$0xff]  ;;  %v229_v10 = vld [vmem:[#allocation3 + $0x30] sm:$0xff]  ;;  %v230_v11 = vld [vmem:[#allocation3 + $0x38] sm:$0xff] }
  0x93   :  { %13710 = vmatpush1.bf16.msra.mxu0 %v13709_v4  ;;  %v13715_v9 = vpack.c.bf16 %v228_v8, %v227_v7  ;;  %v136_v12 = vld [vmem:[%s15206_s0 + $0x8] sm:$0xff]  ;;  %v13718_v13 = vpack.c.bf16 %v230_v11, %v229_v10  ;;  %v231_v14 = vld [vmem:[#allocation3 + $0x40] sm:$0xff]  ;;  %v233_v17 = vld [vmem:[#allocation3 + $0x50] sm:$0xff] }
  0x94   :  { %13711 = vmatprep.subr.bf16.mxu0 %v14491_v0  ;;  %373 = vmatprep.mubr.f32.mxu0 %v136_v12  ;;  %v232_v15 = vld [vmem:[#allocation3 + $0x48] sm:$0xff]  ;;  %v234_v18 = vld [vmem:[#allocation3 + $0x58] sm:$0xff]  ;;  %v235_v20 = vld [vmem:[#allocation3 + $0x60] sm:$0xff] }
  0x95   :  { %v13721_v16 = vpack.c.bf16 %v232_v15, %v231_v14  ;;  %v13724_v19 = vpack.c.bf16 %v234_v18, %v233_v17  ;;  %v236_v21 = vld [vmem:[#allocation3 + $0x68] sm:$0xff]  ;;  %v237_v23 = vld [vmem:[#allocation3 + $0x70] sm:$0xff]  ;;  %v238_v24 = vld [vmem:[#allocation3 + $0x78] sm:$0xff] }
  0x96   :  { %v13727_v22 = vpack.c.bf16 %v236_v21, %v235_v20  ;;  %v13730_v25 = vpack.c.bf16 %v238_v24, %v237_v23  ;;  %v239_v26 = vld [vmem:[#allocation3 + $0x80] sm:$0xff]  ;;  %v240_v27 = vld [vmem:[#allocation3 + $0x88] sm:$0xff]  ;;  %v241_v29 = vld [vmem:[#allocation3 + $0x90] sm:$0xff] }
  0x97   :  { %13713 = vmatpush1.bf16.msra.mxu0 %v13712_v6  ;;  %v13733_v28 = vpack.c.bf16 %v240_v27, %v239_v26  ;;  %v242_v30 = vld [vmem:[#allocation3 + $0x98] sm:$0xff]  ;;  %v243_v32 = vld [vmem:[#allocation3 + $0xa0] sm:$0xff]  ;;  %v244_v33 = vld [vmem:[#allocation3 + $0xa8] sm:$0xff] }
  0x98   :  { %13714 = vmatprep.subr.bf16.mxu0 %v14491_v0  ;;  %v13736_v31 = vpack.c.bf16 %v242_v30, %v241_v29  ;;  %v245_v34 = vld [vmem:[#allocation3 + $0xb0] sm:$0xff]  ;;  %v13739_v35 = vpack.c.bf16 %v244_v33, %v243_v32  ;;  %v246_v36 = vld [vmem:[#allocation3 + $0xb8] sm:$0xff]  ;;  %v247_v37 = vld [vmem:[#allocation3 + $0xc0] sm:$0xff] }
  0x99   :  { %v13742_v38 = vpack.c.bf16 %v246_v36, %v245_v34  ;;  %v248_v39 = vld [vmem:[#allocation3 + $0xc8] sm:$0xff]  ;;  %v249_v40 = vld [vmem:[#allocation3 + $0xd0] sm:$0xff]  ;;  %v250_v42 = vld [vmem:[#allocation3 + $0xd8] sm:$0xff] }
  0x9a   :  { %v13745_v41 = vpack.c.bf16 %v248_v39, %v247_v37  ;;  %v251_v43 = vld [vmem:[#allocation3 + $0xe0] sm:$0xff]  ;;  %v13748_v44 = vpack.c.bf16 %v250_v42, %v249_v40  ;;  %v252_v45 = vld [vmem:[#allocation3 + $0xe8] sm:$0xff]  ;;  %v253_v46 = vld [vmem:[#allocation3 + $0xf0] sm:$0xff] }
  0x9b   :  { %13716 = vmatpush1.bf16.msra.mxu0 %v13715_v9  ;;  %v13751_v47 = vpack.c.bf16 %v252_v45, %v251_v43  ;;  %v254_v48 = vld [vmem:[#allocation3 + $0xf8] sm:$0xff]  ;;  %v255_v49 = vld [vmem:[#allocation3 + $0x100] sm:$0xff]  ;;  %v256_v51 = vld [vmem:[#allocation3 + $0x108] sm:$0xff] }
  0x9c   :  { %13717 = vmatprep.subr.bf16.mxu0 %v14491_v0  ;;  %v13754_v50 = vpack.c.bf16 %v254_v48, %v253_v46  ;;  %v135_v52 = vld [vmem:[%s15206_s0] sm:$0xff]  ;;  %v140_v53 = vld [vmem:[%s15206_s0 + $0x28] sm:$0xff]  ;;  %v257_v54 = vld [vmem:[#allocation3 + $0x110] sm:$0xff]  ;;  %v13757_v55 = vpack.c.bf16 %v256_v51, %v255_v49 }
  0x9d   :  { %v258_v56 = vld [vmem:[#allocation3 + $0x118] sm:$0xff]  ;;  %v139_v57 = vld [vmem:[%s15206_s0 + $0x20] sm:$0xff]  ;;  %v144_v58 = vld [vmem:[%s15206_s0 + $0x48] sm:$0xff] }
  0x9e   :  { %v259_v59 = vld [vmem:[#allocation3 + $0x120] sm:$0xff]  ;;  %v13760_v60 = vpack.c.bf16 %v258_v56, %v257_v54  ;;  %v260_v61 = vld [vmem:[#allocation3 + $0x128] sm:$0xff]  ;;  %v261_v1 = vld [vmem:[#allocation3 + $0x130] sm:$0xff] }
  0x9f   :  { %13719 = vmatpush1.bf16.msra.mxu0 %v13718_v13  ;;  %v143_v62 = vld [vmem:[%s15206_s0 + $0x40] sm:$0xff]  ;;  %v148_v63 = vld [vmem:[%s15206_s0 + $0x68] sm:$0xff]  ;;  %v13763_v2 = vpack.c.bf16 %v260_v61, %v259_v59  ;;  %v262_v3 = vld [vmem:[#allocation3 + $0x138] sm:$0xff] }
  0xa0   :  { %13720 = vmatprep.subr.bf16.mxu0 %v14491_v0  ;;  %v147_v4 = vld [vmem:[%s15206_s0 + $0x60] sm:$0xff]  ;;  %v152_v5 = vld [vmem:[%s15206_s0 + $0x88] sm:$0xff]  ;;  %v13766_v7 = vpack.c.bf16 %v262_v3, %v261_v1  ;;  %v265_v11 = vld [vmem:[#allocation3 + $0x150] sm:$0xff] }
  0xa1   :  { %v263_v6 = vld [vmem:[#allocation3 + $0x140] sm:$0xff]  ;;  %v264_v8 = vld [vmem:[#allocation3 + $0x148] sm:$0xff]  ;;  %v266_v13 = vld [vmem:[#allocation3 + $0x158] sm:$0xff] }
  0xa2   :  { %v151_v9 = vld [vmem:[%s15206_s0 + $0x80] sm:$0xff]  ;;  %v156_v10 = vld [vmem:[%s15206_s0 + $0xa8] sm:$0xff]  ;;  %v13769_v12 = vpack.c.bf16 %v264_v8, %v263_v6  ;;  %v13772_v17 = vpack.c.bf16 %v266_v13, %v265_v11  ;;  %v269_v21 = vld [vmem:[#allocation3 + $0x170] sm:$0xff] }
  0xa3   :  { %13722 = vmatpush1.bf16.msra.mxu0 %v13721_v16  ;;  %v155_v14 = vld [vmem:[%s15206_s0 + $0xa0] sm:$0xff]  ;;  %v160_v15 = vld [vmem:[%s15206_s0 + $0xc8] sm:$0xff]  ;;  %v270_v23 = vld [vmem:[#allocation3 + $0x178] sm:$0xff] }
  0xa4   :  { %13723 = vmatprep.subr.bf16.mxu0 %v14491_v0  ;;  %v267_v16 = vld [vmem:[#allocation3 + $0x160] sm:$0xff]  ;;  %v268_v18 = vld [vmem:[#allocation3 + $0x168] sm:$0xff]  ;;  %v273_v32 = vld [vmem:[#allocation3 + $0x190] sm:$0xff] }
  0xa5   :  { %v164_v20 = vld [vmem:[%s15206_s0 + $0xe8] sm:$0xff]  ;;  %v163_v24 = vld [vmem:[%s15206_s0 + $0xe0] sm:$0xff]  ;;  %v274_v33 = vld [vmem:[#allocation3 + $0x198] sm:$0xff] }
  0xa6   :  { %v168_v26 = vld [vmem:[%s15206_s0 + $0x108] sm:$0xff]  ;;  %v271_v27 = vld [vmem:[#allocation3 + $0x180] sm:$0xff]  ;;  %v277_v42 = vld [vmem:[#allocation3 + $0x1b0] sm:$0xff] }
  0xa7   :  { %13725 = vmatpush1.bf16.msra.mxu0 %v13724_v19  ;;  %v159_v19 = vld [vmem:[%s15206_s0 + $0xc0] sm:$0xff]  ;;  %v176_v36 = vld [vmem:[%s15206_s0 + $0x148] sm:$0xff]  ;;  %v278_v43 = vld [vmem:[#allocation3 + $0x1b8] sm:$0xff] }
  0xa8   :  { %13726 = vmatprep.subr.bf16.mxu0 %v14491_v0  ;;  %v167_v29 = vld [vmem:[%s15206_s0 + $0x100] sm:$0xff]  ;;  %v13790_v45 = vpack.c.bf16 %v278_v43, %v277_v42  ;;  %v184_v46 = vld [vmem:[%s15206_s0 + $0x188] sm:$0xff]  ;;  %v747_v49 = vld [vmem:[#allocation7] sm:$0xff] }
  0xa9   :  { %v171_v34 = vld [vmem:[%s15206_s0 + $0x120] sm:$0xff]  ;;  %v280_v48 = vld [vmem:[#allocation3 + $0x1c8] sm:$0xff]  ;;  %v759_v56 = vld [vmem:[#allocation7 + $0x60] sm:$0xff] }
  0xaa   :  { %v275_v37 = vld [vmem:[#allocation3 + $0x1a0] sm:$0xff]  ;;  %v282_v59 = vld [vmem:[#allocation3 + $0x1d8] sm:$0xff]  ;;  %v763_v61 = vld [vmem:[#allocation7 + $0x80] sm:$0xff] }
  0xab   :  { %13728 = vmatpush1.bf16.msra.mxu0 %v13727_v22  ;;  %v13775_v22 = vpack.c.bf16 %v268_v18, %v267_v16  ;;  %v175_v39 = vld [vmem:[%s15206_s0 + $0x140] sm:$0xff]  ;;  %v192_v3 = vld [vmem:[%s15206_s0 + $0x1c8] sm:$0xff]  ;;  %v775_v8 = vld [vmem:[#allocation7 + $0xe0] sm:$0xff] }
  0xac   :  { %13729 = vmatprep.subr.bf16.mxu0 %v14491_v0  ;;  %v183_v51 = vld [vmem:[%s15206_s0 + $0x180] sm:$0xff]  ;;  %v196_v11 = vld [vmem:[%s15206_s0 + $0x1e8] sm:$0xff]  ;;  %v285_v13 = vld [vmem:[#allocation3 + $0x1f0] sm:$0xff] }
  0xad   :  { %v187_v1 = vld [vmem:[%s15206_s0 + $0x1a0] sm:$0xff]  ;;  %v779_v18 = vld [vmem:[#allocation7 + $0x100] sm:$0xff]  ;;  %v212_v42 = vld [vmem:[%s15206_s0 + $0x268] sm:$0xff] }
  0xae   :  { %v811_v43 = vld [vmem:[#allocation7 + $0x200] sm:$0xff] }
  0xaf   :  { %13731 = vmatpush1.bf16.msra.mxu0 %v13730_v25  ;;  %v13778_v25 = vpack.c.bf16 %v270_v23, %v269_v21  ;;  %v195_v21 = vld [vmem:[%s15206_s0 + $0x1e0] sm:$0xff]  ;;  %v200_v23 = vld [vmem:[%s15206_s0 + $0x208] sm:$0xff] }
  0xb0   :  { %13732 = vmatprep.subr.bf16.mxu0 %v14491_v0 }
  0xb3   :  { %13734 = vmatpush1.bf16.msra.mxu0 %v13733_v28  ;;  %v272_v28 = vld [vmem:[#allocation3 + $0x188] sm:$0xff] }
  0xb4   :  { %13735 = vmatprep.subr.bf16.mxu0 %v14491_v0  ;;  %v13781_v30 = vpack.c.bf16 %v272_v28, %v271_v27  ;;  %v791_v27 = vld [vmem:[#allocation7 + $0x160] sm:$0xff] }
  0xb7   :  { %13737 = vmatpush1.bf16.msra.mxu0 %v13736_v31  ;;  %v172_v31 = vld [vmem:[%s15206_s0 + $0x128] sm:$0xff] }
  0xb8   :  { %13738 = vmatprep.subr.bf16.mxu0 %v14491_v0 }
  0xbb   :  { %13740 = vmatpush1.bf16.msra.mxu0 %v13739_v35  ;;  %v13784_v35 = vpack.c.bf16 %v274_v33, %v273_v32  ;;  %v799_v32 = vld [vmem:[#allocation7 + $0x1a0] sm:$0xff] }
  0xbc   :  { %13741 = vmatprep.subr.bf16.mxu0 %v14491_v0 }
  0xbf   :  { %13743 = vmatpush1.bf16.msra.mxu0 %v13742_v38  ;;  %v276_v38 = vld [vmem:[#allocation3 + $0x1a8] sm:$0xff] }
  0xc0   :  { %13744 = vmatprep.subr.bf16.mxu0 %v14491_v0  ;;  %v13787_v40 = vpack.c.bf16 %v276_v38, %v275_v37  ;;  %v803_v37 = vld [vmem:[#allocation7 + $0x1c0] sm:$0xff] }
  0xc1   :  { %v807_v38 = vld [vmem:[#allocation7 + $0x1e0] sm:$0xff] }
  0xc3   :  { %13746 = vmatpush1.bf16.msra.mxu0 %v13745_v41  ;;  %v180_v41 = vld [vmem:[%s15206_s0 + $0x168] sm:$0xff] }
  0xc4   :  { %13747 = vmatprep.subr.bf16.mxu0 %v14491_v0 }
  0xc7   :  { %13749 = vmatpush1.bf16.msra.mxu0 %v13748_v44  ;;  %v179_v44 = vld [vmem:[%s15206_s0 + $0x160] sm:$0xff] }
  0xc8   :  { %13750 = vmatprep.subr.bf16.mxu0 %v14491_v0 }
  0xcb   :  { %13752 = vmatpush1.bf16.msra.mxu0 %v13751_v47  ;;  %v279_v47 = vld [vmem:[#allocation3 + $0x1c0] sm:$0xff] }
  0xcc   :  { %13753 = vmatprep.subr.bf16.mxu0 %v14491_v0 }
  0xcf   :  { %13755 = vmatpush1.bf16.msra.mxu0 %v13754_v50  ;;  %v751_v50 = vld [vmem:[#allocation7 + $0x20] sm:$0xff] }
  0xd0   :  { %13756 = vmatprep.subr.bf16.mxu0 %v14491_v0  ;;  %v12136_v54 = vcombine.low %v747_v49, %v751_v50 }
  0xd2   :  { %374 = vmatmul.mubr.f32.vlgmr.msra.gmra.mrb[0].mxu0 %v135_v52  ;;  %v13793_v52 = vpack.c.bf16 %v280_v48, %v279_v47  ;;  %v216_v48 = vld [vmem:[%s15206_s0 + $0x288] sm:$0xff] }
  0xd3   :  { %13758 = vmatpush1.bf16.msra.mxu0 %v13757_v55  ;;  %378 = vmatprep.mubr.f32.mxu0 %v140_v53  ;;  %v12137_v53 = vcombine.high %v747_v49, %v751_v50  ;;  %v755_v55 = vld [vmem:[#allocation7 + $0x40] sm:$0xff] }
  0xd4   :  { %13759 = vmatprep.subr.bf16.mxu0 %v14491_v0  ;;  %v819_v49 = vld [vmem:[#allocation7 + $0x240] sm:$0xff] }
  0xd5   :  { %9237 = vmatprep.subr.bf16.mxu1 %v12137_v53  ;;  %v823_v50 = vld [vmem:[#allocation7 + $0x260] sm:$0xff] }
  0xd6   :  { %379 = vmatmul.mubr.f32.gmra.mrb[2].mxu0 %v139_v57  ;;  %v188_v57 = vld [vmem:[%s15206_s0 + $0x1a8] sm:$0xff]  ;;  %9238 = vmatpush1.bf16.msra.mxu1 %v12136_v54  ;;  %v12209_v53 = vcombine.high %v819_v49, %v823_v50 }
  0xd7   :  { %383 = vmatprep.mubr.f32.mxu0 %v144_v58  ;;  %13761 = vmatpush1.bf16.msra.mxu0 %v13760_v60  ;;  %v281_v58 = vld [vmem:[#allocation3 + $0x1d0] sm:$0xff]  ;;  %v12145_v60 = vcombine.high %v755_v55, %v759_v56  ;;  %v220_v54 = vld [vmem:[%s15206_s0 + $0x2a8] sm:$0xff] }
  0xd8   :  { %13762 = vmatprep.subr.bf16.mxu0 %v14491_v0 }
  0xd9   :  { %9239 = vmatprep.subr.bf16.mxu1 %v12145_v60  ;;  %v138_v60 = vld [vmem:[%s15206_s0 + $0x18] sm:$0xff] }
  0xda   :  { %384 = vmatmul.mubr.f32.gmra.mrb[4].mxu0 %v143_v62  ;;  %v767_v62 = vld [vmem:[#allocation7 + $0xa0] sm:$0xff] }
  0xdb   :  { %388 = vmatprep.mubr.f32.mxu0 %v148_v63  ;;  %13764 = vmatpush1.bf16.msra.mxu0 %v13763_v2  ;;  %v12144_v63 = vcombine.low %v755_v55, %v759_v56  ;;  %v13796_v2 = vpack.c.bf16 %v282_v59, %v281_v58  ;;  %v12153_v6 = vcombine.high %v763_v61, %v767_v62  ;;  %v827_v55 = vld [vmem:[#allocation7 + $0x280] sm:$0xff]  ;;  %v219_v58 = vld [vmem:[%s15206_s0 + $0x2a0] sm:$0xff] }
  0xdc   :  { %13765 = vmatprep.subr.bf16.mxu0 %v14491_v0  ;;  %v831_v56 = vld [vmem:[#allocation7 + $0x2a0] sm:$0xff] }
  0xdd   :  { %9240 = vmatpush1.bf16.msra.mxu1 %v12144_v63  ;;  %v12217_v59 = vcombine.high %v827_v55, %v831_v56  ;;  %v835_v63 = vld [vmem:[#allocation7 + $0x2c0] sm:$0xff] }
  0xde   :  { %389 = vmatmul.mubr.f32.gmra.mrb[6].mxu0 %v147_v4  ;;  %v283_v4 = vld [vmem:[#allocation3 + $0x1e0] sm:$0xff]  ;;  %9241 = vmatprep.subr.bf16.mxu1 %v12153_v6 }
  0xdf   :  { %393 = vmatprep.mubr.f32.mxu0 %v152_v5  ;;  %13767 = vmatpush1.bf16.msra.mxu0 %v13766_v7  ;;  %v284_v5 = vld [vmem:[#allocation3 + $0x1e8] sm:$0xff]  ;;  %v771_v7 = vld [vmem:[#allocation7 + $0xc0] sm:$0xff] }
  0xe0   :  { %13768 = vmatprep.subr.bf16.mxu0 %v14491_v0  ;;  %v12161_v16 = vcombine.high %v771_v7, %v775_v8 }
  0xe2   :  { %394 = vmatmul.mubr.f32.gmra.mrb[8].mxu0 %v151_v9  ;;  %v12152_v9 = vcombine.low %v763_v61, %v767_v62  ;;  %v756_v61 = vld [vmem:[#allocation7 + $0x48] sm:$0xff] }
  0xe3   :  { %398 = vmatprep.mubr.f32.mxu0 %v156_v10  ;;  %13770 = vmatpush1.bf16.msra.mxu0 %v13769_v12  ;;  %v191_v10 = vld [vmem:[%s15206_s0 + $0x1c0] sm:$0xff]  ;;  %v13799_v12 = vpack.c.bf16 %v284_v5, %v283_v4  ;;  %v760_v62 = vld [vmem:[#allocation7 + $0x68] sm:$0xff] }
  0xe4   :  { %13771 = vmatprep.subr.bf16.mxu0 %v14491_v0  ;;  %9242 = vmatpush1.bf16.msra.mxu1 %v12152_v9  ;;  %v142_v5 = vld [vmem:[%s15206_s0 + $0x38] sm:$0xff]  ;;  %v12147_v6 = vcombine.high %v756_v61, %v760_v62 }
  0xe5   :  { %9243 = vmatprep.subr.bf16.mxu1 %v12161_v16  ;;  %v768_v9 = vld [vmem:[#allocation7 + $0xa8] sm:$0xff] }
  0xe6   :  { %399 = vmatmul.mubr.f32.gmra.mrb[10].mxu0 %v155_v14  ;;  %v286_v14 = vld [vmem:[#allocation3 + $0x1f8] sm:$0xff] }
  0xe7   :  { %403 = vmatprep.mubr.f32.mxu0 %v160_v15  ;;  %13773 = vmatpush1.bf16.msra.mxu0 %v13772_v17  ;;  %v14781_v15 = vld [vmem:[#allocation7 + $0x8] sm:$0xff] }
  0xe8   :  { %13774 = vmatprep.subr.bf16.mxu0 %v14491_v0  ;;  %v14783_v17 = vld [vmem:[#allocation7 + $0x28] sm:$0xff] }
  0xe9   :  { %v12138_v4 = vcombine.low %v14781_v15, %v14783_v17 }
  0xea   :  { %404 = vmatmul.mubr.f32.gmra.mrb[12].mxu0 %v159_v19  ;;  %v783_v19 = vld [vmem:[#allocation7 + $0x120] sm:$0xff] }
  0xeb   :  { %408 = vmatprep.mubr.f32.mxu0 %v164_v20  ;;  %13776 = vmatpush1.bf16.msra.mxu0 %v13775_v22  ;;  %v12160_v20 = vcombine.low %v771_v7, %v775_v8  ;;  %v13802_v22 = vpack.c.bf16 %v286_v14, %v285_v13  ;;  %v12168_v28 = vcombine.low %v779_v18, %v783_v19  ;;  %v764_v7 = vld [vmem:[#allocation7 + $0x88] sm:$0xff]  ;;  %v141_v13 = vld [vmem:[%s15206_s0 + $0x30] sm:$0xff] }
  0xec   :  { %13777 = vmatprep.subr.bf16.mxu0 %v14491_v0  ;;  %v12146_v14 = vcombine.low %v756_v61, %v760_v62  ;;  %v12155_v16 = vcombine.high %v764_v7, %v768_v9  ;;  %v174_v61 = vld [vmem:[%s15206_s0 + $0x138] sm:$0xff] }
  0xed   :  { %9244 = vmatpush1.bf16.msra.mxu1 %v12160_v20  ;;  %v14844_v20 = vld [vmem:[#allocation7 + $0x340] sm:$0xff] }
  0xee   :  { %409 = vmatmul.mubr.f32.gmra.mrb[14].mxu0 %v163_v24  ;;  %v12139_v24 = vcombine.high %v14781_v15, %v14783_v17  ;;  %v146_v15 = vld [vmem:[%s15206_s0 + $0x58] sm:$0xff] }
  0xef   :  { %413 = vmatprep.mubr.f32.mxu0 %v168_v26  ;;  %13779 = vmatpush1.bf16.msra.mxu0 %v13778_v25  ;;  %v12169_v25 = vcombine.high %v779_v18, %v783_v19  ;;  %v787_v26 = vld [vmem:[#allocation7 + $0x140] sm:$0xff]  ;;  %v772_v17 = vld [vmem:[#allocation7 + $0xc8] sm:$0xff] }
  0xf0   :  { %13780 = vmatprep.subr.bf16.mxu0 %v14491_v0  ;;  %v12176_v33 = vcombine.low %v787_v26, %v791_v27  ;;  %v776_v19 = vld [vmem:[#allocation7 + $0xe8] sm:$0xff] }
  0xf1   :  { %9245 = vmatprep.subr.bf16.mxu1 %v12169_v25  ;;  %v150_v25 = vld [vmem:[%s15206_s0 + $0x78] sm:$0xff] }
  0xf2   :  { %414 = vmatmul.mubr.f32.gmra.mrb[16].mxu0 %v167_v29  ;;  %v199_v29 = vld [vmem:[%s15206_s0 + $0x200] sm:$0xff]  ;;  %9246 = vmatpush1.bf16.msra.mxu1 %v12168_v28  ;;  %v780_v28 = vld [vmem:[#allocation7 + $0x108] sm:$0xff] }
  0xf3   :  { %418 = vmatprep.mubr.f32.mxu0 %v172_v31  ;;  %13782 = vmatpush1.bf16.msra.mxu0 %v13781_v30  ;;  %v12177_v30 = vcombine.high %v787_v26, %v791_v27  ;;  %v795_v31 = vld [vmem:[#allocation7 + $0x180] sm:$0xff]  ;;  %v12163_v26 = vcombine.high %v772_v17, %v776_v19 }
  0xf4   :  { %13783 = vmatprep.subr.bf16.mxu0 %v14491_v0 }
  0xf5   :  { %9247 = vmatprep.subr.bf16.mxu1 %v12177_v30  ;;  %v149_v30 = vld [vmem:[%s15206_s0 + $0x70] sm:$0xff] }
  0xf6   :  { %419 = vmatmul.mubr.f32.gmra.mrb[18].mxu0 %v171_v34  ;;  %v203_v34 = vld [vmem:[%s15206_s0 + $0x220] sm:$0xff]  ;;  %9248 = vmatpush1.bf16.msra.mxu1 %v12176_v33  ;;  %v788_v33 = vld [vmem:[#allocation7 + $0x148] sm:$0xff] }
  0xf7   :  { %423 = vmatprep.mubr.f32.mxu0 %v176_v36  ;;  %13785 = vmatpush1.bf16.msra.mxu0 %v13784_v35  ;;  %v12185_v35 = vcombine.high %v795_v31, %v799_v32  ;;  %v208_v36 = vld [vmem:[%s15206_s0 + $0x248] sm:$0xff] }
  0xf8   :  { %13786 = vmatprep.subr.bf16.mxu0 %v14491_v0 }
  0xf9   :  { %9249 = vmatprep.subr.bf16.mxu1 %v12185_v35  ;;  %v153_v35 = vld [vmem:[%s15206_s0 + $0x90] sm:$0xff] }
  0xfa   :  { %424 = vmatmul.mubr.f32.gmra.mrb[20].mxu0 %v175_v39  ;;  %v12184_v39 = vcombine.low %v795_v31, %v799_v32  ;;  %v154_v31 = vld [vmem:[%s15206_s0 + $0x98] sm:$0xff] }
  0xfb   :  { %428 = vmatprep.mubr.f32.mxu0 %v180_v41  ;;  %13788 = vmatpush1.bf16.msra.mxu0 %v13787_v40  ;;  %v207_v40 = vld [vmem:[%s15206_s0 + $0x240] sm:$0xff]  ;;  %v12193_v41 = vcombine.high %v803_v37, %v807_v38 }
  0xfc   :  { %13789 = vmatprep.subr.bf16.mxu0 %v14491_v0  ;;  %9250 = vmatpush1.bf16.msra.mxu1 %v12184_v39  ;;  %v796_v39 = vld [vmem:[#allocation7 + $0x188] sm:$0xff] }
  0xfd   :  { %9251 = vmatprep.subr.bf16.mxu1 %v12193_v41  ;;  %v157_v41 = vld [vmem:[%s15206_s0 + $0xb0] sm:$0xff] }
  0xfe   :  { %429 = vmatmul.mubr.f32.gmra.mrb[22].mxu0 %v179_v44  ;;  %v815_v44 = vld [vmem:[#allocation7 + $0x220] sm:$0xff] }
  0xff   :  { %433 = vmatprep.mubr.f32.mxu0 %v184_v46  ;;  %13791 = vmatpush1.bf16.msra.mxu0 %v13790_v45  ;;  %v12192_v45 = vcombine.low %v803_v37, %v807_v38  ;;  %v211_v46 = vld [vmem:[%s15206_s0 + $0x260] sm:$0xff]  ;;  %v12201_v47 = vcombine.high %v811_v43, %v815_v44  ;;  %v158_v37 = vld [vmem:[%s15206_s0 + $0xb8] sm:$0xff] }
 0x100   :  { %13792 = vmatprep.subr.bf16.mxu0 %v14491_v0 }
 0x101   :  { %9252 = vmatpush1.bf16.msra.mxu1 %v12192_v45  ;;  %v804_v45 = vld [vmem:[#allocation7 + $0x1c8] sm:$0xff] }
 0x102   :  { %434 = vmatmul.mubr.f32.gmra.mrb[24].mxu0 %v183_v51  ;;  %v12200_v51 = vcombine.low %v811_v43, %v815_v44  ;;  %9253 = vmatprep.subr.bf16.mxu1 %v12201_v47  ;;  %v162_v43 = vld [vmem:[%s15206_s0 + $0xd8] sm:$0xff]  ;;  %v161_v47 = vld [vmem:[%s15206_s0 + $0xd0] sm:$0xff] }
 0x103   :  { %438 = vmatprep.mubr.f32.mxu0 %v188_v57  ;;  %13794 = vmatpush1.bf16.msra.mxu0 %v13793_v52  ;;  %v215_v52 = vld [vmem:[%s15206_s0 + $0x280] sm:$0xff]  ;;  %v12208_v57 = vcombine.low %v819_v49, %v823_v50  ;;  %v166_v49 = vld [vmem:[%s15206_s0 + $0xf8] sm:$0xff] }
 0x104   :  { %13795 = vmatprep.subr.bf16.mxu0 %v14491_v0 }
 0x105   :  { %9254 = vmatpush1.bf16.msra.mxu1 %v12200_v51  ;;  %v812_v51 = vld [vmem:[#allocation7 + $0x208] sm:$0xff] }
 0x106   :  { %439 = vmatmul.mubr.f32.gmra.mrb[26].mxu0 %v187_v1  ;;  %9255 = vmatprep.subr.bf16.mxu1 %v12209_v53  ;;  %v839_v1 = vld [vmem:[#allocation7 + $0x2e0] sm:$0xff] }
 0x107   :  { %443 = vmatprep.mubr.f32.mxu0 %v192_v3  ;;  %13797 = vmatpush1.bf16.msra.mxu0 %v13796_v2  ;;  %v12216_v2 = vcombine.low %v827_v55, %v831_v56  ;;  %v137_v3 = vld [vmem:[%s15206_s0 + $0x10] sm:$0xff]  ;;  %v12225_v8 = vcombine.high %v835_v63, %v839_v1  ;;  %v170_v55 = vld [vmem:[%s15206_s0 + $0x118] sm:$0xff] }
 0x108   :  { %13798 = vmatprep.subr.bf16.mxu0 %v14491_v0  ;;  %v165_v53 = vld [vmem:[%s15206_s0 + $0xf0] sm:$0xff] }
 0x109   :  { %9256 = vmatpush1.bf16.msra.mxu1 %v12208_v57  ;;  %v820_v57 = vld [vmem:[#allocation7 + $0x248] sm:$0xff] }
 0x10a   :  { %444 = vmatmul.mubr.f32.gmra.mrb[28].mxu0 %v191_v10  ;;  %9257 = vmatprep.subr.bf16.mxu1 %v12217_v59  ;;  %v843_v10 = vld [vmem:[#allocation7 + $0x300] sm:$0xff] }
 0x10b   :  { %448 = vmatprep.mubr.f32.mxu0 %v196_v11  ;;  %13800 = vmatpush1.bf16.msra.mxu0 %v13799_v12  ;;  %v847_v11 = vld [vmem:[#allocation7 + $0x320] sm:$0xff]  ;;  %v12224_v12 = vcombine.low %v835_v63, %v839_v1  ;;  %v828_v63 = vld [vmem:[#allocation7 + $0x288] sm:$0xff] }
 0x10c   :  { %13801 = vmatprep.subr.bf16.mxu0 %v14491_v0  ;;  %v204_v0 = vld [vmem:[%s15206_s0 + $0x228] sm:$0xff]  ;;  %v12233_v18 = vcombine.high %v843_v10, %v847_v11  ;;  %v169_v59 = vld [vmem:[%s15206_s0 + $0x110] sm:$0xff]  ;;  %v832_v1 = vld [vmem:[#allocation7 + $0x2a8] sm:$0xff] }
 0x10d   :  { %9258 = vmatpush1.bf16.msra.mxu1 %v12216_v2  ;;  %v173_v2 = vld [vmem:[%s15206_s0 + $0x130] sm:$0xff] }
 0x10e   :  { %449 = vmatmul.mubr.f32.gmra.mrb[30].mxu0 %v195_v21  ;;  %9259 = vmatprep.subr.bf16.mxu1 %v12225_v8  ;;  %v14846_v21 = vld [vmem:[#allocation7 + $0x360] sm:$0xff] }
 0x10f   :  { %453 = vmatprep.mubr.f32.mxu0 %v200_v23  ;;  %13803 = vmatpush1.bf16.msra.mxu0 %v13802_v22  ;;  %v12232_v22 = vcombine.low %v843_v10, %v847_v11  ;;  %v145_v23 = vld [vmem:[%s15206_s0 + $0x50] sm:$0xff]  ;;  %v12241_v27 = vcombine.high %v14844_v20, %v14846_v21  ;;  %v182_v10 = vld [vmem:[%s15206_s0 + $0x178] sm:$0xff] }
 0x110   :  { %9688 = vmatprep.subr.bf16.mxu0 %v12139_v24  ;;  %v12154_v24 = vcombine.low %v764_v7, %v768_v9  ;;  %v840_v7 = vld [vmem:[#allocation7 + $0x2e8] sm:$0xff]  ;;  %v177_v8 = vld [vmem:[%s15206_s0 + $0x150] sm:$0xff]  ;;  %v12218_v9 = vcombine.low %v828_v63, %v832_v1 }
 0x111   :  { %9260 = vmatpush1.bf16.msra.mxu1 %v12224_v12  ;;  %v844_v12 = vld [vmem:[#allocation7 + $0x308] sm:$0xff] }
 0x112   :  { %454 = vmatmul.mubr.f32.gmra.mrb[32].mxu0 %v199_v29  ;;  %9261 = vmatprep.subr.bf16.mxu1 %v12233_v18  ;;  %v784_v29 = vld [vmem:[#allocation7 + $0x128] sm:$0xff] }
 0x113   :  { %458 = vmatprep.mubr.f32.mxu0 %v204_v0  ;;  %v12162_v0 = vcombine.low %v772_v17, %v776_v19  ;;  %v12171_v32 = vcombine.high %v780_v28, %v784_v29  ;;  %v852_v18 = vld [vmem:[#allocation7 + $0x348] sm:$0xff] }
 0x114   :  { %v856_v19 = vld [vmem:[#allocation7 + $0x368] sm:$0xff] }
 0x115   :  { %9262 = vmatpush1.bf16.msra.mxu1 %v12232_v22  ;;  %v185_v22 = vld [vmem:[%s15206_s0 + $0x190] sm:$0xff] }
 0x116   :  { %459 = vmatmul.mubr.f32.gmra.mrb[34].mxu0 %v203_v34  ;;  %9263 = vmatprep.subr.bf16.mxu1 %v12241_v27  ;;  %v792_v34 = vld [vmem:[#allocation7 + $0x168] sm:$0xff]  ;;  %v12242_v27 = vcombine.low %v852_v18, %v856_v19 }
 0x117   :  { %463 = vmatprep.mubr.f32.mxu0 %v208_v36  ;;  %v12170_v36 = vcombine.low %v780_v28, %v784_v29  ;;  %v12179_v38 = vcombine.high %v788_v33, %v792_v34  ;;  %v194_v28 = vld [vmem:[%s15206_s0 + $0x1d8] sm:$0xff]  ;;  %v193_v29 = vld [vmem:[%s15206_s0 + $0x1d0] sm:$0xff] }
 0x11a   :  { %464 = vmatmul.mubr.f32.gmra.mrb[36].mxu0 %v207_v40  ;;  %v800_v40 = vld [vmem:[#allocation7 + $0x1a8] sm:$0xff] }
 0x11b   :  { %468 = vmatprep.mubr.f32.mxu0 %v212_v42  ;;  %v12178_v42 = vcombine.low %v788_v33, %v792_v34  ;;  %v12187_v44 = vcombine.high %v796_v39, %v800_v40  ;;  %v206_v33 = vld [vmem:[%s15206_s0 + $0x238] sm:$0xff]  ;;  %v205_v34 = vld [vmem:[%s15206_s0 + $0x230] sm:$0xff] }
 0x11e   :  { %469 = vmatmul.mubr.f32.gmra.mrb[38].mxu0 %v211_v46  ;;  %v808_v46 = vld [vmem:[#allocation7 + $0x1e8] sm:$0xff] }
 0x11f   :  { %473 = vmatprep.mubr.f32.mxu0 %v216_v48  ;;  %v12186_v48 = vcombine.low %v796_v39, %v800_v40  ;;  %v12195_v50 = vcombine.high %v804_v45, %v808_v46  ;;  %v218_v39 = vld [vmem:[%s15206_s0 + $0x298] sm:$0xff]  ;;  %v217_v40 = vld [vmem:[%s15206_s0 + $0x290] sm:$0xff] }
 0x122   :  { %474 = vmatmul.mubr.f32.gmra.mrb[40].mxu0 %v215_v52  ;;  %v816_v52 = vld [vmem:[#allocation7 + $0x228] sm:$0xff] }
 0x123   :  { %478 = vmatprep.mubr.f32.mxu0 %v220_v54  ;;  %v12194_v54 = vcombine.low %v804_v45, %v808_v46  ;;  %v12203_v56 = vcombine.high %v812_v51, %v816_v52  ;;  %v863_v45 = vld [vmem:[#allocation7 + $0x3a0] sm:$0xff]  ;;  %v860_v46 = vld [vmem:[#allocation7 + $0x388] sm:$0xff] }
 0x126   :  { %479 = vmatmul.mubr.f32.gmra.mrb[42].mxu0 %v219_v58  ;;  %v824_v58 = vld [vmem:[#allocation7 + $0x268] sm:$0xff] }
 0x127   :  { %548 = vmatprep.mubr.f32.mxu0 %v138_v60  ;;  %v12202_v60 = vcombine.low %v812_v51, %v816_v52  ;;  %v12211_v62 = vcombine.high %v820_v57, %v824_v58  ;;  %v867_v52 = vld [vmem:[#allocation7 + $0x3c0] sm:$0xff] }
 0x12a   :  { %549 = vmatmul.mubr.f32.vlgmr.msra.gmra.mrb[0].mxu0 %v137_v3  ;;  %v12210_v3 = vcombine.low %v820_v57, %v824_v58  ;;  %v875_v58 = vld [vmem:[#allocation7 + $0x400] sm:$0xff] }
 0x12b   :  { %553 = vmatprep.mubr.f32.mxu0 %v142_v5  ;;  %9689 = vmatpush1.bf16.msra.mxu0 %v12138_v4  ;;  %v178_v4 = vld [vmem:[%s15206_s0 + $0x158] sm:$0xff]  ;;  %v12219_v5 = vcombine.high %v828_v63, %v832_v1 }
 0x12c   :  { %9690 = vmatprep.subr.bf16.mxu0 %v12147_v6  ;;  %v836_v6 = vld [vmem:[#allocation7 + $0x2c8] sm:$0xff] }
 0x12d   :  { %v12227_v11 = vcombine.high %v836_v6, %v840_v7 }
 0x12e   :  { %554 = vmatmul.mubr.f32.gmra.mrb[2].mxu0 %v141_v13  ;;  %v848_v13 = vld [vmem:[#allocation7 + $0x328] sm:$0xff] }
 0x12f   :  { %558 = vmatprep.mubr.f32.mxu0 %v146_v15  ;;  %9691 = vmatpush1.bf16.msra.mxu0 %v12146_v14  ;;  %v181_v14 = vld [vmem:[%s15206_s0 + $0x170] sm:$0xff]  ;;  %v12226_v15 = vcombine.low %v836_v6, %v840_v7  ;;  %v12235_v17 = vcombine.high %v844_v12, %v848_v13  ;;  %v288_v7 = vld [vmem:[#allocation5 + $0x8] sm:$0xff] }
 0x130   :  { %9692 = vmatprep.subr.bf16.mxu0 %v12155_v16  ;;  %v186_v16 = vld [vmem:[%s15206_s0 + $0x198] sm:$0xff] }
 0x132   :  { %559 = vmatmul.mubr.f32.gmra.mrb[4].mxu0 %v145_v23  ;;  %v12234_v23 = vcombine.low %v844_v12, %v848_v13  ;;  %v883_v12 = vld [vmem:[#allocation7 + $0x440] sm:$0xff] }
 0x133   :  { %563 = vmatprep.mubr.f32.mxu0 %v150_v25  ;;  %9693 = vmatpush1.bf16.msra.mxu0 %v12154_v24  ;;  %v190_v24 = vld [vmem:[%s15206_s0 + $0x1b8] sm:$0xff]  ;;  %v12243_v25 = vcombine.high %v852_v18, %v856_v19 }
 0x134   :  { %9694 = vmatprep.subr.bf16.mxu0 %v12163_v26  ;;  %v189_v26 = vld [vmem:[%s15206_s0 + $0x1b0] sm:$0xff] }
 0x136   :  { %564 = vmatmul.mubr.f32.gmra.mrb[6].mxu0 %v149_v30  ;;  %v198_v30 = vld [vmem:[%s15206_s0 + $0x1f8] sm:$0xff] }
 0x137   :  { %568 = vmatprep.mubr.f32.mxu0 %v154_v31  ;;  %9695 = vmatpush1.bf16.msra.mxu0 %v12162_v0  ;;  %v197_v0 = vld [vmem:[%s15206_s0 + $0x1f0] sm:$0xff]  ;;  %v202_v31 = vld [vmem:[%s15206_s0 + $0x218] sm:$0xff] }
 0x138   :  { %9696 = vmatprep.subr.bf16.mxu0 %v12171_v32  ;;  %v201_v32 = vld [vmem:[%s15206_s0 + $0x210] sm:$0xff] }
 0x13a   :  { %569 = vmatmul.mubr.f32.gmra.mrb[8].mxu0 %v153_v35  ;;  %v210_v35 = vld [vmem:[%s15206_s0 + $0x258] sm:$0xff] }
 0x13b   :  { %573 = vmatprep.mubr.f32.mxu0 %v158_v37  ;;  %9697 = vmatpush1.bf16.msra.mxu0 %v12170_v36  ;;  %v209_v36 = vld [vmem:[%s15206_s0 + $0x250] sm:$0xff]  ;;  %v214_v37 = vld [vmem:[%s15206_s0 + $0x278] sm:$0xff] }
 0x13c   :  { %9698 = vmatprep.subr.bf16.mxu0 %v12179_v38  ;;  %v213_v38 = vld [vmem:[%s15206_s0 + $0x270] sm:$0xff] }
 0x13e   :  { %574 = vmatmul.mubr.f32.gmra.mrb[10].mxu0 %v157_v41  ;;  %v222_v41 = vld [vmem:[%s15206_s0 + $0x2b8] sm:$0xff] }
 0x13f   :  { %578 = vmatprep.mubr.f32.mxu0 %v162_v43  ;;  %9699 = vmatpush1.bf16.msra.mxu0 %v12178_v42  ;;  %v221_v42 = vld [vmem:[%s15206_s0 + $0x2b0] sm:$0xff]  ;;  %v12240_v43 = vcombine.low %v14844_v20, %v14846_v21 }
 0x140   :  { %9700 = vmatprep.subr.bf16.mxu0 %v12187_v44  ;;  %v859_v44 = vld [vmem:[#allocation7 + $0x380] sm:$0xff] }
 0x141   :  { %9264 = vmatpush1.bf16.msra.mxu1 %v12240_v43  ;;  %v12248_v51 = vcombine.low %v859_v44, %v863_v45 }
 0x142   :  { %579 = vmatmul.mubr.f32.gmra.mrb[12].mxu0 %v161_v47  ;;  %v12249_v47 = vcombine.high %v859_v44, %v863_v45 }
 0x143   :  { %583 = vmatprep.mubr.f32.mxu0 %v166_v49  ;;  %9701 = vmatpush1.bf16.msra.mxu0 %v12186_v48  ;;  %v864_v48 = vld [vmem:[#allocation7 + $0x3a8] sm:$0xff] }
 0x144   :  { %9702 = vmatprep.subr.bf16.mxu0 %v12195_v50  ;;  %v12250_v49 = vcombine.low %v860_v46, %v864_v48  ;;  %v12251_v50 = vcombine.high %v860_v46, %v864_v48  ;;  %9265 = vmatprep.subr.bf16.mxu1 %v12249_v47  ;;  %v907_v48 = vld [vmem:[#allocation7 + $0x500] sm:$0xff] }
 0x145   :  { %9266 = vmatpush1.bf16.msra.mxu1 %v12248_v51  ;;  %v912_v51 = vld [vmem:[#allocation7 + $0x528] sm:$0xff] }
 0x146   :  { %584 = vmatmul.mubr.f32.gmra.mrb[14].mxu0 %v165_v53  ;;  %v871_v53 = vld [vmem:[#allocation7 + $0x3e0] sm:$0xff] }
 0x147   :  { %588 = vmatprep.mubr.f32.mxu0 %v170_v55  ;;  %9703 = vmatpush1.bf16.msra.mxu0 %v12194_v54  ;;  %v12257_v54 = vcombine.high %v867_v52, %v871_v53  ;;  %v868_v55 = vld [vmem:[#allocation7 + $0x3c8] sm:$0xff]  ;;  %v12256_v57 = vcombine.low %v867_v52, %v871_v53 }
 0x148   :  { %9704 = vmatprep.subr.bf16.mxu0 %v12203_v56  ;;  %v872_v56 = vld [vmem:[#allocation7 + $0x3e8] sm:$0xff] }
 0x149   :  { %v12258_v20 = vcombine.low %v868_v55, %v872_v56  ;;  %v12259_v21 = vcombine.high %v868_v55, %v872_v56  ;;  %9267 = vmatprep.subr.bf16.mxu1 %v12257_v54 }
 0x14a   :  { %589 = vmatmul.mubr.f32.gmra.mrb[16].mxu0 %v169_v59  ;;  %9268 = vmatpush1.bf16.msra.mxu1 %v12256_v57  ;;  %v879_v59 = vld [vmem:[#allocation7 + $0x420] sm:$0xff] }
 0x14b   :  { %593 = vmatprep.mubr.f32.mxu0 %v174_v61  ;;  %9705 = vmatpush1.bf16.msra.mxu0 %v12202_v60  ;;  %v12265_v60 = vcombine.high %v875_v58, %v879_v59  ;;  %v876_v61 = vld [vmem:[#allocation7 + $0x408] sm:$0xff]  ;;  %v12264_v63 = vcombine.low %v875_v58, %v879_v59  ;;  %v919_v57 = vld [vmem:[#allocation7 + $0x560] sm:$0xff] }
 0x14c   :  { %9706 = vmatprep.subr.bf16.mxu0 %v12211_v62  ;;  %v880_v62 = vld [vmem:[#allocation7 + $0x428] sm:$0xff] }
 0x14d   :  { %v12266_v1 = vcombine.low %v876_v61, %v880_v62  ;;  %9278 = vmatprep.subr.bf16.mxu1 %v12265_v60  ;;  %v916_v58 = vld [vmem:[#allocation7 + $0x548] sm:$0xff] }
 0x14e   :  { %594 = vmatmul.mubr.f32.gmra.mrb[18].mxu0 %v173_v2  ;;  %v12267_v2 = vcombine.high %v876_v61, %v880_v62  ;;  %v920_v59 = vld [vmem:[#allocation7 + $0x568] sm:$0xff] }
 0x14f   :  { %598 = vmatprep.mubr.f32.mxu0 %v178_v4  ;;  %9707 = vmatpush1.bf16.msra.mxu0 %v12210_v3  ;;  %v287_v3 = vld [vmem:[#allocation5] sm:$0xff] }
 0x150   :  { %9708 = vmatprep.subr.bf16.mxu0 %v12219_v5 }
 0x152   :  { %599 = vmatmul.mubr.f32.gmra.mrb[20].mxu0 %v177_v8 }
 0x153   :  { %603 = vmatprep.mubr.f32.mxu0 %v182_v10  ;;  %9709 = vmatpush1.bf16.msra.mxu0 %v12218_v9 }
 0x154   :  { %9710 = vmatprep.subr.bf16.mxu0 %v12227_v11 }
 0x156   :  { %604 = vmatmul.mubr.f32.gmra.mrb[22].mxu0 %v181_v14  ;;  %v887_v14 = vld [vmem:[#allocation7 + $0x460] sm:$0xff] }
 0x157   :  { %608 = vmatprep.mubr.f32.mxu0 %v186_v16  ;;  %9711 = vmatpush1.bf16.msra.mxu0 %v12226_v15  ;;  %v884_v15 = vld [vmem:[#allocation7 + $0x448] sm:$0xff] }
 0x158   :  { %9712 = vmatprep.subr.bf16.mxu0 %v12235_v17  ;;  %v888_v16 = vld [vmem:[#allocation7 + $0x468] sm:$0xff] }
 0x15a   :  { %609 = vmatmul.mubr.f32.gmra.mrb[24].mxu0 %v185_v22 }
 0x15b   :  { %613 = vmatprep.mubr.f32.mxu0 %v190_v24  ;;  %9713 = vmatpush1.bf16.msra.mxu0 %v12234_v23  ;;  %v290_v23 = vld [vmem:[#allocation5 + $0x18] sm:$0xff]  ;;  %v12273_v24 = vcombine.high %v883_v12, %v887_v14 }
 0x15c   :  { %9714 = vmatprep.subr.bf16.mxu0 %v12243_v25  ;;  %v12275_v25 = vcombine.high %v884_v15, %v888_v16 }
 0x15e   :  { %614 = vmatmul.mubr.f32.gmra.mrb[26].mxu0 %v189_v26  ;;  %v891_v26 = vld [vmem:[#allocation7 + $0x480] sm:$0xff] }
 0x15f   :  { %618 = vmatprep.mubr.f32.mxu0 %v194_v28  ;;  %9715 = vmatpush1.bf16.msra.mxu0 %v12242_v27  ;;  %v895_v27 = vld [vmem:[#allocation7 + $0x4a0] sm:$0xff]  ;;  %v892_v28 = vld [vmem:[#allocation7 + $0x488] sm:$0xff] }
 0x160   :  { %9716 = vmatprep.subr.bf16.mxu0 %v12251_v50  ;;  %v12280_v44 = vcombine.low %v891_v26, %v895_v27  ;;  %v908_v50 = vld [vmem:[#allocation7 + $0x508] sm:$0xff] }
 0x162   :  { %619 = vmatmul.mubr.f32.gmra.mrb[28].mxu0 %v193_v29  ;;  %v896_v29 = vld [vmem:[#allocation7 + $0x4a8] sm:$0xff] }
 0x163   :  { %623 = vmatprep.mubr.f32.mxu0 %v198_v30  ;;  %9717 = vmatpush1.bf16.msra.mxu0 %v12250_v49  ;;  %v12282_v45 = vcombine.low %v892_v28, %v896_v29  ;;  %v911_v49 = vld [vmem:[#allocation7 + $0x520] sm:$0xff] }
 0x164   :  { %9718 = vmatprep.subr.bf16.mxu0 %v12259_v21  ;;  %v12297_v56 = vcombine.high %v907_v48, %v911_v49  ;;  %v915_v21 = vld [vmem:[#allocation7 + $0x540] sm:$0xff]  ;;  %v12296_v62 = vcombine.low %v907_v48, %v911_v49 }
 0x165   :  { %v955_v49 = vld [vmem:[#allocation7 + $0x680] sm:$0xff] }
 0x166   :  { %624 = vmatmul.mubr.f32.gmra.mrb[30].mxu0 %v197_v0 }
 0x167   :  { %628 = vmatprep.mubr.f32.mxu0 %v202_v31  ;;  %9719 = vmatpush1.bf16.msra.mxu0 %v12258_v20  ;;  %v12299_v20 = vcombine.high %v908_v50, %v912_v51 }
 0x168   :  { %9729 = vmatprep.subr.bf16.mxu0 %v12267_v2  ;;  %v12307_v2 = vcombine.high %v916_v58, %v920_v59 }
 0x16a   :  { %629 = vmatmul.mubr.f32.gmra.mrb[32].mxu0 %v201_v32  ;;  %v12272_v32 = vcombine.low %v883_v12, %v887_v14  ;;  %v935_v14 = vld [vmem:[#allocation7 + $0x5e0] sm:$0xff] }
 0x16b   :  { %633 = vmatprep.mubr.f32.mxu0 %v206_v33  ;;  %v12274_v33 = vcombine.low %v884_v15, %v888_v16  ;;  %v932_v15 = vld [vmem:[#allocation7 + $0x5c8] sm:$0xff] }
 0x16c   :  { %v936_v16 = vld [vmem:[#allocation7 + $0x5e8] sm:$0xff] }
 0x16e   :  { %634 = vmatmul.mubr.f32.gmra.mrb[34].mxu0 %v205_v34  ;;  %v12281_v34 = vcombine.high %v891_v26, %v895_v27  ;;  %v12323_v27 = vcombine.high %v932_v15, %v936_v16 }
 0x16f   :  { %638 = vmatprep.mubr.f32.mxu0 %v210_v35  ;;  %v12283_v35 = vcombine.high %v892_v28, %v896_v29  ;;  %v939_v28 = vld [vmem:[#allocation7 + $0x600] sm:$0xff] }
 0x170   :  { %v943_v29 = vld [vmem:[#allocation7 + $0x620] sm:$0xff] }
 0x172   :  { %639 = vmatmul.mubr.f32.gmra.mrb[36].mxu0 %v209_v36  ;;  %v899_v36 = vld [vmem:[#allocation7 + $0x4c0] sm:$0xff] }
 0x173   :  { %643 = vmatprep.mubr.f32.mxu0 %v214_v37 }
 0x176   :  { %644 = vmatmul.mubr.f32.gmra.mrb[38].mxu0 %v213_v38  ;;  %v903_v38 = vld [vmem:[#allocation7 + $0x4e0] sm:$0xff] }
 0x177   :  { %648 = vmatprep.mubr.f32.mxu0 %v218_v39  ;;  %v900_v39 = vld [vmem:[#allocation7 + $0x4c8] sm:$0xff]  ;;  %v12289_v46 = vcombine.high %v899_v36, %v903_v38  ;;  %v12288_v54 = vcombine.low %v899_v36, %v903_v38  ;;  %v951_v38 = vld [vmem:[#allocation7 + $0x660] sm:$0xff] }
 0x17a   :  { %649 = vmatmul.mubr.f32.gmra.mrb[40].mxu0 %v217_v40  ;;  %v904_v40 = vld [vmem:[#allocation7 + $0x4e8] sm:$0xff] }
 0x17b   :  { %653 = vmatprep.mubr.f32.mxu0 %v222_v41  ;;  %v12291_v47 = vcombine.high %v900_v39, %v904_v40  ;;  %v12290_v55 = vcombine.low %v900_v39, %v904_v40  ;;  %v948_v39 = vld [vmem:[#allocation7 + $0x648] sm:$0xff] }
 0x17c   :  { %v952_v40 = vld [vmem:[#allocation7 + $0x668] sm:$0xff] }
 0x17d   :  { %v12339_v48 = vcombine.high %v948_v39, %v952_v40 }
 0x17e   :  { %654 = vmatmul.mubr.f32.gmra.mrb[42].mxu0 %v221_v42 }
 0x1fd   :  { %v550_v4 = vpop.f32.mrb[0].mxu0 }
 0x1fe   :  { %v552_v5 = vpop.f32.mrb[1].mxu0  ;;  %v13836_v6 = vadd.f32 %v550_v4, %v287_v3  ;;  %v923_v3 = vld [vmem:[#allocation7 + $0x580] sm:$0xff] }
 0x1ff   :  { %v927_v4 = vld [vmem:[#allocation7 + $0x5a0] sm:$0xff]  ;;  %v924_v5 = vld [vmem:[#allocation7 + $0x588] sm:$0xff] }
 0x200   :  { %v659_v11 = vmax.f32 %v13836_v6, 0.0  ;;  %v928_v6 = vld [vmem:[#allocation7 + $0x5a8] sm:$0xff] }
 0x201   :  { %v555_v8 = vpop.f32.mrb[2].mxu0  ;;  %v12315_v12 = vcombine.high %v924_v5, %v928_v6 }
 0x202   :  { %v13837_v9 = vadd.f32 %v555_v8, %v288_v7  ;;  %v557_v10 = vpop.f32.mrb[3].mxu0  ;;  %v14973_v22 = vpack.c.bf16 %v659_v11, %v659_v11  ;;  %v12313_v11 = vcombine.high %v923_v3, %v927_v4 }
 0x203   :  { %v12306_v10 = vcombine.low %v916_v58, %v920_v59  ;;  %v963_v58 = vld [vmem:[#allocation7 + $0x6c0] sm:$0xff] }
 0x204   :  { %v660_v13 = vmax.f32 %v13837_v9, 0.0  ;;  %v12304_v9 = vcombine.low %v915_v21, %v919_v57  ;;  %v967_v59 = vld [vmem:[#allocation7 + $0x6e0] sm:$0xff] }
 0x205   :  { %v14969_v17 = vpop.f32.mrb[4].mxu0 }
 0x206   :  { %v14971_v18 = vpack.c.bf16 %v660_v13, %v660_v13  ;;  %v562_v19 = vpop.f32.mrb[5].mxu0  ;;  %v931_v13 = vld [vmem:[#allocation7 + $0x5c0] sm:$0xff] }
 0x207   :  { %v12321_v26 = vcombine.high %v931_v13, %v935_v14 }
 0x208   :  { %9269 = vmatprep.mubr.bf16.mxu1 %v14971_v18  ;;  %9720 = vmatprep.mubr.bf16.mxu0 %v14971_v18 }
 0x209   :  { %v565_v30 = vpop.f32.mrb[6].mxu0  ;;  %9270 = vmatmul.mubr.bf16.vlgmr.msra.gmra.mrb[0].mxu1 %v14973_v22  ;;  %9721 = vmatmul.mubr.bf16.vlgmr.msra.gmra.mrb[44].mxu0 %v14973_v22 }
 0x20a   :  { %v13839_v0 = vadd.f32 %v565_v30, %v290_v23  ;;  %9279 = vmatpush1.bf16.msra.mxu1 %v12264_v63  ;;  %9730 = vmatpush1.bf16.msra.mxu0 %v12266_v1  ;;  %v567_v31 = vpop.f32.mrb[7].mxu0  ;;  %v12298_v63 = vcombine.low %v908_v50, %v912_v51  ;;  %v12305_v1 = vcombine.high %v915_v21, %v919_v57  ;;  %v940_v30 = vld [vmem:[#allocation7 + $0x608] sm:$0xff]  ;;  %v959_v50 = vld [vmem:[#allocation7 + $0x6a0] sm:$0xff] }
 0x20b   :  { %9280 = vmatprep.subr.bf16.mxu1 %v12273_v24  ;;  %9731 = vmatprep.subr.bf16.mxu0 %v12275_v25  ;;  %v12312_v24 = vcombine.low %v923_v3, %v927_v4  ;;  %v12314_v25 = vcombine.low %v924_v5, %v928_v6  ;;  %v956_v51 = vld [vmem:[#allocation7 + $0x688] sm:$0xff]  ;;  %v12345_v21 = vcombine.high %v955_v49, %v959_v50  ;;  %v971_v6 = vld [vmem:[#allocation7 + $0x700] sm:$0xff] }
 0x20c   :  { %v662_v37 = vmax.f32 %v13839_v0, 0.0  ;;  %v944_v0 = vld [vmem:[#allocation7 + $0x628] sm:$0xff]  ;;  %v12353_v4 = vcombine.high %v963_v58, %v967_v59 }
 0x20d   :  { %v14979_v41 = vpop.f32.mrb[8].mxu0  ;;  %v12331_v36 = vcombine.high %v940_v30, %v944_v0 }
 0x20e   :  { %v14981_v42 = vpack.c.bf16 %v662_v37, %v662_v37  ;;  %9281 = vmatpush1.bf16.msra.mxu1 %v12272_v32  ;;  %9732 = vmatpush1.bf16.msra.mxu0 %v12274_v33  ;;  %v572_v43 = vpop.f32.mrb[9].mxu0  ;;  %v12320_v33 = vcombine.low %v931_v13, %v935_v14  ;;  %v947_v37 = vld [vmem:[#allocation7 + $0x640] sm:$0xff]  ;;  %v12352_v13 = vcombine.low %v963_v58, %v967_v59 }
 0x20f   :  { %9282 = vmatprep.subr.bf16.mxu1 %v12281_v34  ;;  %9733 = vmatprep.subr.bf16.mxu0 %v12283_v35  ;;  %v12322_v34 = vcombine.low %v932_v15, %v936_v16  ;;  %v12329_v35 = vcombine.high %v939_v28, %v943_v29  ;;  %v1003_v59 = vld [vmem:[#allocation7 + $0x800] sm:$0xff] }
 0x210   :  { %9310 = vmatprep.mubr.bf16.mxu1 %v14981_v42  ;;  %9761 = vmatprep.mubr.bf16.mxu0 %v14981_v42 }
 0x211   :  { %v14985_v52 = vpop.f32.mrb[10].mxu0 }
 0x212   :  { %9283 = vmatpush1.bf16.msra.mxu1 %v12280_v44  ;;  %9734 = vmatpush1.bf16.msra.mxu0 %v12282_v45  ;;  %v577_v53 = vpop.f32.mrb[11].mxu0  ;;  %v12328_v45 = vcombine.low %v939_v28, %v943_v29 }
 0x213   :  { %9284 = vmatprep.subr.bf16.mxu1 %v12289_v46  ;;  %9735 = vmatprep.subr.bf16.mxu0 %v12291_v47  ;;  %v12330_v46 = vcombine.low %v940_v30, %v944_v0  ;;  %v12337_v47 = vcombine.high %v947_v37, %v951_v38  ;;  %v960_v53 = vld [vmem:[#allocation7 + $0x6a8] sm:$0xff] }
 0x214   :  { %v12347_v57 = vcombine.high %v956_v51, %v960_v53  ;;  %v12346_v3 = vcombine.low %v956_v51, %v960_v53  ;;  %v292_v51 = vld [vmem:[#allocation5 + $0x28] sm:$0xff] }
 0x215   :  { %v14987_v60 = vpop.f32.mrb[12].mxu0 }
 0x216   :  { %9285 = vmatpush1.bf16.msra.mxu1 %v12288_v54  ;;  %9736 = vmatpush1.bf16.msra.mxu0 %v12290_v55  ;;  %v582_v61 = vpop.f32.mrb[13].mxu0 }
 0x217   :  { %9286 = vmatprep.subr.bf16.mxu1 %v12297_v56  ;;  %9737 = vmatprep.subr.bf16.mxu0 %v12299_v20  ;;  %v12336_v56 = vcombine.low %v947_v37, %v951_v38  ;;  %v12338_v20 = vcombine.low %v948_v39, %v952_v40  ;;  %v964_v61 = vld [vmem:[#allocation7 + $0x6c8] sm:$0xff] }
 0x219   :  { %v14989_v7 = vpop.f32.mrb[14].mxu0 }
 0x21a   :  { %9287 = vmatpush1.bf16.msra.mxu1 %v12296_v62  ;;  %9738 = vmatpush1.bf16.msra.mxu0 %v12298_v63  ;;  %v587_v8 = vpop.f32.mrb[15].mxu0  ;;  %v968_v62 = vld [vmem:[#allocation7 + $0x6e8] sm:$0xff] }
 0x21b   :  { %9288 = vmatprep.subr.bf16.mxu1 %v12305_v1  ;;  %9739 = vmatprep.subr.bf16.mxu0 %v12307_v2  ;;  %v12344_v2 = vcombine.low %v955_v49, %v959_v50  ;;  %v12355_v5 = vcombine.high %v964_v61, %v968_v62  ;;  %v975_v8 = vld [vmem:[#allocation7 + $0x720] sm:$0xff]  ;;  %v12354_v14 = vcombine.low %v964_v61, %v968_v62  ;;  %v996_v49 = vld [vmem:[#allocation7 + $0x7c8] sm:$0xff] }
 0x21c   :  { %v12361_v15 = vcombine.high %v971_v6, %v975_v8  ;;  %v12360_v29 = vcombine.low %v971_v6, %v975_v8  ;;  %v1000_v50 = vld [vmem:[#allocation7 + $0x7e8] sm:$0xff]  ;;  %v13841_v61 = vadd.f32 %v14985_v52, %v292_v51  ;;  %v1007_v62 = vld [vmem:[#allocation7 + $0x820] sm:$0xff] }
 0x21d   :  { %v14991_v19 = vpop.f32.mrb[16].mxu0  ;;  %v12387_v58 = vcombine.high %v996_v49, %v1000_v50  ;;  %v12386_v6 = vcombine.low %v996_v49, %v1000_v50  ;;  %v1015_v52 = vld [vmem:[#allocation7 + $0x860] sm:$0xff] }
 0x21e   :  { %9289 = vmatpush1.bf16.msra.mxu1 %v12304_v9  ;;  %9740 = vmatpush1.bf16.msra.mxu0 %v12306_v10  ;;  %v592_v23 = vpop.f32.mrb[17].mxu0  ;;  %v972_v9 = vld [vmem:[#allocation7 + $0x708] sm:$0xff] }
 0x21f   :  { %9290 = vmatprep.subr.bf16.mxu1 %v12313_v11  ;;  %9741 = vmatprep.subr.bf16.mxu0 %v12315_v12  ;;  %v976_v10 = vld [vmem:[#allocation7 + $0x728] sm:$0xff]  ;;  %v979_v23 = vld [vmem:[#allocation7 + $0x740] sm:$0xff] }
 0x220   :  { %v12363_v16 = vcombine.high %v972_v9, %v976_v10  ;;  %v12362_v30 = vcombine.low %v972_v9, %v976_v10  ;;  %v664_v10 = vmax.f32 %v13841_v61, 0.0 }
 0x221   :  { %v14993_v31 = vpop.f32.mrb[18].mxu0 }
 0x222   :  { %9291 = vmatpush1.bf16.msra.mxu1 %v12312_v24  ;;  %9742 = vmatpush1.bf16.msra.mxu0 %v12314_v25  ;;  %v597_v32 = vpop.f32.mrb[19].mxu0  ;;  %v983_v24 = vld [vmem:[#allocation7 + $0x760] sm:$0xff]  ;;  %v980_v25 = vld [vmem:[#allocation7 + $0x748] sm:$0xff] }
 0x223   :  { %9292 = vmatprep.subr.bf16.mxu1 %v12321_v26  ;;  %9743 = vmatprep.subr.bf16.mxu0 %v12323_v27  ;;  %v984_v26 = vld [vmem:[#allocation7 + $0x768] sm:$0xff]  ;;  %v12369_v0 = vcombine.high %v979_v23, %v983_v24  ;;  %v12368_v39 = vcombine.low %v979_v23, %v983_v24  ;;  %v12392_v23 = vcombine.low %v1003_v59, %v1007_v62 }
 0x224   :  { %v12371_v32 = vcombine.high %v980_v25, %v984_v26  ;;  %v12370_v40 = vcombine.low %v980_v25, %v984_v26  ;;  %v15017_v26 = vpack.c.bf16 %v664_v10, %v664_v10 }
 0x225   :  { %v14995_v43 = vpop.f32.mrb[20].mxu0 }
 0x226   :  { %9293 = vmatpush1.bf16.msra.mxu1 %v12320_v33  ;;  %9744 = vmatpush1.bf16.msra.mxu0 %v12322_v34  ;;  %v602_v44 = vpop.f32.mrb[21].mxu0  ;;  %v987_v33 = vld [vmem:[#allocation7 + $0x780] sm:$0xff] }
 0x227   :  { %9294 = vmatprep.subr.bf16.mxu1 %v12329_v35  ;;  %9745 = vmatprep.subr.bf16.mxu0 %v12331_v36  ;;  %v991_v34 = vld [vmem:[#allocation7 + $0x7a0] sm:$0xff]  ;;  %v988_v35 = vld [vmem:[#allocation7 + $0x788] sm:$0xff] }
 0x228   :  { %v992_v36 = vld [vmem:[#allocation7 + $0x7a8] sm:$0xff]  ;;  %v289_v44 = vld [vmem:[#allocation5 + $0x10] sm:$0xff] }
 0x229   :  { %v14997_v54 = vpop.f32.mrb[22].mxu0 }
 0x22a   :  { %9295 = vmatpush1.bf16.msra.mxu1 %v12328_v45  ;;  %9746 = vmatpush1.bf16.msra.mxu0 %v12330_v46  ;;  %v607_v55 = vpop.f32.mrb[23].mxu0  ;;  %v12377_v45 = vcombine.high %v987_v33, %v991_v34  ;;  %v12379_v46 = vcombine.high %v988_v35, %v992_v36 }
 0x22b   :  { %9296 = vmatprep.subr.bf16.mxu1 %v12337_v47  ;;  %9747 = vmatprep.subr.bf16.mxu0 %v12339_v48  ;;  %v995_v47 = vld [vmem:[#allocation7 + $0x7c0] sm:$0xff] }
 0x22c   :  { %v999_v48 = vld [vmem:[#allocation7 + $0x7e0] sm:$0xff] }
 0x22d   :  { %v14999_v63 = vpop.f32.mrb[24].mxu0 }
 0x22e   :  { %9297 = vmatpush1.bf16.msra.mxu1 %v12336_v56  ;;  %9748 = vmatpush1.bf16.msra.mxu0 %v12338_v20  ;;  %v612_v1 = vpop.f32.mrb[25].mxu0  ;;  %v12376_v56 = vcombine.low %v987_v33, %v991_v34  ;;  %v12378_v20 = vcombine.low %v988_v35, %v992_v36  ;;  %v1020_v33 = vld [vmem:[#allocation7 + $0x888] sm:$0xff] }
 0x22f   :  { %9298 = vmatprep.subr.bf16.mxu1 %v12345_v21  ;;  %9749 = vmatprep.subr.bf16.mxu0 %v12347_v57  ;;  %v13838_v21 = vadd.f32 %v14969_v17, %v289_v44  ;;  %v12385_v57 = vcombine.high %v995_v47, %v999_v48  ;;  %v1004_v1 = vld [vmem:[#allocation7 + $0x808] sm:$0xff]  ;;  %v12393_v17 = vcombine.high %v1003_v59, %v1007_v62  ;;  %v1027_v44 = vld [vmem:[#allocation7 + $0x8c0] sm:$0xff] }
 0x230   :  { %v1024_v34 = vld [vmem:[#allocation7 + $0x8a8] sm:$0xff] }
 0x231   :  { %v15001_v11 = vpop.f32.mrb[26].mxu0  ;;  %v661_v8 = vmax.f32 %v13838_v21, 0.0  ;;  %v12410_v51 = vcombine.low %v1020_v33, %v1024_v34  ;;  %v1039_v21 = vld [vmem:[#allocation7 + $0x920] sm:$0xff]  ;;  %v1040_v59 = vld [vmem:[#allocation7 + $0x928] sm:$0xff] }
 0x232   :  { %9299 = vmatpush1.bf16.msra.mxu1 %v12344_v2  ;;  %9750 = vmatpush1.bf16.msra.mxu0 %v12346_v3  ;;  %v617_v12 = vpop.f32.mrb[27].mxu0  ;;  %v1008_v2 = vld [vmem:[#allocation7 + $0x828] sm:$0xff] }
 0x233   :  { %9300 = vmatprep.subr.bf16.mxu1 %v12353_v4  ;;  %9751 = vmatprep.subr.bf16.mxu0 %v12355_v5  ;;  %v12384_v5 = vcombine.low %v995_v47, %v999_v48  ;;  %v12395_v9 = vcombine.high %v1004_v1, %v1008_v2  ;;  %v1011_v12 = vld [vmem:[#allocation7 + $0x840] sm:$0xff]  ;;  %v15015_v24 = vpack.c.bf16 %v661_v8, %v661_v8  ;;  %v1028_v47 = vld [vmem:[#allocation7 + $0x8c8] sm:$0xff] }
 0x234   :  { %v12394_v25 = vcombine.low %v1004_v1, %v1008_v2  ;;  %v12400_v36 = vcombine.low %v1011_v12, %v1015_v52  ;;  %v1032_v48 = vld [vmem:[#allocation7 + $0x8e8] sm:$0xff] }
 0x235   :  { %v15003_v27 = vpop.f32.mrb[28].mxu0  ;;  %v12418_v1 = vcombine.low %v1028_v47, %v1032_v48  ;;  %v1044_v8 = vld [vmem:[#allocation7 + $0x948] sm:$0xff] }
 0x236   :  { %9301 = vmatpush1.bf16.msra.mxu1 %v12352_v13  ;;  %9752 = vmatpush1.bf16.msra.mxu0 %v12354_v14  ;;  %v622_v28 = vpop.f32.mrb[29].mxu0  ;;  %v1012_v14 = vld [vmem:[#allocation7 + $0x848] sm:$0xff] }
 0x237   :  { %9302 = vmatprep.subr.bf16.mxu1 %v12361_v15  ;;  %9753 = vmatprep.subr.bf16.mxu0 %v12363_v16  ;;  %v1016_v15 = vld [vmem:[#allocation7 + $0x868] sm:$0xff]  ;;  %v12401_v28 = vcombine.high %v1011_v12, %v1015_v52 }
 0x239   :  { %v15005_v37 = vpop.f32.mrb[30].mxu0 }
 0x23a   :  { %9303 = vmatpush1.bf16.msra.mxu1 %v12360_v29  ;;  %9754 = vmatpush1.bf16.msra.mxu0 %v12362_v30  ;;  %v627_v38 = vpop.f32.mrb[31].mxu0  ;;  %v12403_v29 = vcombine.high %v1012_v14, %v1016_v15  ;;  %v1019_v30 = vld [vmem:[#allocation7 + $0x880] sm:$0xff] }
 0x23b   :  { %9304 = vmatprep.subr.bf16.mxu1 %v12369_v0  ;;  %9755 = vmatprep.subr.bf16.mxu0 %v12371_v32  ;;  %v1023_v0 = vld [vmem:[#allocation7 + $0x8a0] sm:$0xff]  ;;  %v12402_v38 = vcombine.low %v1012_v14, %v1016_v15 }
 0x23c   :  { %v12408_v50 = vcombine.low %v1019_v30, %v1023_v0  ;;  %v1051_v14 = vld [vmem:[#allocation7 + $0x980] sm:$0xff] }
 0x23d   :  { %v15007_v53 = vpop.f32.mrb[32].mxu0  ;;  %v1055_v15 = vld [vmem:[#allocation7 + $0x9a0] sm:$0xff] }
 0x23e   :  { %9305 = vmatpush1.bf16.msra.mxu1 %v12368_v39  ;;  %9756 = vmatpush1.bf16.msra.mxu0 %v12370_v40  ;;  %v632_v55 = vpop.f32.mrb[33].mxu0  ;;  %v12409_v39 = vcombine.high %v1019_v30, %v1023_v0  ;;  %v12411_v40 = vcombine.high %v1020_v33, %v1024_v34  ;;  %v1059_v0 = vld [vmem:[#allocation7 + $0x9c0] sm:$0xff]  ;;  %v1060_v34 = vld [vmem:[#allocation7 + $0x9c8] sm:$0xff] }
 0x23f   :  { %9306 = vmatprep.subr.bf16.mxu1 %v12377_v45  ;;  %9757 = vmatprep.subr.bf16.mxu0 %v12379_v46  ;;  %v1031_v45 = vld [vmem:[#allocation7 + $0x8e0] sm:$0xff] }
 0x240   :  { %v12417_v55 = vcombine.high %v1027_v44, %v1031_v45  ;;  %v12416_v62 = vcombine.low %v1027_v44, %v1031_v45  ;;  %v1063_v33 = vld [vmem:[#allocation7 + $0x9e0] sm:$0xff] }
 0x241   :  { %v15011_v3 = vpop.f32.mrb[34].mxu0  ;;  %v1067_v44 = vld [vmem:[#allocation7 + $0xa00] sm:$0xff] }
 0x242   :  { %9307 = vmatpush1.bf16.msra.mxu1 %v12376_v56  ;;  %9758 = vmatpush1.bf16.msra.mxu0 %v12378_v20  ;;  %v637_v4 = vpop.f32.mrb[35].mxu0  ;;  %v12419_v56 = vcombine.high %v1028_v47, %v1032_v48  ;;  %v1035_v20 = vld [vmem:[#allocation7 + $0x900] sm:$0xff]  ;;  %v1068_v47 = vld [vmem:[#allocation7 + $0xa08] sm:$0xff] }
 0x243   :  { %9308 = vmatprep.subr.bf16.mxu1 %v12385_v57  ;;  %9759 = vmatprep.subr.bf16.mxu0 %v12387_v58  ;;  %v1036_v58 = vld [vmem:[#allocation7 + $0x908] sm:$0xff]  ;;  %v12425_v2 = vcombine.high %v1035_v20, %v1039_v21  ;;  %v1071_v45 = vld [vmem:[#allocation7 + $0xa20] sm:$0xff] }
 0x244   :  { %v12427_v4 = vcombine.high %v1036_v58, %v1040_v59  ;;  %v12426_v10 = vcombine.low %v1036_v58, %v1040_v59  ;;  %v1072_v48 = vld [vmem:[#allocation7 + $0xa28] sm:$0xff]  ;;  %v12456_v59 = vcombine.low %v1067_v44, %v1071_v45 }
 0x245   :  { %v15013_v13 = vpop.f32.mrb[36].mxu0  ;;  %v1080_v58 = vld [vmem:[#allocation7 + $0xa68] sm:$0xff] }
 0x246   :  { %9309 = vmatpush1.bf16.msra.mxu1 %v12384_v5  ;;  %9760 = vmatpush1.bf16.msra.mxu0 %v12386_v6  ;;  %v642_v16 = vpop.f32.mrb[37].mxu0  ;;  %v1043_v5 = vld [vmem:[#allocation7 + $0x940] sm:$0xff] }
 0x247   :  { %9319 = vmatprep.subr.bf16.mxu1 %v12393_v17  ;;  %9770 = vmatprep.subr.bf16.mxu0 %v12395_v9  ;;  %v1047_v6 = vld [vmem:[#allocation7 + $0x960] sm:$0xff]  ;;  %v1048_v17 = vld [vmem:[#allocation7 + $0x968] sm:$0xff]  ;;  %v12424_v9 = vcombine.low %v1035_v20, %v1039_v21 }
 0x248   :  { %v12433_v12 = vcombine.high %v1043_v5, %v1047_v6  ;;  %v12435_v52 = vcombine.high %v1044_v8, %v1048_v17  ;;  %v1052_v16 = vld [vmem:[#allocation7 + $0x988] sm:$0xff]  ;;  %v1079_v20 = vld [vmem:[#allocation7 + $0xa60] sm:$0xff] }
 0x249   :  { %9311 = vmatmul.mubr.bf16.vlgmr.msra.gmra.mrb[0].mxu1 %v15015_v24  ;;  %9762 = vmatmul.mubr.bf16.vlgmr.msra.gmra.mrb[44].mxu0 %v15015_v24  ;;  %v15021_v32 = vpop.f32.mrb[38].mxu0  ;;  %v1076_v21 = vld [vmem:[#allocation7 + $0xa48] sm:$0xff] }
 0x24a   :  { %9320 = vmatpush1.bf16.msra.mxu1 %v12392_v23  ;;  %9351 = vmatprep.mubr.bf16.mxu1 %v15017_v26  ;;  %v647_v35 = vpop.f32.mrb[39].mxu0  ;;  %v1056_v23 = vld [vmem:[#allocation7 + $0x9a8] sm:$0xff] }
 0x24b   :  { %9771 = vmatpush1.bf16.msra.mxu0 %v12394_v25  ;;  %9802 = vmatprep.mubr.bf16.mxu0 %v15017_v26  ;;  %v12432_v25 = vcombine.low %v1043_v5, %v1047_v6  ;;  %v12443_v30 = vcombine.high %v1052_v16, %v1056_v23  ;;  %v1064_v35 = vld [vmem:[#allocation7 + $0x9e8] sm:$0xff] }
 0x24c   :  { %9321 = vmatprep.subr.bf16.mxu1 %v12401_v28  ;;  %9772 = vmatprep.subr.bf16.mxu0 %v12403_v29  ;;  %v12434_v28 = vcombine.low %v1044_v8, %v1048_v17  ;;  %v12441_v29 = vcombine.high %v1051_v14, %v1055_v15  ;;  %v1084_v5 = vld [vmem:[#allocation7 + $0xa88] sm:$0xff]  ;;  %v12466_v17 = vcombine.low %v1076_v21, %v1080_v58 }
 0x24d   :  { %v15025_v46 = vpop.f32.mrb[40].mxu0  ;;  %v1088_v6 = vld [vmem:[#allocation7 + $0xaa8] sm:$0xff] }
 0x24e   :  { %9322 = vmatpush1.bf16.msra.mxu1 %v12400_v36  ;;  %v652_v49 = vpop.f32.mrb[41].mxu0  ;;  %v12440_v36 = vcombine.low %v1051_v14, %v1055_v15  ;;  %v1092_v14 = vld [vmem:[#allocation7 + $0xac8] sm:$0xff] }
 0x24f   :  { %9773 = vmatpush1.bf16.msra.mxu0 %v12402_v38  ;;  %9323 = vmatprep.subr.bf16.mxu1 %v12409_v39  ;;  %v12442_v38 = vcombine.low %v1052_v16, %v1056_v23  ;;  %v12449_v39 = vcombine.high %v1059_v0, %v1063_v33  ;;  %v12448_v49 = vcombine.low %v1059_v0, %v1063_v33  ;;  %v1096_v15 = vld [vmem:[#allocation7 + $0xae8] sm:$0xff] }
 0x250   :  { %9774 = vmatprep.subr.bf16.mxu0 %v12411_v40  ;;  %v12451_v40 = vcombine.high %v1060_v34, %v1064_v35  ;;  %v12474_v23 = vcombine.low %v1084_v5, %v1088_v6  ;;  %v1100_v0 = vld [vmem:[#allocation7 + $0xb08] sm:$0xff] }
 0x251   :  { %v15027_v57 = vpop.f32.mrb[42].mxu0  ;;  %v1104_v33 = vld [vmem:[#allocation7 + $0xb28] sm:$0xff] }
 0x252   :  { %9324 = vmatpush1.bf16.msra.mxu1 %v12408_v50  ;;  %v657_v61 = vpop.f32.mrb[43].mxu0  ;;  %v12450_v50 = vcombine.low %v1060_v34, %v1064_v35  ;;  %v12482_v35 = vcombine.low %v1092_v14, %v1096_v15 }
 0x253   :  { %9775 = vmatpush1.bf16.msra.mxu0 %v12410_v51  ;;  %9325 = vmatprep.subr.bf16.mxu1 %v12417_v55  ;;  %v12457_v51 = vcombine.high %v1067_v44, %v1071_v45  ;;  %v12459_v55 = vcombine.high %v1068_v47, %v1072_v48  ;;  %v12458_v61 = vcombine.low %v1068_v47, %v1072_v48  ;;  %v1108_v44 = vld [vmem:[#allocation7 + $0xb48] sm:$0xff] }
 0x254   :  { %9776 = vmatprep.subr.bf16.mxu0 %v12419_v56  ;;  %v1075_v56 = vld [vmem:[#allocation7 + $0xa40] sm:$0xff]  ;;  %v1112_v45 = vld [vmem:[#allocation7 + $0xb68] sm:$0xff]  ;;  %v12490_v48 = vcombine.low %v1100_v0, %v1104_v33 }
 0x255   :  { %v12464_v8 = vcombine.low %v1075_v56, %v1079_v20 }
 0x256   :  { %9326 = vmatpush1.bf16.msra.mxu1 %v12416_v62  ;;  %v12465_v62 = vcombine.high %v1075_v56, %v1079_v20  ;;  %v1116_v56 = vld [vmem:[#allocation7 + $0xb88] sm:$0xff] }
 0x257   :  { %9777 = vmatpush1.bf16.msra.mxu0 %v12418_v1  ;;  %9327 = vmatprep.subr.bf16.mxu1 %v12425_v2  ;;  %v12467_v1 = vcombine.high %v1076_v21, %v1080_v58  ;;  %v1083_v2 = vld [vmem:[#allocation7 + $0xa80] sm:$0xff]  ;;  %v1120_v20 = vld [vmem:[#allocation7 + $0xba8] sm:$0xff]  ;;  %v12498_v58 = vcombine.low %v1108_v44, %v1112_v45 }
 0x258   :  { %9778 = vmatprep.subr.bf16.mxu0 %v12427_v4  ;;  %v1087_v4 = vld [vmem:[#allocation7 + $0xaa0] sm:$0xff] }
 0x259   :  { %v12472_v16 = vcombine.low %v1083_v2, %v1087_v4 }
 0x25a   :  { %9328 = vmatpush1.bf16.msra.mxu1 %v12424_v9  ;;  %v12473_v9 = vcombine.high %v1083_v2, %v1087_v4  ;;  %v1127_v2 = vld [vmem:[#allocation7 + $0xbe0] sm:$0xff]  ;;  %v1124_v4 = vld [vmem:[#allocation7 + $0xbc8] sm:$0xff] }
 0x25b   :  { %9779 = vmatpush1.bf16.msra.mxu0 %v12426_v10  ;;  %9329 = vmatprep.subr.bf16.mxu1 %v12433_v12  ;;  %v12475_v10 = vcombine.high %v1084_v5, %v1088_v6  ;;  %v1091_v12 = vld [vmem:[#allocation7 + $0xac0] sm:$0xff]  ;;  %v1128_v5 = vld [vmem:[#allocation7 + $0xbe8] sm:$0xff] }
 0x25c   :  { %9780 = vmatprep.subr.bf16.mxu0 %v12435_v52  ;;  %v1095_v52 = vld [vmem:[#allocation7 + $0xae0] sm:$0xff]  ;;  %v294_v6 = vld [vmem:[#allocation5 + $0x38] sm:$0xff] }
 0x25d   :  { %v12480_v34 = vcombine.low %v1091_v12, %v1095_v52 }
 0x25e   :  { %9330 = vmatpush1.bf16.msra.mxu1 %v12432_v25  ;;  %v12481_v25 = vcombine.high %v1091_v12, %v1095_v52  ;;  %v12515_v12 = vcombine.high %v1124_v4, %v1128_v5  ;;  %v1131_v52 = vld [vmem:[#allocation7 + $0xc00] sm:$0xff] }
 0x25f   :  { %9781 = vmatpush1.bf16.msra.mxu0 %v12434_v28  ;;  %9331 = vmatprep.subr.bf16.mxu1 %v12441_v29  ;;  %v12483_v28 = vcombine.high %v1092_v14, %v1096_v15  ;;  %v1099_v29 = vld [vmem:[#allocation7 + $0xb00] sm:$0xff]  ;;  %v13843_v15 = vadd.f32 %v14989_v7, %v294_v6 }
 0x260   :  { %9782 = vmatprep.subr.bf16.mxu0 %v12443_v30  ;;  %v1103_v30 = vld [vmem:[#allocation7 + $0xb20] sm:$0xff] }
 0x261   :  { %v12488_v47 = vcombine.low %v1099_v29, %v1103_v30  ;;  %v1135_v14 = vld [vmem:[#allocation7 + $0xc20] sm:$0xff] }
 0x262   :  { %9332 = vmatpush1.bf16.msra.mxu1 %v12440_v36  ;;  %v12489_v36 = vcombine.high %v1099_v29, %v1103_v30  ;;  %v12514_v29 = vcombine.low %v1124_v4, %v1128_v5  ;;  %v12521_v30 = vcombine.high %v1131_v52, %v1135_v14  ;;  %v1163_v5 = vld [vmem:[#allocation7 + $0xd00] sm:$0xff] }
 0x263   :  { %9783 = vmatpush1.bf16.msra.mxu0 %v12442_v38  ;;  %9333 = vmatprep.subr.bf16.mxu1 %v12449_v39  ;;  %v12491_v38 = vcombine.high %v1100_v0, %v1104_v33  ;;  %v1107_v39 = vld [vmem:[#allocation7 + $0xb40] sm:$0xff]  ;;  %v666_v0 = vmax.f32 %v13843_v15, 0.0 }
 0x264   :  { %9784 = vmatprep.subr.bf16.mxu0 %v12451_v40  ;;  %v1111_v40 = vld [vmem:[#allocation7 + $0xb60] sm:$0xff] }
 0x265   :  { %v12496_v21 = vcombine.low %v1107_v39, %v1111_v40  ;;  %v1139_v33 = vld [vmem:[#allocation7 + $0xc40] sm:$0xff] }
 0x266   :  { %9334 = vmatpush1.bf16.msra.mxu1 %v12448_v49  ;;  %v12497_v49 = vcombine.high %v1107_v39, %v1111_v40  ;;  %v1167_v6 = vld [vmem:[#allocation7 + $0xd20] sm:$0xff] }
 0x267   :  { %9785 = vmatpush1.bf16.msra.mxu0 %v12450_v50  ;;  %9335 = vmatprep.subr.bf16.mxu1 %v12457_v51  ;;  %v12499_v50 = vcombine.high %v1108_v44, %v1112_v45  ;;  %v1115_v51 = vld [vmem:[#allocation7 + $0xb80] sm:$0xff] }
 0x268   :  { %9786 = vmatprep.subr.bf16.mxu0 %v12459_v55  ;;  %v1119_v55 = vld [vmem:[#allocation7 + $0xba0] sm:$0xff] }
 0x269   :  { %v1147_v44 = vld [vmem:[#allocation7 + $0xc80] sm:$0xff] }
 0x26a   :  { %9336 = vmatpush1.bf16.msra.mxu1 %v12456_v59  ;;  %v12505_v59 = vcombine.high %v1115_v51, %v1119_v55  ;;  %v1151_v45 = vld [vmem:[#allocation7 + $0xca0] sm:$0xff] }
 0x26b   :  { %9787 = vmatpush1.bf16.msra.mxu0 %v12458_v61  ;;  %9337 = vmatprep.subr.bf16.mxu1 %v12465_v62  ;;  %v291_v61 = vld [vmem:[#allocation5 + $0x20] sm:$0xff]  ;;  %v12507_v62 = vcombine.high %v1116_v56, %v1120_v20  ;;  %v1175_v15 = vld [vmem:[#allocation7 + $0xd60] sm:$0xff] }
 0x26c   :  { %9788 = vmatprep.subr.bf16.mxu0 %v12467_v1  ;;  %v1123_v1 = vld [vmem:[#allocation7 + $0xbc0] sm:$0xff] }
 0x26e   :  { %9338 = vmatpush1.bf16.msra.mxu1 %v12464_v8  ;;  %v12504_v8 = vcombine.low %v1115_v51, %v1119_v55 }
 0x26f   :  { %9789 = vmatpush1.bf16.msra.mxu0 %v12466_v17  ;;  %9339 = vmatprep.subr.bf16.mxu1 %v12473_v9  ;;  %v13840_v17 = vadd.f32 %v14979_v41, %v291_v61  ;;  %v12506_v9 = vcombine.low %v1116_v56, %v1120_v20  ;;  %v12537_v56 = vcombine.high %v1147_v44, %v1151_v45  ;;  %v1160_v61 = vld [vmem:[#allocation7 + $0xce8] sm:$0xff] }
 0x270   :  { %9790 = vmatprep.subr.bf16.mxu0 %v12475_v10  ;;  %v12513_v10 = vcombine.high %v1123_v1, %v1127_v2 }
 0x272   :  { %9340 = vmatpush1.bf16.msra.mxu1 %v12472_v16  ;;  %v1132_v16 = vld [vmem:[#allocation7 + $0xc08] sm:$0xff] }
 0x273   :  { %9791 = vmatpush1.bf16.msra.mxu0 %v12474_v23  ;;  %9341 = vmatprep.subr.bf16.mxu1 %v12481_v25  ;;  %v1136_v23 = vld [vmem:[#allocation7 + $0xc28] sm:$0xff]  ;;  %v12512_v25 = vcombine.low %v1123_v1, %v1127_v2 }
 0x274   :  { %9792 = vmatprep.subr.bf16.mxu0 %v12483_v28  ;;  %v663_v28 = vmax.f32 %v13840_v17, 0.0  ;;  %v12523_v41 = vcombine.high %v1132_v16, %v1136_v23  ;;  %v12522_v7 = vcombine.low %v1132_v16, %v1136_v23  ;;  %v1168_v17 = vld [vmem:[#allocation7 + $0xd28] sm:$0xff] }
 0x275   :  { %v1172_v16 = vld [vmem:[#allocation7 + $0xd48] sm:$0xff] }
 0x276   :  { %9342 = vmatpush1.bf16.msra.mxu1 %v12480_v34  ;;  %v1143_v34 = vld [vmem:[#allocation7 + $0xc60] sm:$0xff]  ;;  %v15031_v39 = vpack.c.bf16 %v663_v28, %v663_v28  ;;  %v1176_v23 = vld [vmem:[#allocation7 + $0xd68] sm:$0xff] }
 0x277   :  { %9793 = vmatpush1.bf16.msra.mxu0 %v12482_v35  ;;  %9343 = vmatprep.subr.bf16.mxu1 %v12489_v36  ;;  %v12520_v35 = vcombine.low %v1131_v52, %v1135_v14  ;;  %v1140_v36 = vld [vmem:[#allocation7 + $0xc48] sm:$0xff]  ;;  %v12529_v40 = vcombine.high %v1139_v33, %v1143_v34  ;;  %v12528_v51 = vcombine.low %v1139_v33, %v1143_v34  ;;  %v1171_v14 = vld [vmem:[#allocation7 + $0xd40] sm:$0xff] }
 0x278   :  { %9794 = vmatprep.subr.bf16.mxu0 %v12491_v38  ;;  %v1144_v38 = vld [vmem:[#allocation7 + $0xc68] sm:$0xff] }
 0x279   :  { %v12530_v55 = vcombine.low %v1140_v36, %v1144_v38  ;;  %v1180_v33 = vld [vmem:[#allocation7 + $0xd88] sm:$0xff] }
 0x27a   :  { %9344 = vmatpush1.bf16.msra.mxu1 %v12488_v47  ;;  %v15033_v47 = vpack.c.bf16 %v666_v0, %v666_v0  ;;  %v1183_v0 = vld [vmem:[#allocation7 + $0xda0] sm:$0xff]  ;;  %v1184_v34 = vld [vmem:[#allocation7 + $0xda8] sm:$0xff] }
 0x27b   :  { %9795 = vmatpush1.bf16.msra.mxu0 %v12490_v48  ;;  %9345 = vmatprep.subr.bf16.mxu1 %v12497_v49  ;;  %v12531_v48 = vcombine.high %v1140_v36, %v1144_v38  ;;  %v1148_v49 = vld [vmem:[#allocation7 + $0xc88] sm:$0xff]  ;;  %v12562_v36 = vcombine.low %v1172_v16, %v1176_v23 }
 0x27c   :  { %9796 = vmatprep.subr.bf16.mxu0 %v12499_v50  ;;  %v1152_v50 = vld [vmem:[#allocation7 + $0xca8] sm:$0xff] }
 0x27d   :  { %v12539_v20 = vcombine.high %v1148_v49, %v1152_v50  ;;  %v12538_v1 = vcombine.low %v1148_v49, %v1152_v50  ;;  %v12570_v50 = vcombine.low %v1180_v33, %v1184_v34 }
 0x27e   :  { %9346 = vmatpush1.bf16.msra.mxu1 %v12496_v21  ;;  %v1155_v21 = vld [vmem:[#allocation7 + $0xcc0] sm:$0xff] }
 0x27f   :  { %9797 = vmatpush1.bf16.msra.mxu0 %v12498_v58  ;;  %9347 = vmatprep.subr.bf16.mxu1 %v12505_v59  ;;  %v1159_v58 = vld [vmem:[#allocation7 + $0xce0] sm:$0xff]  ;;  %v1156_v59 = vld [vmem:[#allocation7 + $0xcc8] sm:$0xff] }
 0x280   :  { %9798 = vmatprep.subr.bf16.mxu0 %v12507_v62  ;;  %v12536_v62 = vcombine.low %v1147_v44, %v1151_v45  ;;  %v12545_v2 = vcombine.high %v1155_v21, %v1159_v58  ;;  %v12547_v4 = vcombine.high %v1156_v59, %v1160_v61  ;;  %v1191_v44 = vld [vmem:[#allocation7 + $0xde0] sm:$0xff]  ;;  %v1188_v45 = vld [vmem:[#allocation7 + $0xdc8] sm:$0xff] }
 0x282   :  { %9348 = vmatpush1.bf16.msra.mxu1 %v12504_v8  ;;  %v1164_v8 = vld [vmem:[#allocation7 + $0xd08] sm:$0xff] }
 0x283   :  { %9799 = vmatpush1.bf16.msra.mxu0 %v12506_v9  ;;  %9349 = vmatprep.subr.bf16.mxu1 %v12513_v10  ;;  %v12544_v9 = vcombine.low %v1155_v21, %v1159_v58  ;;  %v12546_v10 = vcombine.low %v1156_v59, %v1160_v61  ;;  %v12555_v52 = vcombine.high %v1164_v8, %v1168_v17  ;;  %v1196_v21 = vld [vmem:[#allocation7 + $0xe08] sm:$0xff] }
 0x284   :  { %9800 = vmatprep.subr.bf16.mxu0 %v12515_v12  ;;  %v12553_v12 = vcombine.high %v1163_v5, %v1167_v6  ;;  %v12554_v28 = vcombine.low %v1164_v8, %v1168_v17  ;;  %v1200_v58 = vld [vmem:[#allocation7 + $0xe28] sm:$0xff] }
 0x285   :  { %v12586_v17 = vcombine.low %v1196_v21, %v1200_v58 }
 0x286   :  { %9350 = vmatpush1.bf16.msra.mxu1 %v12512_v25  ;;  %v12552_v25 = vcombine.low %v1163_v5, %v1167_v6  ;;  %v1204_v5 = vld [vmem:[#allocation7 + $0xe48] sm:$0xff] }
 0x287   :  { %9801 = vmatpush1.bf16.msra.mxu0 %v12514_v29  ;;  %9360 = vmatprep.subr.bf16.mxu1 %v12521_v30  ;;  %v12561_v29 = vcombine.high %v1171_v14, %v1175_v15  ;;  %v12563_v30 = vcombine.high %v1172_v16, %v1176_v23  ;;  %v1208_v6 = vld [vmem:[#allocation7 + $0xe68] sm:$0xff] }
 0x288   :  { %9811 = vmatprep.subr.bf16.mxu0 %v12523_v41  ;;  %v1179_v41 = vld [vmem:[#allocation7 + $0xd80] sm:$0xff]  ;;  %v12594_v23 = vcombine.low %v1204_v5, %v1208_v6 }
 0x289   :  { %9352 = vmatmul.mubr.bf16.vlgmr.msra.gmra.mrb[0].mxu1 %v15031_v39  ;;  %v12569_v38 = vcombine.high %v1179_v41, %v1183_v0  ;;  %v12568_v49 = vcombine.low %v1179_v41, %v1183_v0  ;;  %v1220_v41 = vld [vmem:[#allocation7 + $0xec8] sm:$0xff] }
 0x28a   :  { %9803 = vmatmul.mubr.bf16.vlgmr.msra.gmra.mrb[44].mxu0 %v15031_v39  ;;  %9361 = vmatpush1.bf16.msra.mxu1 %v12520_v35  ;;  %v12560_v35 = vcombine.low %v1171_v14, %v1175_v15  ;;  %v1212_v14 = vld [vmem:[#allocation7 + $0xe88] sm:$0xff] }
 0x28b   :  { %9392 = vmatprep.mubr.bf16.mxu1 %v15033_v47  ;;  %9812 = vmatpush1.bf16.msra.mxu0 %v12522_v7  ;;  %v12571_v7 = vcombine.high %v1180_v33, %v1184_v34  ;;  %v1216_v15 = vld [vmem:[#allocation7 + $0xea8] sm:$0xff] }
 0x28c   :  { %9843 = vmatprep.mubr.bf16.mxu0 %v15033_v47  ;;  %9362 = vmatprep.subr.bf16.mxu1 %v12529_v40  ;;  %v1187_v40 = vld [vmem:[#allocation7 + $0xdc0] sm:$0xff]  ;;  %v1224_v0 = vld [vmem:[#allocation7 + $0xee8] sm:$0xff]  ;;  %v12602_v34 = vcombine.low %v1212_v14, %v1216_v15 }
 0x28d   :  { %9813 = vmatprep.subr.bf16.mxu0 %v12531_v48  ;;  %v1192_v48 = vld [vmem:[#allocation7 + $0xde8] sm:$0xff]  ;;  %v12576_v59 = vcombine.low %v1187_v40, %v1191_v44 }
 0x28e   :  { %9363 = vmatpush1.bf16.msra.mxu1 %v12528_v51  ;;  %v12577_v51 = vcombine.high %v1187_v40, %v1191_v44  ;;  %v12578_v61 = vcombine.low %v1188_v45, %v1192_v48  ;;  %v1228_v40 = vld [vmem:[#allocation7 + $0xf08] sm:$0xff] }
 0x28f   :  { %9814 = vmatpush1.bf16.msra.mxu0 %v12530_v55  ;;  %9364 = vmatprep.subr.bf16.mxu1 %v12537_v56  ;;  %v12579_v55 = vcombine.high %v1188_v45, %v1192_v48  ;;  %v1195_v56 = vld [vmem:[#allocation7 + $0xe00] sm:$0xff]  ;;  %v1232_v44 = vld [vmem:[#allocation7 + $0xf28] sm:$0xff]  ;;  %v12610_v48 = vcombine.low %v1220_v41, %v1224_v0 }
 0x290   :  { %9815 = vmatprep.subr.bf16.mxu0 %v12539_v20  ;;  %v1199_v20 = vld [vmem:[#allocation7 + $0xe20] sm:$0xff] }
 0x291   :  { %v12584_v8 = vcombine.low %v1195_v56, %v1199_v20 }
 0x292   :  { %9365 = vmatpush1.bf16.msra.mxu1 %v12536_v62  ;;  %v12585_v62 = vcombine.high %v1195_v56, %v1199_v20  ;;  %v1236_v56 = vld [vmem:[#allocation7 + $0xf48] sm:$0xff] }
 0x293   :  { %9816 = vmatpush1.bf16.msra.mxu0 %v12538_v1  ;;  %9366 = vmatprep.subr.bf16.mxu1 %v12545_v2  ;;  %v12587_v1 = vcombine.high %v1196_v21, %v1200_v58  ;;  %v1203_v2 = vld [vmem:[#allocation7 + $0xe40] sm:$0xff]  ;;  %v1240_v20 = vld [vmem:[#allocation7 + $0xf68] sm:$0xff]  ;;  %v12618_v58 = vcombine.low %v1228_v40, %v1232_v44 }
 0x294   :  { %9817 = vmatprep.subr.bf16.mxu0 %v12547_v4  ;;  %v1207_v4 = vld [vmem:[#allocation7 + $0xe60] sm:$0xff] }
 0x295   :  { %v12592_v16 = vcombine.low %v1203_v2, %v1207_v4 }
 0x296   :  { %9367 = vmatpush1.bf16.msra.mxu1 %v12544_v9  ;;  %v12593_v9 = vcombine.high %v1203_v2, %v1207_v4  ;;  %v1244_v2 = vld [vmem:[#allocation7 + $0xf88] sm:$0xff] }
 0x297   :  { %9818 = vmatpush1.bf16.msra.mxu0 %v12546_v10  ;;  %9368 = vmatprep.subr.bf16.mxu1 %v12553_v12  ;;  %v12595_v10 = vcombine.high %v1204_v5, %v1208_v6  ;;  %v1211_v12 = vld [vmem:[#allocation7 + $0xe80] sm:$0xff]  ;;  %v1248_v4 = vld [vmem:[#allocation7 + $0xfa8] sm:$0xff]  ;;  %v12626_v6 = vcombine.low %v1236_v56, %v1240_v20 }
 0x298   :  { %9819 = vmatprep.subr.bf16.mxu0 %v12555_v52  ;;  %v1215_v52 = vld [vmem:[#allocation7 + $0xea0] sm:$0xff] }
 0x299   :  { %v12600_v33 = vcombine.low %v1211_v12, %v1215_v52 }
 0x29a   :  { %9369 = vmatpush1.bf16.msra.mxu1 %v12552_v25  ;;  %v12601_v25 = vcombine.high %v1211_v12, %v1215_v52  ;;  %v1255_v12 = vld [vmem:[#allocation7 + $0xfe0] sm:$0xff]  ;;  %v1252_v52 = vld [vmem:[#allocation7 + $0xfc8] sm:$0xff] }
 0x29b   :  { %9820 = vmatpush1.bf16.msra.mxu0 %v12554_v28  ;;  %9370 = vmatprep.subr.bf16.mxu1 %v12561_v29  ;;  %v12603_v28 = vcombine.high %v1212_v14, %v1216_v15  ;;  %v1219_v29 = vld [vmem:[#allocation7 + $0xec0] sm:$0xff]  ;;  %v1256_v14 = vld [vmem:[#allocation7 + $0xfe8] sm:$0xff]  ;;  %v296_v15 = vld [vmem:[#allocation5 + $0x48] sm:$0xff] }
 0x29c   :  { %9821 = vmatprep.subr.bf16.mxu0 %v12563_v30  ;;  %v1223_v30 = vld [vmem:[#allocation7 + $0xee0] sm:$0xff] }
 0x29d   :  { %v12608_v45 = vcombine.low %v1219_v29, %v1223_v30 }
 0x29e   :  { %9371 = vmatpush1.bf16.msra.mxu1 %v12560_v35  ;;  %v12609_v35 = vcombine.high %v1219_v29, %v1223_v30  ;;  %v12643_v29 = vcombine.high %v1252_v52, %v1256_v14  ;;  %v1259_v30 = vld [vmem:[#allocation7 + $0x1000] sm:$0xff] }
 0x29f   :  { %9822 = vmatpush1.bf16.msra.mxu0 %v12562_v36  ;;  %9372 = vmatprep.subr.bf16.mxu1 %v12569_v38  ;;  %v12611_v36 = vcombine.high %v1220_v41, %v1224_v0  ;;  %v1227_v38 = vld [vmem:[#allocation7 + $0xf00] sm:$0xff]  ;;  %v13845_v0 = vadd.f32 %v14993_v31, %v296_v15 }
 0x2a0   :  { %9823 = vmatprep.subr.bf16.mxu0 %v12571_v7  ;;  %v1231_v7 = vld [vmem:[#allocation7 + $0xf20] sm:$0xff] }
 0x2a1   :  { %v12616_v21 = vcombine.low %v1227_v38, %v1231_v7  ;;  %v1263_v41 = vld [vmem:[#allocation7 + $0x1020] sm:$0xff] }
 0x2a2   :  { %9373 = vmatpush1.bf16.msra.mxu1 %v12568_v49  ;;  %v12617_v49 = vcombine.high %v1227_v38, %v1231_v7  ;;  %v12642_v38 = vcombine.low %v1252_v52, %v1256_v14  ;;  %v12649_v7 = vcombine.high %v1259_v30, %v1263_v41  ;;  %v1291_v14 = vld [vmem:[#allocation7 + $0x1100] sm:$0xff] }
 0x2a3   :  { %9824 = vmatpush1.bf16.msra.mxu0 %v12570_v50  ;;  %9374 = vmatprep.subr.bf16.mxu1 %v12577_v51  ;;  %v12619_v50 = vcombine.high %v1228_v40, %v1232_v44  ;;  %v1235_v51 = vld [vmem:[#allocation7 + $0xf40] sm:$0xff]  ;;  %v668_v40 = vmax.f32 %v13845_v0, 0.0 }
 0x2a4   :  { %9825 = vmatprep.subr.bf16.mxu0 %v12579_v55  ;;  %v1239_v55 = vld [vmem:[#allocation7 + $0xf60] sm:$0xff] }
 0x2a5   :  { %v12624_v5 = vcombine.low %v1235_v51, %v1239_v55  ;;  %v1267_v44 = vld [vmem:[#allocation7 + $0x1040] sm:$0xff] }
 0x2a6   :  { %9375 = vmatpush1.bf16.msra.mxu1 %v12576_v59  ;;  %v12625_v59 = vcombine.high %v1235_v51, %v1239_v55  ;;  %v1295_v15 = vld [vmem:[#allocation7 + $0x1120] sm:$0xff] }
 0x2a7   :  { %9826 = vmatpush1.bf16.msra.mxu0 %v12578_v61  ;;  %9376 = vmatprep.subr.bf16.mxu1 %v12585_v62  ;;  %v12627_v61 = vcombine.high %v1236_v56, %v1240_v20  ;;  %v1243_v62 = vld [vmem:[#allocation7 + $0xf80] sm:$0xff] }
 0x2a8   :  { %9827 = vmatprep.subr.bf16.mxu0 %v12587_v1  ;;  %v1247_v1 = vld [vmem:[#allocation7 + $0xfa0] sm:$0xff] }
 0x2a9   :  { %v1275_v56 = vld [vmem:[#allocation7 + $0x1080] sm:$0xff] }
 0x2aa   :  { %9377 = vmatpush1.bf16.msra.mxu1 %v12584_v8  ;;  %v12633_v8 = vcombine.high %v1243_v62, %v1247_v1  ;;  %v1279_v20 = vld [vmem:[#allocation7 + $0x10a0] sm:$0xff] }
 0x2ab   :  { %9828 = vmatpush1.bf16.msra.mxu0 %v12586_v17  ;;  %9378 = vmatprep.subr.bf16.mxu1 %v12593_v9  ;;  %v293_v17 = vld [vmem:[#allocation5 + $0x30] sm:$0xff]  ;;  %v12635_v9 = vcombine.high %v1244_v2, %v1248_v4 }
 0x2ac   :  { %9829 = vmatprep.subr.bf16.mxu0 %v12595_v10  ;;  %v1251_v10 = vld [vmem:[#allocation7 + $0xfc0] sm:$0xff] }
 0x2ad   :  { %v1303_v0 = vld [vmem:[#allocation7 + $0x1160] sm:$0xff] }
 0x2ae   :  { %9379 = vmatpush1.bf16.msra.mxu1 %v12592_v16  ;;  %v12632_v16 = vcombine.low %v1243_v62, %v1247_v1 }
 0x2af   :  { %9830 = vmatpush1.bf16.msra.mxu0 %v12594_v23  ;;  %9380 = vmatprep.subr.bf16.mxu1 %v12601_v25  ;;  %v13842_v23 = vadd.f32 %v14987_v60, %v293_v17  ;;  %v12634_v25 = vcombine.low %v1244_v2, %v1248_v4  ;;  %v12665_v2 = vcombine.high %v1275_v56, %v1279_v20  ;;  %v1288_v17 = vld [vmem:[#allocation7 + $0x10e8] sm:$0xff] }
 0x2b0   :  { %9831 = vmatprep.subr.bf16.mxu0 %v12603_v28  ;;  %v12641_v28 = vcombine.high %v1251_v10, %v1255_v12 }
 0x2b2   :  { %9381 = vmatpush1.bf16.msra.mxu1 %v12600_v33  ;;  %v1260_v33 = vld [vmem:[#allocation7 + $0x1008] sm:$0xff] }
 0x2b3   :  { %9832 = vmatpush1.bf16.msra.mxu0 %v12602_v34  ;;  %9382 = vmatprep.subr.bf16.mxu1 %v12609_v35  ;;  %v1264_v34 = vld [vmem:[#allocation7 + $0x1028] sm:$0xff]  ;;  %v12640_v35 = vcombine.low %v1251_v10, %v1255_v12 }
 0x2b4   :  { %9833 = vmatprep.subr.bf16.mxu0 %v12611_v36  ;;  %v665_v36 = vmax.f32 %v13842_v23, 0.0  ;;  %v12651_v60 = vcombine.high %v1260_v33, %v1264_v34  ;;  %v12650_v31 = vcombine.low %v1260_v33, %v1264_v34  ;;  %v1296_v23 = vld [vmem:[#allocation7 + $0x1128] sm:$0xff] }
 0x2b5   :  { %v1300_v33 = vld [vmem:[#allocation7 + $0x1148] sm:$0xff] }
 0x2b6   :  { %9383 = vmatpush1.bf16.msra.mxu1 %v12608_v45  ;;  %v1271_v45 = vld [vmem:[#allocation7 + $0x1060] sm:$0xff]  ;;  %v15041_v51 = vpack.c.bf16 %v665_v36, %v665_v36  ;;  %v1304_v34 = vld [vmem:[#allocation7 + $0x1168] sm:$0xff] }
 0x2b7   :  { %9834 = vmatpush1.bf16.msra.mxu0 %v12610_v48  ;;  %9384 = vmatprep.subr.bf16.mxu1 %v12617_v49  ;;  %v12648_v48 = vcombine.low %v1259_v30, %v1263_v41  ;;  %v1268_v49 = vld [vmem:[#allocation7 + $0x1048] sm:$0xff]  ;;  %v12657_v55 = vcombine.high %v1267_v44, %v1271_v45  ;;  %v12656_v62 = vcombine.low %v1267_v44, %v1271_v45  ;;  %v1299_v41 = vld [vmem:[#allocation7 + $0x1140] sm:$0xff] }
 0x2b8   :  { %9835 = vmatprep.subr.bf16.mxu0 %v12619_v50  ;;  %v1272_v50 = vld [vmem:[#allocation7 + $0x1068] sm:$0xff] }
 0x2b9   :  { %v12658_v1 = vcombine.low %v1268_v49, %v1272_v50  ;;  %v1308_v44 = vld [vmem:[#allocation7 + $0x1188] sm:$0xff] }
 0x2ba   :  { %9385 = vmatpush1.bf16.msra.mxu1 %v12616_v21  ;;  %v15043_v21 = vpack.c.bf16 %v668_v40, %v668_v40  ;;  %v1311_v40 = vld [vmem:[#allocation7 + $0x11a0] sm:$0xff]  ;;  %v1312_v45 = vld [vmem:[#allocation7 + $0x11a8] sm:$0xff] }
 0x2bb   :  { %9836 = vmatpush1.bf16.msra.mxu0 %v12618_v58  ;;  %9386 = vmatprep.subr.bf16.mxu1 %v12625_v59  ;;  %v12659_v58 = vcombine.high %v1268_v49, %v1272_v50  ;;  %v1276_v59 = vld [vmem:[#allocation7 + $0x1088] sm:$0xff]  ;;  %v12690_v49 = vcombine.low %v1300_v33, %v1304_v34 }
 0x2bc   :  { %9837 = vmatprep.subr.bf16.mxu0 %v12627_v61  ;;  %v1280_v61 = vld [vmem:[#allocation7 + $0x10a8] sm:$0xff] }
 0x2bd   :  { %v12667_v4 = vcombine.high %v1276_v59, %v1280_v61  ;;  %v12666_v10 = vcombine.low %v1276_v59, %v1280_v61  ;;  %v12698_v61 = vcombine.low %v1308_v44, %v1312_v45 }
 0x2be   :  { %9387 = vmatpush1.bf16.msra.mxu1 %v12624_v5  ;;  %v1283_v5 = vld [vmem:[#allocation7 + $0x10c0] sm:$0xff] }
 0x2bf   :  { %9838 = vmatpush1.bf16.msra.mxu0 %v12626_v6  ;;  %9388 = vmatprep.subr.bf16.mxu1 %v12633_v8  ;;  %v1287_v6 = vld [vmem:[#allocation7 + $0x10e0] sm:$0xff]  ;;  %v1284_v8 = vld [vmem:[#allocation7 + $0x10c8] sm:$0xff] }
 0x2c0   :  { %9839 = vmatprep.subr.bf16.mxu0 %v12635_v9  ;;  %v12664_v9 = vcombine.low %v1275_v56, %v1279_v20  ;;  %v12673_v12 = vcombine.high %v1283_v5, %v1287_v6  ;;  %v12675_v52 = vcombine.high %v1284_v8, %v1288_v17  ;;  %v1319_v56 = vld [vmem:[#allocation7 + $0x11e0] sm:$0xff]  ;;  %v1316_v20 = vld [vmem:[#allocation7 + $0x11c8] sm:$0xff] }
 0x2c2   :  { %9389 = vmatpush1.bf16.msra.mxu1 %v12632_v16  ;;  %v1292_v16 = vld [vmem:[#allocation7 + $0x1108] sm:$0xff] }
 0x2c3   :  { %9840 = vmatpush1.bf16.msra.mxu0 %v12634_v25  ;;  %9390 = vmatprep.subr.bf16.mxu1 %v12641_v28  ;;  %v12672_v25 = vcombine.low %v1283_v5, %v1287_v6  ;;  %v12674_v28 = vcombine.low %v1284_v8, %v1288_v17  ;;  %v12683_v30 = vcombine.high %v1292_v16, %v1296_v23  ;;  %v1324_v5 = vld [vmem:[#allocation7 + $0x1208] sm:$0xff] }
 0x2c4   :  { %9841 = vmatprep.subr.bf16.mxu0 %v12643_v29  ;;  %v12681_v29 = vcombine.high %v1291_v14, %v1295_v15  ;;  %v12682_v36 = vcombine.low %v1292_v16, %v1296_v23  ;;  %v1328_v6 = vld [vmem:[#allocation7 + $0x1228] sm:$0xff] }
 0x2c5   :  { %v12714_v23 = vcombine.low %v1324_v5, %v1328_v6 }
 0x2c6   :  { %9391 = vmatpush1.bf16.msra.mxu1 %v12640_v35  ;;  %v12680_v35 = vcombine.low %v1291_v14, %v1295_v15  ;;  %v1332_v14 = vld [vmem:[#allocation7 + $0x1248] sm:$0xff] }
 0x2c7   :  { %9842 = vmatpush1.bf16.msra.mxu0 %v12642_v38  ;;  %9401 = vmatprep.subr.bf16.mxu1 %v12649_v7  ;;  %v12689_v38 = vcombine.high %v1299_v41, %v1303_v0  ;;  %v12691_v7 = vcombine.high %v1300_v33, %v1304_v34  ;;  %v1336_v15 = vld [vmem:[#allocation7 + $0x1268] sm:$0xff] }
 0x2c8   :  { %9852 = vmatprep.subr.bf16.mxu0 %v12651_v60  ;;  %v1307_v60 = vld [vmem:[#allocation7 + $0x1180] sm:$0xff]  ;;  %v12722_v34 = vcombine.low %v1332_v14, %v1336_v15 }
 0x2c9   :  { %9393 = vmatmul.mubr.bf16.vlgmr.msra.gmra.mrb[0].mxu1 %v15041_v51  ;;  %v12697_v50 = vcombine.high %v1307_v60, %v1311_v40  ;;  %v12696_v59 = vcombine.low %v1307_v60, %v1311_v40  ;;  %v1348_v60 = vld [vmem:[#allocation7 + $0x12c8] sm:$0xff] }
 0x2ca   :  { %9844 = vmatmul.mubr.bf16.vlgmr.msra.gmra.mrb[44].mxu0 %v15041_v51  ;;  %9402 = vmatpush1.bf16.msra.mxu1 %v12648_v48  ;;  %v12688_v48 = vcombine.low %v1299_v41, %v1303_v0  ;;  %v1340_v41 = vld [vmem:[#allocation7 + $0x1288] sm:$0xff] }
 0x2cb   :  { %9433 = vmatprep.mubr.bf16.mxu1 %v15043_v21  ;;  %9853 = vmatpush1.bf16.msra.mxu0 %v12650_v31  ;;  %v12699_v31 = vcombine.high %v1308_v44, %v1312_v45  ;;  %v1344_v0 = vld [vmem:[#allocation7 + $0x12a8] sm:$0xff] }
 0x2cc   :  { %9884 = vmatprep.mubr.bf16.mxu0 %v15043_v21  ;;  %9403 = vmatprep.subr.bf16.mxu1 %v12657_v55  ;;  %v1315_v55 = vld [vmem:[#allocation7 + $0x11c0] sm:$0xff]  ;;  %v1352_v40 = vld [vmem:[#allocation7 + $0x12e8] sm:$0xff]  ;;  %v12730_v45 = vcombine.low %v1340_v41, %v1344_v0 }
 0x2cd   :  { %9854 = vmatprep.subr.bf16.mxu0 %v12659_v58  ;;  %v1320_v58 = vld [vmem:[#allocation7 + $0x11e8] sm:$0xff]  ;;  %v12704_v8 = vcombine.low %v1315_v55, %v1319_v56 }
 0x2ce   :  { %9404 = vmatpush1.bf16.msra.mxu1 %v12656_v62  ;;  %v12705_v62 = vcombine.high %v1315_v55, %v1319_v56  ;;  %v12706_v17 = vcombine.low %v1316_v20, %v1320_v58  ;;  %v1356_v55 = vld [vmem:[#allocation7 + $0x1308] sm:$0xff] }
 0x2cf   :  { %9855 = vmatpush1.bf16.msra.mxu0 %v12658_v1  ;;  %9405 = vmatprep.subr.bf16.mxu1 %v12665_v2  ;;  %v12707_v1 = vcombine.high %v1316_v20, %v1320_v58  ;;  %v1323_v2 = vld [vmem:[#allocation7 + $0x1200] sm:$0xff]  ;;  %v1360_v56 = vld [vmem:[#allocation7 + $0x1328] sm:$0xff]  ;;  %v12738_v58 = vcombine.low %v1348_v60, %v1352_v40 }
 0x2d0   :  { %9856 = vmatprep.subr.bf16.mxu0 %v12667_v4  ;;  %v1327_v4 = vld [vmem:[#allocation7 + $0x1220] sm:$0xff] }
 0x2d1   :  { %v12712_v16 = vcombine.low %v1323_v2, %v1327_v4 }
 0x2d2   :  { %9406 = vmatpush1.bf16.msra.mxu1 %v12664_v9  ;;  %v12713_v9 = vcombine.high %v1323_v2, %v1327_v4  ;;  %v1364_v2 = vld [vmem:[#allocation7 + $0x1348] sm:$0xff] }
 0x2d3   :  { %9857 = vmatpush1.bf16.msra.mxu0 %v12666_v10  ;;  %9407 = vmatprep.subr.bf16.mxu1 %v12673_v12  ;;  %v12715_v10 = vcombine.high %v1324_v5, %v1328_v6  ;;  %v1331_v12 = vld [vmem:[#allocation7 + $0x1240] sm:$0xff]  ;;  %v1368_v4 = vld [vmem:[#allocation7 + $0x1368] sm:$0xff]  ;;  %v12746_v6 = vcombine.low %v1356_v55, %v1360_v56 }
 0x2d4   :  { %9858 = vmatprep.subr.bf16.mxu0 %v12675_v52  ;;  %v1335_v52 = vld [vmem:[#allocation7 + $0x1260] sm:$0xff] }
 0x2d5   :  { %v12720_v33 = vcombine.low %v1331_v12, %v1335_v52 }
 0x2d6   :  { %9408 = vmatpush1.bf16.msra.mxu1 %v12672_v25  ;;  %v12721_v25 = vcombine.high %v1331_v12, %v1335_v52  ;;  %v1372_v12 = vld [vmem:[#allocation7 + $0x1388] sm:$0xff] }
 0x2d7   :  { %9859 = vmatpush1.bf16.msra.mxu0 %v12674_v28  ;;  %9409 = vmatprep.subr.bf16.mxu1 %v12681_v29  ;;  %v12723_v28 = vcombine.high %v1332_v14, %v1336_v15  ;;  %v1339_v29 = vld [vmem:[#allocation7 + $0x1280] sm:$0xff]  ;;  %v1376_v52 = vld [vmem:[#allocation7 + $0x13a8] sm:$0xff]  ;;  %v12754_v15 = vcombine.low %v1364_v2, %v1368_v4 }
 0x2d8   :  { %9860 = vmatprep.subr.bf16.mxu0 %v12683_v30  ;;  %v1343_v30 = vld [vmem:[#allocation7 + $0x12a0] sm:$0xff] }
 0x2d9   :  { %v12728_v44 = vcombine.low %v1339_v29, %v1343_v30 }
 0x2da   :  { %9410 = vmatpush1.bf16.msra.mxu1 %v12680_v35  ;;  %v12729_v35 = vcombine.high %v1339_v29, %v1343_v30  ;;  %v1383_v29 = vld [vmem:[#allocation7 + $0x13e0] sm:$0xff]  ;;  %v1380_v30 = vld [vmem:[#allocation7 + $0x13c8] sm:$0xff] }
 0x2db   :  { %9861 = vmatpush1.bf16.msra.mxu0 %v12682_v36  ;;  %9411 = vmatprep.subr.bf16.mxu1 %v12689_v38  ;;  %v12731_v36 = vcombine.high %v1340_v41, %v1344_v0  ;;  %v1347_v38 = vld [vmem:[#allocation7 + $0x12c0] sm:$0xff]  ;;  %v1384_v41 = vld [vmem:[#allocation7 + $0x13e8] sm:$0xff] }
 0x2dc   :  { %9862 = vmatprep.subr.bf16.mxu0 %v12691_v7  ;;  %v1351_v7 = vld [vmem:[#allocation7 + $0x12e0] sm:$0xff]  ;;  %v298_v0 = vld [vmem:[#allocation5 + $0x58] sm:$0xff] }
 0x2dd   :  { %v12736_v20 = vcombine.low %v1347_v38, %v1351_v7 }
 0x2de   :  { %9412 = vmatpush1.bf16.msra.mxu1 %v12688_v48  ;;  %v12737_v48 = vcombine.high %v1347_v38, %v1351_v7  ;;  %v12771_v38 = vcombine.high %v1380_v30, %v1384_v41  ;;  %v1387_v7 = vld [vmem:[#allocation7 + $0x1400] sm:$0xff] }
 0x2df   :  { %9863 = vmatpush1.bf16.msra.mxu0 %v12690_v49  ;;  %9413 = vmatprep.subr.bf16.mxu1 %v12697_v50  ;;  %v12739_v49 = vcombine.high %v1348_v60, %v1352_v40  ;;  %v1355_v50 = vld [vmem:[#allocation7 + $0x1300] sm:$0xff]  ;;  %v13847_v40 = vadd.f32 %v14997_v54, %v298_v0 }
 0x2e0   :  { %9864 = vmatprep.subr.bf16.mxu0 %v12699_v31  ;;  %v1359_v31 = vld [vmem:[#allocation7 + $0x1320] sm:$0xff] }
 0x2e1   :  { %v12744_v5 = vcombine.low %v1355_v50, %v1359_v31  ;;  %v1391_v60 = vld [vmem:[#allocation7 + $0x1420] sm:$0xff] }
 0x2e2   :  { %9414 = vmatpush1.bf16.msra.mxu1 %v12696_v59  ;;  %v12745_v59 = vcombine.high %v1355_v50, %v1359_v31  ;;  %v12770_v50 = vcombine.low %v1380_v30, %v1384_v41  ;;  %v12777_v31 = vcombine.high %v1387_v7, %v1391_v60  ;;  %v1419_v41 = vld [vmem:[#allocation7 + $0x1500] sm:$0xff] }
 0x2e3   :  { %9865 = vmatpush1.bf16.msra.mxu0 %v12698_v61  ;;  %9415 = vmatprep.subr.bf16.mxu1 %v12705_v62  ;;  %v12747_v61 = vcombine.high %v1356_v55, %v1360_v56  ;;  %v1363_v62 = vld [vmem:[#allocation7 + $0x1340] sm:$0xff]  ;;  %v670_v55 = vmax.f32 %v13847_v40, 0.0 }
 0x2e4   :  { %9866 = vmatprep.subr.bf16.mxu0 %v12707_v1  ;;  %v1367_v1 = vld [vmem:[#allocation7 + $0x1360] sm:$0xff] }
 0x2e5   :  { %v12752_v14 = vcombine.low %v1363_v62, %v1367_v1  ;;  %v1395_v56 = vld [vmem:[#allocation7 + $0x1440] sm:$0xff] }
 0x2e6   :  { %9416 = vmatpush1.bf16.msra.mxu1 %v12704_v8  ;;  %v12753_v8 = vcombine.high %v1363_v62, %v1367_v1  ;;  %v1423_v0 = vld [vmem:[#allocation7 + $0x1520] sm:$0xff] }
 0x2e7   :  { %9867 = vmatpush1.bf16.msra.mxu0 %v12706_v17  ;;  %9417 = vmatprep.subr.bf16.mxu1 %v12713_v9  ;;  %v12755_v17 = vcombine.high %v1364_v2, %v1368_v4  ;;  %v1371_v9 = vld [vmem:[#allocation7 + $0x1380] sm:$0xff] }
 0x2e8   :  { %9868 = vmatprep.subr.bf16.mxu0 %v12715_v10  ;;  %v1375_v10 = vld [vmem:[#allocation7 + $0x13a0] sm:$0xff] }
 0x2e9   :  { %v1403_v2 = vld [vmem:[#allocation7 + $0x1480] sm:$0xff] }
 0x2ea   :  { %9418 = vmatpush1.bf16.msra.mxu1 %v12712_v16  ;;  %v12761_v16 = vcombine.high %v1371_v9, %v1375_v10  ;;  %v1407_v4 = vld [vmem:[#allocation7 + $0x14a0] sm:$0xff] }
 0x2eb   :  { %9869 = vmatpush1.bf16.msra.mxu0 %v12714_v23  ;;  %9419 = vmatprep.subr.bf16.mxu1 %v12721_v25  ;;  %v295_v23 = vld [vmem:[#allocation5 + $0x40] sm:$0xff]  ;;  %v12763_v25 = vcombine.high %v1372_v12, %v1376_v52  ;;  %v1431_v40 = vld [vmem:[#allocation7 + $0x1560] sm:$0xff] }
 0x2ec   :  { %9870 = vmatprep.subr.bf16.mxu0 %v12723_v28  ;;  %v1379_v28 = vld [vmem:[#allocation7 + $0x13c0] sm:$0xff] }
 0x2ee   :  { %9420 = vmatpush1.bf16.msra.mxu1 %v12720_v33  ;;  %v12760_v33 = vcombine.low %v1371_v9, %v1375_v10 }
 0x2ef   :  { %9871 = vmatpush1.bf16.msra.mxu0 %v12722_v34  ;;  %9421 = vmatprep.subr.bf16.mxu1 %v12729_v35  ;;  %v13844_v34 = vadd.f32 %v14991_v19, %v295_v23  ;;  %v12762_v35 = vcombine.low %v1372_v12, %v1376_v52  ;;  %v12793_v12 = vcombine.high %v1403_v2, %v1407_v4  ;;  %v1416_v23 = vld [vmem:[#allocation7 + $0x14e8] sm:$0xff] }
 0x2f0   :  { %9872 = vmatprep.subr.bf16.mxu0 %v12731_v36  ;;  %v12769_v36 = vcombine.high %v1379_v28, %v1383_v29 }
 0x2f2   :  { %9422 = vmatpush1.bf16.msra.mxu1 %v12728_v44  ;;  %v1388_v44 = vld [vmem:[#allocation7 + $0x1408] sm:$0xff] }
 0x2f3   :  { %9873 = vmatpush1.bf16.msra.mxu0 %v12730_v45  ;;  %9423 = vmatprep.subr.bf16.mxu1 %v12737_v48  ;;  %v1392_v45 = vld [vmem:[#allocation7 + $0x1428] sm:$0xff]  ;;  %v12768_v48 = vcombine.low %v1379_v28, %v1383_v29 }
 0x2f4   :  { %9874 = vmatprep.subr.bf16.mxu0 %v12739_v49  ;;  %v667_v49 = vmax.f32 %v13844_v34, 0.0  ;;  %v12779_v19 = vcombine.high %v1388_v44, %v1392_v45  ;;  %v12778_v54 = vcombine.low %v1388_v44, %v1392_v45  ;;  %v1424_v34 = vld [vmem:[#allocation7 + $0x1528] sm:$0xff] }
 0x2f5   :  { %v1428_v44 = vld [vmem:[#allocation7 + $0x1548] sm:$0xff] }
 0x2f6   :  { %9424 = vmatpush1.bf16.msra.mxu1 %v12736_v20  ;;  %v1399_v20 = vld [vmem:[#allocation7 + $0x1460] sm:$0xff]  ;;  %v15051_v62 = vpack.c.bf16 %v667_v49, %v667_v49  ;;  %v1432_v45 = vld [vmem:[#allocation7 + $0x1568] sm:$0xff] }
 0x2f7   :  { %9875 = vmatpush1.bf16.msra.mxu0 %v12738_v58  ;;  %9425 = vmatprep.subr.bf16.mxu1 %v12745_v59  ;;  %v12776_v58 = vcombine.low %v1387_v7, %v1391_v60  ;;  %v1396_v59 = vld [vmem:[#allocation7 + $0x1448] sm:$0xff]  ;;  %v12785_v1 = vcombine.high %v1395_v56, %v1399_v20  ;;  %v12784_v9 = vcombine.low %v1395_v56, %v1399_v20  ;;  %v1427_v60 = vld [vmem:[#allocation7 + $0x1540] sm:$0xff] }
 0x2f8   :  { %9876 = vmatprep.subr.bf16.mxu0 %v12747_v61  ;;  %v1400_v61 = vld [vmem:[#allocation7 + $0x1468] sm:$0xff] }
 0x2f9   :  { %v12786_v10 = vcombine.low %v1396_v59, %v1400_v61  ;;  %v1436_v56 = vld [vmem:[#allocation7 + $0x1588] sm:$0xff] }
 0x2fa   :  { %9426 = vmatpush1.bf16.msra.mxu1 %v12744_v5  ;;  %v15053_v5 = vpack.c.bf16 %v670_v55, %v670_v55  ;;  %v1439_v55 = vld [vmem:[#allocation7 + $0x15a0] sm:$0xff]  ;;  %v1440_v20 = vld [vmem:[#allocation7 + $0x15a8] sm:$0xff] }
 0x2fb   :  { %9877 = vmatpush1.bf16.msra.mxu0 %v12746_v6  ;;  %9427 = vmatprep.subr.bf16.mxu1 %v12753_v8  ;;  %v12787_v6 = vcombine.high %v1396_v59, %v1400_v61  ;;  %v1404_v8 = vld [vmem:[#allocation7 + $0x1488] sm:$0xff]  ;;  %v12818_v59 = vcombine.low %v1428_v44, %v1432_v45 }
 0x2fc   :  { %9878 = vmatprep.subr.bf16.mxu0 %v12755_v17  ;;  %v1408_v17 = vld [vmem:[#allocation7 + $0x14a8] sm:$0xff] }
 0x2fd   :  { %v12795_v52 = vcombine.high %v1404_v8, %v1408_v17  ;;  %v12794_v28 = vcombine.low %v1404_v8, %v1408_v17  ;;  %v12826_v17 = vcombine.low %v1436_v56, %v1440_v20 }
 0x2fe   :  { %9428 = vmatpush1.bf16.msra.mxu1 %v12752_v14  ;;  %v1411_v14 = vld [vmem:[#allocation7 + $0x14c0] sm:$0xff] }
 0x2ff   :  { %9879 = vmatpush1.bf16.msra.mxu0 %v12754_v15  ;;  %9429 = vmatprep.subr.bf16.mxu1 %v12761_v16  ;;  %v1415_v15 = vld [vmem:[#allocation7 + $0x14e0] sm:$0xff]  ;;  %v1412_v16 = vld [vmem:[#allocation7 + $0x14c8] sm:$0xff] }
 0x300   :  { %9880 = vmatprep.subr.bf16.mxu0 %v12763_v25  ;;  %v12792_v25 = vcombine.low %v1403_v2, %v1407_v4  ;;  %v12801_v29 = vcombine.high %v1411_v14, %v1415_v15  ;;  %v12803_v30 = vcombine.high %v1412_v16, %v1416_v23  ;;  %v1447_v2 = vld [vmem:[#allocation7 + $0x15e0] sm:$0xff]  ;;  %v1444_v4 = vld [vmem:[#allocation7 + $0x15c8] sm:$0xff] }
 0x302   :  { %9430 = vmatpush1.bf16.msra.mxu1 %v12760_v33  ;;  %v1420_v33 = vld [vmem:[#allocation7 + $0x1508] sm:$0xff] }
 0x303   :  { %9881 = vmatpush1.bf16.msra.mxu0 %v12762_v35  ;;  %9431 = vmatprep.subr.bf16.mxu1 %v12769_v36  ;;  %v12800_v35 = vcombine.low %v1411_v14, %v1415_v15  ;;  %v12802_v36 = vcombine.low %v1412_v16, %v1416_v23  ;;  %v12811_v7 = vcombine.high %v1420_v33, %v1424_v34  ;;  %v1452_v14 = vld [vmem:[#allocation7 + $0x1608] sm:$0xff] }
 0x304   :  { %9882 = vmatprep.subr.bf16.mxu0 %v12771_v38  ;;  %v12809_v38 = vcombine.high %v1419_v41, %v1423_v0  ;;  %v12810_v49 = vcombine.low %v1420_v33, %v1424_v34  ;;  %v1456_v15 = vld [vmem:[#allocation7 + $0x1628] sm:$0xff] }
 0x305   :  { %v12842_v34 = vcombine.low %v1452_v14, %v1456_v15 }
 0x306   :  { %9432 = vmatpush1.bf16.msra.mxu1 %v12768_v48  ;;  %v12808_v48 = vcombine.low %v1419_v41, %v1423_v0  ;;  %v1460_v41 = vld [vmem:[#allocation7 + $0x1648] sm:$0xff] }
 0x307   :  { %9883 = vmatpush1.bf16.msra.mxu0 %v12770_v50  ;;  %9442 = vmatprep.subr.bf16.mxu1 %v12777_v31  ;;  %v12817_v50 = vcombine.high %v1427_v60, %v1431_v40  ;;  %v12819_v31 = vcombine.high %v1428_v44, %v1432_v45  ;;  %v1464_v0 = vld [vmem:[#allocation7 + $0x1668] sm:$0xff] }
 0x308   :  { %9893 = vmatprep.subr.bf16.mxu0 %v12779_v19  ;;  %v1435_v19 = vld [vmem:[#allocation7 + $0x1580] sm:$0xff]  ;;  %v12850_v45 = vcombine.low %v1460_v41, %v1464_v0 }
 0x309   :  { %9434 = vmatmul.mubr.bf16.vlgmr.msra.gmra.mrb[0].mxu1 %v15051_v62  ;;  %v12825_v61 = vcombine.high %v1435_v19, %v1439_v55  ;;  %v12824_v8 = vcombine.low %v1435_v19, %v1439_v55  ;;  %v1476_v19 = vld [vmem:[#allocation7 + $0x16c8] sm:$0xff] }
 0x30a   :  { %9885 = vmatmul.mubr.bf16.vlgmr.msra.gmra.mrb[44].mxu0 %v15051_v62  ;;  %9443 = vmatpush1.bf16.msra.mxu1 %v12776_v58  ;;  %v12816_v58 = vcombine.low %v1427_v60, %v1431_v40  ;;  %v1468_v60 = vld [vmem:[#allocation7 + $0x1688] sm:$0xff] }
 0x30b   :  { %9474 = vmatprep.mubr.bf16.mxu1 %v15053_v5  ;;  %9894 = vmatpush1.bf16.msra.mxu0 %v12778_v54  ;;  %v12827_v54 = vcombine.high %v1436_v56, %v1440_v20  ;;  %v1472_v40 = vld [vmem:[#allocation7 + $0x16a8] sm:$0xff] }
 0x30c   :  { %9925 = vmatprep.mubr.bf16.mxu0 %v15053_v5  ;;  %9444 = vmatprep.subr.bf16.mxu1 %v12785_v1  ;;  %v1443_v1 = vld [vmem:[#allocation7 + $0x15c0] sm:$0xff]  ;;  %v1480_v55 = vld [vmem:[#allocation7 + $0x16e8] sm:$0xff]  ;;  %v12858_v20 = vcombine.low %v1468_v60, %v1472_v40 }
 0x30d   :  { %9895 = vmatprep.subr.bf16.mxu0 %v12787_v6  ;;  %v1448_v6 = vld [vmem:[#allocation7 + $0x15e8] sm:$0xff]  ;;  %v12832_v16 = vcombine.low %v1443_v1, %v1447_v2 }
 0x30e   :  { %9445 = vmatpush1.bf16.msra.mxu1 %v12784_v9  ;;  %v12833_v9 = vcombine.high %v1443_v1, %v1447_v2  ;;  %v12834_v23 = vcombine.low %v1444_v4, %v1448_v6  ;;  %v1484_v1 = vld [vmem:[#allocation7 + $0x1708] sm:$0xff] }
 0x30f   :  { %9896 = vmatpush1.bf16.msra.mxu0 %v12786_v10  ;;  %9446 = vmatprep.subr.bf16.mxu1 %v12793_v12  ;;  %v12835_v10 = vcombine.high %v1444_v4, %v1448_v6  ;;  %v1451_v12 = vld [vmem:[#allocation7 + $0x1600] sm:$0xff]  ;;  %v1488_v2 = vld [vmem:[#allocation7 + $0x1728] sm:$0xff]  ;;  %v12866_v6 = vcombine.low %v1476_v19, %v1480_v55 }
 0x310   :  { %9897 = vmatprep.subr.bf16.mxu0 %v12795_v52  ;;  %v1455_v52 = vld [vmem:[#allocation7 + $0x1620] sm:$0xff] }
 0x311   :  { %v12840_v33 = vcombine.low %v1451_v12, %v1455_v52 }
 0x312   :  { %9447 = vmatpush1.bf16.msra.mxu1 %v12792_v25  ;;  %v12841_v25 = vcombine.high %v1451_v12, %v1455_v52  ;;  %v1492_v12 = vld [vmem:[#allocation7 + $0x1748] sm:$0xff] }
 0x313   :  { %9898 = vmatpush1.bf16.msra.mxu0 %v12794_v28  ;;  %9448 = vmatprep.subr.bf16.mxu1 %v12801_v29  ;;  %v12843_v28 = vcombine.high %v1452_v14, %v1456_v15  ;;  %v1459_v29 = vld [vmem:[#allocation7 + $0x1640] sm:$0xff]  ;;  %v1496_v52 = vld [vmem:[#allocation7 + $0x1768] sm:$0xff]  ;;  %v12874_v15 = vcombine.low %v1484_v1, %v1488_v2 }
 0x314   :  { %9899 = vmatprep.subr.bf16.mxu0 %v12803_v30  ;;  %v1463_v30 = vld [vmem:[#allocation7 + $0x1660] sm:$0xff] }
 0x315   :  { %v12848_v44 = vcombine.low %v1459_v29, %v1463_v30 }
 0x316   :  { %9449 = vmatpush1.bf16.msra.mxu1 %v12800_v35  ;;  %v12849_v35 = vcombine.high %v1459_v29, %v1463_v30  ;;  %v1500_v29 = vld [vmem:[#allocation7 + $0x1788] sm:$0xff] }
 0x317   :  { %9900 = vmatpush1.bf16.msra.mxu0 %v12802_v36  ;;  %9450 = vmatprep.subr.bf16.mxu1 %v12809_v38  ;;  %v12851_v36 = vcombine.high %v1460_v41, %v1464_v0  ;;  %v1467_v38 = vld [vmem:[#allocation7 + $0x1680] sm:$0xff]  ;;  %v1504_v30 = vld [vmem:[#allocation7 + $0x17a8] sm:$0xff]  ;;  %v12882_v0 = vcombine.low %v1492_v12, %v1496_v52 }
 0x318   :  { %9901 = vmatprep.subr.bf16.mxu0 %v12811_v7  ;;  %v1471_v7 = vld [vmem:[#allocation7 + $0x16a0] sm:$0xff] }
 0x319   :  { %v12856_v56 = vcombine.low %v1467_v38, %v1471_v7 }
 0x31a   :  { %9451 = vmatpush1.bf16.msra.mxu1 %v12808_v48  ;;  %v12857_v48 = vcombine.high %v1467_v38, %v1471_v7  ;;  %v1511_v38 = vld [vmem:[#allocation7 + $0x17e0] sm:$0xff]  ;;  %v1508_v7 = vld [vmem:[#allocation7 + $0x17c8] sm:$0xff] }
 0x31b   :  { %9902 = vmatpush1.bf16.msra.mxu0 %v12810_v49  ;;  %9452 = vmatprep.subr.bf16.mxu1 %v12817_v50  ;;  %v12859_v49 = vcombine.high %v1468_v60, %v1472_v40  ;;  %v1475_v50 = vld [vmem:[#allocation7 + $0x16c0] sm:$0xff]  ;;  %v1512_v60 = vld [vmem:[#allocation7 + $0x17e8] sm:$0xff]  ;;  %v300_v40 = vld [vmem:[#allocation5 + $0x68] sm:$0xff] }
 0x31c   :  { %9903 = vmatprep.subr.bf16.mxu0 %v12819_v31  ;;  %v1479_v31 = vld [vmem:[#allocation7 + $0x16e0] sm:$0xff] }
 0x31d   :  { %v12864_v4 = vcombine.low %v1475_v50, %v1479_v31 }
 0x31e   :  { %9453 = vmatpush1.bf16.msra.mxu1 %v12816_v58  ;;  %v12865_v58 = vcombine.high %v1475_v50, %v1479_v31  ;;  %v12899_v50 = vcombine.high %v1508_v7, %v1512_v60  ;;  %v1515_v31 = vld [vmem:[#allocation7 + $0x1800] sm:$0xff] }
 0x31f   :  { %9904 = vmatpush1.bf16.msra.mxu0 %v12818_v59  ;;  %9454 = vmatprep.subr.bf16.mxu1 %v12825_v61  ;;  %v12867_v59 = vcombine.high %v1476_v19, %v1480_v55  ;;  %v1483_v61 = vld [vmem:[#allocation7 + $0x1700] sm:$0xff]  ;;  %v13849_v55 = vadd.f32 %v15001_v11, %v300_v40 }
 0x320   :  { %9905 = vmatprep.subr.bf16.mxu0 %v12827_v54  ;;  %v1487_v54 = vld [vmem:[#allocation7 + $0x1720] sm:$0xff] }
 0x321   :  { %v12872_v14 = vcombine.low %v1483_v61, %v1487_v54  ;;  %v1519_v19 = vld [vmem:[#allocation7 + $0x1820] sm:$0xff] }
 0x322   :  { %9455 = vmatpush1.bf16.msra.mxu1 %v12824_v8  ;;  %v12873_v8 = vcombine.high %v1483_v61, %v1487_v54  ;;  %v12898_v61 = vcombine.low %v1508_v7, %v1512_v60  ;;  %v12905_v54 = vcombine.high %v1515_v31, %v1519_v19  ;;  %v1547_v60 = vld [vmem:[#allocation7 + $0x1900] sm:$0xff] }
 0x323   :  { %9906 = vmatpush1.bf16.msra.mxu0 %v12826_v17  ;;  %9456 = vmatprep.subr.bf16.mxu1 %v12833_v9  ;;  %v12875_v17 = vcombine.high %v1484_v1, %v1488_v2  ;;  %v1491_v9 = vld [vmem:[#allocation7 + $0x1740] sm:$0xff]  ;;  %v672_v1 = vmax.f32 %v13849_v55, 0.0 }
 0x324   :  { %9907 = vmatprep.subr.bf16.mxu0 %v12835_v10  ;;  %v1495_v10 = vld [vmem:[#allocation7 + $0x1760] sm:$0xff] }
 0x325   :  { %v12880_v41 = vcombine.low %v1491_v9, %v1495_v10  ;;  %v1523_v2 = vld [vmem:[#allocation7 + $0x1840] sm:$0xff] }
 0x326   :  { %9457 = vmatpush1.bf16.msra.mxu1 %v12832_v16  ;;  %v12881_v16 = vcombine.high %v1491_v9, %v1495_v10  ;;  %v1551_v40 = vld [vmem:[#allocation7 + $0x1920] sm:$0xff] }
 0x327   :  { %9908 = vmatpush1.bf16.msra.mxu0 %v12834_v23  ;;  %9458 = vmatprep.subr.bf16.mxu1 %v12841_v25  ;;  %v12883_v23 = vcombine.high %v1492_v12, %v1496_v52  ;;  %v1499_v25 = vld [vmem:[#allocation7 + $0x1780] sm:$0xff] }
 0x328   :  { %9909 = vmatprep.subr.bf16.mxu0 %v12843_v28  ;;  %v1503_v28 = vld [vmem:[#allocation7 + $0x17a0] sm:$0xff] }
 0x329   :  { %v1531_v12 = vld [vmem:[#allocation7 + $0x1880] sm:$0xff] }
 0x32a   :  { %9459 = vmatpush1.bf16.msra.mxu1 %v12840_v33  ;;  %v12889_v33 = vcombine.high %v1499_v25, %v1503_v28  ;;  %v1535_v52 = vld [vmem:[#allocation7 + $0x18a0] sm:$0xff] }
 0x32b   :  { %9910 = vmatpush1.bf16.msra.mxu0 %v12842_v34  ;;  %9460 = vmatprep.subr.bf16.mxu1 %v12849_v35  ;;  %v297_v34 = vld [vmem:[#allocation5 + $0x50] sm:$0xff]  ;;  %v12891_v35 = vcombine.high %v1500_v29, %v1504_v30 }
 0x32c   :  { %9911 = vmatprep.subr.bf16.mxu0 %v12851_v36  ;;  %v1507_v36 = vld [vmem:[#allocation7 + $0x17c0] sm:$0xff] }
 0x32d   :  { %v1559_v55 = vld [vmem:[#allocation7 + $0x1960] sm:$0xff] }
 0x32e   :  { %9461 = vmatpush1.bf16.msra.mxu1 %v12848_v44  ;;  %v12888_v44 = vcombine.low %v1499_v25, %v1503_v28 }
 0x32f   :  { %9912 = vmatpush1.bf16.msra.mxu0 %v12850_v45  ;;  %9462 = vmatprep.subr.bf16.mxu1 %v12857_v48  ;;  %v13846_v45 = vadd.f32 %v14995_v43, %v297_v34  ;;  %v12890_v48 = vcombine.low %v1500_v29, %v1504_v30  ;;  %v12921_v29 = vcombine.high %v1531_v12, %v1535_v52  ;;  %v1544_v34 = vld [vmem:[#allocation7 + $0x18e8] sm:$0xff] }
 0x330   :  { %9913 = vmatprep.subr.bf16.mxu0 %v12859_v49  ;;  %v12897_v49 = vcombine.high %v1507_v36, %v1511_v38 }
 0x332   :  { %9463 = vmatpush1.bf16.msra.mxu1 %v12856_v56  ;;  %v1516_v56 = vld [vmem:[#allocation7 + $0x1808] sm:$0xff] }
 0x333   :  { %9914 = vmatpush1.bf16.msra.mxu0 %v12858_v20  ;;  %9464 = vmatprep.subr.bf16.mxu1 %v12865_v58  ;;  %v1520_v20 = vld [vmem:[#allocation7 + $0x1828] sm:$0xff]  ;;  %v12896_v58 = vcombine.low %v1507_v36, %v1511_v38 }
 0x334   :  { %9915 = vmatprep.subr.bf16.mxu0 %v12867_v59  ;;  %v669_v59 = vmax.f32 %v13846_v45, 0.0  ;;  %v12907_v43 = vcombine.high %v1516_v56, %v1520_v20  ;;  %v12906_v11 = vcombine.low %v1516_v56, %v1520_v20  ;;  %v1552_v45 = vld [vmem:[#allocation7 + $0x1928] sm:$0xff] }
 0x335   :  { %v1556_v56 = vld [vmem:[#allocation7 + $0x1948] sm:$0xff] }
 0x336   :  { %9465 = vmatpush1.bf16.msra.mxu1 %v12864_v4  ;;  %v1527_v4 = vld [vmem:[#allocation7 + $0x1860] sm:$0xff]  ;;  %v15061_v9 = vpack.c.bf16 %v669_v59, %v669_v59  ;;  %v1560_v20 = vld [vmem:[#allocation7 + $0x1968] sm:$0xff] }
 0x337   :  { %9916 = vmatpush1.bf16.msra.mxu0 %v12866_v6  ;;  %9466 = vmatprep.subr.bf16.mxu1 %v12873_v8  ;;  %v12904_v6 = vcombine.low %v1515_v31, %v1519_v19  ;;  %v1524_v8 = vld [vmem:[#allocation7 + $0x1848] sm:$0xff]  ;;  %v12913_v10 = vcombine.high %v1523_v2, %v1527_v4  ;;  %v12912_v25 = vcombine.low %v1523_v2, %v1527_v4  ;;  %v1555_v19 = vld [vmem:[#allocation7 + $0x1940] sm:$0xff] }
 0x338   :  { %9917 = vmatprep.subr.bf16.mxu0 %v12875_v17  ;;  %v1528_v17 = vld [vmem:[#allocation7 + $0x1868] sm:$0xff] }
 0x339   :  { %v12914_v28 = vcombine.low %v1524_v8, %v1528_v17  ;;  %v1564_v2 = vld [vmem:[#allocation7 + $0x1988] sm:$0xff] }
 0x33a   :  { %9467 = vmatpush1.bf16.msra.mxu1 %v12872_v14  ;;  %v15063_v14 = vpack.c.bf16 %v672_v1, %v672_v1  ;;  %v1567_v1 = vld [vmem:[#allocation7 + $0x19a0] sm:$0xff]  ;;  %v1568_v4 = vld [vmem:[#allocation7 + $0x19a8] sm:$0xff] }
 0x33b   :  { %9918 = vmatpush1.bf16.msra.mxu0 %v12874_v15  ;;  %9468 = vmatprep.subr.bf16.mxu1 %v12881_v16  ;;  %v12915_v15 = vcombine.high %v1524_v8, %v1528_v17  ;;  %v1532_v16 = vld [vmem:[#allocation7 + $0x1888] sm:$0xff]  ;;  %v12946_v8 = vcombine.low %v1556_v56, %v1560_v20 }
 0x33c   :  { %9919 = vmatprep.subr.bf16.mxu0 %v12883_v23  ;;  %v1536_v23 = vld [vmem:[#allocation7 + $0x18a8] sm:$0xff] }
 0x33d   :  { %v12923_v30 = vcombine.high %v1532_v16, %v1536_v23  ;;  %v12922_v36 = vcombine.low %v1532_v16, %v1536_v23  ;;  %v12954_v23 = vcombine.low %v1564_v2, %v1568_v4 }
 0x33e   :  { %9469 = vmatpush1.bf16.msra.mxu1 %v12880_v41  ;;  %v1539_v41 = vld [vmem:[#allocation7 + $0x18c0] sm:$0xff] }
 0x33f   :  { %9920 = vmatpush1.bf16.msra.mxu0 %v12882_v0  ;;  %9470 = vmatprep.subr.bf16.mxu1 %v12889_v33  ;;  %v1543_v0 = vld [vmem:[#allocation7 + $0x18e0] sm:$0xff]  ;;  %v1540_v33 = vld [vmem:[#allocation7 + $0x18c8] sm:$0xff] }
 0x340   :  { %9921 = vmatprep.subr.bf16.mxu0 %v12891_v35  ;;  %v12920_v35 = vcombine.low %v1531_v12, %v1535_v52  ;;  %v12929_v38 = vcombine.high %v1539_v41, %v1543_v0  ;;  %v12931_v7 = vcombine.high %v1540_v33, %v1544_v34  ;;  %v1575_v12 = vld [vmem:[#allocation7 + $0x19e0] sm:$0xff]  ;;  %v1572_v52 = vld [vmem:[#allocation7 + $0x19c8] sm:$0xff] }
 0x342   :  { %9471 = vmatpush1.bf16.msra.mxu1 %v12888_v44  ;;  %v1548_v44 = vld [vmem:[#allocation7 + $0x1908] sm:$0xff] }
 0x343   :  { %9922 = vmatpush1.bf16.msra.mxu0 %v12890_v48  ;;  %9472 = vmatprep.subr.bf16.mxu1 %v12897_v49  ;;  %v12928_v48 = vcombine.low %v1539_v41, %v1543_v0  ;;  %v12930_v49 = vcombine.low %v1540_v33, %v1544_v34  ;;  %v12939_v31 = vcombine.high %v1548_v44, %v1552_v45  ;;  %v1580_v41 = vld [vmem:[#allocation7 + $0x1a08] sm:$0xff] }
 0x344   :  { %9923 = vmatprep.subr.bf16.mxu0 %v12899_v50  ;;  %v12937_v50 = vcombine.high %v1547_v60, %v1551_v40  ;;  %v12938_v59 = vcombine.low %v1548_v44, %v1552_v45  ;;  %v1584_v0 = vld [vmem:[#allocation7 + $0x1a28] sm:$0xff] }
 0x345   :  { %v12970_v45 = vcombine.low %v1580_v41, %v1584_v0 }
 0x346   :  { %9473 = vmatpush1.bf16.msra.mxu1 %v12896_v58  ;;  %v12936_v58 = vcombine.low %v1547_v60, %v1551_v40  ;;  %v1588_v60 = vld [vmem:[#allocation7 + $0x1a48] sm:$0xff] }
 0x347   :  { %9924 = vmatpush1.bf16.msra.mxu0 %v12898_v61  ;;  %9483 = vmatprep.subr.bf16.mxu1 %v12905_v54  ;;  %v12945_v61 = vcombine.high %v1555_v19, %v1559_v55  ;;  %v12947_v54 = vcombine.high %v1556_v56, %v1560_v20  ;;  %v1592_v40 = vld [vmem:[#allocation7 + $0x1a68] sm:$0xff] }
 0x348   :  { %9934 = vmatprep.subr.bf16.mxu0 %v12907_v43  ;;  %v1563_v43 = vld [vmem:[#allocation7 + $0x1980] sm:$0xff]  ;;  %v12978_v20 = vcombine.low %v1588_v60, %v1592_v40 }
 0x349   :  { %9475 = vmatmul.mubr.bf16.vlgmr.msra.gmra.mrb[0].mxu1 %v15061_v9  ;;  %v12953_v17 = vcombine.high %v1563_v43, %v1567_v1  ;;  %v12952_v16 = vcombine.low %v1563_v43, %v1567_v1  ;;  %v1604_v43 = vld [vmem:[#allocation7 + $0x1ac8] sm:$0xff] }
 0x34a   :  { %9926 = vmatmul.mubr.bf16.vlgmr.msra.gmra.mrb[44].mxu0 %v15061_v9  ;;  %9484 = vmatpush1.bf16.msra.mxu1 %v12904_v6  ;;  %v12944_v6 = vcombine.low %v1555_v19, %v1559_v55  ;;  %v1596_v19 = vld [vmem:[#allocation7 + $0x1a88] sm:$0xff] }
 0x34b   :  { %9515 = vmatprep.mubr.bf16.mxu1 %v15063_v14  ;;  %9935 = vmatpush1.bf16.msra.mxu0 %v12906_v11  ;;  %v12955_v11 = vcombine.high %v1564_v2, %v1568_v4  ;;  %v1600_v55 = vld [vmem:[#allocation7 + $0x1aa8] sm:$0xff] }
 0x34c   :  { %9966 = vmatprep.mubr.bf16.mxu0 %v15063_v14  ;;  %9485 = vmatprep.subr.bf16.mxu1 %v12913_v10  ;;  %v1571_v10 = vld [vmem:[#allocation7 + $0x19c0] sm:$0xff]  ;;  %v1608_v1 = vld [vmem:[#allocation7 + $0x1ae8] sm:$0xff]  ;;  %v12986_v4 = vcombine.low %v1596_v19, %v1600_v55 }
 0x34d   :  { %9936 = vmatprep.subr.bf16.mxu0 %v12915_v15  ;;  %v1576_v15 = vld [vmem:[#allocation7 + $0x19e8] sm:$0xff]  ;;  %v12960_v33 = vcombine.low %v1571_v10, %v1575_v12 }
 0x34e   :  { %9486 = vmatpush1.bf16.msra.mxu1 %v12912_v25  ;;  %v12961_v25 = vcombine.high %v1571_v10, %v1575_v12  ;;  %v12962_v34 = vcombine.low %v1572_v52, %v1576_v15  ;;  %v1612_v10 = vld [vmem:[#allocation7 + $0x1b08] sm:$0xff] }
 0x34f   :  { %9937 = vmatpush1.bf16.msra.mxu0 %v12914_v28  ;;  %9487 = vmatprep.subr.bf16.mxu1 %v12921_v29  ;;  %v12963_v28 = vcombine.high %v1572_v52, %v1576_v15  ;;  %v1579_v29 = vld [vmem:[#allocation7 + $0x1a00] sm:$0xff]  ;;  %v1616_v12 = vld [vmem:[#allocation7 + $0x1b28] sm:$0xff]  ;;  %v12994_v15 = vcombine.low %v1604_v43, %v1608_v1 }
 0x350   :  { %9938 = vmatprep.subr.bf16.mxu0 %v12923_v30  ;;  %v1583_v30 = vld [vmem:[#allocation7 + $0x1a20] sm:$0xff] }
 0x351   :  { %v12968_v44 = vcombine.low %v1579_v29, %v1583_v30 }
 0x352   :  { %9488 = vmatpush1.bf16.msra.mxu1 %v12920_v35  ;;  %v12969_v35 = vcombine.high %v1579_v29, %v1583_v30  ;;  %v1620_v29 = vld [vmem:[#allocation7 + $0x1b48] sm:$0xff] }
 0x353   :  { %9939 = vmatpush1.bf16.msra.mxu0 %v12922_v36  ;;  %9489 = vmatprep.subr.bf16.mxu1 %v12929_v38  ;;  %v12971_v36 = vcombine.high %v1580_v41, %v1584_v0  ;;  %v1587_v38 = vld [vmem:[#allocation7 + $0x1a40] sm:$0xff]  ;;  %v1624_v30 = vld [vmem:[#allocation7 + $0x1b68] sm:$0xff]  ;;  %v13002_v0 = vcombine.low %v1612_v10, %v1616_v12 }
 0x354   :  { %9940 = vmatprep.subr.bf16.mxu0 %v12931_v7  ;;  %v1591_v7 = vld [vmem:[#allocation7 + $0x1a60] sm:$0xff] }
 0x355   :  { %v12976_v56 = vcombine.low %v1587_v38, %v1591_v7 }
 0x356   :  { %9490 = vmatpush1.bf16.msra.mxu1 %v12928_v48  ;;  %v12977_v48 = vcombine.high %v1587_v38, %v1591_v7  ;;  %v1628_v38 = vld [vmem:[#allocation7 + $0x1b88] sm:$0xff] }
 0x357   :  { %9941 = vmatpush1.bf16.msra.mxu0 %v12930_v49  ;;  %9491 = vmatprep.subr.bf16.mxu1 %v12937_v50  ;;  %v12979_v49 = vcombine.high %v1588_v60, %v1592_v40  ;;  %v1595_v50 = vld [vmem:[#allocation7 + $0x1a80] sm:$0xff]  ;;  %v1632_v7 = vld [vmem:[#allocation7 + $0x1ba8] sm:$0xff]  ;;  %v13010_v40 = vcombine.low %v1620_v29, %v1624_v30 }
 0x358   :  { %9942 = vmatprep.subr.bf16.mxu0 %v12939_v31  ;;  %v1599_v31 = vld [vmem:[#allocation7 + $0x1aa0] sm:$0xff] }
 0x359   :  { %v12984_v2 = vcombine.low %v1595_v50, %v1599_v31 }
 0x35a   :  { %9492 = vmatpush1.bf16.msra.mxu1 %v12936_v58  ;;  %v12985_v58 = vcombine.high %v1595_v50, %v1599_v31  ;;  %v1639_v50 = vld [vmem:[#allocation7 + $0x1be0] sm:$0xff]  ;;  %v1636_v31 = vld [vmem:[#allocation7 + $0x1bc8] sm:$0xff] }
 0x35b   :  { %9943 = vmatpush1.bf16.msra.mxu0 %v12938_v59  ;;  %9493 = vmatprep.subr.bf16.mxu1 %v12945_v61  ;;  %v12987_v59 = vcombine.high %v1596_v19, %v1600_v55  ;;  %v1603_v61 = vld [vmem:[#allocation7 + $0x1ac0] sm:$0xff]  ;;  %v1640_v19 = vld [vmem:[#allocation7 + $0x1be8] sm:$0xff] }
 0x35c   :  { %9944 = vmatprep.subr.bf16.mxu0 %v12947_v54  ;;  %v1607_v54 = vld [vmem:[#allocation7 + $0x1ae0] sm:$0xff]  ;;  %v302_v55 = vld [vmem:[#allocation5 + $0x78] sm:$0xff] }
 0x35d   :  { %v12992_v52 = vcombine.low %v1603_v61, %v1607_v54 }
 0x35e   :  { %9494 = vmatpush1.bf16.msra.mxu1 %v12944_v6  ;;  %v12993_v6 = vcombine.high %v1603_v61, %v1607_v54  ;;  %v13027_v61 = vcombine.high %v1636_v31, %v1640_v19  ;;  %v1643_v54 = vld [vmem:[#allocation7 + $0x1c00] sm:$0xff] }
 0x35f   :  { %9945 = vmatpush1.bf16.msra.mxu0 %v12946_v8  ;;  %9495 = vmatprep.subr.bf16.mxu1 %v12953_v17  ;;  %v12995_v8 = vcombine.high %v1604_v43, %v1608_v1  ;;  %v1611_v17 = vld [vmem:[#allocation7 + $0x1b00] sm:$0xff]  ;;  %v13851_v1 = vadd.f32 %v15005_v37, %v302_v55 }
 0x360   :  { %9946 = vmatprep.subr.bf16.mxu0 %v12955_v11  ;;  %v1615_v11 = vld [vmem:[#allocation7 + $0x1b20] sm:$0xff] }
 0x361   :  { %v13000_v41 = vcombine.low %v1611_v17, %v1615_v11  ;;  %v1647_v43 = vld [vmem:[#allocation7 + $0x1c20] sm:$0xff] }
 0x362   :  { %9496 = vmatpush1.bf16.msra.mxu1 %v12952_v16  ;;  %v13001_v16 = vcombine.high %v1611_v17, %v1615_v11  ;;  %v13026_v17 = vcombine.low %v1636_v31, %v1640_v19  ;;  %v13033_v11 = vcombine.high %v1643_v54, %v1647_v43  ;;  %v1675_v19 = vld [vmem:[#allocation7 + $0x1d00] sm:$0xff] }
 0x363   :  { %9947 = vmatpush1.bf16.msra.mxu0 %v12954_v23  ;;  %9497 = vmatprep.subr.bf16.mxu1 %v12961_v25  ;;  %v13003_v23 = vcombine.high %v1612_v10, %v1616_v12  ;;  %v1619_v25 = vld [vmem:[#allocation7 + $0x1b40] sm:$0xff]  ;;  %v674_v10 = vmax.f32 %v13851_v1, 0.0 }
 0x364   :  { %9948 = vmatprep.subr.bf16.mxu0 %v12963_v28  ;;  %v1623_v28 = vld [vmem:[#allocation7 + $0x1b60] sm:$0xff] }
 0x365   :  { %v13008_v60 = vcombine.low %v1619_v25, %v1623_v28  ;;  %v1651_v12 = vld [vmem:[#allocation7 + $0x1c40] sm:$0xff] }
 0x366   :  { %9498 = vmatpush1.bf16.msra.mxu1 %v12960_v33  ;;  %v13009_v33 = vcombine.high %v1619_v25, %v1623_v28  ;;  %v1679_v55 = vld [vmem:[#allocation7 + $0x1d20] sm:$0xff] }
 0x367   :  { %9949 = vmatpush1.bf16.msra.mxu0 %v12962_v34  ;;  %9499 = vmatprep.subr.bf16.mxu1 %v12969_v35  ;;  %v13011_v34 = vcombine.high %v1620_v29, %v1624_v30  ;;  %v1627_v35 = vld [vmem:[#allocation7 + $0x1b80] sm:$0xff] }
 0x368   :  { %9950 = vmatprep.subr.bf16.mxu0 %v12971_v36  ;;  %v1631_v36 = vld [vmem:[#allocation7 + $0x1ba0] sm:$0xff] }
 0x369   :  { %v1659_v29 = vld [vmem:[#allocation7 + $0x1c80] sm:$0xff] }
 0x36a   :  { %9500 = vmatpush1.bf16.msra.mxu1 %v12968_v44  ;;  %v13017_v44 = vcombine.high %v1627_v35, %v1631_v36  ;;  %v1663_v30 = vld [vmem:[#allocation7 + $0x1ca0] sm:$0xff] }
 0x36b   :  { %9951 = vmatpush1.bf16.msra.mxu0 %v12970_v45  ;;  %9501 = vmatprep.subr.bf16.mxu1 %v12977_v48  ;;  %v299_v45 = vld [vmem:[#allocation5 + $0x60] sm:$0xff]  ;;  %v13019_v48 = vcombine.high %v1628_v38, %v1632_v7  ;;  %v1687_v1 = vld [vmem:[#allocation7 + $0x1d60] sm:$0xff] }
 0x36c   :  { %9952 = vmatprep.subr.bf16.mxu0 %v12979_v49  ;;  %v1635_v49 = vld [vmem:[#allocation7 + $0x1bc0] sm:$0xff] }
 0x36e   :  { %9502 = vmatpush1.bf16.msra.mxu1 %v12976_v56  ;;  %v13016_v56 = vcombine.low %v1627_v35, %v1631_v36 }
 0x36f   :  { %9953 = vmatpush1.bf16.msra.mxu0 %v12978_v20  ;;  %9503 = vmatprep.subr.bf16.mxu1 %v12985_v58  ;;  %v13848_v20 = vadd.f32 %v14999_v63, %v299_v45  ;;  %v13018_v58 = vcombine.low %v1628_v38, %v1632_v7  ;;  %v13049_v38 = vcombine.high %v1659_v29, %v1663_v30  ;;  %v1672_v45 = vld [vmem:[#allocation7 + $0x1ce8] sm:$0xff] }
 0x370   :  { %9954 = vmatprep.subr.bf16.mxu0 %v12987_v59  ;;  %v13025_v59 = vcombine.high %v1635_v49, %v1639_v50 }
 0x372   :  { %9504 = vmatpush1.bf16.msra.mxu1 %v12984_v2  ;;  %v1644_v2 = vld [vmem:[#allocation7 + $0x1c08] sm:$0xff] }
 0x373   :  { %9955 = vmatpush1.bf16.msra.mxu0 %v12986_v4  ;;  %9505 = vmatprep.subr.bf16.mxu1 %v12993_v6  ;;  %v1648_v4 = vld [vmem:[#allocation7 + $0x1c28] sm:$0xff]  ;;  %v13024_v6 = vcombine.low %v1635_v49, %v1639_v50 }
 0x374   :  { %9956 = vmatprep.subr.bf16.mxu0 %v12995_v8  ;;  %v671_v8 = vmax.f32 %v13848_v20, 0.0  ;;  %v13035_v63 = vcombine.high %v1644_v2, %v1648_v4  ;;  %v13034_v37 = vcombine.low %v1644_v2, %v1648_v4  ;;  %v1680_v20 = vld [vmem:[#allocation7 + $0x1d28] sm:$0xff] }
 0x375   :  { %v1684_v2 = vld [vmem:[#allocation7 + $0x1d48] sm:$0xff] }
 0x376   :  { %9506 = vmatpush1.bf16.msra.mxu1 %v12992_v52  ;;  %v1655_v52 = vld [vmem:[#allocation7 + $0x1c60] sm:$0xff]  ;;  %v15071_v25 = vpack.c.bf16 %v671_v8, %v671_v8  ;;  %v1688_v4 = vld [vmem:[#allocation7 + $0x1d68] sm:$0xff] }
 0x377   :  { %9957 = vmatpush1.bf16.msra.mxu0 %v12994_v15  ;;  %9507 = vmatprep.subr.bf16.mxu1 %v13001_v16  ;;  %v13032_v15 = vcombine.low %v1643_v54, %v1647_v43  ;;  %v1652_v16 = vld [vmem:[#allocation7 + $0x1c48] sm:$0xff]  ;;  %v13041_v28 = vcombine.high %v1651_v12, %v1655_v52  ;;  %v13040_v35 = vcombine.low %v1651_v12, %v1655_v52  ;;  %v1683_v43 = vld [vmem:[#allocation7 + $0x1d40] sm:$0xff] }
 0x378   :  { %9958 = vmatprep.subr.bf16.mxu0 %v13003_v23  ;;  %v1656_v23 = vld [vmem:[#allocation7 + $0x1c68] sm:$0xff] }
 0x379   :  { %v13042_v36 = vcombine.low %v1652_v16, %v1656_v23  ;;  %v1692_v12 = vld [vmem:[#allocation7 + $0x1d88] sm:$0xff] }
 0x37a   :  { %9508 = vmatpush1.bf16.msra.mxu1 %v13000_v41  ;;  %v15073_v41 = vpack.c.bf16 %v674_v10, %v674_v10  ;;  %v1695_v10 = vld [vmem:[#allocation7 + $0x1da0] sm:$0xff]  ;;  %v1696_v52 = vld [vmem:[#allocation7 + $0x1da8] sm:$0xff] }
 0x37b   :  { %9959 = vmatpush1.bf16.msra.mxu0 %v13002_v0  ;;  %9509 = vmatprep.subr.bf16.mxu1 %v13009_v33  ;;  %v13043_v0 = vcombine.high %v1652_v16, %v1656_v23  ;;  %v1660_v33 = vld [vmem:[#allocation7 + $0x1c88] sm:$0xff]  ;;  %v13074_v16 = vcombine.low %v1684_v2, %v1688_v4 }
 0x37c   :  { %9960 = vmatprep.subr.bf16.mxu0 %v13011_v34  ;;  %v1664_v34 = vld [vmem:[#allocation7 + $0x1ca8] sm:$0xff] }
 0x37d   :  { %v13051_v7 = vcombine.high %v1660_v33, %v1664_v34  ;;  %v13050_v49 = vcombine.low %v1660_v33, %v1664_v34  ;;  %v13082_v34 = vcombine.low %v1692_v12, %v1696_v52 }
 0x37e   :  { %9510 = vmatpush1.bf16.msra.mxu1 %v13008_v60  ;;  %v1667_v60 = vld [vmem:[#allocation7 + $0x1cc0] sm:$0xff] }
 0x37f   :  { %9961 = vmatpush1.bf16.msra.mxu0 %v13010_v40  ;;  %9511 = vmatprep.subr.bf16.mxu1 %v13017_v44  ;;  %v1671_v40 = vld [vmem:[#allocation7 + $0x1ce0] sm:$0xff]  ;;  %v1668_v44 = vld [vmem:[#allocation7 + $0x1cc8] sm:$0xff] }
 0x380   :  { %9962 = vmatprep.subr.bf16.mxu0 %v13019_v48  ;;  %v13048_v48 = vcombine.low %v1659_v29, %v1663_v30  ;;  %v13057_v50 = vcombine.high %v1667_v60, %v1671_v40  ;;  %v13059_v31 = vcombine.high %v1668_v44, %v1672_v45  ;;  %v1703_v29 = vld [vmem:[#allocation7 + $0x1de0] sm:$0xff]  ;;  %v1700_v30 = vld [vmem:[#allocation7 + $0x1dc8] sm:$0xff] }
 0x382   :  { %9512 = vmatpush1.bf16.msra.mxu1 %v13016_v56  ;;  %v1676_v56 = vld [vmem:[#allocation7 + $0x1d08] sm:$0xff] }
 0x383   :  { %9963 = vmatpush1.bf16.msra.mxu0 %v13018_v58  ;;  %9513 = vmatprep.subr.bf16.mxu1 %v13025_v59  ;;  %v13056_v58 = vcombine.low %v1667_v60, %v1671_v40  ;;  %v13058_v59 = vcombine.low %v1668_v44, %v1672_v45  ;;  %v13067_v54 = vcombine.high %v1676_v56, %v1680_v20  ;;  %v1708_v60 = vld [vmem:[#allocation7 + $0x1e08] sm:$0xff] }
 0x384   :  { %9964 = vmatprep.subr.bf16.mxu0 %v13027_v61  ;;  %v13065_v61 = vcombine.high %v1675_v19, %v1679_v55  ;;  %v13066_v8 = vcombine.low %v1676_v56, %v1680_v20  ;;  %v1712_v40 = vld [vmem:[#allocation7 + $0x1e28] sm:$0xff] }
 0x385   :  { %v13098_v20 = vcombine.low %v1708_v60, %v1712_v40 }
 0x386   :  { %9514 = vmatpush1.bf16.msra.mxu1 %v13024_v6  ;;  %v13064_v6 = vcombine.low %v1675_v19, %v1679_v55  ;;  %v1716_v19 = vld [vmem:[#allocation7 + $0x1e48] sm:$0xff] }
 0x387   :  { %9965 = vmatpush1.bf16.msra.mxu0 %v13026_v17  ;;  %9524 = vmatprep.subr.bf16.mxu1 %v13033_v11  ;;  %v13073_v17 = vcombine.high %v1683_v43, %v1687_v1  ;;  %v13075_v11 = vcombine.high %v1684_v2, %v1688_v4  ;;  %v1720_v55 = vld [vmem:[#allocation7 + $0x1e68] sm:$0xff] }
 0x388   :  { %9975 = vmatprep.subr.bf16.mxu0 %v13035_v63  ;;  %v1691_v63 = vld [vmem:[#allocation7 + $0x1d80] sm:$0xff]  ;;  %v13106_v4 = vcombine.low %v1716_v19, %v1720_v55 }
 0x389   :  { %9516 = vmatmul.mubr.bf16.vlgmr.msra.gmra.mrb[0].mxu1 %v15071_v25  ;;  %v13081_v23 = vcombine.high %v1691_v63, %v1695_v10  ;;  %v13080_v33 = vcombine.low %v1691_v63, %v1695_v10  ;;  %v1732_v63 = vld [vmem:[#allocation7 + $0x1ec8] sm:$0xff] }
 0x38a   :  { %9967 = vmatmul.mubr.bf16.vlgmr.msra.gmra.mrb[44].mxu0 %v15071_v25  ;;  %9525 = vmatpush1.bf16.msra.mxu1 %v13032_v15  ;;  %v13072_v15 = vcombine.low %v1683_v43, %v1687_v1  ;;  %v1724_v43 = vld [vmem:[#allocation7 + $0x1e88] sm:$0xff] }
 0x38b   :  { %9556 = vmatprep.mubr.bf16.mxu1 %v15073_v41  ;;  %9976 = vmatpush1.bf16.msra.mxu0 %v13034_v37  ;;  %v13083_v37 = vcombine.high %v1692_v12, %v1696_v52  ;;  %v1728_v1 = vld [vmem:[#allocation7 + $0x1ea8] sm:$0xff] }
 0x38c   :  { %10007 = vmatprep.mubr.bf16.mxu0 %v15073_v41  ;;  %9526 = vmatprep.subr.bf16.mxu1 %v13041_v28  ;;  %v1699_v28 = vld [vmem:[#allocation7 + $0x1dc0] sm:$0xff]  ;;  %v1736_v10 = vld [vmem:[#allocation7 + $0x1ee8] sm:$0xff]  ;;  %v13114_v52 = vcombine.low %v1724_v43, %v1728_v1 }
 0x38d   :  { %9977 = vmatprep.subr.bf16.mxu0 %v13043_v0  ;;  %v1704_v0 = vld [vmem:[#allocation7 + $0x1de8] sm:$0xff]  ;;  %v13088_v44 = vcombine.low %v1699_v28, %v1703_v29 }
 0x38e   :  { %9527 = vmatpush1.bf16.msra.mxu1 %v13040_v35  ;;  %v13089_v35 = vcombine.high %v1699_v28, %v1703_v29  ;;  %v13090_v45 = vcombine.low %v1700_v30, %v1704_v0  ;;  %v1740_v28 = vld [vmem:[#allocation7 + $0x1f08] sm:$0xff] }
 0x38f   :  { %9978 = vmatpush1.bf16.msra.mxu0 %v13042_v36  ;;  %9528 = vmatprep.subr.bf16.mxu1 %v13049_v38  ;;  %v13091_v36 = vcombine.high %v1700_v30, %v1704_v0  ;;  %v1707_v38 = vld [vmem:[#allocation7 + $0x1e00] sm:$0xff]  ;;  %v1744_v29 = vld [vmem:[#allocation7 + $0x1f28] sm:$0xff]  ;;  %v13122_v0 = vcombine.low %v1732_v63, %v1736_v10 }
 0x390   :  { %9979 = vmatprep.subr.bf16.mxu0 %v13051_v7  ;;  %v1711_v7 = vld [vmem:[#allocation7 + $0x1e20] sm:$0xff] }
 0x391   :  { %v13096_v56 = vcombine.low %v1707_v38, %v1711_v7 }
 0x392   :  { %9529 = vmatpush1.bf16.msra.mxu1 %v13048_v48  ;;  %v13097_v48 = vcombine.high %v1707_v38, %v1711_v7  ;;  %v1748_v38 = vld [vmem:[#allocation7 + $0x1f48] sm:$0xff] }
 0x393   :  { %9980 = vmatpush1.bf16.msra.mxu0 %v13050_v49  ;;  %9530 = vmatprep.subr.bf16.mxu1 %v13057_v50  ;;  %v13099_v49 = vcombine.high %v1708_v60, %v1712_v40  ;;  %v1715_v50 = vld [vmem:[#allocation7 + $0x1e40] sm:$0xff]  ;;  %v1752_v7 = vld [vmem:[#allocation7 + $0x1f68] sm:$0xff]  ;;  %v13130_v40 = vcombine.low %v1740_v28, %v1744_v29 }
 0x394   :  { %9981 = vmatprep.subr.bf16.mxu0 %v13059_v31  ;;  %v1719_v31 = vld [vmem:[#allocation7 + $0x1e60] sm:$0xff] }
 0x395   :  { %v13104_v2 = vcombine.low %v1715_v50, %v1719_v31 }
 0x396   :  { %9531 = vmatpush1.bf16.msra.mxu1 %v13056_v58  ;;  %v13105_v58 = vcombine.high %v1715_v50, %v1719_v31  ;;  %v1756_v50 = vld [vmem:[#allocation7 + $0x1f88] sm:$0xff] }
 0x397   :  { %9982 = vmatpush1.bf16.msra.mxu0 %v13058_v59  ;;  %9532 = vmatprep.subr.bf16.mxu1 %v13065_v61  ;;  %v13107_v59 = vcombine.high %v1716_v19, %v1720_v55  ;;  %v1723_v61 = vld [vmem:[#allocation7 + $0x1e80] sm:$0xff]  ;;  %v1760_v31 = vld [vmem:[#allocation7 + $0x1fa8] sm:$0xff]  ;;  %v13138_v55 = vcombine.low %v1748_v38, %v1752_v7 }
 0x398   :  { %9983 = vmatprep.subr.bf16.mxu0 %v13067_v54  ;;  %v1727_v54 = vld [vmem:[#allocation7 + $0x1ea0] sm:$0xff] }
 0x399   :  { %v13112_v12 = vcombine.low %v1723_v61, %v1727_v54 }
 0x39a   :  { %9533 = vmatpush1.bf16.msra.mxu1 %v13064_v6  ;;  %v13113_v6 = vcombine.high %v1723_v61, %v1727_v54  ;;  %v1767_v61 = vld [vmem:[#allocation7 + $0x1fe0] sm:$0xff]  ;;  %v1764_v54 = vld [vmem:[#allocation7 + $0x1fc8] sm:$0xff] }
 0x39b   :  { %9984 = vmatpush1.bf16.msra.mxu0 %v13066_v8  ;;  %9534 = vmatprep.subr.bf16.mxu1 %v13073_v17  ;;  %v13115_v8 = vcombine.high %v1724_v43, %v1728_v1  ;;  %v1731_v17 = vld [vmem:[#allocation7 + $0x1ec0] sm:$0xff]  ;;  %v1768_v43 = vld [vmem:[#allocation7 + $0x1fe8] sm:$0xff]  ;;  %v304_v1 = vld [vmem:[#allocation5 + $0x88] sm:$0xff] }
 0x39c   :  { %9985 = vmatprep.subr.bf16.mxu0 %v13075_v11  ;;  %v1735_v11 = vld [vmem:[#allocation7 + $0x1ee0] sm:$0xff] }
 0x39d   :  { %v13120_v30 = vcombine.low %v1731_v17, %v1735_v11 }
 0x39e   :  { %9535 = vmatpush1.bf16.msra.mxu1 %v13072_v15  ;;  %v13121_v15 = vcombine.high %v1731_v17, %v1735_v11  ;;  %v13155_v17 = vcombine.high %v1764_v54, %v1768_v43  ;;  %v1771_v11 = vld [vmem:[#allocation7 + $0x2000] sm:$0xff] }
 0x39f   :  { %9986 = vmatpush1.bf16.msra.mxu0 %v13074_v16  ;;  %9536 = vmatprep.subr.bf16.mxu1 %v13081_v23  ;;  %v13123_v16 = vcombine.high %v1732_v63, %v1736_v10  ;;  %v1739_v23 = vld [vmem:[#allocation7 + $0x1f00] sm:$0xff]  ;;  %v13853_v10 = vadd.f32 %v15011_v3, %v304_v1 }
 0x3a0   :  { %9987 = vmatprep.subr.bf16.mxu0 %v13083_v37  ;;  %v1743_v37 = vld [vmem:[#allocation7 + $0x1f20] sm:$0xff] }
 0x3a1   :  { %v13128_v60 = vcombine.low %v1739_v23, %v1743_v37  ;;  %v1775_v63 = vld [vmem:[#allocation7 + $0x2020] sm:$0xff] }
 0x3a2   :  { %9537 = vmatpush1.bf16.msra.mxu1 %v13080_v33  ;;  %v13129_v33 = vcombine.high %v1739_v23, %v1743_v37  ;;  %v13154_v23 = vcombine.low %v1764_v54, %v1768_v43  ;;  %v13161_v37 = vcombine.high %v1771_v11, %v1775_v63  ;;  %v1803_v43 = vld [vmem:[#allocation7 + $0x2100] sm:$0xff] }
 0x3a3   :  { %9988 = vmatpush1.bf16.msra.mxu0 %v13082_v34  ;;  %9538 = vmatprep.subr.bf16.mxu1 %v13089_v35  ;;  %v13131_v34 = vcombine.high %v1740_v28, %v1744_v29  ;;  %v1747_v35 = vld [vmem:[#allocation7 + $0x1f40] sm:$0xff]  ;;  %v676_v28 = vmax.f32 %v13853_v10, 0.0 }
 0x3a4   :  { %9989 = vmatprep.subr.bf16.mxu0 %v13091_v36  ;;  %v1751_v36 = vld [vmem:[#allocation7 + $0x1f60] sm:$0xff] }
 0x3a5   :  { %v13136_v19 = vcombine.low %v1747_v35, %v1751_v36  ;;  %v1779_v29 = vld [vmem:[#allocation7 + $0x2040] sm:$0xff] }
 0x3a6   :  { %9539 = vmatpush1.bf16.msra.mxu1 %v13088_v44  ;;  %v13137_v44 = vcombine.high %v1747_v35, %v1751_v36  ;;  %v1807_v1 = vld [vmem:[#allocation7 + $0x2120] sm:$0xff] }
 0x3a7   :  { %9990 = vmatpush1.bf16.msra.mxu0 %v13090_v45  ;;  %9540 = vmatprep.subr.bf16.mxu1 %v13097_v48  ;;  %v13139_v45 = vcombine.high %v1748_v38, %v1752_v7  ;;  %v1755_v48 = vld [vmem:[#allocation7 + $0x1f80] sm:$0xff] }
 0x3a8   :  { %9991 = vmatprep.subr.bf16.mxu0 %v13099_v49  ;;  %v1759_v49 = vld [vmem:[#allocation7 + $0x1fa0] sm:$0xff] }
 0x3a9   :  { %v1787_v38 = vld [vmem:[#allocation7 + $0x2080] sm:$0xff] }
 0x3aa   :  { %9541 = vmatpush1.bf16.msra.mxu1 %v13096_v56  ;;  %v13145_v56 = vcombine.high %v1755_v48, %v1759_v49  ;;  %v1791_v7 = vld [vmem:[#allocation7 + $0x20a0] sm:$0xff] }
 0x3ab   :  { %9992 = vmatpush1.bf16.msra.mxu0 %v13098_v20  ;;  %9542 = vmatprep.subr.bf16.mxu1 %v13105_v58  ;;  %v301_v20 = vld [vmem:[#allocation5 + $0x70] sm:$0xff]  ;;  %v13147_v58 = vcombine.high %v1756_v50, %v1760_v31 }
 0x3ac   :  { %9993 = vmatprep.subr.bf16.mxu0 %v13107_v59  ;;  %v1763_v59 = vld [vmem:[#allocation7 + $0x1fc0] sm:$0xff] }
 0x3ad   :  { %v1815_v10 = vld [vmem:[#allocation7 + $0x2160] sm:$0xff] }
 0x3ae   :  { %9543 = vmatpush1.bf16.msra.mxu1 %v13104_v2  ;;  %v13144_v2 = vcombine.low %v1755_v48, %v1759_v49 }
 0x3af   :  { %9994 = vmatpush1.bf16.msra.mxu0 %v13106_v4  ;;  %9544 = vmatprep.subr.bf16.mxu1 %v13113_v6  ;;  %v13850_v4 = vadd.f32 %v15003_v27, %v301_v20  ;;  %v13146_v6 = vcombine.low %v1756_v50, %v1760_v31  ;;  %v13177_v50 = vcombine.high %v1787_v38, %v1791_v7  ;;  %v1800_v20 = vld [vmem:[#allocation7 + $0x20e8] sm:$0xff] }
 0x3b0   :  { %9995 = vmatprep.subr.bf16.mxu0 %v13115_v8  ;;  %v13153_v8 = vcombine.high %v1763_v59, %v1767_v61 }
 0x3b2   :  { %9545 = vmatpush1.bf16.msra.mxu1 %v13112_v12  ;;  %v1772_v12 = vld [vmem:[#allocation7 + $0x2008] sm:$0xff] }
 0x3b3   :  { %9996 = vmatpush1.bf16.msra.mxu0 %v13114_v52  ;;  %9546 = vmatprep.subr.bf16.mxu1 %v13121_v15  ;;  %v1776_v52 = vld [vmem:[#allocation7 + $0x2028] sm:$0xff]  ;;  %v13152_v15 = vcombine.low %v1763_v59, %v1767_v61 }
 0x3b4   :  { %9997 = vmatprep.subr.bf16.mxu0 %v13123_v16  ;;  %v673_v16 = vmax.f32 %v13850_v4, 0.0  ;;  %v13163_v27 = vcombine.high %v1772_v12, %v1776_v52  ;;  %v13162_v3 = vcombine.low %v1772_v12, %v1776_v52  ;;  %v1808_v4 = vld [vmem:[#allocation7 + $0x2128] sm:$0xff] }
 0x3b5   :  { %v1812_v12 = vld [vmem:[#allocation7 + $0x2148] sm:$0xff] }
 0x3b6   :  { %9547 = vmatpush1.bf16.msra.mxu1 %v13120_v30  ;;  %v1783_v30 = vld [vmem:[#allocation7 + $0x2060] sm:$0xff]  ;;  %v15081_v35 = vpack.c.bf16 %v673_v16, %v673_v16  ;;  %v1816_v52 = vld [vmem:[#allocation7 + $0x2168] sm:$0xff] }
 0x3b7   :  { %9998 = vmatpush1.bf16.msra.mxu0 %v13122_v0  ;;  %9548 = vmatprep.subr.bf16.mxu1 %v13129_v33  ;;  %v13160_v0 = vcombine.low %v1771_v11, %v1775_v63  ;;  %v1780_v33 = vld [vmem:[#allocation7 + $0x2048] sm:$0xff]  ;;  %v13169_v36 = vcombine.high %v1779_v29, %v1783_v30  ;;  %v13168_v48 = vcombine.low %v1779_v29, %v1783_v30  ;;  %v1811_v63 = vld [vmem:[#allocation7 + $0x2140] sm:$0xff] }
 0x3b8   :  { %9999 = vmatprep.subr.bf16.mxu0 %v13131_v34  ;;  %v1784_v34 = vld [vmem:[#allocation7 + $0x2068] sm:$0xff] }
 0x3b9   :  { %v13170_v49 = vcombine.low %v1780_v33, %v1784_v34  ;;  %v1820_v29 = vld [vmem:[#allocation7 + $0x2188] sm:$0xff] }
 0x3ba   :  { %9549 = vmatpush1.bf16.msra.mxu1 %v13128_v60  ;;  %v15083_v60 = vpack.c.bf16 %v676_v28, %v676_v28  ;;  %v1823_v28 = vld [vmem:[#allocation7 + $0x21a0] sm:$0xff]  ;;  %v1824_v30 = vld [vmem:[#allocation7 + $0x21a8] sm:$0xff] }
 0x3bb   :  { %10000 = vmatpush1.bf16.msra.mxu0 %v13130_v40  ;;  %9550 = vmatprep.subr.bf16.mxu1 %v13137_v44  ;;  %v13171_v40 = vcombine.high %v1780_v33, %v1784_v34  ;;  %v1788_v44 = vld [vmem:[#allocation7 + $0x2088] sm:$0xff]  ;;  %v13202_v33 = vcombine.low %v1812_v12, %v1816_v52 }
 0x3bc   :  { %10001 = vmatprep.subr.bf16.mxu0 %v13139_v45  ;;  %v1792_v45 = vld [vmem:[#allocation7 + $0x20a8] sm:$0xff] }
 0x3bd   :  { %v13179_v31 = vcombine.high %v1788_v44, %v1792_v45  ;;  %v13178_v59 = vcombine.low %v1788_v44, %v1792_v45  ;;  %v13210_v45 = vcombine.low %v1820_v29, %v1824_v30 }
 0x3be   :  { %9551 = vmatpush1.bf16.msra.mxu1 %v13136_v19  ;;  %v1795_v19 = vld [vmem:[#allocation7 + $0x20c0] sm:$0xff] }
 0x3bf   :  { %10002 = vmatpush1.bf16.msra.mxu0 %v13138_v55  ;;  %9552 = vmatprep.subr.bf16.mxu1 %v13145_v56  ;;  %v1799_v55 = vld [vmem:[#allocation7 + $0x20e0] sm:$0xff]  ;;  %v1796_v56 = vld [vmem:[#allocation7 + $0x20c8] sm:$0xff] }
 0x3c0   :  { %10003 = vmatprep.subr.bf16.mxu0 %v13147_v58  ;;  %v13176_v58 = vcombine.low %v1787_v38, %v1791_v7  ;;  %v13185_v61 = vcombine.high %v1795_v19, %v1799_v55  ;;  %v13187_v54 = vcombine.high %v1796_v56, %v1800_v20  ;;  %v1831_v38 = vld [vmem:[#allocation7 + $0x21e0] sm:$0xff]  ;;  %v1828_v7 = vld [vmem:[#allocation7 + $0x21c8] sm:$0xff] }
 0x3c2   :  { %9553 = vmatpush1.bf16.msra.mxu1 %v13144_v2  ;;  %v1804_v2 = vld [vmem:[#allocation7 + $0x2108] sm:$0xff] }
 0x3c3   :  { %10004 = vmatpush1.bf16.msra.mxu0 %v13146_v6  ;;  %9554 = vmatprep.subr.bf16.mxu1 %v13153_v8  ;;  %v13184_v6 = vcombine.low %v1795_v19, %v1799_v55  ;;  %v13186_v8 = vcombine.low %v1796_v56, %v1800_v20  ;;  %v13195_v11 = vcombine.high %v1804_v2, %v1808_v4  ;;  %v1836_v19 = vld [vmem:[#allocation7 + $0x2208] sm:$0xff] }
 0x3c4   :  { %10005 = vmatprep.subr.bf16.mxu0 %v13155_v17  ;;  %v13193_v17 = vcombine.high %v1803_v43, %v1807_v1  ;;  %v13194_v16 = vcombine.low %v1804_v2, %v1808_v4  ;;  %v1840_v55 = vld [vmem:[#allocation7 + $0x2228] sm:$0xff] }
 0x3c5   :  { %v13226_v4 = vcombine.low %v1836_v19, %v1840_v55 }
 0x3c6   :  { %9555 = vmatpush1.bf16.msra.mxu1 %v13152_v15  ;;  %v13192_v15 = vcombine.low %v1803_v43, %v1807_v1  ;;  %v1844_v43 = vld [vmem:[#allocation7 + $0x2248] sm:$0xff] }
 0x3c7   :  { %10006 = vmatpush1.bf16.msra.mxu0 %v13154_v23  ;;  %9565 = vmatprep.subr.bf16.mxu1 %v13161_v37  ;;  %v13201_v23 = vcombine.high %v1811_v63, %v1815_v10  ;;  %v13203_v37 = vcombine.high %v1812_v12, %v1816_v52  ;;  %v1848_v1 = vld [vmem:[#allocation7 + $0x2268] sm:$0xff] }
 0x3c8   :  { %10016 = vmatprep.subr.bf16.mxu0 %v13163_v27  ;;  %v1819_v27 = vld [vmem:[#allocation7 + $0x2180] sm:$0xff]  ;;  %v13234_v52 = vcombine.low %v1844_v43, %v1848_v1 }
 0x3c9   :  { %9557 = vmatmul.mubr.bf16.vlgmr.msra.gmra.mrb[0].mxu1 %v15081_v35  ;;  %v13209_v34 = vcombine.high %v1819_v27, %v1823_v28  ;;  %v13208_v44 = vcombine.low %v1819_v27, %v1823_v28  ;;  %v1860_v27 = vld [vmem:[#allocation7 + $0x22c8] sm:$0xff] }
 0x3ca   :  { %10008 = vmatmul.mubr.bf16.vlgmr.msra.gmra.mrb[44].mxu0 %v15081_v35  ;;  %9566 = vmatpush1.bf16.msra.mxu1 %v13160_v0  ;;  %v13200_v0 = vcombine.low %v1811_v63, %v1815_v10  ;;  %v1852_v63 = vld [vmem:[#allocation7 + $0x2288] sm:$0xff] }
 0x3cb   :  { %9597 = vmatprep.mubr.bf16.mxu1 %v15083_v60  ;;  %10017 = vmatpush1.bf16.msra.mxu0 %v13162_v3  ;;  %v13211_v3 = vcombine.high %v1820_v29, %v1824_v30  ;;  %v1856_v10 = vld [vmem:[#allocation7 + $0x22a8] sm:$0xff] }
 0x3cc   :  { %10048 = vmatprep.mubr.bf16.mxu0 %v15083_v60  ;;  %9567 = vmatprep.subr.bf16.mxu1 %v13169_v36  ;;  %v1827_v36 = vld [vmem:[#allocation7 + $0x21c0] sm:$0xff]  ;;  %v1864_v28 = vld [vmem:[#allocation7 + $0x22e8] sm:$0xff]  ;;  %v13242_v30 = vcombine.low %v1852_v63, %v1856_v10 }
 0x3cd   :  { %10018 = vmatprep.subr.bf16.mxu0 %v13171_v40  ;;  %v1832_v40 = vld [vmem:[#allocation7 + $0x21e8] sm:$0xff]  ;;  %v13216_v56 = vcombine.low %v1827_v36, %v1831_v38 }
 0x3ce   :  { %9568 = vmatpush1.bf16.msra.mxu1 %v13168_v48  ;;  %v13217_v48 = vcombine.high %v1827_v36, %v1831_v38  ;;  %v13218_v20 = vcombine.low %v1828_v7, %v1832_v40  ;;  %v1868_v36 = vld [vmem:[#allocation7 + $0x2308] sm:$0xff] }
 0x3cf   :  { %10019 = vmatpush1.bf16.msra.mxu0 %v13170_v49  ;;  %9569 = vmatprep.subr.bf16.mxu1 %v13177_v50  ;;  %v13219_v49 = vcombine.high %v1828_v7, %v1832_v40  ;;  %v1835_v50 = vld [vmem:[#allocation7 + $0x2200] sm:$0xff]  ;;  %v1872_v38 = vld [vmem:[#allocation7 + $0x2328] sm:$0xff]  ;;  %v13250_v40 = vcombine.low %v1860_v27, %v1864_v28 }
 0x3d0   :  { %10020 = vmatprep.subr.bf16.mxu0 %v13179_v31  ;;  %v1839_v31 = vld [vmem:[#allocation7 + $0x2220] sm:$0xff] }
 0x3d1   :  { %v13224_v2 = vcombine.low %v1835_v50, %v1839_v31 }
 0x3d2   :  { %9570 = vmatpush1.bf16.msra.mxu1 %v13176_v58  ;;  %v13225_v58 = vcombine.high %v1835_v50, %v1839_v31  ;;  %v1876_v50 = vld [vmem:[#allocation7 + $0x2348] sm:$0xff] }
 0x3d3   :  { %10021 = vmatpush1.bf16.msra.mxu0 %v13178_v59  ;;  %9571 = vmatprep.subr.bf16.mxu1 %v13185_v61  ;;  %v13227_v59 = vcombine.high %v1836_v19, %v1840_v55  ;;  %v1843_v61 = vld [vmem:[#allocation7 + $0x2240] sm:$0xff]  ;;  %v1880_v31 = vld [vmem:[#allocation7 + $0x2368] sm:$0xff]  ;;  %v13258_v55 = vcombine.low %v1868_v36, %v1872_v38 }
 0x3d4   :  { %10022 = vmatprep.subr.bf16.mxu0 %v13187_v54  ;;  %v1847_v54 = vld [vmem:[#allocation7 + $0x2260] sm:$0xff] }
 0x3d5   :  { %v13232_v12 = vcombine.low %v1843_v61, %v1847_v54 }
 0x3d6   :  { %9572 = vmatpush1.bf16.msra.mxu1 %v13184_v6  ;;  %v13233_v6 = vcombine.high %v1843_v61, %v1847_v54  ;;  %v1884_v61 = vld [vmem:[#allocation7 + $0x2388] sm:$0xff] }
 0x3d7   :  { %10023 = vmatpush1.bf16.msra.mxu0 %v13186_v8  ;;  %9573 = vmatprep.subr.bf16.mxu1 %v13193_v17  ;;  %v13235_v8 = vcombine.high %v1844_v43, %v1848_v1  ;;  %v1851_v17 = vld [vmem:[#allocation7 + $0x2280] sm:$0xff]  ;;  %v1888_v54 = vld [vmem:[#allocation7 + $0x23a8] sm:$0xff]  ;;  %v13266_v1 = vcombine.low %v1876_v50, %v1880_v31 }
 0x3d8   :  { %10024 = vmatprep.subr.bf16.mxu0 %v13195_v11  ;;  %v1855_v11 = vld [vmem:[#allocation7 + $0x22a0] sm:$0xff] }
 0x3d9   :  { %v13240_v29 = vcombine.low %v1851_v17, %v1855_v11 }
 0x3da   :  { %9574 = vmatpush1.bf16.msra.mxu1 %v13192_v15  ;;  %v13241_v15 = vcombine.high %v1851_v17, %v1855_v11  ;;  %v1895_v17 = vld [vmem:[#allocation7 + $0x23e0] sm:$0xff]  ;;  %v1892_v11 = vld [vmem:[#allocation7 + $0x23c8] sm:$0xff] }
 0x3db   :  { %10025 = vmatpush1.bf16.msra.mxu0 %v13194_v16  ;;  %9575 = vmatprep.subr.bf16.mxu1 %v13201_v23  ;;  %v13243_v16 = vcombine.high %v1852_v63, %v1856_v10  ;;  %v1859_v23 = vld [vmem:[#allocation7 + $0x22c0] sm:$0xff]  ;;  %v1896_v63 = vld [vmem:[#allocation7 + $0x23e8] sm:$0xff] }
 0x3dc   :  { %10026 = vmatprep.subr.bf16.mxu0 %v13203_v37  ;;  %v1863_v37 = vld [vmem:[#allocation7 + $0x22e0] sm:$0xff]  ;;  %v306_v10 = vld [vmem:[#allocation5 + $0x98] sm:$0xff] }
 0x3dd   :  { %v13248_v7 = vcombine.low %v1859_v23, %v1863_v37 }
 0x3de   :  { %9576 = vmatpush1.bf16.msra.mxu1 %v13200_v0  ;;  %v13249_v0 = vcombine.high %v1859_v23, %v1863_v37  ;;  %v13283_v23 = vcombine.high %v1892_v11, %v1896_v63  ;;  %v1899_v37 = vld [vmem:[#allocation7 + $0x2400] sm:$0xff] }
 0x3df   :  { %10027 = vmatpush1.bf16.msra.mxu0 %v13202_v33  ;;  %9577 = vmatprep.subr.bf16.mxu1 %v13209_v34  ;;  %v13251_v33 = vcombine.high %v1860_v27, %v1864_v28  ;;  %v1867_v34 = vld [vmem:[#allocation7 + $0x2300] sm:$0xff]  ;;  %v13855_v28 = vadd.f32 %v15021_v32, %v306_v10 }
 0x3e0   :  { %10028 = vmatprep.subr.bf16.mxu0 %v13211_v3  ;;  %v1871_v3 = vld [vmem:[#allocation7 + $0x2320] sm:$0xff] }
 0x3e1   :  { %v13256_v19 = vcombine.low %v1867_v34, %v1871_v3  ;;  %v1903_v27 = vld [vmem:[#allocation7 + $0x2420] sm:$0xff] }
 0x3e2   :  { %9578 = vmatpush1.bf16.msra.mxu1 %v13208_v44  ;;  %v13257_v44 = vcombine.high %v1867_v34, %v1871_v3  ;;  %v13282_v34 = vcombine.low %v1892_v11, %v1896_v63  ;;  %v13289_v3 = vcombine.high %v1899_v37, %v1903_v27  ;;  %v1931_v63 = vld [vmem:[#allocation7 + $0x2500] sm:$0xff] }
 0x3e3   :  { %10029 = vmatpush1.bf16.msra.mxu0 %v13210_v45  ;;  %9579 = vmatprep.subr.bf16.mxu1 %v13217_v48  ;;  %v13259_v45 = vcombine.high %v1868_v36, %v1872_v38  ;;  %v1875_v48 = vld [vmem:[#allocation7 + $0x2340] sm:$0xff]  ;;  %v678_v36 = vmax.f32 %v13855_v28, 0.0 }
 0x3e4   :  { %10030 = vmatprep.subr.bf16.mxu0 %v13219_v49  ;;  %v1879_v49 = vld [vmem:[#allocation7 + $0x2360] sm:$0xff] }
 0x3e5   :  { %v13264_v43 = vcombine.low %v1875_v48, %v1879_v49  ;;  %v1907_v38 = vld [vmem:[#allocation7 + $0x2440] sm:$0xff] }
 0x3e6   :  { %9580 = vmatpush1.bf16.msra.mxu1 %v13216_v56  ;;  %v13265_v56 = vcombine.high %v1875_v48, %v1879_v49  ;;  %v1935_v10 = vld [vmem:[#allocation7 + $0x2520] sm:$0xff] }
 0x3e7   :  { %10031 = vmatpush1.bf16.msra.mxu0 %v13218_v20  ;;  %9581 = vmatprep.subr.bf16.mxu1 %v13225_v58  ;;  %v13267_v20 = vcombine.high %v1876_v50, %v1880_v31  ;;  %v1883_v58 = vld [vmem:[#allocation7 + $0x2380] sm:$0xff] }
 0x3e8   :  { %10032 = vmatprep.subr.bf16.mxu0 %v13227_v59  ;;  %v1887_v59 = vld [vmem:[#allocation7 + $0x23a0] sm:$0xff] }
 0x3e9   :  { %v1915_v50 = vld [vmem:[#allocation7 + $0x2480] sm:$0xff] }
 0x3ea   :  { %9582 = vmatpush1.bf16.msra.mxu1 %v13224_v2  ;;  %v13273_v2 = vcombine.high %v1883_v58, %v1887_v59  ;;  %v1919_v31 = vld [vmem:[#allocation7 + $0x24a0] sm:$0xff] }
 0x3eb   :  { %10033 = vmatpush1.bf16.msra.mxu0 %v13226_v4  ;;  %9583 = vmatprep.subr.bf16.mxu1 %v13233_v6  ;;  %v303_v4 = vld [vmem:[#allocation5 + $0x80] sm:$0xff]  ;;  %v13275_v6 = vcombine.high %v1884_v61, %v1888_v54  ;;  %v1943_v28 = vld [vmem:[#allocation7 + $0x2560] sm:$0xff] }
 0x3ec   :  { %10034 = vmatprep.subr.bf16.mxu0 %v13235_v8  ;;  %v1891_v8 = vld [vmem:[#allocation7 + $0x23c0] sm:$0xff] }
 0x3ee   :  { %9584 = vmatpush1.bf16.msra.mxu1 %v13232_v12  ;;  %v13272_v12 = vcombine.low %v1883_v58, %v1887_v59 }
 0x3ef   :  { %10035 = vmatpush1.bf16.msra.mxu0 %v13234_v52  ;;  %9585 = vmatprep.subr.bf16.mxu1 %v13241_v15  ;;  %v13852_v52 = vadd.f32 %v15007_v53, %v303_v4  ;;  %v13274_v15 = vcombine.low %v1884_v61, %v1888_v54  ;;  %v13305_v61 = vcombine.high %v1915_v50, %v1919_v31  ;;  %v1928_v4 = vld [vmem:[#allocation7 + $0x24e8] sm:$0xff] }
 0x3f0   :  { %10036 = vmatprep.subr.bf16.mxu0 %v13243_v16  ;;  %v13281_v16 = vcombine.high %v1891_v8, %v1895_v17 }
 0x3f2   :  { %9586 = vmatpush1.bf16.msra.mxu1 %v13240_v29  ;;  %v1900_v29 = vld [vmem:[#allocation7 + $0x2408] sm:$0xff] }
 0x3f3   :  { %10037 = vmatpush1.bf16.msra.mxu0 %v13242_v30  ;;  %9587 = vmatprep.subr.bf16.mxu1 %v13249_v0  ;;  %v1904_v30 = vld [vmem:[#allocation7 + $0x2428] sm:$0xff]  ;;  %v13280_v0 = vcombine.low %v1891_v8, %v1895_v17 }
 0x3f4   :  { %10038 = vmatprep.subr.bf16.mxu0 %v13251_v33  ;;  %v675_v33 = vmax.f32 %v13852_v52, 0.0  ;;  %v13291_v53 = vcombine.high %v1900_v29, %v1904_v30  ;;  %v13290_v32 = vcombine.low %v1900_v29, %v1904_v30  ;;  %v1936_v52 = vld [vmem:[#allocation7 + $0x2528] sm:$0xff] }
 0x3f5   :  { %v1940_v29 = vld [vmem:[#allocation7 + $0x2548] sm:$0xff] }
 0x3f6   :  { %9588 = vmatpush1.bf16.msra.mxu1 %v13248_v7  ;;  %v1911_v7 = vld [vmem:[#allocation7 + $0x2460] sm:$0xff]  ;;  %v15091_v48 = vpack.c.bf16 %v675_v33, %v675_v33  ;;  %v1944_v30 = vld [vmem:[#allocation7 + $0x2568] sm:$0xff] }
 0x3f7   :  { %10039 = vmatpush1.bf16.msra.mxu0 %v13250_v40  ;;  %9589 = vmatprep.subr.bf16.mxu1 %v13257_v44  ;;  %v13288_v40 = vcombine.low %v1899_v37, %v1903_v27  ;;  %v1908_v44 = vld [vmem:[#allocation7 + $0x2448] sm:$0xff]  ;;  %v13297_v49 = vcombine.high %v1907_v38, %v1911_v7  ;;  %v13296_v58 = vcombine.low %v1907_v38, %v1911_v7  ;;  %v1939_v27 = vld [vmem:[#allocation7 + $0x2540] sm:$0xff] }
 0x3f8   :  { %10040 = vmatprep.subr.bf16.mxu0 %v13259_v45  ;;  %v1912_v45 = vld [vmem:[#allocation7 + $0x2468] sm:$0xff] }
 0x3f9   :  { %v13298_v59 = vcombine.low %v1908_v44, %v1912_v45  ;;  %v1948_v38 = vld [vmem:[#allocation7 + $0x2588] sm:$0xff] }
 0x3fa   :  { %9590 = vmatpush1.bf16.msra.mxu1 %v13256_v19  ;;  %v15093_v19 = vpack.c.bf16 %v678_v36, %v678_v36  ;;  %v1951_v36 = vld [vmem:[#allocation7 + $0x25a0] sm:$0xff]  ;;  %v1952_v7 = vld [vmem:[#allocation7 + $0x25a8] sm:$0xff] }
 0x3fb   :  { %10041 = vmatpush1.bf16.msra.mxu0 %v13258_v55  ;;  %9591 = vmatprep.subr.bf16.mxu1 %v13265_v56  ;;  %v13299_v55 = vcombine.high %v1908_v44, %v1912_v45  ;;  %v1916_v56 = vld [vmem:[#allocation7 + $0x2488] sm:$0xff]  ;;  %v13330_v44 = vcombine.low %v1940_v29, %v1944_v30 }
 0x3fc   :  { %10042 = vmatprep.subr.bf16.mxu0 %v13267_v20  ;;  %v1920_v20 = vld [vmem:[#allocation7 + $0x24a8] sm:$0xff] }
 0x3fd   :  { %v13307_v54 = vcombine.high %v1916_v56, %v1920_v20  ;;  %v13306_v8 = vcombine.low %v1916_v56, %v1920_v20  ;;  %v13338_v20 = vcombine.low %v1948_v38, %v1952_v7 }
 0x3fe   :  { %9592 = vmatpush1.bf16.msra.mxu1 %v13264_v43  ;;  %v1923_v43 = vld [vmem:[#allocation7 + $0x24c0] sm:$0xff] }
 0x3ff   :  { %10043 = vmatpush1.bf16.msra.mxu0 %v13266_v1  ;;  %9593 = vmatprep.subr.bf16.mxu1 %v13273_v2  ;;  %v1927_v1 = vld [vmem:[#allocation7 + $0x24e0] sm:$0xff]  ;;  %v1924_v2 = vld [vmem:[#allocation7 + $0x24c8] sm:$0xff] }
 0x400   :  { %10044 = vmatprep.subr.bf16.mxu0 %v13275_v6  ;;  %v13304_v6 = vcombine.low %v1915_v50, %v1919_v31  ;;  %v13313_v17 = vcombine.high %v1923_v43, %v1927_v1  ;;  %v13315_v11 = vcombine.high %v1924_v2, %v1928_v4  ;;  %v1959_v50 = vld [vmem:[#allocation7 + $0x25e0] sm:$0xff]  ;;  %v1956_v31 = vld [vmem:[#allocation7 + $0x25c8] sm:$0xff] }
 0x402   :  { %9594 = vmatpush1.bf16.msra.mxu1 %v13272_v12  ;;  %v1932_v12 = vld [vmem:[#allocation7 + $0x2508] sm:$0xff] }
 0x403   :  { %10045 = vmatpush1.bf16.msra.mxu0 %v13274_v15  ;;  %9595 = vmatprep.subr.bf16.mxu1 %v13281_v16  ;;  %v13312_v15 = vcombine.low %v1923_v43, %v1927_v1  ;;  %v13314_v16 = vcombine.low %v1924_v2, %v1928_v4  ;;  %v13323_v37 = vcombine.high %v1932_v12, %v1936_v52  ;;  %v1964_v43 = vld [vmem:[#allocation7 + $0x2608] sm:$0xff] }
 0x404   :  { %10046 = vmatprep.subr.bf16.mxu0 %v13283_v23  ;;  %v13321_v23 = vcombine.high %v1931_v63, %v1935_v10  ;;  %v13322_v33 = vcombine.low %v1932_v12, %v1936_v52  ;;  %v1968_v1 = vld [vmem:[#allocation7 + $0x2628] sm:$0xff] }
 0x405   :  { %v13354_v52 = vcombine.low %v1964_v43, %v1968_v1 }
 0x406   :  { %9596 = vmatpush1.bf16.msra.mxu1 %v13280_v0  ;;  %v13320_v0 = vcombine.low %v1931_v63, %v1935_v10  ;;  %v1972_v63 = vld [vmem:[#allocation7 + $0x2648] sm:$0xff] }
 0x407   :  { %10047 = vmatpush1.bf16.msra.mxu0 %v13282_v34  ;;  %9606 = vmatprep.subr.bf16.mxu1 %v13289_v3  ;;  %v13329_v34 = vcombine.high %v1939_v27, %v1943_v28  ;;  %v13331_v3 = vcombine.high %v1940_v29, %v1944_v30  ;;  %v1976_v10 = vld [vmem:[#allocation7 + $0x2668] sm:$0xff] }
 0x408   :  { %10057 = vmatprep.subr.bf16.mxu0 %v13291_v53  ;;  %v1947_v53 = vld [vmem:[#allocation7 + $0x2580] sm:$0xff]  ;;  %v13362_v30 = vcombine.low %v1972_v63, %v1976_v10 }
 0x409   :  { %9598 = vmatmul.mubr.bf16.vlgmr.msra.gmra.mrb[0].mxu1 %v15091_v48  ;;  %v13337_v45 = vcombine.high %v1947_v53, %v1951_v36  ;;  %v13336_v56 = vcombine.low %v1947_v53, %v1951_v36  ;;  %v1988_v53 = vld [vmem:[#allocation7 + $0x26c8] sm:$0xff] }
 0x40a   :  { %10049 = vmatmul.mubr.bf16.vlgmr.msra.gmra.mrb[44].mxu0 %v15091_v48  ;;  %9607 = vmatpush1.bf16.msra.mxu1 %v13288_v40  ;;  %v13328_v40 = vcombine.low %v1939_v27, %v1943_v28  ;;  %v1980_v27 = vld [vmem:[#allocation7 + $0x2688] sm:$0xff] }
 0x40b   :  { %9638 = vmatprep.mubr.bf16.mxu1 %v15093_v19  ;;  %10058 = vmatpush1.bf16.msra.mxu0 %v13290_v32  ;;  %v13339_v32 = vcombine.high %v1948_v38, %v1952_v7  ;;  %v1984_v28 = vld [vmem:[#allocation7 + $0x26a8] sm:$0xff] }
 0x40c   :  { %10089 = vmatprep.mubr.bf16.mxu0 %v15093_v19  ;;  %9608 = vmatprep.subr.bf16.mxu1 %v13297_v49  ;;  %v1955_v49 = vld [vmem:[#allocation7 + $0x25c0] sm:$0xff]  ;;  %v1992_v36 = vld [vmem:[#allocation7 + $0x26e8] sm:$0xff]  ;;  %v13370_v7 = vcombine.low %v1980_v27, %v1984_v28 }
 0x40d   :  { %10059 = vmatprep.subr.bf16.mxu0 %v13299_v55  ;;  %v1960_v55 = vld [vmem:[#allocation7 + $0x25e8] sm:$0xff]  ;;  %v13344_v2 = vcombine.low %v1955_v49, %v1959_v50 }
 0x40e   :  { %9609 = vmatpush1.bf16.msra.mxu1 %v13296_v58  ;;  %v13345_v58 = vcombine.high %v1955_v49, %v1959_v50  ;;  %v13346_v4 = vcombine.low %v1956_v31, %v1960_v55  ;;  %v1996_v49 = vld [vmem:[#allocation7 + $0x2708] sm:$0xff] }
 0x40f   :  { %10060 = vmatpush1.bf16.msra.mxu0 %v13298_v59  ;;  %9610 = vmatprep.subr.bf16.mxu1 %v13305_v61  ;;  %v13347_v59 = vcombine.high %v1956_v31, %v1960_v55  ;;  %v1963_v61 = vld [vmem:[#allocation7 + $0x2600] sm:$0xff]  ;;  %v2000_v50 = vld [vmem:[#allocation7 + $0x2728] sm:$0xff]  ;;  %v13378_v55 = vcombine.low %v1988_v53, %v1992_v36 }
 0x410   :  { %10061 = vmatprep.subr.bf16.mxu0 %v13307_v54  ;;  %v1967_v54 = vld [vmem:[#allocation7 + $0x2620] sm:$0xff] }
 0x411   :  { %v13352_v12 = vcombine.low %v1963_v61, %v1967_v54 }
 0x412   :  { %9611 = vmatpush1.bf16.msra.mxu1 %v13304_v6  ;;  %v13353_v6 = vcombine.high %v1963_v61, %v1967_v54  ;;  %v2004_v61 = vld [vmem:[#allocation7 + $0x2748] sm:$0xff] }
 0x413   :  { %10062 = vmatpush1.bf16.msra.mxu0 %v13306_v8  ;;  %9612 = vmatprep.subr.bf16.mxu1 %v13313_v17  ;;  %v13355_v8 = vcombine.high %v1964_v43, %v1968_v1  ;;  %v1971_v17 = vld [vmem:[#allocation7 + $0x2640] sm:$0xff]  ;;  %v2008_v54 = vld [vmem:[#allocation7 + $0x2768] sm:$0xff]  ;;  %v13386_v1 = vcombine.low %v1996_v49, %v2000_v50 }
 0x414   :  { %10063 = vmatprep.subr.bf16.mxu0 %v13315_v11  ;;  %v1975_v11 = vld [vmem:[#allocation7 + $0x2660] sm:$0xff] }
 0x415   :  { %v13360_v29 = vcombine.low %v1971_v17, %v1975_v11 }
 0x416   :  { %9613 = vmatpush1.bf16.msra.mxu1 %v13312_v15  ;;  %v13361_v15 = vcombine.high %v1971_v17, %v1975_v11  ;;  %v2012_v17 = vld [vmem:[#allocation7 + $0x2788] sm:$0xff] }
 0x417   :  { %10064 = vmatpush1.bf16.msra.mxu0 %v13314_v16  ;;  %9614 = vmatprep.subr.bf16.mxu1 %v13321_v23  ;;  %v13363_v16 = vcombine.high %v1972_v63, %v1976_v10  ;;  %v1979_v23 = vld [vmem:[#allocation7 + $0x2680] sm:$0xff]  ;;  %v2016_v11 = vld [vmem:[#allocation7 + $0x27a8] sm:$0xff]  ;;  %v13394_v10 = vcombine.low %v2004_v61, %v2008_v54 }
 0x418   :  { %10065 = vmatprep.subr.bf16.mxu0 %v13323_v37  ;;  %v1983_v37 = vld [vmem:[#allocation7 + $0x26a0] sm:$0xff] }
 0x419   :  { %v13368_v38 = vcombine.low %v1979_v23, %v1983_v37 }
 0x41a   :  { %9615 = vmatpush1.bf16.msra.mxu1 %v13320_v0  ;;  %v13369_v0 = vcombine.high %v1979_v23, %v1983_v37  ;;  %v2023_v23 = vld [vmem:[#allocation7 + $0x27e0] sm:$0xff]  ;;  %v2020_v37 = vld [vmem:[#allocation7 + $0x27c8] sm:$0xff] }
 0x41b   :  { %10066 = vmatpush1.bf16.msra.mxu0 %v13322_v33  ;;  %9616 = vmatprep.subr.bf16.mxu1 %v13329_v34  ;;  %v13371_v33 = vcombine.high %v1980_v27, %v1984_v28  ;;  %v1987_v34 = vld [vmem:[#allocation7 + $0x26c0] sm:$0xff]  ;;  %v2024_v27 = vld [vmem:[#allocation7 + $0x27e8] sm:$0xff]  ;;  %v308_v28 = vld [vmem:[#allocation5 + $0xa8] sm:$0xff] }
 0x41c   :  { %10067 = vmatprep.subr.bf16.mxu0 %v13331_v3  ;;  %v1991_v3 = vld [vmem:[#allocation7 + $0x26e0] sm:$0xff] }
 0x41d   :  { %v13376_v31 = vcombine.low %v1987_v34, %v1991_v3 }
 0x41e   :  { %9617 = vmatpush1.bf16.msra.mxu1 %v13328_v40  ;;  %v13377_v40 = vcombine.high %v1987_v34, %v1991_v3  ;;  %v13411_v34 = vcombine.high %v2020_v37, %v2024_v27  ;;  %v2027_v3 = vld [vmem:[#allocation7 + $0x2800] sm:$0xff] }
 0x41f   :  { %10068 = vmatpush1.bf16.msra.mxu0 %v13330_v44  ;;  %9618 = vmatprep.subr.bf16.mxu1 %v13337_v45  ;;  %v13379_v44 = vcombine.high %v1988_v53, %v1992_v36  ;;  %v1995_v45 = vld [vmem:[#allocation7 + $0x2700] sm:$0xff]  ;;  %v13857_v36 = vadd.f32 %v15027_v57, %v308_v28 }
 0x420   :  { %10069 = vmatprep.subr.bf16.mxu0 %v13339_v32  ;;  %v1999_v32 = vld [vmem:[#allocation7 + $0x2720] sm:$0xff] }
 0x421   :  { %v13384_v43 = vcombine.low %v1995_v45, %v1999_v32  ;;  %v2031_v53 = vld [vmem:[#allocation7 + $0x2820] sm:$0xff] }
 0x422   :  { %9619 = vmatpush1.bf16.msra.mxu1 %v13336_v56  ;;  %v13385_v56 = vcombine.high %v1995_v45, %v1999_v32  ;;  %v13410_v45 = vcombine.low %v2020_v37, %v2024_v27  ;;  %v13417_v32 = vcombine.high %v2027_v3, %v2031_v53  ;;  %v2059_v27 = vld [vmem:[#allocation7 + $0x2900] sm:$0xff] }
 0x423   :  { %10070 = vmatpush1.bf16.msra.mxu0 %v13338_v20  ;;  %9620 = vmatprep.subr.bf16.mxu1 %v13345_v58  ;;  %v13387_v20 = vcombine.high %v1996_v49, %v2000_v50  ;;  %v2003_v58 = vld [vmem:[#allocation7 + $0x2740] sm:$0xff]  ;;  %v680_v49 = vmax.f32 %v13857_v36, 0.0 }
 0x424   :  { %10071 = vmatprep.subr.bf16.mxu0 %v13347_v59  ;;  %v2007_v59 = vld [vmem:[#allocation7 + $0x2760] sm:$0xff] }
 0x425   :  { %v13392_v63 = vcombine.low %v2003_v58, %v2007_v59  ;;  %v2035_v50 = vld [vmem:[#allocation7 + $0x2840] sm:$0xff] }
 0x426   :  { %9621 = vmatpush1.bf16.msra.mxu1 %v13344_v2  ;;  %v13393_v2 = vcombine.high %v2003_v58, %v2007_v59  ;;  %v2063_v28 = vld [vmem:[#allocation7 + $0x2920] sm:$0xff] }
 0x427   :  { %10072 = vmatpush1.bf16.msra.mxu0 %v13346_v4  ;;  %9622 = vmatprep.subr.bf16.mxu1 %v13353_v6  ;;  %v13395_v4 = vcombine.high %v2004_v61, %v2008_v54  ;;  %v2011_v6 = vld [vmem:[#allocation7 + $0x2780] sm:$0xff] }
 0x428   :  { %10073 = vmatprep.subr.bf16.mxu0 %v13355_v8  ;;  %v2015_v8 = vld [vmem:[#allocation7 + $0x27a0] sm:$0xff] }
 0x429   :  { %v2043_v61 = vld [vmem:[#allocation7 + $0x2880] sm:$0xff] }
 0x42a   :  { %9623 = vmatpush1.bf16.msra.mxu1 %v13352_v12  ;;  %v13401_v12 = vcombine.high %v2011_v6, %v2015_v8  ;;  %v2047_v54 = vld [vmem:[#allocation7 + $0x28a0] sm:$0xff] }
 0x42b   :  { %10074 = vmatpush1.bf16.msra.mxu0 %v13354_v52  ;;  %9624 = vmatprep.subr.bf16.mxu1 %v13361_v15  ;;  %v305_v52 = vld [vmem:[#allocation5 + $0x90] sm:$0xff]  ;;  %v13403_v15 = vcombine.high %v2012_v17, %v2016_v11 }
 0x42c   :  { %10075 = vmatprep.subr.bf16.mxu0 %v13363_v16  ;;  %v2019_v16 = vld [vmem:[#allocation7 + $0x27c0] sm:$0xff] }
 0x42d   :  { %v2071_v36 = vld [vmem:[#allocation7 + $0x2960] sm:$0xff] }
 0x42e   :  { %9625 = vmatpush1.bf16.msra.mxu1 %v13360_v29  ;;  %v13400_v29 = vcombine.low %v2011_v6, %v2015_v8 }
 0x42f   :  { %10076 = vmatpush1.bf16.msra.mxu0 %v13362_v30  ;;  %9626 = vmatprep.subr.bf16.mxu1 %v13369_v0  ;;  %v13854_v30 = vadd.f32 %v15013_v13, %v305_v52  ;;  %v13402_v0 = vcombine.low %v2012_v17, %v2016_v11  ;;  %v13433_v17 = vcombine.high %v2043_v61, %v2047_v54  ;;  %v2056_v52 = vld [vmem:[#allocation7 + $0x28e8] sm:$0xff] }
 0x430   :  { %10077 = vmatprep.subr.bf16.mxu0 %v13371_v33  ;;  %v13409_v33 = vcombine.high %v2019_v16, %v2023_v23 }
 0x432   :  { %9627 = vmatpush1.bf16.msra.mxu1 %v13368_v38  ;;  %v2028_v38 = vld [vmem:[#allocation7 + $0x2808] sm:$0xff] }
 0x433   :  { %10078 = vmatpush1.bf16.msra.mxu0 %v13370_v7  ;;  %9628 = vmatprep.subr.bf16.mxu1 %v13377_v40  ;;  %v2032_v7 = vld [vmem:[#allocation7 + $0x2828] sm:$0xff]  ;;  %v13408_v40 = vcombine.low %v2019_v16, %v2023_v23 }
 0x434   :  { %10079 = vmatprep.subr.bf16.mxu0 %v13379_v44  ;;  %v677_v44 = vmax.f32 %v13854_v30, 0.0  ;;  %v13419_v13 = vcombine.high %v2028_v38, %v2032_v7  ;;  %v13418_v57 = vcombine.low %v2028_v38, %v2032_v7  ;;  %v2064_v30 = vld [vmem:[#allocation7 + $0x2928] sm:$0xff] }
 0x435   :  { %v2068_v38 = vld [vmem:[#allocation7 + $0x2948] sm:$0xff] }
 0x436   :  { %9629 = vmatpush1.bf16.msra.mxu1 %v13376_v31  ;;  %v2039_v31 = vld [vmem:[#allocation7 + $0x2860] sm:$0xff]  ;;  %v15101_v58 = vpack.c.bf16 %v677_v44, %v677_v44  ;;  %v2072_v7 = vld [vmem:[#allocation7 + $0x2968] sm:$0xff] }
 0x437   :  { %10080 = vmatpush1.bf16.msra.mxu0 %v13378_v55  ;;  %9630 = vmatprep.subr.bf16.mxu1 %v13385_v56  ;;  %v13416_v55 = vcombine.low %v2027_v3, %v2031_v53  ;;  %v2036_v56 = vld [vmem:[#allocation7 + $0x2848] sm:$0xff]  ;;  %v13425_v59 = vcombine.high %v2035_v50, %v2039_v31  ;;  %v13424_v6 = vcombine.low %v2035_v50, %v2039_v31  ;;  %v2067_v53 = vld [vmem:[#allocation7 + $0x2940] sm:$0xff] }
 0x438   :  { %10081 = vmatprep.subr.bf16.mxu0 %v13387_v20  ;;  %v2040_v20 = vld [vmem:[#allocation7 + $0x2868] sm:$0xff] }
 0x439   :  { %v13426_v8 = vcombine.low %v2036_v56, %v2040_v20  ;;  %v2076_v50 = vld [vmem:[#allocation7 + $0x2988] sm:$0xff] }
 0x43a   :  { %9631 = vmatpush1.bf16.msra.mxu1 %v13384_v43  ;;  %v15103_v43 = vpack.c.bf16 %v680_v49, %v680_v49  ;;  %v2079_v49 = vld [vmem:[#allocation7 + $0x29a0] sm:$0xff]  ;;  %v2080_v31 = vld [vmem:[#allocation7 + $0x29a8] sm:$0xff] }
 0x43b   :  { %10082 = vmatpush1.bf16.msra.mxu0 %v13386_v1  ;;  %9632 = vmatprep.subr.bf16.mxu1 %v13393_v2  ;;  %v13427_v1 = vcombine.high %v2036_v56, %v2040_v20  ;;  %v2044_v2 = vld [vmem:[#allocation7 + $0x2888] sm:$0xff]  ;;  %v13458_v56 = vcombine.low %v2068_v38, %v2072_v7 }
 0x43c   :  { %10083 = vmatprep.subr.bf16.mxu0 %v13395_v4  ;;  %v2048_v4 = vld [vmem:[#allocation7 + $0x28a8] sm:$0xff] }
 0x43d   :  { %v13435_v11 = vcombine.high %v2044_v2, %v2048_v4  ;;  %v13434_v16 = vcombine.low %v2044_v2, %v2048_v4  ;;  %v13466_v4 = vcombine.low %v2076_v50, %v2080_v31 }
 0x43e   :  { %9633 = vmatpush1.bf16.msra.mxu1 %v13392_v63  ;;  %v2051_v63 = vld [vmem:[#allocation7 + $0x28c0] sm:$0xff] }
 0x43f   :  { %10084 = vmatpush1.bf16.msra.mxu0 %v13394_v10  ;;  %9634 = vmatprep.subr.bf16.mxu1 %v13401_v12  ;;  %v2055_v10 = vld [vmem:[#allocation7 + $0x28e0] sm:$0xff]  ;;  %v2052_v12 = vld [vmem:[#allocation7 + $0x28c8] sm:$0xff] }
 0x440   :  { %10085 = vmatprep.subr.bf16.mxu0 %v13403_v15  ;;  %v13432_v15 = vcombine.low %v2043_v61, %v2047_v54  ;;  %v13441_v23 = vcombine.high %v2051_v63, %v2055_v10  ;;  %v13443_v37 = vcombine.high %v2052_v12, %v2056_v52  ;;  %v2087_v61 = vld [vmem:[#allocation7 + $0x29e0] sm:$0xff]  ;;  %v2084_v54 = vld [vmem:[#allocation7 + $0x29c8] sm:$0xff] }
 0x442   :  { %9635 = vmatpush1.bf16.msra.mxu1 %v13400_v29  ;;  %v2060_v29 = vld [vmem:[#allocation7 + $0x2908] sm:$0xff] }
 0x443   :  { %10086 = vmatpush1.bf16.msra.mxu0 %v13402_v0  ;;  %9636 = vmatprep.subr.bf16.mxu1 %v13409_v33  ;;  %v13440_v0 = vcombine.low %v2051_v63, %v2055_v10  ;;  %v13442_v33 = vcombine.low %v2052_v12, %v2056_v52  ;;  %v13451_v3 = vcombine.high %v2060_v29, %v2064_v30  ;;  %v2092_v63 = vld [vmem:[#allocation7 + $0x2a08] sm:$0xff] }
 0x444   :  { %10087 = vmatprep.subr.bf16.mxu0 %v13411_v34  ;;  %v13449_v34 = vcombine.high %v2059_v27, %v2063_v28  ;;  %v13450_v44 = vcombine.low %v2060_v29, %v2064_v30  ;;  %v2096_v10 = vld [vmem:[#allocation7 + $0x2a28] sm:$0xff] }
 0x445   :  { %v13482_v30 = vcombine.low %v2092_v63, %v2096_v10 }
 0x446   :  { %9637 = vmatpush1.bf16.msra.mxu1 %v13408_v40  ;;  %v13448_v40 = vcombine.low %v2059_v27, %v2063_v28  ;;  %v2100_v27 = vld [vmem:[#allocation7 + $0x2a48] sm:$0xff] }
 0x447   :  { %10088 = vmatpush1.bf16.msra.mxu0 %v13410_v45  ;;  %9647 = vmatprep.subr.bf16.mxu1 %v13417_v32  ;;  %v13457_v45 = vcombine.high %v2067_v53, %v2071_v36  ;;  %v13459_v32 = vcombine.high %v2068_v38, %v2072_v7  ;;  %v2104_v28 = vld [vmem:[#allocation7 + $0x2a68] sm:$0xff] }
 0x448   :  { %10098 = vmatprep.subr.bf16.mxu0 %v13419_v13  ;;  %v2075_v13 = vld [vmem:[#allocation7 + $0x2980] sm:$0xff]  ;;  %v13490_v7 = vcombine.low %v2100_v27, %v2104_v28 }
 0x449   :  { %9639 = vmatmul.mubr.bf16.vlgmr.msra.gmra.mrb[0].mxu1 %v15101_v58  ;;  %v13465_v20 = vcombine.high %v2075_v13, %v2079_v49  ;;  %v13464_v2 = vcombine.low %v2075_v13, %v2079_v49  ;;  %v2116_v13 = vld [vmem:[#allocation7 + $0x2ac8] sm:$0xff] }
 0x44a   :  { %10090 = vmatmul.mubr.bf16.vlgmr.msra.gmra.mrb[44].mxu0 %v15101_v58  ;;  %9648 = vmatpush1.bf16.msra.mxu1 %v13416_v55  ;;  %v13456_v55 = vcombine.low %v2067_v53, %v2071_v36  ;;  %v2108_v53 = vld [vmem:[#allocation7 + $0x2a88] sm:$0xff] }
 0x44b   :  { %9679 = vmatprep.mubr.bf16.mxu1 %v15103_v43  ;;  %10099 = vmatpush1.bf16.msra.mxu0 %v13418_v57  ;;  %v13467_v57 = vcombine.high %v2076_v50, %v2080_v31  ;;  %v2112_v36 = vld [vmem:[#allocation7 + $0x2aa8] sm:$0xff] }
 0x44c   :  { %10130 = vmatprep.mubr.bf16.mxu0 %v15103_v43  ;;  %9649 = vmatprep.subr.bf16.mxu1 %v13425_v59  ;;  %v2083_v59 = vld [vmem:[#allocation7 + $0x29c0] sm:$0xff]  ;;  %v2120_v49 = vld [vmem:[#allocation7 + $0x2ae8] sm:$0xff]  ;;  %v13498_v31 = vcombine.low %v2108_v53, %v2112_v36 }
 0x44d   :  { %10100 = vmatprep.subr.bf16.mxu0 %v13427_v1  ;;  %v2088_v1 = vld [vmem:[#allocation7 + $0x29e8] sm:$0xff]  ;;  %v13472_v12 = vcombine.low %v2083_v59, %v2087_v61 }
 0x44e   :  { %9650 = vmatpush1.bf16.msra.mxu1 %v13424_v6  ;;  %v13473_v6 = vcombine.high %v2083_v59, %v2087_v61  ;;  %v13474_v52 = vcombine.low %v2084_v54, %v2088_v1  ;;  %v2124_v59 = vld [vmem:[#allocation7 + $0x2b08] sm:$0xff] }
 0x44f   :  { %10101 = vmatpush1.bf16.msra.mxu0 %v13426_v8  ;;  %9651 = vmatprep.subr.bf16.mxu1 %v13433_v17  ;;  %v13475_v8 = vcombine.high %v2084_v54, %v2088_v1  ;;  %v2091_v17 = vld [vmem:[#allocation7 + $0x2a00] sm:$0xff]  ;;  %v2128_v61 = vld [vmem:[#allocation7 + $0x2b28] sm:$0xff]  ;;  %v13506_v1 = vcombine.low %v2116_v13, %v2120_v49 }
 0x450   :  { %10102 = vmatprep.subr.bf16.mxu0 %v13435_v11  ;;  %v2095_v11 = vld [vmem:[#allocation7 + $0x2a20] sm:$0xff] }
 0x451   :  { %v13480_v29 = vcombine.low %v2091_v17, %v2095_v11 }
 0x452   :  { %9652 = vmatpush1.bf16.msra.mxu1 %v13432_v15  ;;  %v13481_v15 = vcombine.high %v2091_v17, %v2095_v11  ;;  %v2132_v17 = vld [vmem:[#allocation7 + $0x2b48] sm:$0xff] }
 0x453   :  { %10103 = vmatpush1.bf16.msra.mxu0 %v13434_v16  ;;  %9653 = vmatprep.subr.bf16.mxu1 %v13441_v23  ;;  %v13483_v16 = vcombine.high %v2092_v63, %v2096_v10  ;;  %v2099_v23 = vld [vmem:[#allocation7 + $0x2a40] sm:$0xff]  ;;  %v2136_v11 = vld [vmem:[#allocation7 + $0x2b68] sm:$0xff]  ;;  %v13514_v10 = vcombine.low %v2124_v59, %v2128_v61 }
 0x454   :  { %10104 = vmatprep.subr.bf16.mxu0 %v13443_v37  ;;  %v2103_v37 = vld [vmem:[#allocation7 + $0x2a60] sm:$0xff] }
 0x455   :  { %v13488_v38 = vcombine.low %v2099_v23, %v2103_v37 }
 0x456   :  { %9654 = vmatpush1.bf16.msra.mxu1 %v13440_v0  ;;  %v13489_v0 = vcombine.high %v2099_v23, %v2103_v37  ;;  %v2140_v23 = vld [vmem:[#allocation7 + $0x2b88] sm:$0xff] }
 0x457   :  { %10105 = vmatpush1.bf16.msra.mxu0 %v13442_v33  ;;  %9655 = vmatprep.subr.bf16.mxu1 %v13449_v34  ;;  %v13491_v33 = vcombine.high %v2100_v27, %v2104_v28  ;;  %v2107_v34 = vld [vmem:[#allocation7 + $0x2a80] sm:$0xff]  ;;  %v2144_v37 = vld [vmem:[#allocation7 + $0x2ba8] sm:$0xff]  ;;  %v13522_v28 = vcombine.low %v2132_v17, %v2136_v11 }
 0x458   :  { %10106 = vmatprep.subr.bf16.mxu0 %v13451_v3  ;;  %v2111_v3 = vld [vmem:[#allocation7 + $0x2aa0] sm:$0xff] }
 0x459   :  { %v13496_v50 = vcombine.low %v2107_v34, %v2111_v3 }
 0x45a   :  { %9656 = vmatpush1.bf16.msra.mxu1 %v13448_v40  ;;  %v13497_v40 = vcombine.high %v2107_v34, %v2111_v3  ;;  %v2151_v34 = vld [vmem:[#allocation7 + $0x2be0] sm:$0xff]  ;;  %v2148_v3 = vld [vmem:[#allocation7 + $0x2bc8] sm:$0xff] }
 0x45b   :  { %10107 = vmatpush1.bf16.msra.mxu0 %v13450_v44  ;;  %9657 = vmatprep.subr.bf16.mxu1 %v13457_v45  ;;  %v13499_v44 = vcombine.high %v2108_v53, %v2112_v36  ;;  %v2115_v45 = vld [vmem:[#allocation7 + $0x2ac0] sm:$0xff]  ;;  %v2152_v53 = vld [vmem:[#allocation7 + $0x2be8] sm:$0xff] }
 0x45c   :  { %10108 = vmatprep.subr.bf16.mxu0 %v13459_v32  ;;  %v2119_v32 = vld [vmem:[#allocation7 + $0x2ae0] sm:$0xff] }
 0x45d   :  { %v13504_v54 = vcombine.low %v2115_v45, %v2119_v32 }
 0x45e   :  { %9658 = vmatpush1.bf16.msra.mxu1 %v13456_v55  ;;  %v13505_v55 = vcombine.high %v2115_v45, %v2119_v32  ;;  %v749_v45 = vld [vmem:[#allocation7 + $0x10] sm:$0xff] }
 0x45f   :  { %10109 = vmatpush1.bf16.msra.mxu0 %v13458_v56  ;;  %9659 = vmatprep.subr.bf16.mxu1 %v13465_v20  ;;  %v13507_v56 = vcombine.high %v2116_v13, %v2120_v49  ;;  %v2123_v20 = vld [vmem:[#allocation7 + $0x2b00] sm:$0xff]  ;;  %v753_v32 = vld [vmem:[#allocation7 + $0x30] sm:$0xff]  ;;  %v750_v13 = vld [vmem:[#allocation7 + $0x18] sm:$0xff] }
 0x460   :  { %10110 = vmatprep.subr.bf16.mxu0 %v13467_v57  ;;  %v2127_v57 = vld [vmem:[#allocation7 + $0x2b20] sm:$0xff]  ;;  %v754_v49 = vld [vmem:[#allocation7 + $0x38] sm:$0xff] }
 0x461   :  { %v13512_v63 = vcombine.low %v2123_v20, %v2127_v57 }
 0x462   :  { %9660 = vmatpush1.bf16.msra.mxu1 %v13464_v2  ;;  %v13513_v2 = vcombine.high %v2123_v20, %v2127_v57  ;;  %v12143_v20 = vcombine.high %v750_v13, %v754_v49  ;;  %v761_v57 = vld [vmem:[#allocation7 + $0x70] sm:$0xff] }
 0x463   :  { %10111 = vmatpush1.bf16.msra.mxu0 %v13466_v4  ;;  %9661 = vmatprep.subr.bf16.mxu1 %v13473_v6  ;;  %v13515_v4 = vcombine.high %v2124_v59, %v2128_v61  ;;  %v2131_v6 = vld [vmem:[#allocation7 + $0x2b40] sm:$0xff]  ;;  %v12140_v59 = vcombine.low %v749_v45, %v753_v32  ;;  %v758_v61 = vld [vmem:[#allocation7 + $0x58] sm:$0xff] }
 0x464   :  { %10112 = vmatprep.subr.bf16.mxu0 %v13475_v8  ;;  %v2135_v8 = vld [vmem:[#allocation7 + $0x2b60] sm:$0xff] }
 0x465   :  { %v13520_v27 = vcombine.low %v2131_v6, %v2135_v8 }
 0x466   :  { %9662 = vmatpush1.bf16.msra.mxu1 %v13472_v12  ;;  %v13521_v12 = vcombine.high %v2131_v6, %v2135_v8  ;;  %v765_v6 = vld [vmem:[#allocation7 + $0x90] sm:$0xff] }
 0x467   :  { %10113 = vmatpush1.bf16.msra.mxu0 %v13474_v52  ;;  %9663 = vmatprep.subr.bf16.mxu1 %v13481_v15  ;;  %v13523_v52 = vcombine.high %v2132_v17, %v2136_v11  ;;  %v2139_v15 = vld [vmem:[#allocation7 + $0x2b80] sm:$0xff]  ;;  %v769_v8 = vld [vmem:[#allocation7 + $0xb0] sm:$0xff]  ;;  %v766_v11 = vld [vmem:[#allocation7 + $0x98] sm:$0xff] }
 0x468   :  { %10114 = vmatprep.subr.bf16.mxu0 %v13483_v16  ;;  %v2143_v16 = vld [vmem:[#allocation7 + $0x2ba0] sm:$0xff] }
 0x469   :  { %v13528_v36 = vcombine.low %v2139_v15, %v2143_v16 }
 0x46a   :  { %9664 = vmatpush1.bf16.msra.mxu1 %v13480_v29  ;;  %v13529_v29 = vcombine.high %v2139_v15, %v2143_v16  ;;  %v773_v16 = vld [vmem:[#allocation7 + $0xd0] sm:$0xff] }
 0x46b   :  { %10115 = vmatpush1.bf16.msra.mxu0 %v13482_v30  ;;  %9665 = vmatprep.subr.bf16.mxu1 %v13489_v0  ;;  %v307_v30 = vld [vmem:[#allocation5 + $0xa0] sm:$0xff]  ;;  %v13531_v0 = vcombine.high %v2140_v23, %v2144_v37 }
 0x46c   :  { %10116 = vmatprep.subr.bf16.mxu0 %v13491_v33  ;;  %v2147_v33 = vld [vmem:[#allocation7 + $0x2bc0] sm:$0xff] }
 0x46e   :  { %9666 = vmatpush1.bf16.msra.mxu1 %v13488_v38  ;;  %v13856_v38 = vadd.f32 %v15025_v46, %v307_v30  ;;  %v757_v46 = vld [vmem:[#allocation7 + $0x50] sm:$0xff] }
 0x46f   :  { %10117 = vmatpush1.bf16.msra.mxu0 %v13490_v7  ;;  %9667 = vmatprep.subr.bf16.mxu1 %v13497_v40  ;;  %v13530_v7 = vcombine.low %v2140_v23, %v2144_v37  ;;  %v13537_v40 = vcombine.high %v2147_v33, %v2151_v34  ;;  %v777_v23 = vld [vmem:[#allocation7 + $0xf0] sm:$0xff]  ;;  %v774_v37 = vld [vmem:[#allocation7 + $0xd8] sm:$0xff] }
 0x470   :  { %10118 = vmatprep.subr.bf16.mxu0 %v13499_v44  ;;  %v13539_v44 = vcombine.high %v2148_v3, %v2152_v53  ;;  %v12165_v30 = vcombine.high %v773_v16, %v777_v23 }
 0x472   :  { %9668 = vmatpush1.bf16.msra.mxu1 %v13496_v50  ;;  %v13536_v50 = vcombine.low %v2147_v33, %v2151_v34  ;;  %v781_v33 = vld [vmem:[#allocation7 + $0x110] sm:$0xff] }
 0x473   :  { %10119 = vmatpush1.bf16.msra.mxu0 %v13498_v31  ;;  %9669 = vmatprep.subr.bf16.mxu1 %v13505_v55  ;;  %v679_v31 = vmax.f32 %v13856_v38, 0.0  ;;  %v13538_v55 = vcombine.low %v2148_v3, %v2152_v53  ;;  %v785_v34 = vld [vmem:[#allocation7 + $0x130] sm:$0xff]  ;;  %v782_v3 = vld [vmem:[#allocation7 + $0x118] sm:$0xff] }
 0x474   :  { %10120 = vmatprep.subr.bf16.mxu0 %v13507_v56  ;;  %v12141_v56 = vcombine.high %v749_v45, %v753_v32  ;;  %v786_v53 = vld [vmem:[#allocation7 + $0x138] sm:$0xff]  ;;  %v12173_v38 = vcombine.high %v781_v33, %v785_v34 }
 0x475   :  { %v790_v45 = vld [vmem:[#allocation7 + $0x158] sm:$0xff] }
 0x476   :  { %9670 = vmatpush1.bf16.msra.mxu1 %v13504_v54  ;;  %v762_v54 = vld [vmem:[#allocation7 + $0x78] sm:$0xff] }
 0x477   :  { %10121 = vmatpush1.bf16.msra.mxu0 %v13506_v1  ;;  %9671 = vmatprep.subr.bf16.mxu1 %v13513_v2  ;;  %v15110_v1 = vpack.c.bf16 %v679_v31, %v679_v31  ;;  %v12142_v2 = vcombine.low %v750_v13, %v754_v49  ;;  %v12151_v17 = vcombine.high %v758_v61, %v762_v54  ;;  %v794_v32 = vld [vmem:[#allocation7 + $0x178] sm:$0xff] }
 0x478   :  { %10122 = vmatprep.subr.bf16.mxu0 %v13515_v4  ;;  %v12149_v4 = vcombine.high %v757_v46, %v761_v57  ;;  %v12172_v13 = vcombine.low %v781_v33, %v785_v34  ;;  %v12174_v49 = vcombine.low %v782_v3, %v786_v53  ;;  %v12183_v31 = vcombine.high %v790_v45, %v794_v32  ;;  %v826_v33 = vld [vmem:[#allocation7 + $0x278] sm:$0xff] }
 0x47a   :  { %9672 = vmatpush1.bf16.msra.mxu1 %v13512_v63  ;;  %v770_v63 = vld [vmem:[#allocation7 + $0xb8] sm:$0xff] }
 0x47b   :  { %10123 = vmatpush1.bf16.msra.mxu0 %v13514_v10  ;;  %9673 = vmatprep.subr.bf16.mxu1 %v13521_v12  ;;  %v12148_v10 = vcombine.low %v757_v46, %v761_v57  ;;  %v12150_v12 = vcombine.low %v758_v61, %v762_v54  ;;  %v12159_v15 = vcombine.high %v766_v11, %v770_v63  ;;  %v802_v46 = vld [vmem:[#allocation7 + $0x1b8] sm:$0xff] }
 0x47c   :  { %10124 = vmatprep.subr.bf16.mxu0 %v13523_v52  ;;  %v12157_v52 = vcombine.high %v765_v6, %v769_v8 }
 0x47e   :  { %9674 = vmatpush1.bf16.msra.mxu1 %v13520_v27  ;;  %v778_v27 = vld [vmem:[#allocation7 + $0xf8] sm:$0xff] }
 0x47f   :  { %10125 = vmatpush1.bf16.msra.mxu0 %v13522_v28  ;;  %9675 = vmatprep.subr.bf16.mxu1 %v13529_v29  ;;  %v12156_v28 = vcombine.low %v765_v6, %v769_v8  ;;  %v12158_v29 = vcombine.low %v766_v11, %v770_v63  ;;  %v806_v6 = vld [vmem:[#allocation7 + $0x1d8] sm:$0xff] }
 0x480   :  { %10126 = vmatprep.subr.bf16.mxu0 %v13531_v0  ;;  %v12167_v0 = vcombine.high %v774_v37, %v778_v27  ;;  %v810_v8 = vld [vmem:[#allocation7 + $0x1f8] sm:$0xff] }
 0x482   :  { %9676 = vmatpush1.bf16.msra.mxu1 %v13528_v36  ;;  %v12166_v36 = vcombine.low %v774_v37, %v778_v27  ;;  %v12198_v37 = vcombine.low %v806_v6, %v810_v8 }
 0x483   :  { %10127 = vmatpush1.bf16.msra.mxu0 %v13530_v7  ;;  %9677 = vmatprep.subr.bf16.mxu1 %v13537_v40  ;;  %v12175_v7 = vcombine.high %v782_v3, %v786_v53  ;;  %v789_v40 = vld [vmem:[#allocation7 + $0x150] sm:$0xff] }
 0x484   :  { %10128 = vmatprep.subr.bf16.mxu0 %v13539_v44  ;;  %v793_v44 = vld [vmem:[#allocation7 + $0x170] sm:$0xff] }
 0x485   :  { %v12180_v57 = vcombine.low %v789_v40, %v793_v44 }
 0x486   :  { %9678 = vmatpush1.bf16.msra.mxu1 %v13536_v50  ;;  %v12181_v50 = vcombine.high %v789_v40, %v793_v44  ;;  %v834_v40 = vld [vmem:[#allocation7 + $0x2b8] sm:$0xff] }
 0x487   :  { %10129 = vmatpush1.bf16.msra.mxu0 %v13538_v55  ;;  %10139 = vmatprep.subr.bf16.mxu1 %v12141_v56  ;;  %v797_v55 = vld [vmem:[#allocation7 + $0x190] sm:$0xff] }
 0x488   :  { %10590 = vmatprep.subr.bf16.mxu0 %v12143_v20  ;;  %v801_v56 = vld [vmem:[#allocation7 + $0x1b0] sm:$0xff]  ;;  %v798_v20 = vld [vmem:[#allocation7 + $0x198] sm:$0xff] }
 0x489   :  { %9680 = vmatmul.mubr.bf16.vlgmr.msra.gmra.mrb[0].mxu1 %v15110_v1  ;;  %v12189_v61 = vcombine.high %v797_v55, %v801_v56  ;;  %v12191_v54 = vcombine.high %v798_v20, %v802_v46  ;;  %v12190_v11 = vcombine.low %v798_v20, %v802_v46 }
 0x48a   :  { %10131 = vmatmul.mubr.bf16.vlgmr.msra.gmra.mrb[44].mxu0 %v15110_v1  ;;  %10140 = vmatpush1.bf16.msra.mxu1 %v12140_v59  ;;  %v12182_v59 = vcombine.low %v790_v45, %v794_v32 }
 0x48b   :  { %10171 = vmatprep.mubr.bf16.mxu1 %v14971_v18  ;;  %10591 = vmatpush1.bf16.msra.mxu0 %v12142_v2  ;;  %v805_v2 = vld [vmem:[#allocation7 + $0x1d0] sm:$0xff] }
 0x48c   :  { %10622 = vmatprep.mubr.bf16.mxu0 %v14971_v18  ;;  %10141 = vmatprep.subr.bf16.mxu1 %v12149_v4  ;;  %v12164_v18 = vcombine.low %v773_v16, %v777_v23  ;;  %v809_v4 = vld [vmem:[#allocation7 + $0x1f0] sm:$0xff]  ;;  %v818_v16 = vld [vmem:[#allocation7 + $0x238] sm:$0xff] }
 0x48d   :  { %10592 = vmatprep.subr.bf16.mxu0 %v12151_v17  ;;  %v12188_v17 = vcombine.low %v797_v55, %v801_v56  ;;  %v12197_v63 = vcombine.high %v805_v2, %v809_v4  ;;  %v12196_v23 = vcombine.low %v805_v2, %v809_v4  ;;  %v842_v55 = vld [vmem:[#allocation7 + $0x2f8] sm:$0xff] }
 0x48e   :  { %10142 = vmatpush1.bf16.msra.mxu1 %v12148_v10  ;;  %v12199_v10 = vcombine.high %v806_v6, %v810_v8  ;;  %v850_v2 = vld [vmem:[#allocation7 + $0x338] sm:$0xff] }
 0x48f   :  { %10593 = vmatpush1.bf16.msra.mxu0 %v12150_v12  ;;  %10143 = vmatprep.subr.bf16.mxu1 %v12157_v52  ;;  %v813_v12 = vld [vmem:[#allocation7 + $0x210] sm:$0xff] }
 0x490   :  { %10594 = vmatprep.subr.bf16.mxu0 %v12159_v15  ;;  %v817_v52 = vld [vmem:[#allocation7 + $0x230] sm:$0xff]  ;;  %v814_v15 = vld [vmem:[#allocation7 + $0x218] sm:$0xff] }
 0x491   :  { %v12205_v27 = vcombine.high %v813_v12, %v817_v52  ;;  %v12204_v34 = vcombine.low %v813_v12, %v817_v52  ;;  %v12206_v3 = vcombine.low %v814_v15, %v818_v16  ;;  %v858_v12 = vld [vmem:[#allocation7 + $0x378] sm:$0xff] }
 0x492   :  { %10144 = vmatpush1.bf16.msra.mxu1 %v12156_v28  ;;  %v12207_v28 = vcombine.high %v814_v15, %v818_v16 }
 0x493   :  { %10595 = vmatpush1.bf16.msra.mxu0 %v12158_v29  ;;  %10145 = vmatprep.subr.bf16.mxu1 %v12165_v30  ;;  %v821_v29 = vld [vmem:[#allocation7 + $0x250] sm:$0xff] }
 0x494   :  { %10596 = vmatprep.subr.bf16.mxu0 %v12167_v0  ;;  %v825_v30 = vld [vmem:[#allocation7 + $0x270] sm:$0xff]  ;;  %v822_v0 = vld [vmem:[#allocation7 + $0x258] sm:$0xff] }
 0x495   :  { %v12213_v53 = vcombine.high %v821_v29, %v825_v30  ;;  %v12212_v44 = vcombine.low %v821_v29, %v825_v30  ;;  %v12214_v45 = vcombine.low %v822_v0, %v826_v33  ;;  %v866_v29 = vld [vmem:[#allocation7 + $0x3b8] sm:$0xff] }
 0x496   :  { %10146 = vmatpush1.bf16.msra.mxu1 %v12164_v18  ;;  %v12215_v18 = vcombine.high %v822_v0, %v826_v33 }
 0x497   :  { %10597 = vmatpush1.bf16.msra.mxu0 %v12166_v36  ;;  %10147 = vmatprep.subr.bf16.mxu1 %v12173_v38  ;;  %v829_v36 = vld [vmem:[#allocation7 + $0x290] sm:$0xff] }
 0x498   :  { %10598 = vmatprep.subr.bf16.mxu0 %v12175_v7  ;;  %v833_v38 = vld [vmem:[#allocation7 + $0x2b0] sm:$0xff]  ;;  %v830_v7 = vld [vmem:[#allocation7 + $0x298] sm:$0xff] }
 0x499   :  { %v12221_v32 = vcombine.high %v829_v36, %v833_v38  ;;  %v12220_v56 = vcombine.low %v829_v36, %v833_v38  ;;  %v12222_v20 = vcombine.low %v830_v7, %v834_v40  ;;  %v874_v36 = vld [vmem:[#allocation7 + $0x3f8] sm:$0xff] }
 0x49a   :  { %10148 = vmatpush1.bf16.msra.mxu1 %v12172_v13  ;;  %v12223_v13 = vcombine.high %v830_v7, %v834_v40 }
 0x49b   :  { %10599 = vmatpush1.bf16.msra.mxu0 %v12174_v49  ;;  %10149 = vmatprep.subr.bf16.mxu1 %v12181_v50  ;;  %v837_v49 = vld [vmem:[#allocation7 + $0x2d0] sm:$0xff] }
 0x49c   :  { %10600 = vmatprep.subr.bf16.mxu0 %v12183_v31  ;;  %v841_v50 = vld [vmem:[#allocation7 + $0x2f0] sm:$0xff]  ;;  %v838_v31 = vld [vmem:[#allocation7 + $0x2d8] sm:$0xff] }
 0x49d   :  { %v12229_v46 = vcombine.high %v837_v49, %v841_v50  ;;  %v12228_v4 = vcombine.low %v837_v49, %v841_v50  ;;  %v12230_v6 = vcombine.low %v838_v31, %v842_v55  ;;  %v882_v49 = vld [vmem:[#allocation7 + $0x438] sm:$0xff] }
 0x49e   :  { %10150 = vmatpush1.bf16.msra.mxu1 %v12180_v57  ;;  %v12231_v57 = vcombine.high %v838_v31, %v842_v55 }
 0x49f   :  { %10601 = vmatpush1.bf16.msra.mxu0 %v12182_v59  ;;  %10151 = vmatprep.subr.bf16.mxu1 %v12189_v61  ;;  %v845_v59 = vld [vmem:[#allocation7 + $0x310] sm:$0xff] }
 0x4a0   :  { %10602 = vmatprep.subr.bf16.mxu0 %v12191_v54  ;;  %v849_v61 = vld [vmem:[#allocation7 + $0x330] sm:$0xff]  ;;  %v846_v54 = vld [vmem:[#allocation7 + $0x318] sm:$0xff] }
 0x4a1   :  { %v12237_v8 = vcombine.high %v845_v59, %v849_v61  ;;  %v12236_v52 = vcombine.low %v845_v59, %v849_v61  ;;  %v12238_v15 = vcombine.low %v846_v54, %v850_v2  ;;  %v886_v59 = vld [vmem:[#allocation7 + $0x458] sm:$0xff] }
 0x4a2   :  { %10152 = vmatpush1.bf16.msra.mxu1 %v12188_v17  ;;  %v12239_v17 = vcombine.high %v846_v54, %v850_v2  ;;  %v890_v61 = vld [vmem:[#allocation7 + $0x478] sm:$0xff] }
 0x4a3   :  { %10603 = vmatpush1.bf16.msra.mxu0 %v12190_v11  ;;  %10153 = vmatprep.subr.bf16.mxu1 %v12197_v63  ;;  %v853_v11 = vld [vmem:[#allocation7 + $0x350] sm:$0xff] }
 0x4a4   :  { %10604 = vmatprep.subr.bf16.mxu0 %v12199_v10  ;;  %v857_v63 = vld [vmem:[#allocation7 + $0x370] sm:$0xff]  ;;  %v854_v10 = vld [vmem:[#allocation7 + $0x358] sm:$0xff] }
 0x4a5   :  { %v12245_v16 = vcombine.high %v853_v11, %v857_v63  ;;  %v12244_v30 = vcombine.low %v853_v11, %v857_v63  ;;  %v12246_v0 = vcombine.low %v854_v10, %v858_v12  ;;  %v898_v11 = vld [vmem:[#allocation7 + $0x4b8] sm:$0xff] }
 0x4a6   :  { %10154 = vmatpush1.bf16.msra.mxu1 %v12196_v23  ;;  %v12247_v23 = vcombine.high %v854_v10, %v858_v12  ;;  %v12278_v10 = vcombine.low %v886_v59, %v890_v61 }
 0x4a7   :  { %10605 = vmatpush1.bf16.msra.mxu0 %v12198_v37  ;;  %10155 = vmatprep.subr.bf16.mxu1 %v12205_v27  ;;  %v861_v37 = vld [vmem:[#allocation7 + $0x390] sm:$0xff] }
 0x4a8   :  { %10606 = vmatprep.subr.bf16.mxu0 %v12207_v28  ;;  %v865_v27 = vld [vmem:[#allocation7 + $0x3b0] sm:$0xff]  ;;  %v862_v28 = vld [vmem:[#allocation7 + $0x398] sm:$0xff] }
 0x4a9   :  { %v12253_v33 = vcombine.high %v861_v37, %v865_v27  ;;  %v12252_v38 = vcombine.low %v861_v37, %v865_v27  ;;  %v12254_v7 = vcombine.low %v862_v28, %v866_v29  ;;  %v906_v37 = vld [vmem:[#allocation7 + $0x4f8] sm:$0xff] }
 0x4aa   :  { %10156 = vmatpush1.bf16.msra.mxu1 %v12204_v34  ;;  %v12255_v34 = vcombine.high %v862_v28, %v866_v29 }
 0x4ab   :  { %10607 = vmatpush1.bf16.msra.mxu0 %v12206_v3  ;;  %10157 = vmatprep.subr.bf16.mxu1 %v12213_v53  ;;  %v869_v3 = vld [vmem:[#allocation7 + $0x3d0] sm:$0xff] }
 0x4ac   :  { %10608 = vmatprep.subr.bf16.mxu0 %v12215_v18  ;;  %v873_v53 = vld [vmem:[#allocation7 + $0x3f0] sm:$0xff]  ;;  %v870_v18 = vld [vmem:[#allocation7 + $0x3d8] sm:$0xff] }
 0x4ad   :  { %v12261_v40 = vcombine.high %v869_v3, %v873_v53  ;;  %v12260_v50 = vcombine.low %v869_v3, %v873_v53  ;;  %v12262_v31 = vcombine.low %v870_v18, %v874_v36 }
 0x4ae   :  { %10158 = vmatpush1.bf16.msra.mxu1 %v12212_v44  ;;  %v12263_v44 = vcombine.high %v870_v18, %v874_v36  ;;  %v917_v36 = vld [vmem:[#allocation7 + $0x550] sm:$0xff] }
 0x4af   :  { %10609 = vmatpush1.bf16.msra.mxu0 %v12214_v45  ;;  %10159 = vmatprep.subr.bf16.mxu1 %v12221_v32  ;;  %v877_v45 = vld [vmem:[#allocation7 + $0x410] sm:$0xff] }
 0x4b0   :  { %10610 = vmatprep.subr.bf16.mxu0 %v12223_v13  ;;  %v881_v32 = vld [vmem:[#allocation7 + $0x430] sm:$0xff]  ;;  %v878_v13 = vld [vmem:[#allocation7 + $0x418] sm:$0xff] }
 0x4b1   :  { %v12269_v55 = vcombine.high %v877_v45, %v881_v32  ;;  %v12270_v54 = vcombine.low %v878_v13, %v882_v49 }
 0x4b2   :  { %10160 = vmatpush1.bf16.msra.mxu1 %v12220_v56  ;;  %v12271_v56 = vcombine.high %v878_v13, %v882_v49  ;;  %v925_v49 = vld [vmem:[#allocation7 + $0x590] sm:$0xff] }
 0x4b3   :  { %10611 = vmatpush1.bf16.msra.mxu0 %v12222_v20  ;;  %10161 = vmatprep.subr.bf16.mxu1 %v12229_v46  ;;  %v885_v20 = vld [vmem:[#allocation7 + $0x450] sm:$0xff] }
 0x4b4   :  { %10612 = vmatprep.subr.bf16.mxu0 %v12231_v57  ;;  %v889_v46 = vld [vmem:[#allocation7 + $0x470] sm:$0xff]  ;;  %v12268_v57 = vcombine.low %v877_v45, %v881_v32 }
 0x4b5   :  { %v12277_v2 = vcombine.high %v885_v20, %v889_v46  ;;  %v12276_v63 = vcombine.low %v885_v20, %v889_v46 }
 0x4b6   :  { %10162 = vmatpush1.bf16.msra.mxu1 %v12228_v4  ;;  %v893_v4 = vld [vmem:[#allocation7 + $0x490] sm:$0xff] }
 0x4b7   :  { %10613 = vmatpush1.bf16.msra.mxu0 %v12230_v6  ;;  %10163 = vmatprep.subr.bf16.mxu1 %v12237_v8  ;;  %v897_v6 = vld [vmem:[#allocation7 + $0x4b0] sm:$0xff]  ;;  %v12279_v8 = vcombine.high %v886_v59, %v890_v61 }
 0x4b8   :  { %10614 = vmatprep.subr.bf16.mxu0 %v12239_v17  ;;  %v894_v17 = vld [vmem:[#allocation7 + $0x498] sm:$0xff]  ;;  %v12285_v12 = vcombine.high %v893_v4, %v897_v6  ;;  %v12284_v27 = vcombine.low %v893_v4, %v897_v6  ;;  %v933_v59 = vld [vmem:[#allocation7 + $0x5d0] sm:$0xff] }
 0x4b9   :  { %v937_v61 = vld [vmem:[#allocation7 + $0x5f0] sm:$0xff] }
 0x4ba   :  { %10164 = vmatpush1.bf16.msra.mxu1 %v12236_v52  ;;  %v12287_v52 = vcombine.high %v894_v17, %v898_v11 }
 0x4bb   :  { %10615 = vmatpush1.bf16.msra.mxu0 %v12238_v15  ;;  %10165 = vmatprep.subr.bf16.mxu1 %v12245_v16  ;;  %v901_v15 = vld [vmem:[#allocation7 + $0x4d0] sm:$0xff] }
 0x4bc   :  { %10616 = vmatprep.subr.bf16.mxu0 %v12247_v23  ;;  %v905_v16 = vld [vmem:[#allocation7 + $0x4f0] sm:$0xff]  ;;  %v902_v23 = vld [vmem:[#allocation7 + $0x4d8] sm:$0xff] }
 0x4bd   :  { %v12293_v28 = vcombine.high %v901_v15, %v905_v16  ;;  %v12295_v29 = vcombine.high %v902_v23, %v906_v37  ;;  %v12294_v3 = vcombine.low %v902_v23, %v906_v37  ;;  %v949_v37 = vld [vmem:[#allocation7 + $0x650] sm:$0xff] }
 0x4be   :  { %10166 = vmatpush1.bf16.msra.mxu1 %v12244_v30  ;;  %v909_v30 = vld [vmem:[#allocation7 + $0x510] sm:$0xff] }
 0x4bf   :  { %10617 = vmatpush1.bf16.msra.mxu0 %v12246_v0  ;;  %10167 = vmatprep.subr.bf16.mxu1 %v12253_v33  ;;  %v913_v0 = vld [vmem:[#allocation7 + $0x530] sm:$0xff]  ;;  %v910_v33 = vld [vmem:[#allocation7 + $0x518] sm:$0xff] }
 0x4c0   :  { %10618 = vmatprep.subr.bf16.mxu0 %v12255_v34  ;;  %v914_v34 = vld [vmem:[#allocation7 + $0x538] sm:$0xff]  ;;  %v12301_v53 = vcombine.high %v909_v30, %v913_v0 }
 0x4c1   :  { %v12303_v18 = vcombine.high %v910_v33, %v914_v34  ;;  %v12302_v45 = vcombine.low %v910_v33, %v914_v34  ;;  %v957_v34 = vld [vmem:[#allocation7 + $0x690] sm:$0xff] }
 0x4c2   :  { %10168 = vmatpush1.bf16.msra.mxu1 %v12252_v38  ;;  %v921_v38 = vld [vmem:[#allocation7 + $0x570] sm:$0xff] }
 0x4c3   :  { %10619 = vmatpush1.bf16.msra.mxu0 %v12254_v7  ;;  %10169 = vmatprep.subr.bf16.mxu1 %v12261_v40  ;;  %v918_v7 = vld [vmem:[#allocation7 + $0x558] sm:$0xff]  ;;  %v12309_v32 = vcombine.high %v917_v36, %v921_v38 }
 0x4c4   :  { %10620 = vmatprep.subr.bf16.mxu0 %v12263_v44  ;;  %v922_v40 = vld [vmem:[#allocation7 + $0x578] sm:$0xff]  ;;  %v12300_v44 = vcombine.low %v909_v30, %v913_v0 }
 0x4c5   :  { %v12311_v13 = vcombine.high %v918_v7, %v922_v40  ;;  %v12310_v20 = vcombine.low %v918_v7, %v922_v40  ;;  %v965_v40 = vld [vmem:[#allocation7 + $0x6d0] sm:$0xff] }
 0x4c6   :  { %10170 = vmatpush1.bf16.msra.mxu1 %v12260_v50  ;;  %v929_v50 = vld [vmem:[#allocation7 + $0x5b0] sm:$0xff] }
 0x4c7   :  { %10621 = vmatpush1.bf16.msra.mxu0 %v12262_v31  ;;  %10180 = vmatprep.subr.bf16.mxu1 %v12269_v55  ;;  %v926_v31 = vld [vmem:[#allocation7 + $0x598] sm:$0xff]  ;;  %v12317_v46 = vcombine.high %v925_v49, %v929_v50  ;;  %v12316_v4 = vcombine.low %v925_v49, %v929_v50 }
 0x4c8   :  { %10631 = vmatprep.subr.bf16.mxu0 %v12271_v56  ;;  %v930_v55 = vld [vmem:[#allocation7 + $0x5b8] sm:$0xff]  ;;  %v12308_v56 = vcombine.low %v917_v36, %v921_v38 }
 0x4c9   :  { %10172 = vmatmul.mubr.bf16.vlgmr.msra.gmra.mrb[4].mxu1 %v14973_v22  ;;  %v12318_v6 = vcombine.low %v926_v31, %v930_v55 }
 0x4ca   :  { %10623 = vmatmul.mubr.bf16.vlgmr.msra.gmra.mrb[48].mxu0 %v14973_v22  ;;  %10181 = vmatpush1.bf16.msra.mxu1 %v12268_v57  ;;  %v12286_v22 = vcombine.low %v894_v17, %v898_v11  ;;  %v12319_v57 = vcombine.high %v926_v31, %v930_v55  ;;  %v941_v11 = vld [vmem:[#allocation7 + $0x610] sm:$0xff] }
 0x4cb   :  { %10212 = vmatprep.mubr.bf16.mxu1 %v14981_v42  ;;  %10632 = vmatpush1.bf16.msra.mxu0 %v12270_v54  ;;  %v934_v54 = vld [vmem:[#allocation7 + $0x5d8] sm:$0xff]  ;;  %v973_v55 = vld [vmem:[#allocation7 + $0x710] sm:$0xff] }
 0x4cc   :  { %10663 = vmatprep.mubr.bf16.mxu0 %v14981_v42  ;;  %10182 = vmatprep.subr.bf16.mxu1 %v12277_v2  ;;  %v12292_v42 = vcombine.low %v901_v15, %v905_v16  ;;  %v938_v2 = vld [vmem:[#allocation7 + $0x5f8] sm:$0xff] }
 0x4cd   :  { %10633 = vmatprep.subr.bf16.mxu0 %v12279_v8  ;;  %v12325_v8 = vcombine.high %v933_v59, %v937_v61  ;;  %v12327_v17 = vcombine.high %v934_v54, %v938_v2  ;;  %v12326_v15 = vcombine.low %v934_v54, %v938_v2  ;;  %v981_v2 = vld [vmem:[#allocation7 + $0x750] sm:$0xff] }
 0x4ce   :  { %10183 = vmatpush1.bf16.msra.mxu1 %v12276_v63  ;;  %v945_v63 = vld [vmem:[#allocation7 + $0x630] sm:$0xff] }
 0x4cf   :  { %10634 = vmatpush1.bf16.msra.mxu0 %v12278_v10  ;;  %10184 = vmatprep.subr.bf16.mxu1 %v12285_v12  ;;  %v942_v10 = vld [vmem:[#allocation7 + $0x618] sm:$0xff]  ;;  %v12333_v16 = vcombine.high %v941_v11, %v945_v63 }
 0x4d0   :  { %10635 = vmatprep.subr.bf16.mxu0 %v12287_v52  ;;  %v946_v12 = vld [vmem:[#allocation7 + $0x638] sm:$0xff]  ;;  %v12324_v52 = vcombine.low %v933_v59, %v937_v61 }
 0x4d1   :  { %v12335_v23 = vcombine.high %v942_v10, %v946_v12  ;;  %v12334_v30 = vcombine.low %v942_v10, %v946_v12  ;;  %v989_v12 = vld [vmem:[#allocation7 + $0x790] sm:$0xff] }
 0x4d2   :  { %10185 = vmatpush1.bf16.msra.mxu1 %v12284_v27  ;;  %v953_v27 = vld [vmem:[#allocation7 + $0x670] sm:$0xff] }
 0x4d3   :  { %10636 = vmatpush1.bf16.msra.mxu0 %v12286_v22  ;;  %10186 = vmatprep.subr.bf16.mxu1 %v12293_v28  ;;  %v950_v22 = vld [vmem:[#allocation7 + $0x658] sm:$0xff]  ;;  %v12341_v0 = vcombine.high %v949_v37, %v953_v27 }
 0x4d4   :  { %10637 = vmatprep.subr.bf16.mxu0 %v12295_v29  ;;  %v954_v28 = vld [vmem:[#allocation7 + $0x678] sm:$0xff]  ;;  %v12332_v29 = vcombine.low %v941_v11, %v945_v63 }
 0x4d5   :  { %v12343_v33 = vcombine.high %v950_v22, %v954_v28  ;;  %v12342_v36 = vcombine.low %v950_v22, %v954_v28  ;;  %v997_v28 = vld [vmem:[#allocation7 + $0x7d0] sm:$0xff] }
 0x4d6   :  { %10187 = vmatpush1.bf16.msra.mxu1 %v12292_v42  ;;  %v961_v42 = vld [vmem:[#allocation7 + $0x6b0] sm:$0xff] }
 0x4d7   :  { %10638 = vmatpush1.bf16.msra.mxu0 %v12294_v3  ;;  %10188 = vmatprep.subr.bf16.mxu1 %v12301_v53  ;;  %v958_v3 = vld [vmem:[#allocation7 + $0x698] sm:$0xff]  ;;  %v12349_v38 = vcombine.high %v957_v34, %v961_v42 }
 0x4d8   :  { %10639 = vmatprep.subr.bf16.mxu0 %v12303_v18  ;;  %v962_v53 = vld [vmem:[#allocation7 + $0x6b8] sm:$0xff]  ;;  %v12340_v18 = vcombine.low %v949_v37, %v953_v27 }
 0x4d9   :  { %v12351_v7 = vcombine.high %v958_v3, %v962_v53  ;;  %v12350_v49 = vcombine.low %v958_v3, %v962_v53  ;;  %v1005_v53 = vld [vmem:[#allocation7 + $0x810] sm:$0xff] }
 0x4da   :  { %10189 = vmatpush1.bf16.msra.mxu1 %v12300_v44  ;;  %v969_v44 = vld [vmem:[#allocation7 + $0x6f0] sm:$0xff] }
 0x4db   :  { %10640 = vmatpush1.bf16.msra.mxu0 %v12302_v45  ;;  %10190 = vmatprep.subr.bf16.mxu1 %v12309_v32  ;;  %v966_v45 = vld [vmem:[#allocation7 + $0x6d8] sm:$0xff]  ;;  %v12357_v50 = vcombine.high %v965_v40, %v969_v44 }
 0x4dc   :  { %10641 = vmatprep.subr.bf16.mxu0 %v12311_v13  ;;  %v970_v32 = vld [vmem:[#allocation7 + $0x6f8] sm:$0xff]  ;;  %v12348_v13 = vcombine.low %v957_v34, %v961_v42 }
 0x4dd   :  { %v12359_v31 = vcombine.high %v966_v45, %v970_v32  ;;  %v12358_v59 = vcombine.low %v966_v45, %v970_v32  ;;  %v1013_v32 = vld [vmem:[#allocation7 + $0x850] sm:$0xff] }
 0x4de   :  { %10191 = vmatpush1.bf16.msra.mxu1 %v12308_v56  ;;  %v977_v56 = vld [vmem:[#allocation7 + $0x730] sm:$0xff] }
 0x4df   :  { %10642 = vmatpush1.bf16.msra.mxu0 %v12310_v20  ;;  %10192 = vmatprep.subr.bf16.mxu1 %v12317_v46  ;;  %v974_v20 = vld [vmem:[#allocation7 + $0x718] sm:$0xff]  ;;  %v12365_v61 = vcombine.high %v973_v55, %v977_v56 }
 0x4e0   :  { %10643 = vmatprep.subr.bf16.mxu0 %v12319_v57  ;;  %v978_v46 = vld [vmem:[#allocation7 + $0x738] sm:$0xff]  ;;  %v12356_v57 = vcombine.low %v965_v40, %v969_v44 }
 0x4e1   :  { %v12367_v54 = vcombine.high %v974_v20, %v978_v46  ;;  %v12366_v11 = vcombine.low %v974_v20, %v978_v46  ;;  %v1021_v20 = vld [vmem:[#allocation7 + $0x890] sm:$0xff] }
 0x4e2   :  { %10193 = vmatpush1.bf16.msra.mxu1 %v12316_v4  ;;  %v985_v4 = vld [vmem:[#allocation7 + $0x770] sm:$0xff] }
 0x4e3   :  { %10644 = vmatpush1.bf16.msra.mxu0 %v12318_v6  ;;  %10194 = vmatprep.subr.bf16.mxu1 %v12325_v8  ;;  %v982_v6 = vld [vmem:[#allocation7 + $0x758] sm:$0xff]  ;;  %v12373_v63 = vcombine.high %v981_v2, %v985_v4  ;;  %v1025_v46 = vld [vmem:[#allocation7 + $0x8b0] sm:$0xff] }
 0x4e4   :  { %10645 = vmatprep.subr.bf16.mxu0 %v12327_v17  ;;  %v986_v8 = vld [vmem:[#allocation7 + $0x778] sm:$0xff]  ;;  %v12364_v17 = vcombine.low %v973_v55, %v977_v56 }
 0x4e5   :  { %v12375_v10 = vcombine.high %v982_v6, %v986_v8  ;;  %v12374_v37 = vcombine.low %v982_v6, %v986_v8  ;;  %v1029_v8 = vld [vmem:[#allocation7 + $0x8d0] sm:$0xff] }
 0x4e6   :  { %10195 = vmatpush1.bf16.msra.mxu1 %v12324_v52  ;;  %v993_v52 = vld [vmem:[#allocation7 + $0x7b0] sm:$0xff] }
 0x4e7   :  { %10646 = vmatpush1.bf16.msra.mxu0 %v12326_v15  ;;  %10196 = vmatprep.subr.bf16.mxu1 %v12333_v16  ;;  %v990_v15 = vld [vmem:[#allocation7 + $0x798] sm:$0xff]  ;;  %v12381_v27 = vcombine.high %v989_v12, %v993_v52 }
 0x4e8   :  { %10647 = vmatprep.subr.bf16.mxu0 %v12335_v23  ;;  %v994_v16 = vld [vmem:[#allocation7 + $0x7b8] sm:$0xff]  ;;  %v12372_v23 = vcombine.low %v981_v2, %v985_v4  ;;  %v12413_v4 = vcombine.high %v1021_v20, %v1025_v46 }
 0x4e9   :  { %v12383_v22 = vcombine.high %v990_v15, %v994_v16  ;;  %v12382_v34 = vcombine.low %v990_v15, %v994_v16  ;;  %v1037_v15 = vld [vmem:[#allocation7 + $0x910] sm:$0xff] }
 0x4ea   :  { %10197 = vmatpush1.bf16.msra.mxu1 %v12332_v29  ;;  %v1001_v29 = vld [vmem:[#allocation7 + $0x7f0] sm:$0xff] }
 0x4eb   :  { %10648 = vmatpush1.bf16.msra.mxu0 %v12334_v30  ;;  %10198 = vmatprep.subr.bf16.mxu1 %v12341_v0  ;;  %v998_v30 = vld [vmem:[#allocation7 + $0x7d8] sm:$0xff]  ;;  %v12389_v42 = vcombine.high %v997_v28, %v1001_v29  ;;  %v1041_v16 = vld [vmem:[#allocation7 + $0x930] sm:$0xff] }
 0x4ec   :  { %10649 = vmatprep.subr.bf16.mxu0 %v12343_v33  ;;  %v1002_v0 = vld [vmem:[#allocation7 + $0x7f8] sm:$0xff]  ;;  %v12380_v33 = vcombine.low %v989_v12, %v993_v52 }
 0x4ed   :  { %v12391_v3 = vcombine.high %v998_v30, %v1002_v0  ;;  %v12390_v40 = vcombine.low %v998_v30, %v1002_v0  ;;  %v1049_v30 = vld [vmem:[#allocation7 + $0x970] sm:$0xff]  ;;  %v1046_v0 = vld [vmem:[#allocation7 + $0x958] sm:$0xff] }
 0x4ee   :  { %10199 = vmatpush1.bf16.msra.mxu1 %v12340_v18  ;;  %v1009_v18 = vld [vmem:[#allocation7 + $0x830] sm:$0xff] }
 0x4ef   :  { %10650 = vmatpush1.bf16.msra.mxu0 %v12342_v36  ;;  %10200 = vmatprep.subr.bf16.mxu1 %v12349_v38  ;;  %v1006_v36 = vld [vmem:[#allocation7 + $0x818] sm:$0xff]  ;;  %v12397_v44 = vcombine.high %v1005_v53, %v1009_v18 }
 0x4f0   :  { %10651 = vmatprep.subr.bf16.mxu0 %v12351_v7  ;;  %v1010_v38 = vld [vmem:[#allocation7 + $0x838] sm:$0xff]  ;;  %v12388_v7 = vcombine.low %v997_v28, %v1001_v29  ;;  %v1045_v29 = vld [vmem:[#allocation7 + $0x950] sm:$0xff] }
 0x4f1   :  { %v12399_v45 = vcombine.high %v1006_v36, %v1010_v38  ;;  %v12398_v55 = vcombine.low %v1006_v36, %v1010_v38  ;;  %v1057_v36 = vld [vmem:[#allocation7 + $0x9b0] sm:$0xff]  ;;  %v1054_v38 = vld [vmem:[#allocation7 + $0x998] sm:$0xff] }
 0x4f2   :  { %10201 = vmatpush1.bf16.msra.mxu1 %v12348_v13  ;;  %v1017_v13 = vld [vmem:[#allocation7 + $0x870] sm:$0xff] }
 0x4f3   :  { %10652 = vmatpush1.bf16.msra.mxu0 %v12350_v49  ;;  %10202 = vmatprep.subr.bf16.mxu1 %v12357_v50  ;;  %v12396_v49 = vcombine.low %v1005_v53, %v1009_v18  ;;  %v1014_v50 = vld [vmem:[#allocation7 + $0x858] sm:$0xff]  ;;  %v12405_v56 = vcombine.high %v1013_v32, %v1017_v13  ;;  %v1053_v18 = vld [vmem:[#allocation7 + $0x990] sm:$0xff] }
 0x4f4   :  { %10653 = vmatprep.subr.bf16.mxu0 %v12359_v31  ;;  %v1018_v31 = vld [vmem:[#allocation7 + $0x878] sm:$0xff] }
 0x4f5   :  { %v12406_v2 = vcombine.low %v1014_v50, %v1018_v31 }
 0x4f6   :  { %10203 = vmatpush1.bf16.msra.mxu1 %v12356_v57  ;;  %v12407_v57 = vcombine.high %v1014_v50, %v1018_v31  ;;  %v1062_v50 = vld [vmem:[#allocation7 + $0x9d8] sm:$0xff] }
 0x4f7   :  { %10654 = vmatpush1.bf16.msra.mxu0 %v12358_v59  ;;  %10204 = vmatprep.subr.bf16.mxu1 %v12365_v61  ;;  %v1022_v59 = vld [vmem:[#allocation7 + $0x898] sm:$0xff] }
 0x4f8   :  { %10655 = vmatprep.subr.bf16.mxu0 %v12367_v54  ;;  %v1026_v61 = vld [vmem:[#allocation7 + $0x8b8] sm:$0xff]  ;;  %v12404_v54 = vcombine.low %v1013_v32, %v1017_v13  ;;  %v1061_v13 = vld [vmem:[#allocation7 + $0x9d0] sm:$0xff] }
 0x4f9   :  { %v12415_v6 = vcombine.high %v1022_v59, %v1026_v61  ;;  %v1066_v31 = vld [vmem:[#allocation7 + $0x9f8] sm:$0xff] }
 0x4fa   :  { %10205 = vmatpush1.bf16.msra.mxu1 %v12364_v17  ;;  %v1033_v17 = vld [vmem:[#allocation7 + $0x8f0] sm:$0xff] }
 0x4fb   :  { %10656 = vmatpush1.bf16.msra.mxu0 %v12366_v11  ;;  %10206 = vmatprep.subr.bf16.mxu1 %v12373_v63  ;;  %v1030_v11 = vld [vmem:[#allocation7 + $0x8d8] sm:$0xff]  ;;  %v12421_v12 = vcombine.high %v1029_v8, %v1033_v17 }
 0x4fc   :  { %10657 = vmatprep.subr.bf16.mxu0 %v12375_v10  ;;  %v1034_v63 = vld [vmem:[#allocation7 + $0x8f8] sm:$0xff]  ;;  %v12412_v10 = vcombine.low %v1021_v20, %v1025_v46  ;;  %v12455_v46 = vcombine.high %v1062_v50, %v1066_v31 }
 0x4fd   :  { %v12423_v52 = vcombine.high %v1030_v11, %v1034_v63 }
 0x4fe   :  { %10207 = vmatpush1.bf16.msra.mxu1 %v12372_v23  ;;  %v1038_v23 = vld [vmem:[#allocation7 + $0x918] sm:$0xff] }
 0x4ff   :  { %10658 = vmatpush1.bf16.msra.mxu0 %v12374_v37  ;;  %10208 = vmatprep.subr.bf16.mxu1 %v12381_v27  ;;  %v1042_v37 = vld [vmem:[#allocation7 + $0x938] sm:$0xff]  ;;  %v12422_v27 = vcombine.low %v1030_v11, %v1034_v63  ;;  %v1081_v11 = vld [vmem:[#allocation7 + $0xa70] sm:$0xff] }
 0x500   :  { %10659 = vmatprep.subr.bf16.mxu0 %v12383_v22  ;;  %v12429_v22 = vcombine.high %v1037_v15, %v1041_v16  ;;  %v12431_v28 = vcombine.high %v1038_v23, %v1042_v37  ;;  %v1078_v63 = vld [vmem:[#allocation7 + $0xa58] sm:$0xff] }
 0x502   :  { %10209 = vmatpush1.bf16.msra.mxu1 %v12380_v33  ;;  %v1050_v33 = vld [vmem:[#allocation7 + $0x978] sm:$0xff] }
 0x503   :  { %10660 = vmatpush1.bf16.msra.mxu0 %v12382_v34  ;;  %10210 = vmatprep.subr.bf16.mxu1 %v12389_v42  ;;  %v12428_v34 = vcombine.low %v1037_v15, %v1041_v16  ;;  %v12430_v42 = vcombine.low %v1038_v23, %v1042_v37  ;;  %v12439_v53 = vcombine.high %v1046_v0, %v1050_v33  ;;  %v1085_v16 = vld [vmem:[#allocation7 + $0xa90] sm:$0xff]  ;;  %v1086_v37 = vld [vmem:[#allocation7 + $0xa98] sm:$0xff] }
 0x504   :  { %10661 = vmatprep.subr.bf16.mxu0 %v12391_v3  ;;  %v12437_v3 = vcombine.high %v1045_v29, %v1049_v30  ;;  %v1089_v23 = vld [vmem:[#allocation7 + $0xab0] sm:$0xff] }
 0x506   :  { %10211 = vmatpush1.bf16.msra.mxu1 %v12388_v7  ;;  %v1058_v7 = vld [vmem:[#allocation7 + $0x9b8] sm:$0xff] }
 0x507   :  { %10662 = vmatpush1.bf16.msra.mxu0 %v12390_v40  ;;  %10221 = vmatprep.subr.bf16.mxu1 %v12397_v44  ;;  %v12436_v40 = vcombine.low %v1045_v29, %v1049_v30  ;;  %v12438_v44 = vcombine.low %v1046_v0, %v1050_v33  ;;  %v12447_v32 = vcombine.high %v1054_v38, %v1058_v7  ;;  %v1093_v30 = vld [vmem:[#allocation7 + $0xad0] sm:$0xff]  ;;  %v1094_v33 = vld [vmem:[#allocation7 + $0xad8] sm:$0xff] }
 0x508   :  { %10672 = vmatprep.subr.bf16.mxu0 %v12399_v45  ;;  %v12445_v45 = vcombine.high %v1053_v18, %v1057_v36  ;;  %v1097_v0 = vld [vmem:[#allocation7 + $0xaf0] sm:$0xff] }
 0x509   :  { %10213 = vmatmul.mubr.bf16.vlgmr.msra.gmra.mrb[4].mxu1 %v15015_v24 }
 0x50a   :  { %10664 = vmatmul.mubr.bf16.vlgmr.msra.gmra.mrb[48].mxu0 %v15015_v24  ;;  %10222 = vmatpush1.bf16.msra.mxu1 %v12396_v49  ;;  %v12414_v24 = vcombine.low %v1022_v59, %v1026_v61  ;;  %v1065_v49 = vld [vmem:[#allocation7 + $0x9f0] sm:$0xff]  ;;  %v1070_v61 = vld [vmem:[#allocation7 + $0xa18] sm:$0xff] }
 0x50b   :  { %10253 = vmatprep.mubr.bf16.mxu1 %v15017_v26  ;;  %10673 = vmatpush1.bf16.msra.mxu0 %v12398_v55  ;;  %v12444_v55 = vcombine.low %v1053_v18, %v1057_v36  ;;  %v12453_v20 = vcombine.high %v1061_v13, %v1065_v49  ;;  %v1073_v59 = vld [vmem:[#allocation7 + $0xa30] sm:$0xff] }
 0x50c   :  { %10704 = vmatprep.mubr.bf16.mxu0 %v15017_v26  ;;  %10223 = vmatprep.subr.bf16.mxu1 %v12405_v56  ;;  %v12420_v26 = vcombine.low %v1029_v8, %v1033_v17  ;;  %v12446_v56 = vcombine.low %v1054_v38, %v1058_v7  ;;  %v1077_v17 = vld [vmem:[#allocation7 + $0xa50] sm:$0xff]  ;;  %v1102_v7 = vld [vmem:[#allocation7 + $0xb18] sm:$0xff] }
 0x50d   :  { %10674 = vmatprep.subr.bf16.mxu0 %v12407_v57  ;;  %v1069_v57 = vld [vmem:[#allocation7 + $0xa10] sm:$0xff] }
 0x50e   :  { %10224 = vmatpush1.bf16.msra.mxu1 %v12404_v54  ;;  %v1074_v54 = vld [vmem:[#allocation7 + $0xa38] sm:$0xff]  ;;  %v1101_v36 = vld [vmem:[#allocation7 + $0xb10] sm:$0xff] }
 0x50f   :  { %10675 = vmatpush1.bf16.msra.mxu0 %v12406_v2  ;;  %10225 = vmatprep.subr.bf16.mxu1 %v12413_v4  ;;  %v12452_v2 = vcombine.low %v1061_v13, %v1065_v49  ;;  %v12454_v4 = vcombine.low %v1062_v50, %v1066_v31  ;;  %v12463_v8 = vcombine.high %v1070_v61, %v1074_v54  ;;  %v1105_v38 = vld [vmem:[#allocation7 + $0xb30] sm:$0xff]  ;;  %v1110_v31 = vld [vmem:[#allocation7 + $0xb58] sm:$0xff] }
 0x510   :  { %10676 = vmatprep.subr.bf16.mxu0 %v12415_v6  ;;  %v12461_v6 = vcombine.high %v1069_v57, %v1073_v59  ;;  %v1109_v49 = vld [vmem:[#allocation7 + $0xb50] sm:$0xff] }
 0x511   :  { %v1113_v50 = vld [vmem:[#allocation7 + $0xb70] sm:$0xff] }
 0x512   :  { %10226 = vmatpush1.bf16.msra.mxu1 %v12412_v10  ;;  %v1082_v10 = vld [vmem:[#allocation7 + $0xa78] sm:$0xff] }
 0x513   :  { %10677 = vmatpush1.bf16.msra.mxu0 %v12414_v24  ;;  %10227 = vmatprep.subr.bf16.mxu1 %v12421_v12  ;;  %v12460_v24 = vcombine.low %v1069_v57, %v1073_v59  ;;  %v12462_v12 = vcombine.low %v1070_v61, %v1074_v54  ;;  %v12471_v15 = vcombine.high %v1078_v63, %v1082_v10  ;;  %v1117_v59 = vld [vmem:[#allocation7 + $0xb90] sm:$0xff]  ;;  %v1118_v54 = vld [vmem:[#allocation7 + $0xb98] sm:$0xff] }
 0x514   :  { %10678 = vmatprep.subr.bf16.mxu0 %v12423_v52  ;;  %v12469_v52 = vcombine.high %v1077_v17, %v1081_v11  ;;  %v1121_v61 = vld [vmem:[#allocation7 + $0xbb0] sm:$0xff] }
 0x516   :  { %10228 = vmatpush1.bf16.msra.mxu1 %v12420_v26  ;;  %v1090_v26 = vld [vmem:[#allocation7 + $0xab8] sm:$0xff] }
 0x517   :  { %10679 = vmatpush1.bf16.msra.mxu0 %v12422_v27  ;;  %10229 = vmatprep.subr.bf16.mxu1 %v12429_v22  ;;  %v12468_v27 = vcombine.low %v1077_v17, %v1081_v11  ;;  %v12470_v22 = vcombine.low %v1078_v63, %v1082_v10  ;;  %v12479_v29 = vcombine.high %v1086_v37, %v1090_v26  ;;  %v1125_v11 = vld [vmem:[#allocation7 + $0xbd0] sm:$0xff]  ;;  %v1126_v10 = vld [vmem:[#allocation7 + $0xbd8] sm:$0xff] }
 0x518   :  { %10680 = vmatprep.subr.bf16.mxu0 %v12431_v28  ;;  %v12477_v28 = vcombine.high %v1085_v16, %v1089_v23  ;;  %v1129_v63 = vld [vmem:[#allocation7 + $0xbf0] sm:$0xff] }
 0x51a   :  { %10230 = vmatpush1.bf16.msra.mxu1 %v12428_v34  ;;  %v1098_v34 = vld [vmem:[#allocation7 + $0xaf8] sm:$0xff] }
 0x51b   :  { %10681 = vmatpush1.bf16.msra.mxu0 %v12430_v42  ;;  %10231 = vmatprep.subr.bf16.mxu1 %v12437_v3  ;;  %v12476_v42 = vcombine.low %v1085_v16, %v1089_v23  ;;  %v12478_v3 = vcombine.low %v1086_v37, %v1090_v26  ;;  %v12487_v18 = vcombine.high %v1094_v33, %v1098_v34  ;;  %v1133_v23 = vld [vmem:[#allocation7 + $0xc10] sm:$0xff]  ;;  %v1134_v26 = vld [vmem:[#allocation7 + $0xc18] sm:$0xff] }
 0x51c   :  { %10682 = vmatprep.subr.bf16.mxu0 %v12439_v53  ;;  %v12485_v53 = vcombine.high %v1093_v30, %v1097_v0  ;;  %v1137_v37 = vld [vmem:[#allocation7 + $0xc30] sm:$0xff] }
 0x51e   :  { %10232 = vmatpush1.bf16.msra.mxu1 %v12436_v40  ;;  %v1106_v40 = vld [vmem:[#allocation7 + $0xb38] sm:$0xff] }
 0x51f   :  { %10683 = vmatpush1.bf16.msra.mxu0 %v12438_v44  ;;  %10233 = vmatprep.subr.bf16.mxu1 %v12445_v45  ;;  %v12484_v44 = vcombine.low %v1093_v30, %v1097_v0  ;;  %v12486_v45 = vcombine.low %v1094_v33, %v1098_v34  ;;  %v12495_v13 = vcombine.high %v1102_v7, %v1106_v40  ;;  %v1141_v0 = vld [vmem:[#allocation7 + $0xc50] sm:$0xff] }
 0x520   :  { %10684 = vmatprep.subr.bf16.mxu0 %v12447_v32  ;;  %v12493_v32 = vcombine.high %v1101_v36, %v1105_v38  ;;  %v1145_v33 = vld [vmem:[#allocation7 + $0xc70] sm:$0xff]  ;;  %v12524_v34 = vcombine.low %v1133_v23, %v1137_v37 }
 0x522   :  { %10234 = vmatpush1.bf16.msra.mxu1 %v12444_v55  ;;  %v1114_v55 = vld [vmem:[#allocation7 + $0xb78] sm:$0xff] }
 0x523   :  { %10685 = vmatpush1.bf16.msra.mxu0 %v12446_v56  ;;  %10235 = vmatprep.subr.bf16.mxu1 %v12453_v20  ;;  %v12492_v56 = vcombine.low %v1101_v36, %v1105_v38  ;;  %v12494_v20 = vcombine.low %v1102_v7, %v1106_v40  ;;  %v12503_v57 = vcombine.high %v1110_v31, %v1114_v55  ;;  %v1149_v36 = vld [vmem:[#allocation7 + $0xc90] sm:$0xff]  ;;  %v1150_v40 = vld [vmem:[#allocation7 + $0xc98] sm:$0xff] }
 0x524   :  { %10686 = vmatprep.subr.bf16.mxu0 %v12455_v46  ;;  %v12501_v46 = vcombine.high %v1109_v49, %v1113_v50  ;;  %v1153_v38 = vld [vmem:[#allocation7 + $0xcb0] sm:$0xff] }
 0x526   :  { %10236 = vmatpush1.bf16.msra.mxu1 %v12452_v2  ;;  %v1122_v2 = vld [vmem:[#allocation7 + $0xbb8] sm:$0xff] }
 0x527   :  { %10687 = vmatpush1.bf16.msra.mxu0 %v12454_v4  ;;  %10237 = vmatprep.subr.bf16.mxu1 %v12461_v6  ;;  %v12500_v4 = vcombine.low %v1109_v49, %v1113_v50  ;;  %v12502_v6 = vcombine.low %v1110_v31, %v1114_v55  ;;  %v12511_v17 = vcombine.high %v1118_v54, %v1122_v2  ;;  %v1157_v50 = vld [vmem:[#allocation7 + $0xcd0] sm:$0xff]  ;;  %v1158_v55 = vld [vmem:[#allocation7 + $0xcd8] sm:$0xff] }
 0x528   :  { %10688 = vmatprep.subr.bf16.mxu0 %v12463_v8  ;;  %v12509_v8 = vcombine.high %v1117_v59, %v1121_v61  ;;  %v1161_v31 = vld [vmem:[#allocation7 + $0xcf0] sm:$0xff] }
 0x52a   :  { %10238 = vmatpush1.bf16.msra.mxu1 %v12460_v24  ;;  %v1130_v24 = vld [vmem:[#allocation7 + $0xbf8] sm:$0xff] }
 0x52b   :  { %10689 = vmatpush1.bf16.msra.mxu0 %v12462_v12  ;;  %10239 = vmatprep.subr.bf16.mxu1 %v12469_v52  ;;  %v12508_v12 = vcombine.low %v1117_v59, %v1121_v61  ;;  %v12510_v52 = vcombine.low %v1118_v54, %v1122_v2  ;;  %v12519_v16 = vcombine.high %v1126_v10, %v1130_v24  ;;  %v1165_v59 = vld [vmem:[#allocation7 + $0xd10] sm:$0xff]  ;;  %v1166_v54 = vld [vmem:[#allocation7 + $0xd18] sm:$0xff] }
 0x52c   :  { %10690 = vmatprep.subr.bf16.mxu0 %v12471_v15  ;;  %v12517_v15 = vcombine.high %v1125_v11, %v1129_v63  ;;  %v1169_v61 = vld [vmem:[#allocation7 + $0xd30] sm:$0xff]  ;;  %v1170_v2 = vld [vmem:[#allocation7 + $0xd38] sm:$0xff] }
 0x52e   :  { %10240 = vmatpush1.bf16.msra.mxu1 %v12468_v27  ;;  %v1138_v27 = vld [vmem:[#allocation7 + $0xc38] sm:$0xff] }
 0x52f   :  { %10691 = vmatpush1.bf16.msra.mxu0 %v12470_v22  ;;  %10241 = vmatprep.subr.bf16.mxu1 %v12477_v28  ;;  %v12516_v22 = vcombine.low %v1125_v11, %v1129_v63  ;;  %v12518_v28 = vcombine.low %v1126_v10, %v1130_v24  ;;  %v12527_v30 = vcombine.high %v1134_v26, %v1138_v27  ;;  %v1177_v11 = vld [vmem:[#allocation7 + $0xd70] sm:$0xff]  ;;  %v1174_v63 = vld [vmem:[#allocation7 + $0xd58] sm:$0xff] }
 0x530   :  { %10692 = vmatprep.subr.bf16.mxu0 %v12479_v29  ;;  %v12525_v29 = vcombine.high %v1133_v23, %v1137_v37  ;;  %v1178_v10 = vld [vmem:[#allocation7 + $0xd78] sm:$0xff]  ;;  %v12556_v24 = vcombine.low %v1165_v59, %v1169_v61  ;;  %v1185_v23 = vld [vmem:[#allocation7 + $0xdb0] sm:$0xff] }
 0x531   :  { %v1182_v37 = vld [vmem:[#allocation7 + $0xd98] sm:$0xff] }
 0x532   :  { %10242 = vmatpush1.bf16.msra.mxu1 %v12476_v42  ;;  %v1142_v42 = vld [vmem:[#allocation7 + $0xc58] sm:$0xff] }
 0x533   :  { %10693 = vmatpush1.bf16.msra.mxu0 %v12478_v3  ;;  %10243 = vmatprep.subr.bf16.mxu1 %v12485_v53  ;;  %v1146_v3 = vld [vmem:[#allocation7 + $0xc78] sm:$0xff]  ;;  %v12526_v53 = vcombine.low %v1134_v26, %v1138_v27 }
 0x534   :  { %10694 = vmatprep.subr.bf16.mxu0 %v12487_v18  ;;  %v12533_v18 = vcombine.high %v1141_v0, %v1145_v33  ;;  %v12535_v7 = vcombine.high %v1142_v42, %v1146_v3  ;;  %v1186_v26 = vld [vmem:[#allocation7 + $0xdb8] sm:$0xff] }
 0x536   :  { %10244 = vmatpush1.bf16.msra.mxu1 %v12484_v44  ;;  %v1154_v44 = vld [vmem:[#allocation7 + $0xcb8] sm:$0xff] }
 0x537   :  { %10695 = vmatpush1.bf16.msra.mxu0 %v12486_v45  ;;  %10245 = vmatprep.subr.bf16.mxu1 %v12493_v32  ;;  %v12532_v45 = vcombine.low %v1141_v0, %v1145_v33  ;;  %v12534_v32 = vcombine.low %v1142_v42, %v1146_v3  ;;  %v12543_v49 = vcombine.high %v1150_v40, %v1154_v44  ;;  %v1189_v0 = vld [vmem:[#allocation7 + $0xdd0] sm:$0xff]  ;;  %v1190_v3 = vld [vmem:[#allocation7 + $0xdd8] sm:$0xff] }
 0x538   :  { %10696 = vmatprep.subr.bf16.mxu0 %v12495_v13  ;;  %v12541_v13 = vcombine.high %v1149_v36, %v1153_v38  ;;  %v1193_v33 = vld [vmem:[#allocation7 + $0xdf0] sm:$0xff] }
 0x53a   :  { %10246 = vmatpush1.bf16.msra.mxu1 %v12492_v56  ;;  %v1162_v56 = vld [vmem:[#allocation7 + $0xcf8] sm:$0xff] }
 0x53b   :  { %10697 = vmatpush1.bf16.msra.mxu0 %v12494_v20  ;;  %10247 = vmatprep.subr.bf16.mxu1 %v12501_v46  ;;  %v12540_v20 = vcombine.low %v1149_v36, %v1153_v38  ;;  %v12549_v46 = vcombine.high %v1157_v50, %v1161_v31 }
 0x53c   :  { %10698 = vmatprep.subr.bf16.mxu0 %v12503_v57  ;;  %v12551_v57 = vcombine.high %v1158_v55, %v1162_v56 }
 0x53e   :  { %10248 = vmatpush1.bf16.msra.mxu1 %v12500_v4  ;;  %v12550_v4 = vcombine.low %v1158_v55, %v1162_v56  ;;  %v1202_v55 = vld [vmem:[#allocation7 + $0xe38] sm:$0xff]  ;;  %v12580_v56 = vcombine.low %v1189_v0, %v1193_v33 }
 0x53f   :  { %10699 = vmatpush1.bf16.msra.mxu0 %v12502_v6  ;;  %10249 = vmatprep.subr.bf16.mxu1 %v12509_v8  ;;  %v12557_v6 = vcombine.high %v1165_v59, %v1169_v61  ;;  %v12559_v8 = vcombine.high %v1166_v54, %v1170_v2  ;;  %v1209_v59 = vld [vmem:[#allocation7 + $0xe70] sm:$0xff]  ;;  %v1206_v61 = vld [vmem:[#allocation7 + $0xe58] sm:$0xff] }
 0x540   :  { %10700 = vmatprep.subr.bf16.mxu0 %v12511_v17  ;;  %v1173_v17 = vld [vmem:[#allocation7 + $0xd50] sm:$0xff] }
 0x541   :  { %v12564_v27 = vcombine.low %v1173_v17, %v1177_v11 }
 0x542   :  { %10250 = vmatpush1.bf16.msra.mxu1 %v12508_v12  ;;  %v12558_v12 = vcombine.low %v1166_v54, %v1170_v2  ;;  %v1210_v54 = vld [vmem:[#allocation7 + $0xe78] sm:$0xff] }
 0x543   :  { %10701 = vmatpush1.bf16.msra.mxu0 %v12510_v52  ;;  %10251 = vmatprep.subr.bf16.mxu1 %v12517_v15  ;;  %v12565_v52 = vcombine.high %v1173_v17, %v1177_v11  ;;  %v12567_v15 = vcombine.high %v1174_v63, %v1178_v10  ;;  %v1217_v17 = vld [vmem:[#allocation7 + $0xeb0] sm:$0xff]  ;;  %v1214_v11 = vld [vmem:[#allocation7 + $0xe98] sm:$0xff] }
 0x544   :  { %10702 = vmatprep.subr.bf16.mxu0 %v12519_v16  ;;  %v1181_v16 = vld [vmem:[#allocation7 + $0xd90] sm:$0xff] }
 0x545   :  { %v12572_v38 = vcombine.low %v1181_v16, %v1185_v23 }
 0x546   :  { %10252 = vmatpush1.bf16.msra.mxu1 %v12516_v22  ;;  %v12566_v22 = vcombine.low %v1174_v63, %v1178_v10  ;;  %v1218_v63 = vld [vmem:[#allocation7 + $0xeb8] sm:$0xff] }
 0x547   :  { %10703 = vmatpush1.bf16.msra.mxu0 %v12518_v28  ;;  %10262 = vmatprep.subr.bf16.mxu1 %v12525_v29  ;;  %v12573_v28 = vcombine.high %v1181_v16, %v1185_v23  ;;  %v1225_v16 = vld [vmem:[#allocation7 + $0xef0] sm:$0xff]  ;;  %v1222_v23 = vld [vmem:[#allocation7 + $0xed8] sm:$0xff] }
 0x548   :  { %10713 = vmatprep.subr.bf16.mxu0 %v12527_v30  ;;  %v12575_v30 = vcombine.high %v1182_v37, %v1186_v26 }
 0x549   :  { %10254 = vmatmul.mubr.bf16.vlgmr.msra.gmra.mrb[4].mxu1 %v15031_v39 }
 0x54a   :  { %10705 = vmatmul.mubr.bf16.vlgmr.msra.gmra.mrb[48].mxu0 %v15031_v39  ;;  %10263 = vmatpush1.bf16.msra.mxu1 %v12524_v34  ;;  %v12542_v39 = vcombine.low %v1150_v40, %v1154_v44  ;;  %v12574_v44 = vcombine.low %v1182_v37, %v1186_v26  ;;  %v1226_v37 = vld [vmem:[#allocation7 + $0xef8] sm:$0xff] }
 0x54b   :  { %10294 = vmatprep.mubr.bf16.mxu1 %v15033_v47  ;;  %10714 = vmatpush1.bf16.msra.mxu0 %v12526_v53  ;;  %v1194_v53 = vld [vmem:[#allocation7 + $0xdf8] sm:$0xff] }
 0x54c   :  { %10745 = vmatprep.mubr.bf16.mxu0 %v15033_v47  ;;  %10264 = vmatprep.subr.bf16.mxu1 %v12533_v18  ;;  %v12548_v47 = vcombine.low %v1157_v50, %v1161_v31  ;;  %v1201_v50 = vld [vmem:[#allocation7 + $0xe30] sm:$0xff]  ;;  %v1198_v31 = vld [vmem:[#allocation7 + $0xe18] sm:$0xff] }
 0x54d   :  { %10715 = vmatprep.subr.bf16.mxu0 %v12535_v7 }
 0x54e   :  { %10265 = vmatpush1.bf16.msra.mxu1 %v12532_v45  ;;  %v12581_v45 = vcombine.high %v1189_v0, %v1193_v33  ;;  %v1233_v0 = vld [vmem:[#allocation7 + $0xf30] sm:$0xff]  ;;  %v1230_v33 = vld [vmem:[#allocation7 + $0xf18] sm:$0xff] }
 0x54f   :  { %10716 = vmatpush1.bf16.msra.mxu0 %v12534_v32  ;;  %10266 = vmatprep.subr.bf16.mxu1 %v12541_v13  ;;  %v12583_v13 = vcombine.high %v1190_v3, %v1194_v53 }
 0x550   :  { %10717 = vmatprep.subr.bf16.mxu0 %v12543_v49  ;;  %v1197_v49 = vld [vmem:[#allocation7 + $0xe10] sm:$0xff] }
 0x551   :  { %v12588_v2 = vcombine.low %v1197_v49, %v1201_v50 }
 0x552   :  { %10267 = vmatpush1.bf16.msra.mxu1 %v12540_v20  ;;  %v12582_v20 = vcombine.low %v1190_v3, %v1194_v53  ;;  %v1234_v3 = vld [vmem:[#allocation7 + $0xf38] sm:$0xff] }
 0x553   :  { %10718 = vmatpush1.bf16.msra.mxu0 %v12542_v39  ;;  %10268 = vmatprep.subr.bf16.mxu1 %v12549_v46  ;;  %v12589_v39 = vcombine.high %v1197_v49, %v1201_v50  ;;  %v12591_v46 = vcombine.high %v1198_v31, %v1202_v55  ;;  %v12622_v49 = vcombine.low %v1230_v33, %v1234_v3 }
 0x554   :  { %10719 = vmatprep.subr.bf16.mxu0 %v12551_v57  ;;  %v1205_v57 = vld [vmem:[#allocation7 + $0xe50] sm:$0xff] }
 0x555   :  { %v12596_v10 = vcombine.low %v1205_v57, %v1209_v59 }
 0x556   :  { %10269 = vmatpush1.bf16.msra.mxu1 %v12548_v47  ;;  %v12590_v47 = vcombine.low %v1198_v31, %v1202_v55  ;;  %v1245_v55 = vld [vmem:[#allocation7 + $0xf90] sm:$0xff] }
 0x557   :  { %10720 = vmatpush1.bf16.msra.mxu0 %v12550_v4  ;;  %10270 = vmatprep.subr.bf16.mxu1 %v12557_v6  ;;  %v12597_v4 = vcombine.high %v1205_v57, %v1209_v59  ;;  %v12599_v6 = vcombine.high %v1206_v61, %v1210_v54 }
 0x558   :  { %10721 = vmatprep.subr.bf16.mxu0 %v12559_v8  ;;  %v1213_v8 = vld [vmem:[#allocation7 + $0xe90] sm:$0xff] }
 0x559   :  { %v12604_v26 = vcombine.low %v1213_v8, %v1217_v17 }
 0x55a   :  { %10271 = vmatpush1.bf16.msra.mxu1 %v12556_v24  ;;  %v12598_v24 = vcombine.low %v1206_v61, %v1210_v54  ;;  %v1253_v54 = vld [vmem:[#allocation7 + $0xfd0] sm:$0xff] }
 0x55b   :  { %10722 = vmatpush1.bf16.msra.mxu0 %v12558_v12  ;;  %10272 = vmatprep.subr.bf16.mxu1 %v12565_v52  ;;  %v12605_v12 = vcombine.high %v1213_v8, %v1217_v17  ;;  %v12607_v52 = vcombine.high %v1214_v11, %v1218_v63 }
 0x55c   :  { %v15128_v29 = vpop.f32.mrb[0].mxu1  ;;  %10723 = vmatprep.subr.bf16.mxu0 %v12567_v15  ;;  %v1221_v15 = vld [vmem:[#allocation7 + $0xed0] sm:$0xff] }
 0x55d   :  { %v15130_v34 = vpop.f32.mrb[44].mxu0  ;;  %v15132_v42 = vpop.f32.mrb[1].mxu1  ;;  %v12612_v53 = vcombine.low %v1221_v15, %v1225_v16 }
 0x55e   :  { %v15134_v18 = vpop.f32.mrb[45].mxu0  ;;  %v9685_v36 = vpop.f32.mrb[2].mxu1  ;;  %10273 = vmatpush1.bf16.msra.mxu1 %v12564_v27  ;;  %v12606_v27 = vcombine.low %v1214_v11, %v1218_v63  ;;  %v1261_v63 = vld [vmem:[#allocation7 + $0x1010] sm:$0xff] }
 0x55f   :  { %v10136_v7 = vpop.f32.mrb[46].mxu0  ;;  %10724 = vmatpush1.bf16.msra.mxu0 %v12566_v22  ;;  %v9686_v40 = vpop.f32.mrb[3].mxu1  ;;  %10274 = vmatprep.subr.bf16.mxu1 %v12573_v28  ;;  %v12613_v22 = vcombine.high %v1221_v15, %v1225_v16  ;;  %v12615_v28 = vcombine.high %v1222_v23, %v1226_v37  ;;  %v12614_v36 = vcombine.low %v1222_v23, %v1226_v37  ;;  %v1269_v37 = vld [vmem:[#allocation7 + $0x1050] sm:$0xff] }
 0x560   :  { %v10137_v32 = vpop.f32.mrb[47].mxu0  ;;  %10725 = vmatprep.subr.bf16.mxu0 %v12575_v30  ;;  %v1229_v30 = vld [vmem:[#allocation7 + $0xf10] sm:$0xff]  ;;  %v12623_v7 = vcombine.high %v1230_v33, %v1234_v3 }
 0x561   :  { %v1237_v40 = vld [vmem:[#allocation7 + $0xf50] sm:$0xff]  ;;  %v1242_v32 = vld [vmem:[#allocation7 + $0xf78] sm:$0xff] }
 0x562   :  { %10275 = vmatpush1.bf16.msra.mxu1 %v12572_v38  ;;  %v12621_v38 = vcombine.high %v1229_v30, %v1233_v0  ;;  %v1277_v33 = vld [vmem:[#allocation7 + $0x1090] sm:$0xff] }
 0x563   :  { %10726 = vmatpush1.bf16.msra.mxu0 %v12574_v44  ;;  %10276 = vmatprep.subr.bf16.mxu1 %v12581_v45  ;;  %v1241_v44 = vld [vmem:[#allocation7 + $0xf70] sm:$0xff]  ;;  %v1238_v45 = vld [vmem:[#allocation7 + $0xf58] sm:$0xff] }
 0x564   :  { %10727 = vmatprep.subr.bf16.mxu0 %v12583_v13  ;;  %v12620_v13 = vcombine.low %v1229_v30, %v1233_v0  ;;  %v12629_v50 = vcombine.high %v1237_v40, %v1241_v44  ;;  %v12631_v31 = vcombine.high %v1238_v45, %v1242_v32  ;;  %v12630_v57 = vcombine.low %v1238_v45, %v1242_v32  ;;  %v1281_v3 = vld [vmem:[#allocation7 + $0x10b0] sm:$0xff] }
 0x565   :  { %v1285_v32 = vld [vmem:[#allocation7 + $0x10d0] sm:$0xff] }
 0x566   :  { %10277 = vmatpush1.bf16.msra.mxu1 %v12580_v56  ;;  %v1249_v56 = vld [vmem:[#allocation7 + $0xfb0] sm:$0xff] }
 0x567   :  { %10728 = vmatpush1.bf16.msra.mxu0 %v12582_v20  ;;  %10278 = vmatprep.subr.bf16.mxu1 %v12589_v39  ;;  %v1246_v20 = vld [vmem:[#allocation7 + $0xf98] sm:$0xff]  ;;  %v12637_v59 = vcombine.high %v1245_v55, %v1249_v56 }
 0x568   :  { %10729 = vmatprep.subr.bf16.mxu0 %v12591_v46  ;;  %v1250_v39 = vld [vmem:[#allocation7 + $0xfb8] sm:$0xff]  ;;  %v12628_v46 = vcombine.low %v1237_v40, %v1241_v44  ;;  %v12669_v44 = vcombine.high %v1277_v33, %v1281_v3 }
 0x569   :  { %v12639_v61 = vcombine.high %v1246_v20, %v1250_v39  ;;  %v12638_v8 = vcombine.low %v1246_v20, %v1250_v39  ;;  %v1293_v20 = vld [vmem:[#allocation7 + $0x1110] sm:$0xff] }
 0x56a   :  { %10279 = vmatpush1.bf16.msra.mxu1 %v12588_v2  ;;  %v1257_v2 = vld [vmem:[#allocation7 + $0xff0] sm:$0xff] }
 0x56b   :  { %10730 = vmatpush1.bf16.msra.mxu0 %v12590_v47  ;;  %10280 = vmatprep.subr.bf16.mxu1 %v12597_v4  ;;  %v1254_v47 = vld [vmem:[#allocation7 + $0xfd8] sm:$0xff]  ;;  %v12645_v17 = vcombine.high %v1253_v54, %v1257_v2  ;;  %v1297_v39 = vld [vmem:[#allocation7 + $0x1130] sm:$0xff] }
 0x56c   :  { %10731 = vmatprep.subr.bf16.mxu0 %v12599_v6  ;;  %v1258_v4 = vld [vmem:[#allocation7 + $0xff8] sm:$0xff]  ;;  %v12636_v6 = vcombine.low %v1245_v55, %v1249_v56 }
 0x56d   :  { %v12647_v11 = vcombine.high %v1254_v47, %v1258_v4  ;;  %v12646_v15 = vcombine.low %v1254_v47, %v1258_v4  ;;  %v1305_v47 = vld [vmem:[#allocation7 + $0x1170] sm:$0xff]  ;;  %v1302_v4 = vld [vmem:[#allocation7 + $0x1158] sm:$0xff] }
 0x56e   :  { %10281 = vmatpush1.bf16.msra.mxu1 %v12596_v10  ;;  %v1265_v10 = vld [vmem:[#allocation7 + $0x1030] sm:$0xff] }
 0x56f   :  { %10732 = vmatpush1.bf16.msra.mxu0 %v12598_v24  ;;  %10282 = vmatprep.subr.bf16.mxu1 %v12605_v12  ;;  %v1262_v24 = vld [vmem:[#allocation7 + $0x1018] sm:$0xff]  ;;  %v12653_v16 = vcombine.high %v1261_v63, %v1265_v10 }
 0x570   :  { %10733 = vmatprep.subr.bf16.mxu0 %v12607_v52  ;;  %v1266_v12 = vld [vmem:[#allocation7 + $0x1038] sm:$0xff]  ;;  %v12644_v52 = vcombine.low %v1253_v54, %v1257_v2  ;;  %v1301_v2 = vld [vmem:[#allocation7 + $0x1150] sm:$0xff] }
 0x571   :  { %v12655_v23 = vcombine.high %v1262_v24, %v1266_v12  ;;  %v12654_v30 = vcombine.low %v1262_v24, %v1266_v12  ;;  %v1313_v24 = vld [vmem:[#allocation7 + $0x11b0] sm:$0xff]  ;;  %v1310_v12 = vld [vmem:[#allocation7 + $0x1198] sm:$0xff] }
 0x572   :  { %10283 = vmatpush1.bf16.msra.mxu1 %v12604_v26  ;;  %v1273_v26 = vld [vmem:[#allocation7 + $0x1070] sm:$0xff] }
 0x573   :  { %10734 = vmatpush1.bf16.msra.mxu0 %v12606_v27  ;;  %10284 = vmatprep.subr.bf16.mxu1 %v12613_v22  ;;  %v12652_v27 = vcombine.low %v1261_v63, %v1265_v10  ;;  %v1270_v22 = vld [vmem:[#allocation7 + $0x1058] sm:$0xff]  ;;  %v12661_v0 = vcombine.high %v1269_v37, %v1273_v26  ;;  %v1309_v10 = vld [vmem:[#allocation7 + $0x1190] sm:$0xff] }
 0x574   :  { %10735 = vmatprep.subr.bf16.mxu0 %v12615_v28  ;;  %v1274_v28 = vld [vmem:[#allocation7 + $0x1078] sm:$0xff] }
 0x575   :  { %v12662_v40 = vcombine.low %v1270_v22, %v1274_v28 }
 0x576   :  { %10285 = vmatpush1.bf16.msra.mxu1 %v12612_v53  ;;  %v12663_v53 = vcombine.high %v1270_v22, %v1274_v28  ;;  %v1318_v22 = vld [vmem:[#allocation7 + $0x11d8] sm:$0xff] }
 0x577   :  { %10736 = vmatpush1.bf16.msra.mxu0 %v12614_v36  ;;  %10286 = vmatprep.subr.bf16.mxu1 %v12621_v38  ;;  %v1278_v36 = vld [vmem:[#allocation7 + $0x1098] sm:$0xff] }
 0x578   :  { %10737 = vmatprep.subr.bf16.mxu0 %v12623_v7  ;;  %v1282_v38 = vld [vmem:[#allocation7 + $0x10b8] sm:$0xff]  ;;  %v12660_v7 = vcombine.low %v1269_v37, %v1273_v26  ;;  %v1317_v26 = vld [vmem:[#allocation7 + $0x11d0] sm:$0xff] }
 0x579   :  { %v12671_v45 = vcombine.high %v1278_v36, %v1282_v38  ;;  %v1322_v28 = vld [vmem:[#allocation7 + $0x11f8] sm:$0xff] }
 0x57a   :  { %10287 = vmatpush1.bf16.msra.mxu1 %v12620_v13  ;;  %v1289_v13 = vld [vmem:[#allocation7 + $0x10f0] sm:$0xff] }
 0x57b   :  { %10738 = vmatpush1.bf16.msra.mxu0 %v12622_v49  ;;  %10288 = vmatprep.subr.bf16.mxu1 %v12629_v50  ;;  %v1286_v49 = vld [vmem:[#allocation7 + $0x10d8] sm:$0xff]  ;;  %v12677_v55 = vcombine.high %v1285_v32, %v1289_v13 }
 0x57c   :  { %10739 = vmatprep.subr.bf16.mxu0 %v12631_v31  ;;  %v1290_v50 = vld [vmem:[#allocation7 + $0x10f8] sm:$0xff]  ;;  %v12668_v31 = vcombine.low %v1277_v33, %v1281_v3  ;;  %v12711_v3 = vcombine.high %v1318_v22, %v1322_v28 }
 0x57d   :  { %v12679_v56 = vcombine.high %v1286_v49, %v1290_v50 }
 0x57e   :  { %10289 = vmatpush1.bf16.msra.mxu1 %v12628_v46  ;;  %v1294_v46 = vld [vmem:[#allocation7 + $0x1118] sm:$0xff] }
 0x57f   :  { %10740 = vmatpush1.bf16.msra.mxu0 %v12630_v57  ;;  %10290 = vmatprep.subr.bf16.mxu1 %v12637_v59  ;;  %v1298_v57 = vld [vmem:[#allocation7 + $0x1138] sm:$0xff]  ;;  %v12678_v59 = vcombine.low %v1286_v49, %v1290_v50  ;;  %v1337_v49 = vld [vmem:[#allocation7 + $0x1270] sm:$0xff] }
 0x580   :  { %10741 = vmatprep.subr.bf16.mxu0 %v12639_v61  ;;  %v12685_v61 = vcombine.high %v1293_v20, %v1297_v39  ;;  %v12687_v54 = vcombine.high %v1294_v46, %v1298_v57  ;;  %v1334_v50 = vld [vmem:[#allocation7 + $0x1258] sm:$0xff] }
 0x582   :  { %10291 = vmatpush1.bf16.msra.mxu1 %v12636_v6  ;;  %v1306_v6 = vld [vmem:[#allocation7 + $0x1178] sm:$0xff] }
 0x583   :  { %10742 = vmatpush1.bf16.msra.mxu0 %v12638_v8  ;;  %10292 = vmatprep.subr.bf16.mxu1 %v12645_v17  ;;  %v12684_v8 = vcombine.low %v1293_v20, %v1297_v39  ;;  %v12686_v17 = vcombine.low %v1294_v46, %v1298_v57  ;;  %v12695_v63 = vcombine.high %v1302_v4, %v1306_v6  ;;  %v1341_v39 = vld [vmem:[#allocation7 + $0x1290] sm:$0xff]  ;;  %v1342_v57 = vld [vmem:[#allocation7 + $0x1298] sm:$0xff] }
 0x584   :  { %10743 = vmatprep.subr.bf16.mxu0 %v12647_v11  ;;  %v12693_v11 = vcombine.high %v1301_v2, %v1305_v47  ;;  %v1345_v46 = vld [vmem:[#allocation7 + $0x12b0] sm:$0xff] }
 0x586   :  { %10293 = vmatpush1.bf16.msra.mxu1 %v12644_v52  ;;  %v1314_v52 = vld [vmem:[#allocation7 + $0x11b8] sm:$0xff] }
 0x587   :  { %10744 = vmatpush1.bf16.msra.mxu0 %v12646_v15  ;;  %10303 = vmatprep.subr.bf16.mxu1 %v12653_v16  ;;  %v12692_v15 = vcombine.low %v1301_v2, %v1305_v47  ;;  %v12694_v16 = vcombine.low %v1302_v4, %v1306_v6  ;;  %v12703_v37 = vcombine.high %v1310_v12, %v1314_v52  ;;  %v1349_v47 = vld [vmem:[#allocation7 + $0x12d0] sm:$0xff]  ;;  %v1350_v6 = vld [vmem:[#allocation7 + $0x12d8] sm:$0xff] }
 0x588   :  { %10754 = vmatprep.subr.bf16.mxu0 %v12655_v23  ;;  %v12701_v23 = vcombine.high %v1309_v10, %v1313_v24  ;;  %v1353_v4 = vld [vmem:[#allocation7 + $0x12f0] sm:$0xff] }
 0x589   :  { %10295 = vmatmul.mubr.bf16.vlgmr.msra.gmra.mrb[4].mxu1 %v15041_v51 }
 0x58a   :  { %10746 = vmatmul.mubr.bf16.vlgmr.msra.gmra.mrb[48].mxu0 %v15041_v51  ;;  %10304 = vmatpush1.bf16.msra.mxu1 %v12652_v27  ;;  %v12670_v51 = vcombine.low %v1278_v36, %v1282_v38  ;;  %v1321_v27 = vld [vmem:[#allocation7 + $0x11f0] sm:$0xff]  ;;  %v1326_v38 = vld [vmem:[#allocation7 + $0x1218] sm:$0xff] }
 0x58b   :  { %10335 = vmatprep.mubr.bf16.mxu1 %v15043_v21  ;;  %10755 = vmatpush1.bf16.msra.mxu0 %v12654_v30  ;;  %v12700_v30 = vcombine.low %v1309_v10, %v1313_v24  ;;  %v12709_v33 = vcombine.high %v1317_v26, %v1321_v27  ;;  %v1329_v36 = vld [vmem:[#allocation7 + $0x1230] sm:$0xff] }
 0x58c   :  { %10786 = vmatprep.mubr.bf16.mxu0 %v15043_v21  ;;  %10305 = vmatprep.subr.bf16.mxu1 %v12661_v0  ;;  %v12676_v21 = vcombine.low %v1285_v32, %v1289_v13  ;;  %v12702_v0 = vcombine.low %v1310_v12, %v1314_v52  ;;  %v1333_v13 = vld [vmem:[#allocation7 + $0x1250] sm:$0xff]  ;;  %v1358_v52 = vld [vmem:[#allocation7 + $0x1318] sm:$0xff] }
 0x58d   :  { %10756 = vmatprep.subr.bf16.mxu0 %v12663_v53  ;;  %v1325_v53 = vld [vmem:[#allocation7 + $0x1210] sm:$0xff] }
 0x58e   :  { %10306 = vmatpush1.bf16.msra.mxu1 %v12660_v7  ;;  %v1330_v7 = vld [vmem:[#allocation7 + $0x1238] sm:$0xff]  ;;  %v1357_v24 = vld [vmem:[#allocation7 + $0x1310] sm:$0xff] }
 0x58f   :  { %10757 = vmatpush1.bf16.msra.mxu0 %v12662_v40  ;;  %10307 = vmatprep.subr.bf16.mxu1 %v12669_v44  ;;  %v12708_v40 = vcombine.low %v1317_v26, %v1321_v27  ;;  %v12710_v44 = vcombine.low %v1318_v22, %v1322_v28  ;;  %v12719_v32 = vcombine.high %v1326_v38, %v1330_v7  ;;  %v1361_v12 = vld [vmem:[#allocation7 + $0x1330] sm:$0xff]  ;;  %v1366_v28 = vld [vmem:[#allocation7 + $0x1358] sm:$0xff] }
 0x590   :  { %10758 = vmatprep.subr.bf16.mxu0 %v12671_v45  ;;  %v12717_v45 = vcombine.high %v1325_v53, %v1329_v36  ;;  %v1365_v27 = vld [vmem:[#allocation7 + $0x1350] sm:$0xff] }
 0x591   :  { %v1369_v22 = vld [vmem:[#allocation7 + $0x1370] sm:$0xff] }
 0x592   :  { %10308 = vmatpush1.bf16.msra.mxu1 %v12668_v31  ;;  %v1338_v31 = vld [vmem:[#allocation7 + $0x1278] sm:$0xff] }
 0x593   :  { %10759 = vmatpush1.bf16.msra.mxu0 %v12670_v51  ;;  %10309 = vmatprep.subr.bf16.mxu1 %v12677_v55  ;;  %v12716_v51 = vcombine.low %v1325_v53, %v1329_v36  ;;  %v12718_v55 = vcombine.low %v1326_v38, %v1330_v7  ;;  %v12727_v20 = vcombine.high %v1334_v50, %v1338_v31  ;;  %v1373_v36 = vld [vmem:[#allocation7 + $0x1390] sm:$0xff]  ;;  %v1374_v7 = vld [vmem:[#allocation7 + $0x1398] sm:$0xff] }
 0x594   :  { %10760 = vmatprep.subr.bf16.mxu0 %v12679_v56  ;;  %v12725_v56 = vcombine.high %v1333_v13, %v1337_v49  ;;  %v1377_v38 = vld [vmem:[#allocation7 + $0x13b0] sm:$0xff] }
 0x596   :  { %10310 = vmatpush1.bf16.msra.mxu1 %v12676_v21  ;;  %v1346_v21 = vld [vmem:[#allocation7 + $0x12b8] sm:$0xff] }
 0x597   :  { %10761 = vmatpush1.bf16.msra.mxu0 %v12678_v59  ;;  %10311 = vmatprep.subr.bf16.mxu1 %v12685_v61  ;;  %v12724_v59 = vcombine.low %v1333_v13, %v1337_v49  ;;  %v12726_v61 = vcombine.low %v1334_v50, %v1338_v31  ;;  %v12735_v2 = vcombine.high %v1342_v57, %v1346_v21  ;;  %v1381_v49 = vld [vmem:[#allocation7 + $0x13d0] sm:$0xff]  ;;  %v1382_v31 = vld [vmem:[#allocation7 + $0x13d8] sm:$0xff] }
 0x598   :  { %10762 = vmatprep.subr.bf16.mxu0 %v12687_v54  ;;  %v12733_v54 = vcombine.high %v1341_v39, %v1345_v46  ;;  %v1385_v50 = vld [vmem:[#allocation7 + $0x13f0] sm:$0xff] }
 0x59a   :  { %10312 = vmatpush1.bf16.msra.mxu1 %v12684_v8  ;;  %v1354_v8 = vld [vmem:[#allocation7 + $0x12f8] sm:$0xff] }
 0x59b   :  { %10763 = vmatpush1.bf16.msra.mxu0 %v12686_v17  ;;  %10313 = vmatprep.subr.bf16.mxu1 %v12693_v11  ;;  %v12732_v17 = vcombine.low %v1341_v39, %v1345_v46  ;;  %v12734_v11 = vcombine.low %v1342_v57, %v1346_v21  ;;  %v12743_v10 = vcombine.high %v1350_v6, %v1354_v8  ;;  %v1389_v46 = vld [vmem:[#allocation7 + $0x1410] sm:$0xff]  ;;  %v1390_v21 = vld [vmem:[#allocation7 + $0x1418] sm:$0xff] }
 0x59c   :  { %10764 = vmatprep.subr.bf16.mxu0 %v12695_v63  ;;  %v12741_v63 = vcombine.high %v1349_v47, %v1353_v4  ;;  %v1393_v57 = vld [vmem:[#allocation7 + $0x1430] sm:$0xff] }
 0x59e   :  { %10314 = vmatpush1.bf16.msra.mxu1 %v12692_v15  ;;  %v1362_v15 = vld [vmem:[#allocation7 + $0x1338] sm:$0xff] }
 0x59f   :  { %10765 = vmatpush1.bf16.msra.mxu0 %v12694_v16  ;;  %10315 = vmatprep.subr.bf16.mxu1 %v12701_v23  ;;  %v12740_v16 = vcombine.low %v1349_v47, %v1353_v4  ;;  %v12742_v23 = vcombine.low %v1350_v6, %v1354_v8  ;;  %v12751_v26 = vcombine.high %v1358_v52, %v1362_v15  ;;  %v1397_v4 = vld [vmem:[#allocation7 + $0x1450] sm:$0xff] }
 0x5a0   :  { %10766 = vmatprep.subr.bf16.mxu0 %v12703_v37  ;;  %v12749_v37 = vcombine.high %v1357_v24, %v1361_v12  ;;  %v1401_v6 = vld [vmem:[#allocation7 + $0x1470] sm:$0xff]  ;;  %v12780_v8 = vcombine.low %v1389_v46, %v1393_v57 }
 0x5a2   :  { %10316 = vmatpush1.bf16.msra.mxu1 %v12700_v30  ;;  %v1370_v30 = vld [vmem:[#allocation7 + $0x1378] sm:$0xff] }
 0x5a3   :  { %10767 = vmatpush1.bf16.msra.mxu0 %v12702_v0  ;;  %10317 = vmatprep.subr.bf16.mxu1 %v12709_v33  ;;  %v12748_v0 = vcombine.low %v1357_v24, %v1361_v12  ;;  %v12750_v33 = vcombine.low %v1358_v52, %v1362_v15  ;;  %v12759_v53 = vcombine.high %v1366_v28, %v1370_v30  ;;  %v1405_v24 = vld [vmem:[#allocation7 + $0x1490] sm:$0xff]  ;;  %v1406_v15 = vld [vmem:[#allocation7 + $0x1498] sm:$0xff] }
 0x5a4   :  { %10768 = vmatprep.subr.bf16.mxu0 %v12711_v3  ;;  %v12757_v3 = vcombine.high %v1365_v27, %v1369_v22  ;;  %v1409_v12 = vld [vmem:[#allocation7 + $0x14b0] sm:$0xff] }
 0x5a6   :  { %10318 = vmatpush1.bf16.msra.mxu1 %v12708_v40  ;;  %v1378_v40 = vld [vmem:[#allocation7 + $0x13b8] sm:$0xff] }
 0x5a7   :  { %10769 = vmatpush1.bf16.msra.mxu0 %v12710_v44  ;;  %10319 = vmatprep.subr.bf16.mxu1 %v12717_v45  ;;  %v12756_v44 = vcombine.low %v1365_v27, %v1369_v22  ;;  %v12758_v45 = vcombine.low %v1366_v28, %v1370_v30  ;;  %v12767_v13 = vcombine.high %v1374_v7, %v1378_v40  ;;  %v1413_v22 = vld [vmem:[#allocation7 + $0x14d0] sm:$0xff]  ;;  %v1414_v30 = vld [vmem:[#allocation7 + $0x14d8] sm:$0xff] }
 0x5a8   :  { %10770 = vmatprep.subr.bf16.mxu0 %v12719_v32  ;;  %v12765_v32 = vcombine.high %v1373_v36, %v1377_v38  ;;  %v1417_v28 = vld [vmem:[#allocation7 + $0x14f0] sm:$0xff] }
 0x5aa   :  { %10320 = vmatpush1.bf16.msra.mxu1 %v12716_v51  ;;  %v1386_v51 = vld [vmem:[#allocation7 + $0x13f8] sm:$0xff] }
 0x5ab   :  { %10771 = vmatpush1.bf16.msra.mxu0 %v12718_v55  ;;  %10321 = vmatprep.subr.bf16.mxu1 %v12725_v56  ;;  %v12764_v55 = vcombine.low %v1373_v36, %v1377_v38  ;;  %v12766_v56 = vcombine.low %v1374_v7, %v1378_v40  ;;  %v12775_v39 = vcombine.high %v1382_v31, %v1386_v51  ;;  %v1421_v36 = vld [vmem:[#allocation7 + $0x1510] sm:$0xff]  ;;  %v1422_v7 = vld [vmem:[#allocation7 + $0x1518] sm:$0xff] }
 0x5ac   :  { %10772 = vmatprep.subr.bf16.mxu0 %v12727_v20  ;;  %v12773_v20 = vcombine.high %v1381_v49, %v1385_v50  ;;  %v1425_v38 = vld [vmem:[#allocation7 + $0x1530] sm:$0xff]  ;;  %v1426_v40 = vld [vmem:[#allocation7 + $0x1538] sm:$0xff] }
 0x5ae   :  { %10322 = vmatpush1.bf16.msra.mxu1 %v12724_v59  ;;  %v1394_v59 = vld [vmem:[#allocation7 + $0x1438] sm:$0xff] }
 0x5af   :  { %10773 = vmatpush1.bf16.msra.mxu0 %v12726_v61  ;;  %10323 = vmatprep.subr.bf16.mxu1 %v12733_v54  ;;  %v12772_v61 = vcombine.low %v1381_v49, %v1385_v50  ;;  %v12774_v54 = vcombine.low %v1382_v31, %v1386_v51  ;;  %v12783_v47 = vcombine.high %v1390_v21, %v1394_v59  ;;  %v1433_v49 = vld [vmem:[#allocation7 + $0x1570] sm:$0xff]  ;;  %v1430_v50 = vld [vmem:[#allocation7 + $0x1558] sm:$0xff] }
 0x5b0   :  { %10774 = vmatprep.subr.bf16.mxu0 %v12735_v2  ;;  %v12781_v2 = vcombine.high %v1389_v46, %v1393_v57  ;;  %v1434_v31 = vld [vmem:[#allocation7 + $0x1578] sm:$0xff]  ;;  %v12812_v51 = vcombine.low %v1421_v36, %v1425_v38  ;;  %v1441_v46 = vld [vmem:[#allocation7 + $0x15b0] sm:$0xff] }
 0x5b1   :  { %v1438_v57 = vld [vmem:[#allocation7 + $0x1598] sm:$0xff] }
 0x5b2   :  { %10324 = vmatpush1.bf16.msra.mxu1 %v12732_v17  ;;  %v1398_v17 = vld [vmem:[#allocation7 + $0x1458] sm:$0xff] }
 0x5b3   :  { %10775 = vmatpush1.bf16.msra.mxu0 %v12734_v11  ;;  %10325 = vmatprep.subr.bf16.mxu1 %v12741_v63  ;;  %v1402_v11 = vld [vmem:[#allocation7 + $0x1478] sm:$0xff]  ;;  %v12782_v63 = vcombine.low %v1390_v21, %v1394_v59 }
 0x5b4   :  { %10776 = vmatprep.subr.bf16.mxu0 %v12743_v10  ;;  %v12789_v10 = vcombine.high %v1397_v4, %v1401_v6  ;;  %v12791_v52 = vcombine.high %v1398_v17, %v1402_v11  ;;  %v1442_v21 = vld [vmem:[#allocation7 + $0x15b8] sm:$0xff] }
 0x5b6   :  { %10326 = vmatpush1.bf16.msra.mxu1 %v12740_v16  ;;  %v1410_v16 = vld [vmem:[#allocation7 + $0x14b8] sm:$0xff] }
 0x5b7   :  { %10777 = vmatpush1.bf16.msra.mxu0 %v12742_v23  ;;  %10327 = vmatprep.subr.bf16.mxu1 %v12749_v37  ;;  %v12788_v23 = vcombine.low %v1397_v4, %v1401_v6  ;;  %v12790_v37 = vcombine.low %v1398_v17, %v1402_v11  ;;  %v12799_v27 = vcombine.high %v1406_v15, %v1410_v16  ;;  %v1449_v4 = vld [vmem:[#allocation7 + $0x15f0] sm:$0xff]  ;;  %v1446_v6 = vld [vmem:[#allocation7 + $0x15d8] sm:$0xff] }
 0x5b8   :  { %10778 = vmatprep.subr.bf16.mxu0 %v12751_v26  ;;  %v12797_v26 = vcombine.high %v1405_v24, %v1409_v12  ;;  %v12830_v11 = vcombine.low %v1438_v57, %v1442_v21 }
 0x5ba   :  { %10328 = vmatpush1.bf16.msra.mxu1 %v12748_v0  ;;  %v1418_v0 = vld [vmem:[#allocation7 + $0x14f8] sm:$0xff] }
 0x5bb   :  { %10779 = vmatpush1.bf16.msra.mxu0 %v12750_v33  ;;  %10329 = vmatprep.subr.bf16.mxu1 %v12757_v3  ;;  %v12796_v33 = vcombine.low %v1405_v24, %v1409_v12  ;;  %v12805_v3 = vcombine.high %v1413_v22, %v1417_v28  ;;  %v1453_v24 = vld [vmem:[#allocation7 + $0x1610] sm:$0xff] }
 0x5bc   :  { %10780 = vmatprep.subr.bf16.mxu0 %v12759_v53  ;;  %v12807_v53 = vcombine.high %v1414_v30, %v1418_v0  ;;  %v1457_v12 = vld [vmem:[#allocation7 + $0x1630] sm:$0xff] }
 0x5be   :  { %10330 = vmatpush1.bf16.msra.mxu1 %v12756_v44  ;;  %v12806_v44 = vcombine.low %v1414_v30, %v1418_v0  ;;  %v1466_v30 = vld [vmem:[#allocation7 + $0x1678] sm:$0xff]  ;;  %v12844_v0 = vcombine.low %v1453_v24, %v1457_v12 }
 0x5bf   :  { %10781 = vmatpush1.bf16.msra.mxu0 %v12758_v45  ;;  %10331 = vmatprep.subr.bf16.mxu1 %v12765_v32  ;;  %v12813_v45 = vcombine.high %v1421_v36, %v1425_v38  ;;  %v12815_v32 = vcombine.high %v1422_v7, %v1426_v40  ;;  %v1473_v36 = vld [vmem:[#allocation7 + $0x16b0] sm:$0xff]  ;;  %v1470_v38 = vld [vmem:[#allocation7 + $0x1698] sm:$0xff] }
 0x5c0   :  { %10782 = vmatprep.subr.bf16.mxu0 %v12767_v13  ;;  %v1429_v13 = vld [vmem:[#allocation7 + $0x1550] sm:$0xff] }
 0x5c1   :  { %v12820_v59 = vcombine.low %v1429_v13, %v1433_v49 }
 0x5c2   :  { %10332 = vmatpush1.bf16.msra.mxu1 %v12764_v55  ;;  %v12814_v55 = vcombine.low %v1422_v7, %v1426_v40  ;;  %v1474_v7 = vld [vmem:[#allocation7 + $0x16b8] sm:$0xff] }
 0x5c3   :  { %10783 = vmatpush1.bf16.msra.mxu0 %v12766_v56  ;;  %10333 = vmatprep.subr.bf16.mxu1 %v12773_v20  ;;  %v12821_v56 = vcombine.high %v1429_v13, %v1433_v49  ;;  %v12823_v20 = vcombine.high %v1430_v50, %v1434_v31  ;;  %v1481_v13 = vld [vmem:[#allocation7 + $0x16f0] sm:$0xff]  ;;  %v1478_v49 = vld [vmem:[#allocation7 + $0x16d8] sm:$0xff] }
 0x5c4   :  { %10784 = vmatprep.subr.bf16.mxu0 %v12775_v39  ;;  %v1437_v39 = vld [vmem:[#allocation7 + $0x1590] sm:$0xff] }
 0x5c5   :  { %v12828_v17 = vcombine.low %v1437_v39, %v1441_v46 }
 0x5c6   :  { %10334 = vmatpush1.bf16.msra.mxu1 %v12772_v61  ;;  %v12822_v61 = vcombine.low %v1430_v50, %v1434_v31  ;;  %v1482_v50 = vld [vmem:[#allocation7 + $0x16f8] sm:$0xff] }
 0x5c7   :  { %10785 = vmatpush1.bf16.msra.mxu0 %v12774_v54  ;;  %10344 = vmatprep.subr.bf16.mxu1 %v12781_v2  ;;  %v12829_v54 = vcombine.high %v1437_v39, %v1441_v46  ;;  %v12831_v2 = vcombine.high %v1438_v57, %v1442_v21  ;;  %v1489_v39 = vld [vmem:[#allocation7 + $0x1730] sm:$0xff]  ;;  %v1486_v46 = vld [vmem:[#allocation7 + $0x1718] sm:$0xff] }
 0x5c8   :  { %10795 = vmatprep.subr.bf16.mxu0 %v12783_v47  ;;  %v1445_v47 = vld [vmem:[#allocation7 + $0x15d0] sm:$0xff]  ;;  %v1490_v57 = vld [vmem:[#allocation7 + $0x1738] sm:$0xff] }
 0x5c9   :  { %10336 = vmatmul.mubr.bf16.vlgmr.msra.gmra.mrb[4].mxu1 %v15051_v62 }
 0x5ca   :  { %10787 = vmatmul.mubr.bf16.vlgmr.msra.gmra.mrb[48].mxu0 %v15051_v62  ;;  %10345 = vmatpush1.bf16.msra.mxu1 %v12780_v8  ;;  %v12798_v62 = vcombine.low %v1406_v15, %v1410_v16  ;;  %v1450_v8 = vld [vmem:[#allocation7 + $0x15f8] sm:$0xff]  ;;  %v12836_v16 = vcombine.low %v1445_v47, %v1449_v4 }
 0x5cb   :  { %10376 = vmatprep.mubr.bf16.mxu1 %v15053_v5  ;;  %10796 = vmatpush1.bf16.msra.mxu0 %v12782_v63  ;;  %v12837_v63 = vcombine.high %v1445_v47, %v1449_v4  ;;  %v1458_v15 = vld [vmem:[#allocation7 + $0x1638] sm:$0xff]  ;;  %v1497_v47 = vld [vmem:[#allocation7 + $0x1770] sm:$0xff] }
 0x5cc   :  { %10827 = vmatprep.mubr.bf16.mxu0 %v15053_v5  ;;  %10346 = vmatprep.subr.bf16.mxu1 %v12789_v10  ;;  %v12804_v5 = vcombine.low %v1413_v22, %v1417_v28  ;;  %v12839_v10 = vcombine.high %v1446_v6, %v1450_v8  ;;  %v1465_v22 = vld [vmem:[#allocation7 + $0x1670] sm:$0xff]  ;;  %v1462_v28 = vld [vmem:[#allocation7 + $0x1658] sm:$0xff] }
 0x5cd   :  { %10797 = vmatprep.subr.bf16.mxu0 %v12791_v52  ;;  %v1454_v52 = vld [vmem:[#allocation7 + $0x1618] sm:$0xff] }
 0x5ce   :  { %10347 = vmatpush1.bf16.msra.mxu1 %v12788_v23  ;;  %v12838_v23 = vcombine.low %v1446_v6, %v1450_v8  ;;  %v1494_v4 = vld [vmem:[#allocation7 + $0x1758] sm:$0xff] }
 0x5cf   :  { %10798 = vmatpush1.bf16.msra.mxu0 %v12790_v37  ;;  %10348 = vmatprep.subr.bf16.mxu1 %v12797_v26  ;;  %v12845_v37 = vcombine.high %v1453_v24, %v1457_v12  ;;  %v12847_v26 = vcombine.high %v1454_v52, %v1458_v15  ;;  %v1498_v6 = vld [vmem:[#allocation7 + $0x1778] sm:$0xff]  ;;  %v1505_v24 = vld [vmem:[#allocation7 + $0x17b0] sm:$0xff] }
 0x5d0   :  { %10799 = vmatprep.subr.bf16.mxu0 %v12799_v27  ;;  %v1461_v27 = vld [vmem:[#allocation7 + $0x1650] sm:$0xff]  ;;  %v1502_v12 = vld [vmem:[#allocation7 + $0x1798] sm:$0xff] }
 0x5d1   :  { %v12852_v40 = vcombine.low %v1461_v27, %v1465_v22 }
 0x5d2   :  { %10349 = vmatpush1.bf16.msra.mxu1 %v12796_v33  ;;  %v12846_v33 = vcombine.low %v1454_v52, %v1458_v15  ;;  %v1506_v52 = vld [vmem:[#allocation7 + $0x17b8] sm:$0xff] }
 0x5d3   :  { %10800 = vmatpush1.bf16.msra.mxu0 %v12798_v62  ;;  %10350 = vmatprep.subr.bf16.mxu1 %v12805_v3  ;;  %v12853_v62 = vcombine.high %v1461_v27, %v1465_v22  ;;  %v12855_v3 = vcombine.high %v1462_v28, %v1466_v30  ;;  %v1513_v27 = vld [vmem:[#allocation7 + $0x17f0] sm:$0xff]  ;;  %v1510_v22 = vld [vmem:[#allocation7 + $0x17d8] sm:$0xff] }
 0x5d4   :  { %10801 = vmatprep.subr.bf16.mxu0 %v12807_v53  ;;  %v1469_v53 = vld [vmem:[#allocation7 + $0x1690] sm:$0xff] }
 0x5d5   :  { %v12860_v31 = vcombine.low %v1469_v53, %v1473_v36 }
 0x5d6   :  { %10351 = vmatpush1.bf16.msra.mxu1 %v12804_v5  ;;  %v12854_v5 = vcombine.low %v1462_v28, %v1466_v30  ;;  %v1514_v28 = vld [vmem:[#allocation7 + $0x17f8] sm:$0xff] }
 0x5d7   :  { %10802 = vmatpush1.bf16.msra.mxu0 %v12806_v44  ;;  %10352 = vmatprep.subr.bf16.mxu1 %v12813_v45  ;;  %v12861_v44 = vcombine.high %v1469_v53, %v1473_v36  ;;  %v12863_v45 = vcombine.high %v1470_v38, %v1474_v7  ;;  %v1521_v53 = vld [vmem:[#allocation7 + $0x1830] sm:$0xff]  ;;  %v1518_v36 = vld [vmem:[#allocation7 + $0x1818] sm:$0xff] }
 0x5d8   :  { %10803 = vmatprep.subr.bf16.mxu0 %v12815_v32  ;;  %v1477_v32 = vld [vmem:[#allocation7 + $0x16d0] sm:$0xff] }
 0x5d9   :  { %v12868_v21 = vcombine.low %v1477_v32, %v1481_v13 }
 0x5da   :  { %10353 = vmatpush1.bf16.msra.mxu1 %v12812_v51  ;;  %v12862_v51 = vcombine.low %v1470_v38, %v1474_v7  ;;  %v1522_v38 = vld [vmem:[#allocation7 + $0x1838] sm:$0xff] }
 0x5db   :  { %10804 = vmatpush1.bf16.msra.mxu0 %v12814_v55  ;;  %10354 = vmatprep.subr.bf16.mxu1 %v12821_v56  ;;  %v12869_v55 = vcombine.high %v1477_v32, %v1481_v13  ;;  %v12871_v56 = vcombine.high %v1478_v49, %v1482_v50  ;;  %v1529_v32 = vld [vmem:[#allocation7 + $0x1870] sm:$0xff] }
 0x5dc   :  { %10805 = vmatprep.subr.bf16.mxu0 %v12823_v20  ;;  %v1485_v20 = vld [vmem:[#allocation7 + $0x1710] sm:$0xff] }
 0x5dd   :  { %v12876_v8 = vcombine.low %v1485_v20, %v1489_v39 }
 0x5de   :  { %10355 = vmatpush1.bf16.msra.mxu1 %v12820_v59  ;;  %v12870_v59 = vcombine.low %v1478_v49, %v1482_v50  ;;  %v1526_v49 = vld [vmem:[#allocation7 + $0x1858] sm:$0xff] }
 0x5df   :  { %10806 = vmatpush1.bf16.msra.mxu0 %v12822_v61  ;;  %10356 = vmatprep.subr.bf16.mxu1 %v12829_v54  ;;  %v12877_v61 = vcombine.high %v1485_v20, %v1489_v39  ;;  %v12879_v54 = vcombine.high %v1486_v46, %v1490_v57  ;;  %v1530_v50 = vld [vmem:[#allocation7 + $0x1878] sm:$0xff] }
 0x5e0   :  { %10807 = vmatprep.subr.bf16.mxu0 %v12831_v2  ;;  %v1493_v2 = vld [vmem:[#allocation7 + $0x1750] sm:$0xff]  ;;  %v12919_v20 = vcombine.high %v1526_v49, %v1530_v50  ;;  %v1534_v39 = vld [vmem:[#allocation7 + $0x1898] sm:$0xff] }
 0x5e1   :  { %v12884_v15 = vcombine.low %v1493_v2, %v1497_v47 }
 0x5e2   :  { %10357 = vmatpush1.bf16.msra.mxu1 %v12828_v17  ;;  %v12878_v17 = vcombine.low %v1486_v46, %v1490_v57  ;;  %v1538_v46 = vld [vmem:[#allocation7 + $0x18b8] sm:$0xff] }
 0x5e3   :  { %10808 = vmatpush1.bf16.msra.mxu0 %v12830_v11  ;;  %10358 = vmatprep.subr.bf16.mxu1 %v12837_v63  ;;  %v12885_v11 = vcombine.high %v1493_v2, %v1497_v47  ;;  %v12887_v63 = vcombine.high %v1494_v4, %v1498_v6  ;;  %v1545_v2 = vld [vmem:[#allocation7 + $0x18f0] sm:$0xff]  ;;  %v1542_v47 = vld [vmem:[#allocation7 + $0x18d8] sm:$0xff] }
 0x5e4   :  { %10809 = vmatprep.subr.bf16.mxu0 %v12839_v10  ;;  %v1501_v10 = vld [vmem:[#allocation7 + $0x1790] sm:$0xff] }
 0x5e5   :  { %v12892_v30 = vcombine.low %v1501_v10, %v1505_v24 }
 0x5e6   :  { %10359 = vmatpush1.bf16.msra.mxu1 %v12836_v16  ;;  %v12886_v16 = vcombine.low %v1494_v4, %v1498_v6  ;;  %v1546_v4 = vld [vmem:[#allocation7 + $0x18f8] sm:$0xff] }
 0x5e7   :  { %10810 = vmatpush1.bf16.msra.mxu0 %v12838_v23  ;;  %10360 = vmatprep.subr.bf16.mxu1 %v12845_v37  ;;  %v12893_v23 = vcombine.high %v1501_v10, %v1505_v24  ;;  %v12895_v37 = vcombine.high %v1502_v12, %v1506_v52  ;;  %v1550_v10 = vld [vmem:[#allocation7 + $0x1918] sm:$0xff] }
 0x5e8   :  { %10811 = vmatprep.subr.bf16.mxu0 %v12847_v26  ;;  %v1509_v26 = vld [vmem:[#allocation7 + $0x17d0] sm:$0xff]  ;;  %v1554_v24 = vld [vmem:[#allocation7 + $0x1938] sm:$0xff] }
 0x5e9   :  { %v12900_v7 = vcombine.low %v1509_v26, %v1513_v27 }
 0x5ea   :  { %10361 = vmatpush1.bf16.msra.mxu1 %v12844_v0  ;;  %v12894_v0 = vcombine.low %v1502_v12, %v1506_v52  ;;  %v12934_v12 = vcombine.low %v1542_v47, %v1546_v4 }
 0x5eb   :  { %10812 = vmatpush1.bf16.msra.mxu0 %v12846_v33  ;;  %10362 = vmatprep.subr.bf16.mxu1 %v12853_v62  ;;  %v12901_v33 = vcombine.high %v1509_v26, %v1513_v27  ;;  %v12903_v62 = vcombine.high %v1510_v22, %v1514_v28  ;;  %v1562_v26 = vld [vmem:[#allocation7 + $0x1978] sm:$0xff] }
 0x5ec   :  { %10813 = vmatprep.subr.bf16.mxu0 %v12855_v3  ;;  %v1517_v3 = vld [vmem:[#allocation7 + $0x1810] sm:$0xff] }
 0x5ed   :  { %v12908_v13 = vcombine.low %v1517_v3, %v1521_v53 }
 0x5ee   :  { %10363 = vmatpush1.bf16.msra.mxu1 %v12852_v40  ;;  %v12902_v40 = vcombine.low %v1510_v22, %v1514_v28  ;;  %v12942_v22 = vcombine.low %v1550_v10, %v1554_v24 }
 0x5ef   :  { %10814 = vmatpush1.bf16.msra.mxu0 %v12854_v5  ;;  %10364 = vmatprep.subr.bf16.mxu1 %v12861_v44  ;;  %v12909_v5 = vcombine.high %v1517_v3, %v1521_v53  ;;  %v12911_v44 = vcombine.high %v1518_v36, %v1522_v38  ;;  %v1570_v3 = vld [vmem:[#allocation7 + $0x19b8] sm:$0xff] }
 0x5f0   :  { %10815 = vmatprep.subr.bf16.mxu0 %v12863_v45  ;;  %v1525_v45 = vld [vmem:[#allocation7 + $0x1850] sm:$0xff] }
 0x5f1   :  { %v12916_v57 = vcombine.low %v1525_v45, %v1529_v32 }
 0x5f2   :  { %10365 = vmatpush1.bf16.msra.mxu1 %v12860_v31  ;;  %v12910_v31 = vcombine.low %v1518_v36, %v1522_v38 }
 0x5f3   :  { %10816 = vmatpush1.bf16.msra.mxu0 %v12862_v51  ;;  %10366 = vmatprep.subr.bf16.mxu1 %v12869_v55  ;;  %v12917_v51 = vcombine.high %v1525_v45, %v1529_v32  ;;  %v1533_v55 = vld [vmem:[#allocation7 + $0x1890] sm:$0xff]  ;;  %v1578_v45 = vld [vmem:[#allocation7 + $0x19f8] sm:$0xff] }
 0x5f4   :  { %10817 = vmatprep.subr.bf16.mxu0 %v12871_v56  ;;  %v1537_v56 = vld [vmem:[#allocation7 + $0x18b0] sm:$0xff] }
 0x5f5   :  { %v12924_v6 = vcombine.low %v1533_v55, %v1537_v56 }
 0x5f6   :  { %10367 = vmatpush1.bf16.msra.mxu1 %v12868_v21  ;;  %v12918_v21 = vcombine.low %v1526_v49, %v1530_v50 }
 0x5f7   :  { %10818 = vmatpush1.bf16.msra.mxu0 %v12870_v59  ;;  %10368 = vmatprep.subr.bf16.mxu1 %v12877_v61  ;;  %v12925_v59 = vcombine.high %v1533_v55, %v1537_v56  ;;  %v12927_v61 = vcombine.high %v1534_v39, %v1538_v46  ;;  %v1582_v55 = vld [vmem:[#allocation7 + $0x1a18] sm:$0xff] }
 0x5f8   :  { %10819 = vmatprep.subr.bf16.mxu0 %v12879_v54  ;;  %v1541_v54 = vld [vmem:[#allocation7 + $0x18d0] sm:$0xff]  ;;  %v1586_v56 = vld [vmem:[#allocation7 + $0x1a38] sm:$0xff] }
 0x5fa   :  { %10369 = vmatpush1.bf16.msra.mxu1 %v12876_v8  ;;  %v12933_v8 = vcombine.high %v1541_v54, %v1545_v2 }
 0x5fb   :  { %10820 = vmatpush1.bf16.msra.mxu0 %v12878_v17  ;;  %10370 = vmatprep.subr.bf16.mxu1 %v12885_v11  ;;  %v12935_v17 = vcombine.high %v1542_v47, %v1546_v4  ;;  %v1549_v11 = vld [vmem:[#allocation7 + $0x1910] sm:$0xff]  ;;  %v12974_v47 = vcombine.low %v1582_v55, %v1586_v56 }
 0x5fc   :  { %10821 = vmatprep.subr.bf16.mxu0 %v12887_v63  ;;  %v1553_v63 = vld [vmem:[#allocation7 + $0x1930] sm:$0xff] }
 0x5fd   :  { %v12941_v52 = vcombine.high %v1549_v11, %v1553_v63  ;;  %v12940_v27 = vcombine.low %v1549_v11, %v1553_v63  ;;  %v1602_v11 = vld [vmem:[#allocation7 + $0x1ab8] sm:$0xff] }
 0x5fe   :  { %10371 = vmatpush1.bf16.msra.mxu1 %v12884_v15  ;;  %v12943_v15 = vcombine.high %v1550_v10, %v1554_v24 }
 0x5ff   :  { %10822 = vmatpush1.bf16.msra.mxu0 %v12886_v16  ;;  %10372 = vmatprep.subr.bf16.mxu1 %v12893_v23  ;;  %v1557_v16 = vld [vmem:[#allocation7 + $0x1950] sm:$0xff] }
 0x600   :  { %10823 = vmatprep.subr.bf16.mxu0 %v12895_v37  ;;  %v1561_v23 = vld [vmem:[#allocation7 + $0x1970] sm:$0xff]  ;;  %v1558_v37 = vld [vmem:[#allocation7 + $0x1958] sm:$0xff] }
 0x601   :  { %v12949_v28 = vcombine.high %v1557_v16, %v1561_v23  ;;  %v12948_v53 = vcombine.low %v1557_v16, %v1561_v23  ;;  %v12950_v36 = vcombine.low %v1558_v37, %v1562_v26  ;;  %v1610_v16 = vld [vmem:[#allocation7 + $0x1af8] sm:$0xff] }
 0x602   :  { %10373 = vmatpush1.bf16.msra.mxu1 %v12892_v30  ;;  %v12951_v30 = vcombine.high %v1558_v37, %v1562_v26 }
 0x603   :  { %10824 = vmatpush1.bf16.msra.mxu0 %v12894_v0  ;;  %10374 = vmatprep.subr.bf16.mxu1 %v12901_v33  ;;  %v1565_v0 = vld [vmem:[#allocation7 + $0x1990] sm:$0xff] }
 0x604   :  { %10825 = vmatprep.subr.bf16.mxu0 %v12903_v62  ;;  %v1569_v33 = vld [vmem:[#allocation7 + $0x19b0] sm:$0xff]  ;;  %v1566_v62 = vld [vmem:[#allocation7 + $0x1998] sm:$0xff] }
 0x605   :  { %v12957_v38 = vcombine.high %v1565_v0, %v1569_v33  ;;  %v12956_v32 = vcombine.low %v1565_v0, %v1569_v33  ;;  %v1618_v0 = vld [vmem:[#allocation7 + $0x1b38] sm:$0xff] }
 0x606   :  { %10375 = vmatpush1.bf16.msra.mxu1 %v12900_v7  ;;  %v12959_v7 = vcombine.high %v1566_v62, %v1570_v3 }
 0x607   :  { %10826 = vmatpush1.bf16.msra.mxu0 %v12902_v40  ;;  %10385 = vmatprep.subr.bf16.mxu1 %v12909_v5  ;;  %v1573_v40 = vld [vmem:[#allocation7 + $0x19d0] sm:$0xff] }
 0x608   :  { %10836 = vmatprep.subr.bf16.mxu0 %v12911_v44  ;;  %v1577_v5 = vld [vmem:[#allocation7 + $0x19f0] sm:$0xff]  ;;  %v1574_v44 = vld [vmem:[#allocation7 + $0x19d8] sm:$0xff] }
 0x609   :  { %10377 = vmatmul.mubr.bf16.vlgmr.msra.gmra.mrb[4].mxu1 %v15061_v9  ;;  %v12965_v49 = vcombine.high %v1573_v40, %v1577_v5  ;;  %v12967_v50 = vcombine.high %v1574_v44, %v1578_v45 }
 0x60a   :  { %10828 = vmatmul.mubr.bf16.vlgmr.msra.gmra.mrb[48].mxu0 %v15061_v9  ;;  %10386 = vmatpush1.bf16.msra.mxu1 %v12908_v13  ;;  %v12926_v9 = vcombine.low %v1534_v39, %v1538_v46  ;;  %v12958_v13 = vcombine.low %v1566_v62, %v1570_v3  ;;  %v12966_v39 = vcombine.low %v1574_v44, %v1578_v45 }
 0x60b   :  { %10417 = vmatprep.mubr.bf16.mxu1 %v15063_v14  ;;  %10837 = vmatpush1.bf16.msra.mxu0 %v12910_v31  ;;  %v1581_v31 = vld [vmem:[#allocation7 + $0x1a10] sm:$0xff] }
 0x60c   :  { %10868 = vmatprep.mubr.bf16.mxu0 %v15063_v14  ;;  %10387 = vmatprep.subr.bf16.mxu1 %v12917_v51  ;;  %v12932_v14 = vcombine.low %v1541_v54, %v1545_v2  ;;  %v1585_v51 = vld [vmem:[#allocation7 + $0x1a30] sm:$0xff]  ;;  %v1594_v54 = vld [vmem:[#allocation7 + $0x1a78] sm:$0xff] }
 0x60d   :  { %10838 = vmatprep.subr.bf16.mxu0 %v12919_v20  ;;  %v12964_v20 = vcombine.low %v1573_v40, %v1577_v5  ;;  %v12973_v46 = vcombine.high %v1581_v31, %v1585_v51  ;;  %v12972_v2 = vcombine.low %v1581_v31, %v1585_v51  ;;  %v1626_v40 = vld [vmem:[#allocation7 + $0x1b78] sm:$0xff] }
 0x60e   :  { %10388 = vmatpush1.bf16.msra.mxu1 %v12916_v57  ;;  %v12975_v57 = vcombine.high %v1582_v55, %v1586_v56  ;;  %v1634_v31 = vld [vmem:[#allocation7 + $0x1bb8] sm:$0xff] }
 0x60f   :  { %10839 = vmatpush1.bf16.msra.mxu0 %v12918_v21  ;;  %10389 = vmatprep.subr.bf16.mxu1 %v12925_v59  ;;  %v1589_v21 = vld [vmem:[#allocation7 + $0x1a50] sm:$0xff] }
 0x610   :  { %10840 = vmatprep.subr.bf16.mxu0 %v12927_v61  ;;  %v1593_v59 = vld [vmem:[#allocation7 + $0x1a70] sm:$0xff]  ;;  %v1590_v61 = vld [vmem:[#allocation7 + $0x1a58] sm:$0xff] }
 0x611   :  { %v12981_v4 = vcombine.high %v1589_v21, %v1593_v59  ;;  %v12980_v63 = vcombine.low %v1589_v21, %v1593_v59  ;;  %v12982_v10 = vcombine.low %v1590_v61, %v1594_v54  ;;  %v1642_v21 = vld [vmem:[#allocation7 + $0x1bf8] sm:$0xff] }
 0x612   :  { %10390 = vmatpush1.bf16.msra.mxu1 %v12924_v6  ;;  %v12983_v6 = vcombine.high %v1590_v61, %v1594_v54 }
 0x613   :  { %10841 = vmatpush1.bf16.msra.mxu0 %v12926_v9  ;;  %10391 = vmatprep.subr.bf16.mxu1 %v12933_v8  ;;  %v1597_v9 = vld [vmem:[#allocation7 + $0x1a90] sm:$0xff] }
 0x614   :  { %10842 = vmatprep.subr.bf16.mxu0 %v12935_v17  ;;  %v1601_v8 = vld [vmem:[#allocation7 + $0x1ab0] sm:$0xff]  ;;  %v1598_v17 = vld [vmem:[#allocation7 + $0x1a98] sm:$0xff] }
 0x615   :  { %v12989_v24 = vcombine.high %v1597_v9, %v1601_v8  ;;  %v12988_v23 = vcombine.low %v1597_v9, %v1601_v8  ;;  %v12990_v37 = vcombine.low %v1598_v17, %v1602_v11  ;;  %v1650_v9 = vld [vmem:[#allocation7 + $0x1c38] sm:$0xff] }
 0x616   :  { %10392 = vmatpush1.bf16.msra.mxu1 %v12932_v14  ;;  %v12991_v14 = vcombine.high %v1598_v17, %v1602_v11 }
 0x617   :  { %10843 = vmatpush1.bf16.msra.mxu0 %v12934_v12  ;;  %10393 = vmatprep.subr.bf16.mxu1 %v12941_v52  ;;  %v1605_v12 = vld [vmem:[#allocation7 + $0x1ad0] sm:$0xff] }
 0x618   :  { %10844 = vmatprep.subr.bf16.mxu0 %v12943_v15  ;;  %v1609_v52 = vld [vmem:[#allocation7 + $0x1af0] sm:$0xff]  ;;  %v1606_v15 = vld [vmem:[#allocation7 + $0x1ad8] sm:$0xff] }
 0x619   :  { %v12997_v26 = vcombine.high %v1605_v12, %v1609_v52  ;;  %v12996_v33 = vcombine.low %v1605_v12, %v1609_v52  ;;  %v12998_v62 = vcombine.low %v1606_v15, %v1610_v16  ;;  %v1654_v12 = vld [vmem:[#allocation7 + $0x1c58] sm:$0xff] }
 0x61a   :  { %10394 = vmatpush1.bf16.msra.mxu1 %v12940_v27  ;;  %v12999_v27 = vcombine.high %v1606_v15, %v1610_v16  ;;  %v1658_v52 = vld [vmem:[#allocation7 + $0x1c78] sm:$0xff] }
 0x61b   :  { %10845 = vmatpush1.bf16.msra.mxu0 %v12942_v22  ;;  %10395 = vmatprep.subr.bf16.mxu1 %v12949_v28  ;;  %v1613_v22 = vld [vmem:[#allocation7 + $0x1b10] sm:$0xff] }
 0x61c   :  { %10846 = vmatprep.subr.bf16.mxu0 %v12951_v30  ;;  %v1617_v28 = vld [vmem:[#allocation7 + $0x1b30] sm:$0xff]  ;;  %v1614_v30 = vld [vmem:[#allocation7 + $0x1b18] sm:$0xff] }
 0x61d   :  { %v13005_v3 = vcombine.high %v1613_v22, %v1617_v28  ;;  %v13004_v5 = vcombine.low %v1613_v22, %v1617_v28  ;;  %v13006_v44 = vcombine.low %v1614_v30, %v1618_v0  ;;  %v1666_v22 = vld [vmem:[#allocation7 + $0x1cb8] sm:$0xff] }
 0x61e   :  { %10396 = vmatpush1.bf16.msra.mxu1 %v12948_v53  ;;  %v13007_v53 = vcombine.high %v1614_v30, %v1618_v0  ;;  %v13046_v30 = vcombine.low %v1654_v12, %v1658_v52 }
 0x61f   :  { %10847 = vmatpush1.bf16.msra.mxu0 %v12950_v36  ;;  %10397 = vmatprep.subr.bf16.mxu1 %v12957_v38  ;;  %v1621_v36 = vld [vmem:[#allocation7 + $0x1b50] sm:$0xff] }
 0x620   :  { %10848 = vmatprep.subr.bf16.mxu0 %v12959_v7  ;;  %v1625_v38 = vld [vmem:[#allocation7 + $0x1b70] sm:$0xff]  ;;  %v1622_v7 = vld [vmem:[#allocation7 + $0x1b58] sm:$0xff] }
 0x621   :  { %v13013_v45 = vcombine.high %v1621_v36, %v1625_v38  ;;  %v13012_v51 = vcombine.low %v1621_v36, %v1625_v38  ;;  %v13014_v55 = vcombine.low %v1622_v7, %v1626_v40  ;;  %v1674_v36 = vld [vmem:[#allocation7 + $0x1cf8] sm:$0xff] }
 0x622   :  { %10398 = vmatpush1.bf16.msra.mxu1 %v12956_v32  ;;  %v13015_v32 = vcombine.high %v1622_v7, %v1626_v40 }
 0x623   :  { %10849 = vmatpush1.bf16.msra.mxu0 %v12958_v13  ;;  %10399 = vmatprep.subr.bf16.mxu1 %v12965_v49  ;;  %v1629_v13 = vld [vmem:[#allocation7 + $0x1b90] sm:$0xff] }
 0x624   :  { %10850 = vmatprep.subr.bf16.mxu0 %v12967_v50  ;;  %v1633_v49 = vld [vmem:[#allocation7 + $0x1bb0] sm:$0xff]  ;;  %v1630_v50 = vld [vmem:[#allocation7 + $0x1b98] sm:$0xff] }
 0x625   :  { %v13021_v56 = vcombine.high %v1629_v13, %v1633_v49  ;;  %v13020_v59 = vcombine.low %v1629_v13, %v1633_v49  ;;  %v13022_v61 = vcombine.low %v1630_v50, %v1634_v31 }
 0x626   :  { %10400 = vmatpush1.bf16.msra.mxu1 %v12964_v20  ;;  %v13023_v20 = vcombine.high %v1630_v50, %v1634_v31  ;;  %v1685_v31 = vld [vmem:[#allocation7 + $0x1d50] sm:$0xff] }
 0x627   :  { %10851 = vmatpush1.bf16.msra.mxu0 %v12966_v39  ;;  %10401 = vmatprep.subr.bf16.mxu1 %v12973_v46  ;;  %v1637_v39 = vld [vmem:[#allocation7 + $0x1bd0] sm:$0xff] }
 0x628   :  { %10852 = vmatprep.subr.bf16.mxu0 %v12975_v57  ;;  %v1641_v46 = vld [vmem:[#allocation7 + $0x1bf0] sm:$0xff]  ;;  %v1638_v57 = vld [vmem:[#allocation7 + $0x1bd8] sm:$0xff] }
 0x629   :  { %v13029_v54 = vcombine.high %v1637_v39, %v1641_v46  ;;  %v13028_v8 = vcombine.low %v1637_v39, %v1641_v46  ;;  %v13030_v17 = vcombine.low %v1638_v57, %v1642_v21 }
 0x62a   :  { %10402 = vmatpush1.bf16.msra.mxu1 %v12972_v2  ;;  %v13031_v2 = vcombine.high %v1638_v57, %v1642_v21  ;;  %v1693_v21 = vld [vmem:[#allocation7 + $0x1d90] sm:$0xff] }
 0x62b   :  { %10853 = vmatpush1.bf16.msra.mxu0 %v12974_v47  ;;  %10403 = vmatprep.subr.bf16.mxu1 %v12981_v4  ;;  %v1645_v47 = vld [vmem:[#allocation7 + $0x1c10] sm:$0xff] }
 0x62c   :  { %10854 = vmatprep.subr.bf16.mxu0 %v12983_v6  ;;  %v1649_v4 = vld [vmem:[#allocation7 + $0x1c30] sm:$0xff]  ;;  %v1646_v6 = vld [vmem:[#allocation7 + $0x1c18] sm:$0xff] }
 0x62d   :  { %v13037_v11 = vcombine.high %v1645_v47, %v1649_v4  ;;  %v13038_v15 = vcombine.low %v1646_v6, %v1650_v9 }
 0x62e   :  { %10404 = vmatpush1.bf16.msra.mxu1 %v12980_v63  ;;  %v13039_v63 = vcombine.high %v1646_v6, %v1650_v9  ;;  %v1701_v9 = vld [vmem:[#allocation7 + $0x1dd0] sm:$0xff] }
 0x62f   :  { %10855 = vmatpush1.bf16.msra.mxu0 %v12982_v10  ;;  %10405 = vmatprep.subr.bf16.mxu1 %v12989_v24  ;;  %v1653_v10 = vld [vmem:[#allocation7 + $0x1c50] sm:$0xff] }
 0x630   :  { %10856 = vmatprep.subr.bf16.mxu0 %v12991_v14  ;;  %v1657_v24 = vld [vmem:[#allocation7 + $0x1c70] sm:$0xff]  ;;  %v13036_v14 = vcombine.low %v1645_v47, %v1649_v4 }
 0x631   :  { %v13045_v16 = vcombine.high %v1653_v10, %v1657_v24  ;;  %v13044_v28 = vcombine.low %v1653_v10, %v1657_v24 }
 0x632   :  { %10406 = vmatpush1.bf16.msra.mxu1 %v12988_v23  ;;  %v1661_v23 = vld [vmem:[#allocation7 + $0x1c90] sm:$0xff] }
 0x633   :  { %10857 = vmatpush1.bf16.msra.mxu0 %v12990_v37  ;;  %10407 = vmatprep.subr.bf16.mxu1 %v12997_v26  ;;  %v1665_v37 = vld [vmem:[#allocation7 + $0x1cb0] sm:$0xff]  ;;  %v13047_v26 = vcombine.high %v1654_v12, %v1658_v52 }
 0x634   :  { %10858 = vmatprep.subr.bf16.mxu0 %v12999_v27  ;;  %v1662_v27 = vld [vmem:[#allocation7 + $0x1c98] sm:$0xff]  ;;  %v13053_v0 = vcombine.high %v1661_v23, %v1665_v37  ;;  %v13052_v38 = vcombine.low %v1661_v23, %v1665_v37  ;;  %v1709_v12 = vld [vmem:[#allocation7 + $0x1e10] sm:$0xff] }
 0x635   :  { %v1713_v52 = vld [vmem:[#allocation7 + $0x1e30] sm:$0xff] }
 0x636   :  { %10408 = vmatpush1.bf16.msra.mxu1 %v12996_v33  ;;  %v13055_v33 = vcombine.high %v1662_v27, %v1666_v22 }
 0x637   :  { %10859 = vmatpush1.bf16.msra.mxu0 %v12998_v62  ;;  %10409 = vmatprep.subr.bf16.mxu1 %v13005_v3  ;;  %v1669_v62 = vld [vmem:[#allocation7 + $0x1cd0] sm:$0xff] }
 0x638   :  { %10860 = vmatprep.subr.bf16.mxu0 %v13007_v53  ;;  %v1673_v3 = vld [vmem:[#allocation7 + $0x1cf0] sm:$0xff]  ;;  %v1670_v53 = vld [vmem:[#allocation7 + $0x1cd8] sm:$0xff] }
 0x639   :  { %v13061_v7 = vcombine.high %v1669_v62, %v1673_v3  ;;  %v13063_v40 = vcombine.high %v1670_v53, %v1674_v36  ;;  %v13062_v13 = vcombine.low %v1670_v53, %v1674_v36  ;;  %v1725_v36 = vld [vmem:[#allocation7 + $0x1e90] sm:$0xff] }
 0x63a   :  { %10410 = vmatpush1.bf16.msra.mxu1 %v13004_v5  ;;  %v1677_v5 = vld [vmem:[#allocation7 + $0x1d10] sm:$0xff] }
 0x63b   :  { %10861 = vmatpush1.bf16.msra.mxu0 %v13006_v44  ;;  %10411 = vmatprep.subr.bf16.mxu1 %v13013_v45  ;;  %v1681_v44 = vld [vmem:[#allocation7 + $0x1d30] sm:$0xff]  ;;  %v1678_v45 = vld [vmem:[#allocation7 + $0x1d18] sm:$0xff] }
 0x63c   :  { %10862 = vmatprep.subr.bf16.mxu0 %v13015_v32  ;;  %v1682_v32 = vld [vmem:[#allocation7 + $0x1d38] sm:$0xff]  ;;  %v13069_v49 = vcombine.high %v1677_v5, %v1681_v44 }
 0x63d   :  { %v13071_v50 = vcombine.high %v1678_v45, %v1682_v32  ;;  %v13070_v39 = vcombine.low %v1678_v45, %v1682_v32  ;;  %v1733_v32 = vld [vmem:[#allocation7 + $0x1ed0] sm:$0xff] }
 0x63e   :  { %10412 = vmatpush1.bf16.msra.mxu1 %v13012_v51  ;;  %v1689_v51 = vld [vmem:[#allocation7 + $0x1d70] sm:$0xff] }
 0x63f   :  { %10863 = vmatpush1.bf16.msra.mxu0 %v13014_v55  ;;  %10413 = vmatprep.subr.bf16.mxu1 %v13021_v56  ;;  %v1686_v55 = vld [vmem:[#allocation7 + $0x1d58] sm:$0xff]  ;;  %v13077_v46 = vcombine.high %v1685_v31, %v1689_v51 }
 0x640   :  { %10864 = vmatprep.subr.bf16.mxu0 %v13023_v20  ;;  %v1690_v56 = vld [vmem:[#allocation7 + $0x1d78] sm:$0xff]  ;;  %v13068_v20 = vcombine.low %v1677_v5, %v1681_v44 }
 0x641   :  { %v13079_v57 = vcombine.high %v1686_v55, %v1690_v56  ;;  %v13078_v47 = vcombine.low %v1686_v55, %v1690_v56  ;;  %v1741_v56 = vld [vmem:[#allocation7 + $0x1f10] sm:$0xff] }
 0x642   :  { %10414 = vmatpush1.bf16.msra.mxu1 %v13020_v59  ;;  %v1697_v59 = vld [vmem:[#allocation7 + $0x1db0] sm:$0xff] }
 0x643   :  { %10865 = vmatpush1.bf16.msra.mxu0 %v13022_v61  ;;  %10415 = vmatprep.subr.bf16.mxu1 %v13029_v54  ;;  %v1694_v61 = vld [vmem:[#allocation7 + $0x1d98] sm:$0xff]  ;;  %v13085_v4 = vcombine.high %v1693_v21, %v1697_v59 }
 0x644   :  { %10866 = vmatprep.subr.bf16.mxu0 %v13031_v2  ;;  %v1698_v54 = vld [vmem:[#allocation7 + $0x1db8] sm:$0xff]  ;;  %v13076_v2 = vcombine.low %v1685_v31, %v1689_v51 }
 0x645   :  { %v13087_v6 = vcombine.high %v1694_v61, %v1698_v54  ;;  %v13086_v10 = vcombine.low %v1694_v61, %v1698_v54  ;;  %v1749_v54 = vld [vmem:[#allocation7 + $0x1f50] sm:$0xff] }
 0x646   :  { %10416 = vmatpush1.bf16.msra.mxu1 %v13028_v8  ;;  %v1705_v8 = vld [vmem:[#allocation7 + $0x1df0] sm:$0xff] }
 0x647   :  { %10867 = vmatpush1.bf16.msra.mxu0 %v13030_v17  ;;  %10426 = vmatprep.subr.bf16.mxu1 %v13037_v11  ;;  %v1702_v17 = vld [vmem:[#allocation7 + $0x1dd8] sm:$0xff]  ;;  %v13093_v24 = vcombine.high %v1701_v9, %v1705_v8  ;;  %v13092_v23 = vcombine.low %v1701_v9, %v1705_v8 }
 0x648   :  { %10877 = vmatprep.subr.bf16.mxu0 %v13039_v63  ;;  %v1706_v11 = vld [vmem:[#allocation7 + $0x1df8] sm:$0xff]  ;;  %v13084_v63 = vcombine.low %v1693_v21, %v1697_v59 }
 0x649   :  { %10418 = vmatmul.mubr.bf16.vlgmr.msra.gmra.mrb[4].mxu1 %v15071_v25  ;;  %v13094_v37 = vcombine.low %v1702_v17, %v1706_v11 }
 0x64a   :  { %10869 = vmatmul.mubr.bf16.vlgmr.msra.gmra.mrb[48].mxu0 %v15071_v25  ;;  %10427 = vmatpush1.bf16.msra.mxu1 %v13036_v14  ;;  %v13054_v25 = vcombine.low %v1662_v27, %v1666_v22  ;;  %v13095_v14 = vcombine.high %v1702_v17, %v1706_v11  ;;  %v1717_v22 = vld [vmem:[#allocation7 + $0x1e50] sm:$0xff] }
 0x64b   :  { %10458 = vmatprep.mubr.bf16.mxu1 %v15073_v41  ;;  %10878 = vmatpush1.bf16.msra.mxu0 %v13038_v15  ;;  %v1710_v15 = vld [vmem:[#allocation7 + $0x1e18] sm:$0xff]  ;;  %v1757_v11 = vld [vmem:[#allocation7 + $0x1f90] sm:$0xff] }
 0x64c   :  { %10909 = vmatprep.mubr.bf16.mxu0 %v15073_v41  ;;  %10428 = vmatprep.subr.bf16.mxu1 %v13045_v16  ;;  %v13060_v41 = vcombine.low %v1669_v62, %v1673_v3  ;;  %v1714_v16 = vld [vmem:[#allocation7 + $0x1e38] sm:$0xff] }
 0x64d   :  { %10879 = vmatprep.subr.bf16.mxu0 %v13047_v26  ;;  %v13101_v26 = vcombine.high %v1709_v12, %v1713_v52  ;;  %v13103_v27 = vcombine.high %v1710_v15, %v1714_v16  ;;  %v13102_v62 = vcombine.low %v1710_v15, %v1714_v16  ;;  %v1765_v16 = vld [vmem:[#allocation7 + $0x1fd0] sm:$0xff] }
 0x64e   :  { %10429 = vmatpush1.bf16.msra.mxu1 %v13044_v28  ;;  %v1721_v28 = vld [vmem:[#allocation7 + $0x1e70] sm:$0xff] }
 0x64f   :  { %10880 = vmatpush1.bf16.msra.mxu0 %v13046_v30  ;;  %10430 = vmatprep.subr.bf16.mxu1 %v13053_v0  ;;  %v1718_v30 = vld [vmem:[#allocation7 + $0x1e58] sm:$0xff]  ;;  %v13109_v3 = vcombine.high %v1717_v22, %v1721_v28 }
 0x650   :  { %10881 = vmatprep.subr.bf16.mxu0 %v13055_v33  ;;  %v1722_v0 = vld [vmem:[#allocation7 + $0x1e78] sm:$0xff]  ;;  %v13100_v33 = vcombine.low %v1709_v12, %v1713_v52 }
 0x651   :  { %v13111_v53 = vcombine.high %v1718_v30, %v1722_v0  ;;  %v13110_v5 = vcombine.low %v1718_v30, %v1722_v0  ;;  %v1773_v0 = vld [vmem:[#allocation7 + $0x2010] sm:$0xff] }
 0x652   :  { %10431 = vmatpush1.bf16.msra.mxu1 %v13052_v38  ;;  %v1729_v38 = vld [vmem:[#allocation7 + $0x1eb0] sm:$0xff] }
 0x653   :  { %10882 = vmatpush1.bf16.msra.mxu0 %v13054_v25  ;;  %10432 = vmatprep.subr.bf16.mxu1 %v13061_v7  ;;  %v1726_v25 = vld [vmem:[#allocation7 + $0x1e98] sm:$0xff]  ;;  %v13117_v44 = vcombine.high %v1725_v36, %v1729_v38 }
 0x654   :  { %10883 = vmatprep.subr.bf16.mxu0 %v13063_v40  ;;  %v1730_v7 = vld [vmem:[#allocation7 + $0x1eb8] sm:$0xff]  ;;  %v13108_v40 = vcombine.low %v1717_v22, %v1721_v28 }
 0x655   :  { %v13119_v45 = vcombine.high %v1726_v25, %v1730_v7  ;;  %v13118_v31 = vcombine.low %v1726_v25, %v1730_v7  ;;  %v1781_v7 = vld [vmem:[#allocation7 + $0x2050] sm:$0xff] }
 0x656   :  { %10433 = vmatpush1.bf16.msra.mxu1 %v13060_v41  ;;  %v1737_v41 = vld [vmem:[#allocation7 + $0x1ef0] sm:$0xff] }
 0x657   :  { %10884 = vmatpush1.bf16.msra.mxu0 %v13062_v13  ;;  %10434 = vmatprep.subr.bf16.mxu1 %v13069_v49  ;;  %v1734_v13 = vld [vmem:[#allocation7 + $0x1ed8] sm:$0xff]  ;;  %v13125_v51 = vcombine.high %v1733_v32, %v1737_v41 }
 0x658   :  { %10885 = vmatprep.subr.bf16.mxu0 %v13071_v50  ;;  %v1738_v49 = vld [vmem:[#allocation7 + $0x1ef8] sm:$0xff]  ;;  %v13116_v50 = vcombine.low %v1725_v36, %v1729_v38 }
 0x659   :  { %v13127_v55 = vcombine.high %v1734_v13, %v1738_v49  ;;  %v13126_v21 = vcombine.low %v1734_v13, %v1738_v49  ;;  %v1789_v13 = vld [vmem:[#allocation7 + $0x2090] sm:$0xff] }
 0x65a   :  { %10435 = vmatpush1.bf16.msra.mxu1 %v13068_v20  ;;  %v1745_v20 = vld [vmem:[#allocation7 + $0x1f30] sm:$0xff] }
 0x65b   :  { %10886 = vmatpush1.bf16.msra.mxu0 %v13070_v39  ;;  %10436 = vmatprep.subr.bf16.mxu1 %v13077_v46  ;;  %v1742_v39 = vld [vmem:[#allocation7 + $0x1f18] sm:$0xff]  ;;  %v13133_v59 = vcombine.high %v1741_v56, %v1745_v20  ;;  %v1793_v49 = vld [vmem:[#allocation7 + $0x20b0] sm:$0xff] }
 0x65c   :  { %10887 = vmatprep.subr.bf16.mxu0 %v13079_v57  ;;  %v1746_v46 = vld [vmem:[#allocation7 + $0x1f38] sm:$0xff]  ;;  %v13124_v57 = vcombine.low %v1733_v32, %v1737_v41 }
 0x65d   :  { %v13135_v61 = vcombine.high %v1742_v39, %v1746_v46  ;;  %v13134_v9 = vcombine.low %v1742_v39, %v1746_v46  ;;  %v1797_v46 = vld [vmem:[#allocation7 + $0x20d0] sm:$0xff] }
 0x65e   :  { %10437 = vmatpush1.bf16.msra.mxu1 %v13076_v2  ;;  %v1753_v2 = vld [vmem:[#allocation7 + $0x1f70] sm:$0xff] }
 0x65f   :  { %10888 = vmatpush1.bf16.msra.mxu0 %v13078_v47  ;;  %10438 = vmatprep.subr.bf16.mxu1 %v13085_v4  ;;  %v1750_v47 = vld [vmem:[#allocation7 + $0x1f58] sm:$0xff]  ;;  %v13141_v8 = vcombine.high %v1749_v54, %v1753_v2 }
 0x660   :  { %10889 = vmatprep.subr.bf16.mxu0 %v13087_v6  ;;  %v1754_v4 = vld [vmem:[#allocation7 + $0x1f78] sm:$0xff]  ;;  %v13132_v6 = vcombine.low %v1741_v56, %v1745_v20  ;;  %v13181_v20 = vcombine.high %v1789_v13, %v1793_v49 }
 0x661   :  { %v13143_v17 = vcombine.high %v1750_v47, %v1754_v4  ;;  %v13142_v12 = vcombine.low %v1750_v47, %v1754_v4  ;;  %v1805_v47 = vld [vmem:[#allocation7 + $0x2110] sm:$0xff] }
 0x662   :  { %10439 = vmatpush1.bf16.msra.mxu1 %v13084_v63  ;;  %v1761_v63 = vld [vmem:[#allocation7 + $0x1fb0] sm:$0xff] }
 0x663   :  { %10890 = vmatpush1.bf16.msra.mxu0 %v13086_v10  ;;  %10440 = vmatprep.subr.bf16.mxu1 %v13093_v24  ;;  %v1758_v10 = vld [vmem:[#allocation7 + $0x1f98] sm:$0xff]  ;;  %v13149_v52 = vcombine.high %v1757_v11, %v1761_v63  ;;  %v1809_v4 = vld [vmem:[#allocation7 + $0x2130] sm:$0xff] }
 0x664   :  { %10891 = vmatprep.subr.bf16.mxu0 %v13095_v14  ;;  %v1762_v24 = vld [vmem:[#allocation7 + $0x1fb8] sm:$0xff]  ;;  %v13140_v14 = vcombine.low %v1749_v54, %v1753_v2 }
 0x665   :  { %v13151_v15 = vcombine.high %v1758_v10, %v1762_v24  ;;  %v13150_v22 = vcombine.low %v1758_v10, %v1762_v24  ;;  %v1817_v10 = vld [vmem:[#allocation7 + $0x2170] sm:$0xff]  ;;  %v1814_v24 = vld [vmem:[#allocation7 + $0x2158] sm:$0xff] }
 0x666   :  { %10441 = vmatpush1.bf16.msra.mxu1 %v13092_v23  ;;  %v1769_v23 = vld [vmem:[#allocation7 + $0x1ff0] sm:$0xff] }
 0x667   :  { %10892 = vmatpush1.bf16.msra.mxu0 %v13094_v37  ;;  %10442 = vmatprep.subr.bf16.mxu1 %v13101_v26  ;;  %v1766_v37 = vld [vmem:[#allocation7 + $0x1fd8] sm:$0xff]  ;;  %v13157_v28 = vcombine.high %v1765_v16, %v1769_v23 }
 0x668   :  { %10893 = vmatprep.subr.bf16.mxu0 %v13103_v27  ;;  %v1770_v26 = vld [vmem:[#allocation7 + $0x1ff8] sm:$0xff]  ;;  %v13148_v27 = vcombine.low %v1757_v11, %v1761_v63  ;;  %v1813_v63 = vld [vmem:[#allocation7 + $0x2150] sm:$0xff] }
 0x669   :  { %v13159_v30 = vcombine.high %v1766_v37, %v1770_v26  ;;  %v13158_v36 = vcombine.low %v1766_v37, %v1770_v26  ;;  %v1825_v37 = vld [vmem:[#allocation7 + $0x21b0] sm:$0xff]  ;;  %v1822_v26 = vld [vmem:[#allocation7 + $0x2198] sm:$0xff] }
 0x66a   :  { %10443 = vmatpush1.bf16.msra.mxu1 %v13100_v33  ;;  %v1777_v33 = vld [vmem:[#allocation7 + $0x2030] sm:$0xff] }
 0x66b   :  { %10894 = vmatpush1.bf16.msra.mxu0 %v13102_v62  ;;  %10444 = vmatprep.subr.bf16.mxu1 %v13109_v3  ;;  %v1774_v62 = vld [vmem:[#allocation7 + $0x2018] sm:$0xff]  ;;  %v13165_v38 = vcombine.high %v1773_v0, %v1777_v33 }
 0x66c   :  { %10895 = vmatprep.subr.bf16.mxu0 %v13111_v53  ;;  %v1778_v3 = vld [vmem:[#allocation7 + $0x2038] sm:$0xff]  ;;  %v13156_v53 = vcombine.low %v1765_v16, %v1769_v23  ;;  %v1821_v23 = vld [vmem:[#allocation7 + $0x2190] sm:$0xff] }
 0x66d   :  { %v13167_v25 = vcombine.high %v1774_v62, %v1778_v3  ;;  %v13166_v32 = vcombine.low %v1774_v62, %v1778_v3  ;;  %v1833_v62 = vld [vmem:[#allocation7 + $0x21f0] sm:$0xff]  ;;  %v1830_v3 = vld [vmem:[#allocation7 + $0x21d8] sm:$0xff] }
 0x66e   :  { %10445 = vmatpush1.bf16.msra.mxu1 %v13108_v40  ;;  %v1785_v40 = vld [vmem:[#allocation7 + $0x2070] sm:$0xff] }
 0x66f   :  { %10896 = vmatpush1.bf16.msra.mxu0 %v13110_v5  ;;  %10446 = vmatprep.subr.bf16.mxu1 %v13117_v44  ;;  %v13164_v5 = vcombine.low %v1773_v0, %v1777_v33  ;;  %v1782_v44 = vld [vmem:[#allocation7 + $0x2058] sm:$0xff]  ;;  %v13173_v41 = vcombine.high %v1781_v7, %v1785_v40  ;;  %v1829_v33 = vld [vmem:[#allocation7 + $0x21d0] sm:$0xff] }
 0x670   :  { %10897 = vmatprep.subr.bf16.mxu0 %v13119_v45  ;;  %v1786_v45 = vld [vmem:[#allocation7 + $0x2078] sm:$0xff] }
 0x671   :  { %v13174_v56 = vcombine.low %v1782_v44, %v1786_v45 }
 0x672   :  { %10447 = vmatpush1.bf16.msra.mxu1 %v13116_v50  ;;  %v13175_v50 = vcombine.high %v1782_v44, %v1786_v45  ;;  %v1838_v44 = vld [vmem:[#allocation7 + $0x2218] sm:$0xff] }
 0x673   :  { %10898 = vmatpush1.bf16.msra.mxu0 %v13118_v31  ;;  %10448 = vmatprep.subr.bf16.mxu1 %v13125_v51  ;;  %v1790_v31 = vld [vmem:[#allocation7 + $0x2098] sm:$0xff] }
 0x674   :  { %10899 = vmatprep.subr.bf16.mxu0 %v13127_v55  ;;  %v1794_v51 = vld [vmem:[#allocation7 + $0x20b8] sm:$0xff]  ;;  %v13172_v55 = vcombine.low %v1781_v7, %v1785_v40  ;;  %v1837_v40 = vld [vmem:[#allocation7 + $0x2210] sm:$0xff] }
 0x675   :  { %v13183_v39 = vcombine.high %v1790_v31, %v1794_v51  ;;  %v1842_v45 = vld [vmem:[#allocation7 + $0x2238] sm:$0xff] }
 0x676   :  { %10449 = vmatpush1.bf16.msra.mxu1 %v13124_v57  ;;  %v1801_v57 = vld [vmem:[#allocation7 + $0x20f0] sm:$0xff] }
 0x677   :  { %10900 = vmatpush1.bf16.msra.mxu0 %v13126_v21  ;;  %10450 = vmatprep.subr.bf16.mxu1 %v13133_v59  ;;  %v1798_v21 = vld [vmem:[#allocation7 + $0x20d8] sm:$0xff]  ;;  %v13189_v54 = vcombine.high %v1797_v46, %v1801_v57 }
 0x678   :  { %10901 = vmatprep.subr.bf16.mxu0 %v13135_v61  ;;  %v1802_v59 = vld [vmem:[#allocation7 + $0x20f8] sm:$0xff]  ;;  %v13180_v61 = vcombine.low %v1789_v13, %v1793_v49  ;;  %v13231_v49 = vcombine.high %v1838_v44, %v1842_v45 }
 0x679   :  { %v13191_v2 = vcombine.high %v1798_v21, %v1802_v59 }
 0x67a   :  { %10451 = vmatpush1.bf16.msra.mxu1 %v13132_v6  ;;  %v1806_v6 = vld [vmem:[#allocation7 + $0x2118] sm:$0xff] }
 0x67b   :  { %10902 = vmatpush1.bf16.msra.mxu0 %v13134_v9  ;;  %10452 = vmatprep.subr.bf16.mxu1 %v13141_v8  ;;  %v1810_v9 = vld [vmem:[#allocation7 + $0x2138] sm:$0xff]  ;;  %v13190_v8 = vcombine.low %v1798_v21, %v1802_v59  ;;  %v1857_v21 = vld [vmem:[#allocation7 + $0x22b0] sm:$0xff] }
 0x67c   :  { %10903 = vmatprep.subr.bf16.mxu0 %v13143_v17  ;;  %v13197_v17 = vcombine.high %v1805_v47, %v1809_v4  ;;  %v13199_v11 = vcombine.high %v1806_v6, %v1810_v9  ;;  %v1854_v59 = vld [vmem:[#allocation7 + $0x2298] sm:$0xff] }
 0x67e   :  { %10453 = vmatpush1.bf16.msra.mxu1 %v13140_v14  ;;  %v1818_v14 = vld [vmem:[#allocation7 + $0x2178] sm:$0xff] }
 0x67f   :  { %10904 = vmatpush1.bf16.msra.mxu0 %v13142_v12  ;;  %10454 = vmatprep.subr.bf16.mxu1 %v13149_v52  ;;  %v13196_v12 = vcombine.low %v1805_v47, %v1809_v4  ;;  %v13198_v52 = vcombine.low %v1806_v6, %v1810_v9  ;;  %v13207_v16 = vcombine.high %v1814_v24, %v1818_v14  ;;  %v1861_v4 = vld [vmem:[#allocation7 + $0x22d0] sm:$0xff]  ;;  %v1862_v9 = vld [vmem:[#allocation7 + $0x22d8] sm:$0xff] }
 0x680   :  { %10905 = vmatprep.subr.bf16.mxu0 %v13151_v15  ;;  %v13205_v15 = vcombine.high %v1813_v63, %v1817_v10  ;;  %v1865_v6 = vld [vmem:[#allocation7 + $0x22f0] sm:$0xff] }
 0x682   :  { %10455 = vmatpush1.bf16.msra.mxu1 %v13148_v27  ;;  %v1826_v27 = vld [vmem:[#allocation7 + $0x21b8] sm:$0xff] }
 0x683   :  { %10906 = vmatpush1.bf16.msra.mxu0 %v13150_v22  ;;  %10456 = vmatprep.subr.bf16.mxu1 %v13157_v28  ;;  %v13204_v22 = vcombine.low %v1813_v63, %v1817_v10  ;;  %v13206_v28 = vcombine.low %v1814_v24, %v1818_v14  ;;  %v13215_v0 = vcombine.high %v1822_v26, %v1826_v27  ;;  %v1869_v10 = vld [vmem:[#allocation7 + $0x2310] sm:$0xff]  ;;  %v1870_v14 = vld [vmem:[#allocation7 + $0x2318] sm:$0xff] }
 0x684   :  { %10907 = vmatprep.subr.bf16.mxu0 %v13159_v30  ;;  %v13213_v30 = vcombine.high %v1821_v23, %v1825_v37  ;;  %v1873_v24 = vld [vmem:[#allocation7 + $0x2330] sm:$0xff] }
 0x686   :  { %10457 = vmatpush1.bf16.msra.mxu1 %v13156_v53  ;;  %v1834_v53 = vld [vmem:[#allocation7 + $0x21f8] sm:$0xff] }
 0x687   :  { %10908 = vmatpush1.bf16.msra.mxu0 %v13158_v36  ;;  %10467 = vmatprep.subr.bf16.mxu1 %v13165_v38  ;;  %v13212_v36 = vcombine.low %v1821_v23, %v1825_v37  ;;  %v13214_v38 = vcombine.low %v1822_v26, %v1826_v27  ;;  %v13223_v7 = vcombine.high %v1830_v3, %v1834_v53  ;;  %v1877_v37 = vld [vmem:[#allocation7 + $0x2350] sm:$0xff]  ;;  %v1878_v27 = vld [vmem:[#allocation7 + $0x2358] sm:$0xff] }
 0x688   :  { %10918 = vmatprep.subr.bf16.mxu0 %v13167_v25  ;;  %v13221_v25 = vcombine.high %v1829_v33, %v1833_v62  ;;  %v1881_v26 = vld [vmem:[#allocation7 + $0x2370] sm:$0xff] }
 0x689   :  { %10459 = vmatmul.mubr.bf16.vlgmr.msra.gmra.mrb[4].mxu1 %v15081_v35 }
 0x68a   :  { %10910 = vmatmul.mubr.bf16.vlgmr.msra.gmra.mrb[48].mxu0 %v15081_v35  ;;  %10468 = vmatpush1.bf16.msra.mxu1 %v13164_v5  ;;  %v13182_v35 = vcombine.low %v1790_v31, %v1794_v51  ;;  %v1841_v5 = vld [vmem:[#allocation7 + $0x2230] sm:$0xff]  ;;  %v1846_v51 = vld [vmem:[#allocation7 + $0x2258] sm:$0xff] }
 0x68b   :  { %10499 = vmatprep.mubr.bf16.mxu1 %v15083_v60  ;;  %10919 = vmatpush1.bf16.msra.mxu0 %v13166_v32  ;;  %v13220_v32 = vcombine.low %v1829_v33, %v1833_v62  ;;  %v13229_v13 = vcombine.high %v1837_v40, %v1841_v5  ;;  %v1849_v31 = vld [vmem:[#allocation7 + $0x2270] sm:$0xff] }
 0x68c   :  { %10950 = vmatprep.mubr.bf16.mxu0 %v15083_v60  ;;  %10469 = vmatprep.subr.bf16.mxu1 %v13173_v41  ;;  %v13188_v60 = vcombine.low %v1797_v46, %v1801_v57  ;;  %v13222_v41 = vcombine.low %v1830_v3, %v1834_v53  ;;  %v1853_v57 = vld [vmem:[#allocation7 + $0x2290] sm:$0xff]  ;;  %v1886_v53 = vld [vmem:[#allocation7 + $0x2398] sm:$0xff] }
 0x68d   :  { %10920 = vmatprep.subr.bf16.mxu0 %v13175_v50  ;;  %v1845_v50 = vld [vmem:[#allocation7 + $0x2250] sm:$0xff] }
 0x68e   :  { %10470 = vmatpush1.bf16.msra.mxu1 %v13172_v55  ;;  %v1850_v55 = vld [vmem:[#allocation7 + $0x2278] sm:$0xff]  ;;  %v1885_v62 = vld [vmem:[#allocation7 + $0x2390] sm:$0xff] }
 0x68f   :  { %10921 = vmatpush1.bf16.msra.mxu0 %v13174_v56  ;;  %10471 = vmatprep.subr.bf16.mxu1 %v13181_v20  ;;  %v13228_v56 = vcombine.low %v1837_v40, %v1841_v5  ;;  %v13230_v20 = vcombine.low %v1838_v44, %v1842_v45  ;;  %v13239_v46 = vcombine.high %v1846_v51, %v1850_v55  ;;  %v1889_v3 = vld [vmem:[#allocation7 + $0x23b0] sm:$0xff]  ;;  %v1894_v45 = vld [vmem:[#allocation7 + $0x23d8] sm:$0xff] }
 0x690   :  { %10922 = vmatprep.subr.bf16.mxu0 %v13183_v39  ;;  %v13237_v39 = vcombine.high %v1845_v50, %v1849_v31  ;;  %v1893_v5 = vld [vmem:[#allocation7 + $0x23d0] sm:$0xff] }
 0x691   :  { %v1897_v44 = vld [vmem:[#allocation7 + $0x23f0] sm:$0xff] }
 0x692   :  { %10472 = vmatpush1.bf16.msra.mxu1 %v13180_v61  ;;  %v1858_v61 = vld [vmem:[#allocation7 + $0x22b8] sm:$0xff] }
 0x693   :  { %10923 = vmatpush1.bf16.msra.mxu0 %v13182_v35  ;;  %10473 = vmatprep.subr.bf16.mxu1 %v13189_v54  ;;  %v13236_v35 = vcombine.low %v1845_v50, %v1849_v31  ;;  %v13238_v54 = vcombine.low %v1846_v51, %v1850_v55  ;;  %v13247_v47 = vcombine.high %v1854_v59, %v1858_v61  ;;  %v1901_v31 = vld [vmem:[#allocation7 + $0x2410] sm:$0xff]  ;;  %v1902_v55 = vld [vmem:[#allocation7 + $0x2418] sm:$0xff] }
 0x694   :  { %10924 = vmatprep.subr.bf16.mxu0 %v13191_v2  ;;  %v13245_v2 = vcombine.high %v1853_v57, %v1857_v21  ;;  %v1905_v51 = vld [vmem:[#allocation7 + $0x2430] sm:$0xff] }
 0x696   :  { %10474 = vmatpush1.bf16.msra.mxu1 %v13188_v60  ;;  %v1866_v60 = vld [vmem:[#allocation7 + $0x22f8] sm:$0xff] }
 0x697   :  { %10925 = vmatpush1.bf16.msra.mxu0 %v13190_v8  ;;  %10475 = vmatprep.subr.bf16.mxu1 %v13197_v17  ;;  %v13244_v8 = vcombine.low %v1853_v57, %v1857_v21  ;;  %v13246_v17 = vcombine.low %v1854_v59, %v1858_v61  ;;  %v13255_v63 = vcombine.high %v1862_v9, %v1866_v60  ;;  %v1909_v21 = vld [vmem:[#allocation7 + $0x2450] sm:$0xff] }
 0x698   :  { %10926 = vmatprep.subr.bf16.mxu0 %v13199_v11  ;;  %v13253_v11 = vcombine.high %v1861_v4, %v1865_v6  ;;  %v1913_v59 = vld [vmem:[#allocation7 + $0x2470] sm:$0xff]  ;;  %v13292_v61 = vcombine.low %v1901_v31, %v1905_v51 }
 0x69a   :  { %10476 = vmatpush1.bf16.msra.mxu1 %v13196_v12  ;;  %v1874_v12 = vld [vmem:[#allocation7 + $0x2338] sm:$0xff] }
 0x69b   :  { %10927 = vmatpush1.bf16.msra.mxu0 %v13198_v52  ;;  %10477 = vmatprep.subr.bf16.mxu1 %v13205_v15  ;;  %v13252_v52 = vcombine.low %v1861_v4, %v1865_v6  ;;  %v13254_v15 = vcombine.low %v1862_v9, %v1866_v60  ;;  %v13263_v23 = vcombine.high %v1870_v14, %v1874_v12  ;;  %v1917_v4 = vld [vmem:[#allocation7 + $0x2490] sm:$0xff]  ;;  %v1918_v60 = vld [vmem:[#allocation7 + $0x2498] sm:$0xff] }
 0x69c   :  { %10928 = vmatprep.subr.bf16.mxu0 %v13207_v16  ;;  %v13261_v16 = vcombine.high %v1869_v10, %v1873_v24  ;;  %v1921_v6 = vld [vmem:[#allocation7 + $0x24b0] sm:$0xff] }
 0x69e   :  { %10478 = vmatpush1.bf16.msra.mxu1 %v13204_v22  ;;  %v1882_v22 = vld [vmem:[#allocation7 + $0x2378] sm:$0xff] }
 0x69f   :  { %10929 = vmatpush1.bf16.msra.mxu0 %v13206_v28  ;;  %10479 = vmatprep.subr.bf16.mxu1 %v13213_v30  ;;  %v13260_v28 = vcombine.low %v1869_v10, %v1873_v24  ;;  %v13262_v30 = vcombine.low %v1870_v14, %v1874_v12  ;;  %v13271_v33 = vcombine.high %v1878_v27, %v1882_v22  ;;  %v1925_v24 = vld [vmem:[#allocation7 + $0x24d0] sm:$0xff]  ;;  %v1926_v12 = vld [vmem:[#allocation7 + $0x24d8] sm:$0xff] }
 0x6a0   :  { %10930 = vmatprep.subr.bf16.mxu0 %v13215_v0  ;;  %v13269_v0 = vcombine.high %v1877_v37, %v1881_v26  ;;  %v1929_v14 = vld [vmem:[#allocation7 + $0x24f0] sm:$0xff] }
 0x6a2   :  { %10480 = vmatpush1.bf16.msra.mxu1 %v13212_v36  ;;  %v1890_v36 = vld [vmem:[#allocation7 + $0x23b8] sm:$0xff] }
 0x6a3   :  { %10931 = vmatpush1.bf16.msra.mxu0 %v13214_v38  ;;  %10481 = vmatprep.subr.bf16.mxu1 %v13221_v25  ;;  %v13268_v38 = vcombine.low %v1877_v37, %v1881_v26  ;;  %v13270_v25 = vcombine.low %v1878_v27, %v1882_v22  ;;  %v13279_v40 = vcombine.high %v1886_v53, %v1890_v36  ;;  %v1933_v37 = vld [vmem:[#allocation7 + $0x2510] sm:$0xff]  ;;  %v1934_v27 = vld [vmem:[#allocation7 + $0x2518] sm:$0xff] }
 0x6a4   :  { %10932 = vmatprep.subr.bf16.mxu0 %v13223_v7  ;;  %v13277_v7 = vcombine.high %v1885_v62, %v1889_v3  ;;  %v1937_v26 = vld [vmem:[#allocation7 + $0x2530] sm:$0xff]  ;;  %v1938_v22 = vld [vmem:[#allocation7 + $0x2538] sm:$0xff] }
 0x6a6   :  { %10482 = vmatpush1.bf16.msra.mxu1 %v13220_v32  ;;  %v1898_v32 = vld [vmem:[#allocation7 + $0x23f8] sm:$0xff] }
 0x6a7   :  { %10933 = vmatpush1.bf16.msra.mxu0 %v13222_v41  ;;  %10483 = vmatprep.subr.bf16.mxu1 %v13229_v13  ;;  %v13276_v41 = vcombine.low %v1885_v62, %v1889_v3  ;;  %v13278_v13 = vcombine.low %v1886_v53, %v1890_v36  ;;  %v13287_v50 = vcombine.high %v1894_v45, %v1898_v32  ;;  %v1945_v62 = vld [vmem:[#allocation7 + $0x2570] sm:$0xff]  ;;  %v1942_v3 = vld [vmem:[#allocation7 + $0x2558] sm:$0xff] }
 0x6a8   :  { %10934 = vmatprep.subr.bf16.mxu0 %v13231_v49  ;;  %v13285_v49 = vcombine.high %v1893_v5, %v1897_v44  ;;  %v1946_v53 = vld [vmem:[#allocation7 + $0x2578] sm:$0xff]  ;;  %v13324_v36 = vcombine.low %v1933_v37, %v1937_v26 }
 0x6aa   :  { %10484 = vmatpush1.bf16.msra.mxu1 %v13228_v56  ;;  %v1906_v56 = vld [vmem:[#allocation7 + $0x2438] sm:$0xff] }
 0x6ab   :  { %10935 = vmatpush1.bf16.msra.mxu0 %v13230_v20  ;;  %10485 = vmatprep.subr.bf16.mxu1 %v13237_v39  ;;  %v13284_v20 = vcombine.low %v1893_v5, %v1897_v44  ;;  %v13286_v39 = vcombine.low %v1894_v45, %v1898_v32  ;;  %v13295_v57 = vcombine.high %v1902_v55, %v1906_v56  ;;  %v1953_v5 = vld [vmem:[#allocation7 + $0x25b0] sm:$0xff]  ;;  %v1950_v44 = vld [vmem:[#allocation7 + $0x2598] sm:$0xff] }
 0x6ac   :  { %10936 = vmatprep.subr.bf16.mxu0 %v13239_v46  ;;  %v13293_v46 = vcombine.high %v1901_v31, %v1905_v51  ;;  %v1954_v45 = vld [vmem:[#allocation7 + $0x25b8] sm:$0xff]  ;;  %v1961_v31 = vld [vmem:[#allocation7 + $0x25f0] sm:$0xff] }
 0x6ad   :  { %v1958_v51 = vld [vmem:[#allocation7 + $0x25d8] sm:$0xff] }
 0x6ae   :  { %10486 = vmatpush1.bf16.msra.mxu1 %v13236_v35  ;;  %v1910_v35 = vld [vmem:[#allocation7 + $0x2458] sm:$0xff] }
 0x6af   :  { %10937 = vmatpush1.bf16.msra.mxu0 %v13238_v54  ;;  %10487 = vmatprep.subr.bf16.mxu1 %v13245_v2  ;;  %v1914_v54 = vld [vmem:[#allocation7 + $0x2478] sm:$0xff]  ;;  %v13294_v2 = vcombine.low %v1902_v55, %v1906_v56 }
 0x6b0   :  { %10938 = vmatprep.subr.bf16.mxu0 %v13247_v47  ;;  %v13301_v47 = vcombine.high %v1909_v21, %v1913_v59  ;;  %v13303_v9 = vcombine.high %v1910_v35, %v1914_v54  ;;  %v1962_v55 = vld [vmem:[#allocation7 + $0x25f8] sm:$0xff] }
 0x6b2   :  { %10488 = vmatpush1.bf16.msra.mxu1 %v13244_v8  ;;  %v1922_v8 = vld [vmem:[#allocation7 + $0x24b8] sm:$0xff] }
 0x6b3   :  { %10939 = vmatpush1.bf16.msra.mxu0 %v13246_v17  ;;  %10489 = vmatprep.subr.bf16.mxu1 %v13253_v11  ;;  %v13300_v17 = vcombine.low %v1909_v21, %v1913_v59  ;;  %v13302_v11 = vcombine.low %v1910_v35, %v1914_v54  ;;  %v13311_v10 = vcombine.high %v1918_v60, %v1922_v8  ;;  %v1969_v21 = vld [vmem:[#allocation7 + $0x2630] sm:$0xff]  ;;  %v1966_v59 = vld [vmem:[#allocation7 + $0x2618] sm:$0xff] }
 0x6b4   :  { %10940 = vmatprep.subr.bf16.mxu0 %v13255_v63  ;;  %v13309_v63 = vcombine.high %v1917_v4, %v1921_v6  ;;  %v13350_v54 = vcombine.low %v1958_v51, %v1962_v55 }
 0x6b6   :  { %10490 = vmatpush1.bf16.msra.mxu1 %v13252_v52  ;;  %v1930_v52 = vld [vmem:[#allocation7 + $0x24f8] sm:$0xff] }
 0x6b7   :  { %10941 = vmatpush1.bf16.msra.mxu0 %v13254_v15  ;;  %10491 = vmatprep.subr.bf16.mxu1 %v13261_v16  ;;  %v13308_v15 = vcombine.low %v1917_v4, %v1921_v6  ;;  %v13317_v16 = vcombine.high %v1925_v24, %v1929_v14  ;;  %v1973_v4 = vld [vmem:[#allocation7 + $0x2650] sm:$0xff] }
 0x6b8   :  { %10942 = vmatprep.subr.bf16.mxu0 %v13263_v23  ;;  %v13319_v23 = vcombine.high %v1926_v12, %v1930_v52  ;;  %v1977_v6 = vld [vmem:[#allocation7 + $0x2670] sm:$0xff] }
 0x6ba   :  { %10492 = vmatpush1.bf16.msra.mxu1 %v13260_v28  ;;  %v13318_v28 = vcombine.low %v1926_v12, %v1930_v52  ;;  %v1986_v12 = vld [vmem:[#allocation7 + $0x26b8] sm:$0xff]  ;;  %v13364_v52 = vcombine.low %v1973_v4, %v1977_v6 }
 0x6bb   :  { %10943 = vmatpush1.bf16.msra.mxu0 %v13262_v30  ;;  %10493 = vmatprep.subr.bf16.mxu1 %v13269_v0  ;;  %v13325_v30 = vcombine.high %v1933_v37, %v1937_v26  ;;  %v13327_v0 = vcombine.high %v1934_v27, %v1938_v22  ;;  %v1993_v37 = vld [vmem:[#allocation7 + $0x26f0] sm:$0xff]  ;;  %v1990_v26 = vld [vmem:[#allocation7 + $0x26d8] sm:$0xff] }
 0x6bc   :  { %10944 = vmatprep.subr.bf16.mxu0 %v13271_v33  ;;  %v1941_v33 = vld [vmem:[#allocation7 + $0x2550] sm:$0xff] }
 0x6bd   :  { %v13332_v32 = vcombine.low %v1941_v33, %v1945_v62 }
 0x6be   :  { %10494 = vmatpush1.bf16.msra.mxu1 %v13268_v38  ;;  %v13326_v38 = vcombine.low %v1934_v27, %v1938_v22  ;;  %v1994_v27 = vld [vmem:[#allocation7 + $0x26f8] sm:$0xff] }
 0x6bf   :  { %10945 = vmatpush1.bf16.msra.mxu0 %v13270_v25  ;;  %10495 = vmatprep.subr.bf16.mxu1 %v13277_v7  ;;  %v13333_v25 = vcombine.high %v1941_v33, %v1945_v62  ;;  %v13335_v7 = vcombine.high %v1942_v3, %v1946_v53  ;;  %v2001_v33 = vld [vmem:[#allocation7 + $0x2730] sm:$0xff]  ;;  %v1998_v62 = vld [vmem:[#allocation7 + $0x2718] sm:$0xff] }
 0x6c0   :  { %10946 = vmatprep.subr.bf16.mxu0 %v13279_v40  ;;  %v1949_v40 = vld [vmem:[#allocation7 + $0x2590] sm:$0xff] }
 0x6c1   :  { %v13340_v56 = vcombine.low %v1949_v40, %v1953_v5 }
 0x6c2   :  { %10496 = vmatpush1.bf16.msra.mxu1 %v13276_v41  ;;  %v13334_v41 = vcombine.low %v1942_v3, %v1946_v53  ;;  %v2002_v3 = vld [vmem:[#allocation7 + $0x2738] sm:$0xff] }
 0x6c3   :  { %10947 = vmatpush1.bf16.msra.mxu0 %v13278_v13  ;;  %10497 = vmatprep.subr.bf16.mxu1 %v13285_v49  ;;  %v13341_v13 = vcombine.high %v1949_v40, %v1953_v5  ;;  %v13343_v49 = vcombine.high %v1950_v44, %v1954_v45  ;;  %v2009_v40 = vld [vmem:[#allocation7 + $0x2770] sm:$0xff]  ;;  %v2006_v5 = vld [vmem:[#allocation7 + $0x2758] sm:$0xff] }
 0x6c4   :  { %10948 = vmatprep.subr.bf16.mxu0 %v13287_v50  ;;  %v1957_v50 = vld [vmem:[#allocation7 + $0x25d0] sm:$0xff] }
 0x6c5   :  { %v13348_v35 = vcombine.low %v1957_v50, %v1961_v31 }
 0x6c6   :  { %10498 = vmatpush1.bf16.msra.mxu1 %v13284_v20  ;;  %v13342_v20 = vcombine.low %v1950_v44, %v1954_v45  ;;  %v2010_v44 = vld [vmem:[#allocation7 + $0x2778] sm:$0xff] }
 0x6c7   :  { %10949 = vmatpush1.bf16.msra.mxu0 %v13286_v39  ;;  %10508 = vmatprep.subr.bf16.mxu1 %v13293_v46  ;;  %v13349_v39 = vcombine.high %v1957_v50, %v1961_v31  ;;  %v13351_v46 = vcombine.high %v1958_v51, %v1962_v55  ;;  %v2017_v50 = vld [vmem:[#allocation7 + $0x27b0] sm:$0xff]  ;;  %v2014_v31 = vld [vmem:[#allocation7 + $0x2798] sm:$0xff] }
 0x6c8   :  { %10959 = vmatprep.subr.bf16.mxu0 %v13295_v57  ;;  %v1965_v57 = vld [vmem:[#allocation7 + $0x2610] sm:$0xff]  ;;  %v2018_v51 = vld [vmem:[#allocation7 + $0x27b8] sm:$0xff] }
 0x6c9   :  { %10500 = vmatmul.mubr.bf16.vlgmr.msra.gmra.mrb[4].mxu1 %v15091_v48 }
 0x6ca   :  { %10951 = vmatmul.mubr.bf16.vlgmr.msra.gmra.mrb[48].mxu0 %v15091_v48  ;;  %10509 = vmatpush1.bf16.msra.mxu1 %v13292_v61  ;;  %v13310_v48 = vcombine.low %v1918_v60, %v1922_v8  ;;  %v1970_v61 = vld [vmem:[#allocation7 + $0x2638] sm:$0xff]  ;;  %v13356_v8 = vcombine.low %v1965_v57, %v1969_v21 }
 0x6cb   :  { %10540 = vmatprep.mubr.bf16.mxu1 %v15093_v19  ;;  %10960 = vmatpush1.bf16.msra.mxu0 %v13294_v2  ;;  %v13357_v2 = vcombine.high %v1965_v57, %v1969_v21  ;;  %v1978_v60 = vld [vmem:[#allocation7 + $0x2678] sm:$0xff]  ;;  %v2025_v57 = vld [vmem:[#allocation7 + $0x27f0] sm:$0xff] }
 0x6cc   :  { %10991 = vmatprep.mubr.bf16.mxu0 %v15093_v19  ;;  %10510 = vmatprep.subr.bf16.mxu1 %v13301_v47  ;;  %v13316_v19 = vcombine.low %v1925_v24, %v1929_v14  ;;  %v13359_v47 = vcombine.high %v1966_v59, %v1970_v61  ;;  %v1985_v24 = vld [vmem:[#allocation7 + $0x26b0] sm:$0xff]  ;;  %v1982_v14 = vld [vmem:[#allocation7 + $0x2698] sm:$0xff] }
 0x6cd   :  { %10961 = vmatprep.subr.bf16.mxu0 %v13303_v9  ;;  %v1974_v9 = vld [vmem:[#allocation7 + $0x2658] sm:$0xff] }
 0x6ce   :  { %10511 = vmatpush1.bf16.msra.mxu1 %v13300_v17  ;;  %v13358_v17 = vcombine.low %v1966_v59, %v1970_v61  ;;  %v2022_v21 = vld [vmem:[#allocation7 + $0x27d8] sm:$0xff] }
 0x6cf   :  { %10962 = vmatpush1.bf16.msra.mxu0 %v13302_v11  ;;  %10512 = vmatprep.subr.bf16.mxu1 %v13309_v63  ;;  %v13365_v11 = vcombine.high %v1973_v4, %v1977_v6  ;;  %v13367_v63 = vcombine.high %v1974_v9, %v1978_v60  ;;  %v2026_v59 = vld [vmem:[#allocation7 + $0x27f8] sm:$0xff]  ;;  %v2033_v4 = vld [vmem:[#allocation7 + $0x2830] sm:$0xff] }
 0x6d0   :  { %10963 = vmatprep.subr.bf16.mxu0 %v13311_v10  ;;  %v1981_v10 = vld [vmem:[#allocation7 + $0x2690] sm:$0xff]  ;;  %v2030_v6 = vld [vmem:[#allocation7 + $0x2818] sm:$0xff] }
 0x6d1   :  { %v13372_v22 = vcombine.low %v1981_v10, %v1985_v24 }
 0x6d2   :  { %10513 = vmatpush1.bf16.msra.mxu1 %v13308_v15  ;;  %v13366_v15 = vcombine.low %v1974_v9, %v1978_v60  ;;  %v2034_v9 = vld [vmem:[#allocation7 + $0x2838] sm:$0xff] }
 0x6d3   :  { %10964 = vmatpush1.bf16.msra.mxu0 %v13310_v48  ;;  %10514 = vmatprep.subr.bf16.mxu1 %v13317_v16  ;;  %v13373_v48 = vcombine.high %v1981_v10, %v1985_v24  ;;  %v13375_v16 = vcombine.high %v1982_v14, %v1986_v12  ;;  %v2041_v10 = vld [vmem:[#allocation7 + $0x2870] sm:$0xff] }
 0x6d4   :  { %10965 = vmatprep.subr.bf16.mxu0 %v13319_v23  ;;  %v1989_v23 = vld [vmem:[#allocation7 + $0x26d0] sm:$0xff] }
 0x6d5   :  { %v13380_v53 = vcombine.low %v1989_v23, %v1993_v37 }
 0x6d6   :  { %10515 = vmatpush1.bf16.msra.mxu1 %v13316_v19  ;;  %v13374_v19 = vcombine.low %v1982_v14, %v1986_v12  ;;  %v2038_v14 = vld [vmem:[#allocation7 + $0x2858] sm:$0xff] }
 0x6d7   :  { %10966 = vmatpush1.bf16.msra.mxu0 %v13318_v28  ;;  %10516 = vmatprep.subr.bf16.mxu1 %v13325_v30  ;;  %v13381_v28 = vcombine.high %v1989_v23, %v1993_v37  ;;  %v13383_v30 = vcombine.high %v1990_v26, %v1994_v27  ;;  %v2042_v12 = vld [vmem:[#allocation7 + $0x2878] sm:$0xff] }
 0x6d8   :  { %10967 = vmatprep.subr.bf16.mxu0 %v13327_v0  ;;  %v1997_v0 = vld [vmem:[#allocation7 + $0x2710] sm:$0xff]  ;;  %v13431_v23 = vcombine.high %v2038_v14, %v2042_v12  ;;  %v2046_v37 = vld [vmem:[#allocation7 + $0x2898] sm:$0xff] }
 0x6d9   :  { %v13388_v45 = vcombine.low %v1997_v0, %v2001_v33 }
 0x6da   :  { %10517 = vmatpush1.bf16.msra.mxu1 %v13324_v36  ;;  %v13382_v36 = vcombine.low %v1990_v26, %v1994_v27  ;;  %v2050_v26 = vld [vmem:[#allocation7 + $0x28b8] sm:$0xff] }
 0x6db   :  { %10968 = vmatpush1.bf16.msra.mxu0 %v13326_v38  ;;  %10518 = vmatprep.subr.bf16.mxu1 %v13333_v25  ;;  %v13389_v38 = vcombine.high %v1997_v0, %v2001_v33  ;;  %v13391_v25 = vcombine.high %v1998_v62, %v2002_v3  ;;  %v2057_v0 = vld [vmem:[#allocation7 + $0x28f0] sm:$0xff]  ;;  %v2054_v33 = vld [vmem:[#allocation7 + $0x28d8] sm:$0xff] }
 0x6dc   :  { %10969 = vmatprep.subr.bf16.mxu0 %v13335_v7  ;;  %v2005_v7 = vld [vmem:[#allocation7 + $0x2750] sm:$0xff] }
 0x6dd   :  { %v13396_v55 = vcombine.low %v2005_v7, %v2009_v40 }
 0x6de   :  { %10519 = vmatpush1.bf16.msra.mxu1 %v13332_v32  ;;  %v13390_v32 = vcombine.low %v1998_v62, %v2002_v3  ;;  %v2058_v62 = vld [vmem:[#allocation7 + $0x28f8] sm:$0xff] }
 0x6df   :  { %10970 = vmatpush1.bf16.msra.mxu0 %v13334_v41  ;;  %10520 = vmatprep.subr.bf16.mxu1 %v13341_v13  ;;  %v13397_v41 = vcombine.high %v2005_v7, %v2009_v40  ;;  %v13399_v13 = vcombine.high %v2006_v5, %v2010_v44  ;;  %v2062_v7 = vld [vmem:[#allocation7 + $0x2918] sm:$0xff] }
 0x6e0   :  { %10971 = vmatprep.subr.bf16.mxu0 %v13343_v49  ;;  %v2013_v49 = vld [vmem:[#allocation7 + $0x2790] sm:$0xff]  ;;  %v2066_v40 = vld [vmem:[#allocation7 + $0x2938] sm:$0xff] }
 0x6e1   :  { %v13404_v61 = vcombine.low %v2013_v49, %v2017_v50 }
 0x6e2   :  { %10521 = vmatpush1.bf16.msra.mxu1 %v13340_v56  ;;  %v13398_v56 = vcombine.low %v2006_v5, %v2010_v44  ;;  %v13446_v5 = vcombine.low %v2054_v33, %v2058_v62 }
 0x6e3   :  { %10972 = vmatpush1.bf16.msra.mxu0 %v13342_v20  ;;  %10522 = vmatprep.subr.bf16.mxu1 %v13349_v39  ;;  %v13405_v20 = vcombine.high %v2013_v49, %v2017_v50  ;;  %v13407_v39 = vcombine.high %v2014_v31, %v2018_v51  ;;  %v2074_v49 = vld [vmem:[#allocation7 + $0x2978] sm:$0xff] }
 0x6e4   :  { %10973 = vmatprep.subr.bf16.mxu0 %v13351_v46  ;;  %v2021_v46 = vld [vmem:[#allocation7 + $0x27d0] sm:$0xff] }
 0x6e5   :  { %v13412_v60 = vcombine.low %v2021_v46, %v2025_v57 }
 0x6e6   :  { %10523 = vmatpush1.bf16.msra.mxu1 %v13348_v35  ;;  %v13406_v35 = vcombine.low %v2014_v31, %v2018_v51  ;;  %v13454_v31 = vcombine.low %v2062_v7, %v2066_v40 }
 0x6e7   :  { %10974 = vmatpush1.bf16.msra.mxu0 %v13350_v54  ;;  %10524 = vmatprep.subr.bf16.mxu1 %v13357_v2  ;;  %v13413_v54 = vcombine.high %v2021_v46, %v2025_v57  ;;  %v13415_v2 = vcombine.high %v2022_v21, %v2026_v59  ;;  %v2082_v46 = vld [vmem:[#allocation7 + $0x29b8] sm:$0xff] }
 0x6e8   :  { %10975 = vmatprep.subr.bf16.mxu0 %v13359_v47  ;;  %v2029_v47 = vld [vmem:[#allocation7 + $0x2810] sm:$0xff] }
 0x6e9   :  { %v13420_v24 = vcombine.low %v2029_v47, %v2033_v4 }
 0x6ea   :  { %10525 = vmatpush1.bf16.msra.mxu1 %v13356_v8  ;;  %v13414_v8 = vcombine.low %v2022_v21, %v2026_v59 }
 0x6eb   :  { %10976 = vmatpush1.bf16.msra.mxu0 %v13358_v17  ;;  %10526 = vmatprep.subr.bf16.mxu1 %v13365_v11  ;;  %v13421_v17 = vcombine.high %v2029_v47, %v2033_v4  ;;  %v13423_v11 = vcombine.high %v2030_v6, %v2034_v9  ;;  %v2090_v47 = vld [vmem:[#allocation7 + $0x29f8] sm:$0xff] }
 0x6ec   :  { %10977 = vmatprep.subr.bf16.mxu0 %v13367_v63  ;;  %v2037_v63 = vld [vmem:[#allocation7 + $0x2850] sm:$0xff] }
 0x6ed   :  { %v13428_v27 = vcombine.low %v2037_v63, %v2041_v10 }
 0x6ee   :  { %10527 = vmatpush1.bf16.msra.mxu1 %v13364_v52  ;;  %v13422_v52 = vcombine.low %v2030_v6, %v2034_v9 }
 0x6ef   :  { %10978 = vmatpush1.bf16.msra.mxu0 %v13366_v15  ;;  %10528 = vmatprep.subr.bf16.mxu1 %v13373_v48  ;;  %v13429_v15 = vcombine.high %v2037_v63, %v2041_v10  ;;  %v2045_v48 = vld [vmem:[#allocation7 + $0x2890] sm:$0xff]  ;;  %v2098_v63 = vld [vmem:[#allocation7 + $0x2a38] sm:$0xff] }
 0x6f0   :  { %10979 = vmatprep.subr.bf16.mxu0 %v13375_v16  ;;  %v2049_v16 = vld [vmem:[#allocation7 + $0x28b0] sm:$0xff] }
 0x6f1   :  { %v13436_v3 = vcombine.low %v2045_v48, %v2049_v16 }
 0x6f2   :  { %10529 = vmatpush1.bf16.msra.mxu1 %v13372_v22  ;;  %v13430_v22 = vcombine.low %v2038_v14, %v2042_v12 }
 0x6f3   :  { %10980 = vmatpush1.bf16.msra.mxu0 %v13374_v19  ;;  %10530 = vmatprep.subr.bf16.mxu1 %v13381_v28  ;;  %v13437_v19 = vcombine.high %v2045_v48, %v2049_v16  ;;  %v13439_v28 = vcombine.high %v2046_v37, %v2050_v26  ;;  %v2102_v48 = vld [vmem:[#allocation7 + $0x2a58] sm:$0xff] }
 0x6f4   :  { %10981 = vmatprep.subr.bf16.mxu0 %v13383_v30  ;;  %v2053_v30 = vld [vmem:[#allocation7 + $0x28d0] sm:$0xff]  ;;  %v2106_v16 = vld [vmem:[#allocation7 + $0x2a78] sm:$0xff] }
 0x6f6   :  { %10531 = vmatpush1.bf16.msra.mxu1 %v13380_v53  ;;  %v13445_v53 = vcombine.high %v2053_v30, %v2057_v0 }
 0x6f7   :  { %10982 = vmatpush1.bf16.msra.mxu0 %v13382_v36  ;;  %10532 = vmatprep.subr.bf16.mxu1 %v13389_v38  ;;  %v13447_v36 = vcombine.high %v2054_v33, %v2058_v62  ;;  %v2061_v38 = vld [vmem:[#allocation7 + $0x2910] sm:$0xff]  ;;  %v13494_v33 = vcombine.low %v2102_v48, %v2106_v16 }
 0x6f8   :  { %10983 = vmatprep.subr.bf16.mxu0 %v13391_v25  ;;  %v2065_v25 = vld [vmem:[#allocation7 + $0x2930] sm:$0xff] }
 0x6f9   :  { %v13453_v44 = vcombine.high %v2061_v38, %v2065_v25  ;;  %v13452_v50 = vcombine.low %v2061_v38, %v2065_v25  ;;  %v2122_v38 = vld [vmem:[#allocation7 + $0x2af8] sm:$0xff] }
 0x6fa   :  { %10533 = vmatpush1.bf16.msra.mxu1 %v13388_v45  ;;  %v13455_v45 = vcombine.high %v2062_v7, %v2066_v40 }
 0x6fb   :  { %10984 = vmatpush1.bf16.msra.mxu0 %v13390_v32  ;;  %10534 = vmatprep.subr.bf16.mxu1 %v13397_v41  ;;  %v2069_v32 = vld [vmem:[#allocation7 + $0x2950] sm:$0xff] }
 0x6fc   :  { %10985 = vmatprep.subr.bf16.mxu0 %v13399_v13  ;;  %v2073_v41 = vld [vmem:[#allocation7 + $0x2970] sm:$0xff]  ;;  %v2070_v13 = vld [vmem:[#allocation7 + $0x2958] sm:$0xff] }
 0x6fd   :  { %v13461_v51 = vcombine.high %v2069_v32, %v2073_v41  ;;  %v13460_v57 = vcombine.low %v2069_v32, %v2073_v41  ;;  %v13462_v21 = vcombine.low %v2070_v13, %v2074_v49  ;;  %v2126_v32 = vld [vmem:[#allocation7 + $0x2b18] sm:$0xff] }
 0x6fe   :  { %10535 = vmatpush1.bf16.msra.mxu1 %v13396_v55  ;;  %v13463_v55 = vcombine.high %v2070_v13, %v2074_v49  ;;  %v2130_v41 = vld [vmem:[#allocation7 + $0x2b38] sm:$0xff] }
 0x6ff   :  { %10986 = vmatpush1.bf16.msra.mxu0 %v13398_v56  ;;  %10536 = vmatprep.subr.bf16.mxu1 %v13405_v20  ;;  %v2077_v56 = vld [vmem:[#allocation7 + $0x2990] sm:$0xff] }
 0x700   :  { %10987 = vmatprep.subr.bf16.mxu0 %v13407_v39  ;;  %v2081_v20 = vld [vmem:[#allocation7 + $0x29b0] sm:$0xff]  ;;  %v2078_v39 = vld [vmem:[#allocation7 + $0x2998] sm:$0xff] }
 0x701   :  { %v13469_v59 = vcombine.high %v2077_v56, %v2081_v20  ;;  %v13468_v4 = vcombine.low %v2077_v56, %v2081_v20  ;;  %v13470_v6 = vcombine.low %v2078_v39, %v2082_v46  ;;  %v2134_v20 = vld [vmem:[#allocation7 + $0x2b58] sm:$0xff] }
 0x702   :  { %10537 = vmatpush1.bf16.msra.mxu1 %v13404_v61  ;;  %v13471_v61 = vcombine.high %v2078_v39, %v2082_v46  ;;  %v2138_v39 = vld [vmem:[#allocation7 + $0x2b78] sm:$0xff] }
 0x703   :  { %10988 = vmatpush1.bf16.msra.mxu0 %v13406_v35  ;;  %10538 = vmatprep.subr.bf16.mxu1 %v13413_v54  ;;  %v2085_v35 = vld [vmem:[#allocation7 + $0x29d0] sm:$0xff] }
 0x704   :  { %10989 = vmatprep.subr.bf16.mxu0 %v13415_v2  ;;  %v2089_v54 = vld [vmem:[#allocation7 + $0x29f0] sm:$0xff]  ;;  %v2086_v2 = vld [vmem:[#allocation7 + $0x29d8] sm:$0xff] }
 0x705   :  { %v13477_v9 = vcombine.high %v2085_v35, %v2089_v54  ;;  %v13476_v10 = vcombine.low %v2085_v35, %v2089_v54  ;;  %v2145_v35 = vld [vmem:[#allocation7 + $0x2bb0] sm:$0xff] }
 0x706   :  { %10539 = vmatpush1.bf16.msra.mxu1 %v13412_v60  ;;  %v13479_v60 = vcombine.high %v2086_v2, %v2090_v47 }
 0x707   :  { %10990 = vmatpush1.bf16.msra.mxu0 %v13414_v8  ;;  %10549 = vmatprep.subr.bf16.mxu1 %v13421_v17  ;;  %v2093_v8 = vld [vmem:[#allocation7 + $0x2a10] sm:$0xff] }
 0x708   :  { %11000 = vmatprep.subr.bf16.mxu0 %v13423_v11  ;;  %v2097_v17 = vld [vmem:[#allocation7 + $0x2a30] sm:$0xff]  ;;  %v2094_v11 = vld [vmem:[#allocation7 + $0x2a18] sm:$0xff] }
 0x709   :  { %10541 = vmatmul.mubr.bf16.vlgmr.msra.gmra.mrb[4].mxu1 %v15101_v58  ;;  %v13485_v14 = vcombine.high %v2093_v8, %v2097_v17  ;;  %v13487_v12 = vcombine.high %v2094_v11, %v2098_v63 }
 0x70a   :  { %10992 = vmatmul.mubr.bf16.vlgmr.msra.gmra.mrb[48].mxu0 %v15101_v58  ;;  %10550 = vmatpush1.bf16.msra.mxu1 %v13420_v24  ;;  %v13438_v58 = vcombine.low %v2046_v37, %v2050_v26  ;;  %v13478_v24 = vcombine.low %v2086_v2, %v2090_v47  ;;  %v13486_v37 = vcombine.low %v2094_v11, %v2098_v63  ;;  %v2142_v2 = vld [vmem:[#allocation7 + $0x2b98] sm:$0xff]  ;;  %v2153_v11 = vld [vmem:[#allocation7 + $0x2bf0] sm:$0xff] }
 0x70b   :  { %10581 = vmatprep.mubr.bf16.mxu1 %v15103_v43  ;;  %11001 = vmatpush1.bf16.msra.mxu0 %v13422_v52  ;;  %v2101_v52 = vld [vmem:[#allocation7 + $0x2a50] sm:$0xff]  ;;  %v2146_v47 = vld [vmem:[#allocation7 + $0x2bb8] sm:$0xff] }
 0x70c   :  { %11032 = vmatprep.mubr.bf16.mxu0 %v15103_v43  ;;  %10551 = vmatprep.subr.bf16.mxu1 %v13429_v15  ;;  %v13444_v43 = vcombine.low %v2053_v30, %v2057_v0  ;;  %v2105_v15 = vld [vmem:[#allocation7 + $0x2a70] sm:$0xff]  ;;  %v2114_v30 = vld [vmem:[#allocation7 + $0x2ab8] sm:$0xff] }
 0x70d   :  { %11002 = vmatprep.subr.bf16.mxu0 %v13431_v23  ;;  %v13484_v23 = vcombine.low %v2093_v8, %v2097_v17  ;;  %v13493_v26 = vcombine.high %v2101_v52, %v2105_v15  ;;  %v13492_v0 = vcombine.low %v2101_v52, %v2105_v15  ;;  %v13535_v8 = vcombine.high %v2142_v2, %v2146_v47  ;;  %v2149_v17 = vld [vmem:[#allocation7 + $0x2bd0] sm:$0xff] }
 0x70e   :  { %10552 = vmatpush1.bf16.msra.mxu1 %v13428_v27  ;;  %v13495_v27 = vcombine.high %v2102_v48, %v2106_v16  ;;  %v13541_v52 = vcombine.high %v2149_v17, %v2153_v11  ;;  %v13540_v16 = vcombine.low %v2149_v17, %v2153_v11  ;;  %v14150_v17 = vld [vmem:[#allocation10 + $0x114] ss:$8 sps:$4 sm:$0xff]  }
 0x70f   :  { %11003 = vmatpush1.bf16.msra.mxu0 %v13430_v22  ;;  %10553 = vmatprep.subr.bf16.mxu1 %v13437_v19  ;;  %v2109_v22 = vld [vmem:[#allocation7 + $0x2a90] sm:$0xff] }
 0x710   :  { %11004 = vmatprep.subr.bf16.mxu0 %v13439_v28  ;;  %v2113_v19 = vld [vmem:[#allocation7 + $0x2ab0] sm:$0xff]  ;;  %v2110_v28 = vld [vmem:[#allocation7 + $0x2a98] sm:$0xff] }
 0x711   :  { %v13501_v62 = vcombine.high %v2109_v22, %v2113_v19  ;;  %v13500_v25 = vcombine.low %v2109_v22, %v2113_v19  ;;  %v13502_v7 = vcombine.low %v2110_v28, %v2114_v30  ;;  %v14102_v22 = vld [vmem:[#allocation10 + $0x14] ss:$8 sps:$4 sm:$0xff]  }
 0x712   :  { %10554 = vmatpush1.bf16.msra.mxu1 %v13436_v3  ;;  %v13503_v3 = vcombine.high %v2110_v28, %v2114_v30  ;;  %v14105_v28 = vld [vmem:[#allocation10 + $0x24] ss:$8 sps:$4 sm:$0xff]   ;;  %v14103_v30 = vld [vmem:[#allocation10 + $0x20] ss:$8 sps:$4 sm:$0xff]  }
 0x713   :  { %11005 = vmatpush1.bf16.msra.mxu0 %v13438_v58  ;;  %10555 = vmatprep.subr.bf16.mxu1 %v13445_v53  ;;  %v2117_v58 = vld [vmem:[#allocation7 + $0x2ad0] sm:$0xff] }
 0x714   :  { %11006 = vmatprep.subr.bf16.mxu0 %v13447_v36  ;;  %v2121_v53 = vld [vmem:[#allocation7 + $0x2af0] sm:$0xff]  ;;  %v2118_v36 = vld [vmem:[#allocation7 + $0x2ad8] sm:$0xff] }
 0x715   :  { %v13509_v40 = vcombine.high %v2117_v58, %v2121_v53  ;;  %v13508_v13 = vcombine.low %v2117_v58, %v2121_v53  ;;  %v13510_v49 = vcombine.low %v2118_v36, %v2122_v38  ;;  %v14114_v58 = vld [vmem:[#allocation10 + $0x54] ss:$8 sps:$4 sm:$0xff]   ;;  %v14112_v53 = vld [vmem:[#allocation10 + $0x50] ss:$8 sps:$4 sm:$0xff]  }
 0x716   :  { %10556 = vmatpush1.bf16.msra.mxu1 %v13444_v43  ;;  %v13511_v43 = vcombine.high %v2118_v36, %v2122_v38  ;;  %v14115_v36 = vld [vmem:[#allocation10 + $0x60] ss:$8 sps:$4 sm:$0xff]   ;;  %v14120_v38 = vld [vmem:[#allocation10 + $0x74] ss:$8 sps:$4 sm:$0xff]  }
 0x717   :  { %11007 = vmatpush1.bf16.msra.mxu0 %v13446_v5  ;;  %10557 = vmatprep.subr.bf16.mxu1 %v13453_v44  ;;  %v2125_v5 = vld [vmem:[#allocation7 + $0x2b10] sm:$0xff] }
 0x718   :  { %11008 = vmatprep.subr.bf16.mxu0 %v13455_v45  ;;  %v2129_v44 = vld [vmem:[#allocation7 + $0x2b30] sm:$0xff]  ;;  %v2157_v45 = vlaneseq }
 0x719   :  { %v13516_v46 = vcombine.low %v2125_v5, %v2129_v44 }
 0x71a   :  { %10558 = vmatpush1.bf16.msra.mxu1 %v13452_v50  ;;  %v13517_v50 = vcombine.high %v2125_v5, %v2129_v44  ;;  %v15165_v56 = vshrl.u32 %v2157_v45, 7  ;;  %v14124_v5 = vld [vmem:[#allocation10 + $0x90] ss:$8 sps:$4 sm:$0xff]   ;;  %v14129_v44 = vld [vmem:[#allocation10 + $0xa4] ss:$8 sps:$4 sm:$0xff]  }
 0x71b   :  { %11009 = vmatpush1.bf16.msra.mxu0 %v13454_v31  ;;  %10559 = vmatprep.subr.bf16.mxu1 %v13461_v51  ;;  %v13519_v31 = vcombine.high %v2126_v32, %v2130_v41  ;;  %v2133_v51 = vld [vmem:[#allocation7 + $0x2b50] sm:$0xff] }
 0x71c   :  { %11010 = vmatprep.subr.bf16.mxu0 %v13463_v55  ;;  %v2137_v55 = vld [vmem:[#allocation7 + $0x2b70] sm:$0xff]  ;;  %v2163_v54 = vsub.s32 1, %v15165_v56 }
 0x71e   :  { %10560 = vmatpush1.bf16.msra.mxu1 %v13460_v57  ;;  %v13518_v57 = vcombine.low %v2126_v32, %v2130_v41  ;;  %v14127_v32 = vld [vmem:[#allocation10 + $0xa0] ss:$8 sps:$4 sm:$0xff]   ;;  %v14132_v41 = vld [vmem:[#allocation10 + $0xb4] ss:$8 sps:$4 sm:$0xff]  }
 0x71f   :  { %11011 = vmatpush1.bf16.msra.mxu0 %v13462_v21  ;;  %10561 = vmatprep.subr.bf16.mxu1 %v13469_v59  ;;  %v13525_v21 = vcombine.high %v2133_v51, %v2137_v55  ;;  %v13527_v59 = vcombine.high %v2134_v20, %v2138_v39 }
 0x720   :  { %11012 = vmatprep.subr.bf16.mxu0 %v13471_v61  ;;  %v2141_v61 = vld [vmem:[#allocation7 + $0x2b90] sm:$0xff] }
 0x722   :  { %10562 = vmatpush1.bf16.msra.mxu1 %v13468_v4  ;;  %v15168_v4 = vld [vmem:[#allocation8] sm:$0xff] }
 0x723   :  { %11013 = vmatpush1.bf16.msra.mxu0 %v13470_v6  ;;  %10563 = vmatprep.subr.bf16.mxu1 %v13477_v9  ;;  %v13524_v6 = vcombine.low %v2133_v51, %v2137_v55  ;;  %v13526_v9 = vcombine.low %v2134_v20, %v2138_v39  ;;  %v2164_v63 = vrot.slane %v15168_v4, %v2163_v54  ;;  %v14138_v51 = vld [vmem:[#allocation10 + $0xd4] ss:$8 sps:$4 sm:$0xff]   ;;  %v2171_v55 = vsub.s32 3, %v15165_v56  ;;  %v14136_v20 = vld [vmem:[#allocation10 + $0xd0] ss:$8 sps:$4 sm:$0xff]  }
 0x724   :  { %11014 = vmatprep.subr.bf16.mxu0 %v13479_v60  ;;  %v13533_v60 = vcombine.high %v2141_v61, %v2145_v35 }
 0x725   :  { %v13859_v48 = vadd.f32 %v15132_v42, %v2164_v63  ;;  %v14100_v42 = vld [vmem:[#allocation10 + $0x10] ss:$8 sps:$4 sm:$0xff]   ;;  %v14153_v63 = vld [vmem:[#allocation10 + $0x124] ss:$8 sps:$4 sm:$0xff]  }
 0x726   :  { %10564 = vmatpush1.bf16.msra.mxu1 %v13476_v10  ;;  %v2150_v10 = vld [vmem:[#allocation7 + $0x2bd8] sm:$0xff] }
 0x727   :  { %11015 = vmatpush1.bf16.msra.mxu0 %v13478_v24  ;;  %10565 = vmatprep.subr.bf16.mxu1 %v13485_v14  ;;  %v2154_v24 = vld [vmem:[#allocation7 + $0x2bf8] sm:$0xff]  ;;  %v13532_v14 = vcombine.low %v2141_v61, %v2145_v35 }
 0x728   :  { %11016 = vmatprep.subr.bf16.mxu0 %v13487_v12  ;;  %v13534_v12 = vcombine.low %v2142_v2, %v2146_v47  ;;  %v13543_v15 = vcombine.high %v2150_v10, %v2154_v24  ;;  %v14144_v61 = vld [vmem:[#allocation10 + $0xf4] ss:$8 sps:$4 sm:$0xff]   ;;  %v14142_v2 = vld [vmem:[#allocation10 + $0xf0] ss:$8 sps:$4 sm:$0xff]  }
 0x72a   :  { %10566 = vmatpush1.bf16.msra.mxu1 %v13484_v23  ;;  %v13542_v23 = vcombine.low %v2150_v10, %v2154_v24  ;;  %v14156_v10 = vld [vmem:[#allocation10 + $0x134] ss:$8 sps:$4 sm:$0xff]   ;;  %v14154_v24 = vld [vmem:[#allocation10 + $0x130] ss:$8 sps:$4 sm:$0xff]  }
 0x72b   :  { %11017 = vmatpush1.bf16.msra.mxu0 %v13486_v37  ;;  %10567 = vmatprep.subr.bf16.mxu1 %v13493_v26  ;;  %v14099_v37 = vld [vmem:[#allocation10 + $0x4] ss:$8 sps:$4 sm:$0xff]   ;;  %v11042_v26 = vmax.f32 %v13859_v48, 0.0 }
 0x72c   :  { %11018 = vmatprep.subr.bf16.mxu0 %v13495_v27  ;;  %v14097_v27 = vld [vmem:[#allocation10] ss:$8 sps:$4 sm:$0xff]   ;;  %v14165_v48 = vld [vmem:[#allocation10 + $0x164] ss:$8 sps:$4 sm:$0xff]  }
 0x72d   :  { %v11050_v19 = vpack.c.bf16 %v11042_v26, %v11042_v26  ;;  %v14171_v26 = vld [vmem:[#allocation10 + $0x184] ss:$8 sps:$4 sm:$0xff]  }
 0x72e   :  { %10568 = vmatpush1.bf16.msra.mxu1 %v13492_v0  ;;  %v14108_v0 = vld [vmem:[#allocation10 + $0x34] ss:$8 sps:$4 sm:$0xff]  }
 0x72f   :  { %11019 = vmatpush1.bf16.msra.mxu0 %v13494_v33  ;;  %10569 = vmatprep.subr.bf16.mxu1 %v13501_v62  ;;  %v14106_v33 = vld [vmem:[#allocation10 + $0x30] ss:$8 sps:$4 sm:$0xff]   ;;  %v14111_v62 = vld [vmem:[#allocation10 + $0x44] ss:$8 sps:$4 sm:$0xff]  }
 0x730   :  { %11020 = vmatprep.subr.bf16.mxu0 %v13503_v3  ;;  %v14109_v3 = vld [vmem:[#allocation10 + $0x40] ss:$8 sps:$4 sm:$0xff]  }
 0x732   :  { %10570 = vmatpush1.bf16.msra.mxu1 %v13500_v25  ;;  %v14118_v25 = vld [vmem:[#allocation10 + $0x70] ss:$8 sps:$4 sm:$0xff]  }
 0x733   :  { %11021 = vmatpush1.bf16.msra.mxu0 %v13502_v7  ;;  %10571 = vmatprep.subr.bf16.mxu1 %v13509_v40  ;;  %v14123_v7 = vld [vmem:[#allocation10 + $0x84] ss:$8 sps:$4 sm:$0xff]   ;;  %v14121_v40 = vld [vmem:[#allocation10 + $0x80] ss:$8 sps:$4 sm:$0xff]  }
 0x734   :  { %11022 = vmatprep.subr.bf16.mxu0 %v13511_v43  ;;  %v14126_v43 = vld [vmem:[#allocation10 + $0x94] ss:$8 sps:$4 sm:$0xff]  }
 0x736   :  { %10572 = vmatpush1.bf16.msra.mxu1 %v13508_v13  ;;  %v14130_v13 = vld [vmem:[#allocation10 + $0xb0] ss:$8 sps:$4 sm:$0xff]  }
 0x737   :  { %11023 = vmatpush1.bf16.msra.mxu0 %v13510_v49  ;;  %10573 = vmatprep.subr.bf16.mxu1 %v13517_v50  ;;  %v14135_v49 = vld [vmem:[#allocation10 + $0xc4] ss:$8 sps:$4 sm:$0xff]   ;;  %v14133_v50 = vld [vmem:[#allocation10 + $0xc0] ss:$8 sps:$4 sm:$0xff]  }
 0x738   :  { %11024 = vmatprep.subr.bf16.mxu0 %v13519_v31  ;;  %v2159_v31 = vsub.s32 0, %v15165_v56 }
 0x73a   :  { %10574 = vmatpush1.bf16.msra.mxu1 %v13516_v46  ;;  %v2160_v39 = vrot.slane %v15168_v4, %v2159_v31  ;;  %v14141_v46 = vld [vmem:[#allocation10 + $0xe4] ss:$8 sps:$4 sm:$0xff]  }
 0x73b   :  { %11025 = vmatpush1.bf16.msra.mxu0 %v13518_v57  ;;  %10575 = vmatprep.subr.bf16.mxu1 %v13525_v21  ;;  %v2172_v57 = vrot.slane %v15168_v4, %v2171_v55  ;;  %v14139_v21 = vld [vmem:[#allocation10 + $0xe0] ss:$8 sps:$4 sm:$0xff]   ;;  %v14207_v55 = vld [vmem:[#allocation10 + $0x244] ss:$8 sps:$4 sm:$0xff]  }
 0x73c   :  { %11026 = vmatprep.subr.bf16.mxu0 %v13527_v59  ;;  %v13858_v59 = vadd.f32 %v15128_v29, %v2160_v39  ;;  %v14148_v29 = vld [vmem:[#allocation10 + $0x110] ss:$8 sps:$4 sm:$0xff]   ;;  %v14210_v39 = vld [vmem:[#allocation10 + $0x254] ss:$8 sps:$4 sm:$0xff]  }
 0x73d   :  { %v13861_v35 = vadd.f32 %v15134_v18, %v2172_v57  ;;  %v14151_v18 = vld [vmem:[#allocation10 + $0x120] ss:$8 sps:$4 sm:$0xff]   ;;  %v14213_v57 = vld [vmem:[#allocation10 + $0x264] ss:$8 sps:$4 sm:$0xff]  }
 0x73e   :  { %10576 = vmatpush1.bf16.msra.mxu1 %v13524_v6  ;;  %v11041_v47 = vmax.f32 %v13858_v59, 0.0  ;;  %v14147_v6 = vld [vmem:[#allocation10 + $0x104] ss:$8 sps:$4 sm:$0xff]   ;;  %v14216_v59 = vld [vmem:[#allocation10 + $0x274] ss:$8 sps:$4 sm:$0xff]  }
 0x73f   :  { %11027 = vmatpush1.bf16.msra.mxu0 %v13526_v9  ;;  %10577 = vmatprep.subr.bf16.mxu1 %v13533_v60  ;;  %v11044_v9 = vmax.f32 %v13861_v35, 0.0  ;;  %v14145_v60 = vld [vmem:[#allocation10 + $0x100] ss:$8 sps:$4 sm:$0xff]   ;;  %v14219_v35 = vld [vmem:[#allocation10 + $0x284] ss:$8 sps:$4 sm:$0xff]  }
 0x740   :  { %11028 = vmatprep.subr.bf16.mxu0 %v13535_v8  ;;  %v11049_v8 = vpack.c.bf16 %v11041_v47, %v11041_v47  ;;  %v14222_v47 = vld [vmem:[#allocation10 + $0x294] ss:$8 sps:$4 sm:$0xff]  }
 0x741   :  { %v11052_v11 = vpack.c.bf16 %v11044_v9, %v11044_v9  ;;  %v12020_v9 = vld [vmem:[#allocation13 + $0x88] sm:$0xff] }
 0x742   :  { %10578 = vmatpush1.bf16.msra.mxu1 %v13532_v14  ;;  %v14159_v14 = vld [vmem:[#allocation10 + $0x144] ss:$8 sps:$4 sm:$0xff]  }
 0x743   :  { %11029 = vmatpush1.bf16.msra.mxu0 %v13534_v12  ;;  %10579 = vmatprep.subr.bf16.mxu1 %v13541_v52  ;;  %v14157_v12 = vld [vmem:[#allocation10 + $0x140] ss:$8 sps:$4 sm:$0xff]   ;;  %v14162_v52 = vld [vmem:[#allocation10 + $0x154] ss:$8 sps:$4 sm:$0xff]  }
 0x744   :  { %11030 = vmatprep.subr.bf16.mxu0 %v13543_v15  ;;  %v14160_v15 = vld [vmem:[#allocation10 + $0x150] ss:$8 sps:$4 sm:$0xff]  }
 0x746   :  { %10580 = vmatpush1.bf16.msra.mxu1 %v13540_v16  ;;  %v14163_v16 = vld [vmem:[#allocation10 + $0x160] ss:$8 sps:$4 sm:$0xff]  }
 0x747   :  { %11031 = vmatpush1.bf16.msra.mxu0 %v13542_v23  ;;  %11837 = vmatprep.subr.bf16.mxu1 %v14099_v37  ;;  %v14168_v23 = vld [vmem:[#allocation10 + $0x174] ss:$8 sps:$4 sm:$0xff]   ;;  %v14166_v37 = vld [vmem:[#allocation10 + $0x170] ss:$8 sps:$4 sm:$0xff]  }
 0x749   :  { %10582 = vmatmul.mubr.bf16.vlgmr.msra.gmra.mrb[4].mxu1 %v15110_v1 }
 0x74a   :  { %11033 = vmatmul.mubr.bf16.vlgmr.msra.gmra.mrb[48].mxu0 %v15110_v1  ;;  %11838 = vmatpush1.bf16.msra.mxu1 %v14097_v27  ;;  %v14117_v1 = vld [vmem:[#allocation10 + $0x64] ss:$8 sps:$4 sm:$0xff]   ;;  %v14169_v27 = vld [vmem:[#allocation10 + $0x180] ss:$8 sps:$4 sm:$0xff]  }
 0x74b   :  { %11869 = vmatprep.mubr.bf16.mxu1 %v11050_v19  ;;  %11839 = vmatprep.subr.bf16.mxu1 %v14102_v22  ;;  %v14174_v22 = vld [vmem:[#allocation10 + $0x194] ss:$8 sps:$4 sm:$0xff]   ;;  %v14172_v19 = vld [vmem:[#allocation10 + $0x190] ss:$8 sps:$4 sm:$0xff]  }
 0x74e   :  { %11840 = vmatpush1.bf16.msra.mxu1 %v14100_v42  ;;  %v14177_v42 = vld [vmem:[#allocation10 + $0x1a4] ss:$8 sps:$4 sm:$0xff]  }
 0x74f   :  { %11841 = vmatprep.subr.bf16.mxu1 %v14105_v28  ;;  %v14175_v28 = vld [vmem:[#allocation10 + $0x1a0] ss:$8 sps:$4 sm:$0xff]  }
 0x752   :  { %11842 = vmatpush1.bf16.msra.mxu1 %v14103_v30  ;;  %v14180_v30 = vld [vmem:[#allocation10 + $0x1b4] ss:$8 sps:$4 sm:$0xff]  }
 0x753   :  { %11843 = vmatprep.subr.bf16.mxu1 %v14108_v0  ;;  %v14178_v0 = vld [vmem:[#allocation10 + $0x1b0] ss:$8 sps:$4 sm:$0xff]  }
 0x756   :  { %11844 = vmatpush1.bf16.msra.mxu1 %v14106_v33  ;;  %v14183_v33 = vld [vmem:[#allocation10 + $0x1c4] ss:$8 sps:$4 sm:$0xff]  }
 0x757   :  { %11845 = vmatprep.subr.bf16.mxu1 %v14111_v62  ;;  %v14181_v62 = vld [vmem:[#allocation10 + $0x1c0] ss:$8 sps:$4 sm:$0xff]  }
 0x75a   :  { %11846 = vmatpush1.bf16.msra.mxu1 %v14109_v3  ;;  %v2167_v3 = vsub.s32 2, %v15165_v56 }
 0x75b   :  { %11847 = vmatprep.subr.bf16.mxu1 %v14114_v58  ;;  %v14186_v58 = vld [vmem:[#allocation10 + $0x1d4] ss:$8 sps:$4 sm:$0xff]  }
 0x75e   :  { %11848 = vmatpush1.bf16.msra.mxu1 %v14112_v53  ;;  %v14184_v53 = vld [vmem:[#allocation10 + $0x1d0] ss:$8 sps:$4 sm:$0xff]  }
 0x75f   :  { %11849 = vmatprep.subr.bf16.mxu1 %v14117_v1  ;;  %v2168_v1 = vrot.slane %v15168_v4, %v2167_v3 }
 0x762   :  { %11850 = vmatpush1.bf16.msra.mxu1 %v14115_v36  ;;  %v14189_v36 = vld [vmem:[#allocation10 + $0x1e4] ss:$8 sps:$4 sm:$0xff]  }
 0x763   :  { %11851 = vmatprep.subr.bf16.mxu1 %v14120_v38  ;;  %v14187_v38 = vld [vmem:[#allocation10 + $0x1e0] ss:$8 sps:$4 sm:$0xff]  }
 0x766   :  { %11852 = vmatpush1.bf16.msra.mxu1 %v14118_v25  ;;  %v13860_v25 = vadd.f32 %v15130_v34, %v2168_v1  ;;  %v14204_v34 = vld [vmem:[#allocation10 + $0x234] ss:$8 sps:$4 sm:$0xff]   ;;  %v12011_v1 = vld [vmem:[#allocation13 + $0x40] sm:$0xff] }
 0x767   :  { %11853 = vmatprep.subr.bf16.mxu1 %v14123_v7  ;;  %v14192_v7 = vld [vmem:[#allocation10 + $0x1f4] ss:$8 sps:$4 sm:$0xff]  }
 0x76a   :  { %11854 = vmatpush1.bf16.msra.mxu1 %v14121_v40  ;;  %v14190_v40 = vld [vmem:[#allocation10 + $0x1f0] ss:$8 sps:$4 sm:$0xff]  }
 0x76b   :  { %11855 = vmatprep.subr.bf16.mxu1 %v14126_v43  ;;  %v11043_v43 = vmax.f32 %v13860_v25, 0.0  ;;  %v12029_v25 = vld [vmem:[#allocation13 + $0xd0] sm:$0xff] }
 0x76e   :  { %11856 = vmatpush1.bf16.msra.mxu1 %v14124_v5  ;;  %v14195_v5 = vld [vmem:[#allocation10 + $0x204] ss:$8 sps:$4 sm:$0xff]  }
 0x76f   :  { %11857 = vmatprep.subr.bf16.mxu1 %v14129_v44  ;;  %v14193_v44 = vld [vmem:[#allocation10 + $0x200] ss:$8 sps:$4 sm:$0xff]  }
 0x772   :  { %11858 = vmatpush1.bf16.msra.mxu1 %v14127_v32  ;;  %v11051_v32 = vpack.c.bf16 %v11043_v43, %v11043_v43  ;;  %v14229_v43 = vld [vmem:[#allocation10 + $0x2c0] ss:$8 sps:$4 sm:$0xff]  }
 0x773   :  { %11859 = vmatprep.subr.bf16.mxu1 %v14132_v41  ;;  %v14198_v41 = vld [vmem:[#allocation10 + $0x214] ss:$8 sps:$4 sm:$0xff]  }
 0x776   :  { %11860 = vmatpush1.bf16.msra.mxu1 %v14130_v13  ;;  %v14196_v13 = vld [vmem:[#allocation10 + $0x210] ss:$8 sps:$4 sm:$0xff]  }
 0x777   :  { %11861 = vmatprep.subr.bf16.mxu1 %v14135_v49  ;;  %v14201_v49 = vld [vmem:[#allocation10 + $0x224] ss:$8 sps:$4 sm:$0xff]  }
 0x77a   :  { %11862 = vmatpush1.bf16.msra.mxu1 %v14133_v50  ;;  %v14199_v50 = vld [vmem:[#allocation10 + $0x220] ss:$8 sps:$4 sm:$0xff]  }
 0x77b   :  { %11863 = vmatprep.subr.bf16.mxu1 %v14138_v51  ;;  %v14202_v51 = vld [vmem:[#allocation10 + $0x230] ss:$8 sps:$4 sm:$0xff]  }
 0x77e   :  { %11864 = vmatpush1.bf16.msra.mxu1 %v14136_v20  ;;  %v14205_v20 = vld [vmem:[#allocation10 + $0x240] ss:$8 sps:$4 sm:$0xff]  }
 0x77f   :  { %11865 = vmatprep.subr.bf16.mxu1 %v14141_v46  ;;  %v14208_v46 = vld [vmem:[#allocation10 + $0x250] ss:$8 sps:$4 sm:$0xff]  }
 0x782   :  { %11866 = vmatpush1.bf16.msra.mxu1 %v14139_v21  ;;  %v14211_v21 = vld [vmem:[#allocation10 + $0x260] ss:$8 sps:$4 sm:$0xff]  }
 0x783   :  { %11867 = vmatprep.subr.bf16.mxu1 %v14144_v61  ;;  %v14214_v61 = vld [vmem:[#allocation10 + $0x270] ss:$8 sps:$4 sm:$0xff]  }
 0x786   :  { %11868 = vmatpush1.bf16.msra.mxu1 %v14142_v2  ;;  %v14217_v2 = vld [vmem:[#allocation10 + $0x280] ss:$8 sps:$4 sm:$0xff]  }
 0x787   :  { %11878 = vmatprep.subr.bf16.mxu1 %v14147_v6  ;;  %v12019_v6 = vld [vmem:[#allocation13 + $0x80] sm:$0xff] }
 0x789   :  { %11870 = vmatmul.mubr.bf16.vlgmr.msra.gmra.mrb[8].mxu1 %v11049_v8  ;;  %v13804_v8 = vpack.c.bf16 %v12020_v9, %v12019_v6 }
 0x78a   :  { %11879 = vmatpush1.bf16.msra.mxu1 %v14145_v60  ;;  %11910 = vmatprep.mubr.bf16.mxu1 %v11052_v11  ;;  %v12003_v60 = vld [vmem:[#allocation13] sm:$0xff]  ;;  %v12021_v11 = vld [vmem:[#allocation13 + $0x90] sm:$0xff] }
 0x78b   :  { %11880 = vmatprep.subr.bf16.mxu1 %v14150_v17  ;;  %v12004_v17 = vld [vmem:[#allocation13 + $0x8] sm:$0xff]  ;;  %13805 = vmatprep.subr.bf16.mxu0 %v13804_v8 }
 0x78e   :  { %11881 = vmatpush1.bf16.msra.mxu1 %v14148_v29  ;;  %v12022_v29 = vld [vmem:[#allocation13 + $0x98] sm:$0xff] }
 0x78f   :  { %11882 = vmatprep.subr.bf16.mxu1 %v14153_v63  ;;  %v13806_v63 = vpack.c.bf16 %v12004_v17, %v12003_v60 }
 0x791   :  { %13807 = vmatpush3.bf16.msra.mxu0 %v13806_v63 }
 0x792   :  { %11883 = vmatpush1.bf16.msra.mxu1 %v14151_v18  ;;  %v13808_v18 = vpack.c.bf16 %v12022_v29, %v12021_v11 }
 0x793   :  { %11884 = vmatprep.subr.bf16.mxu1 %v14156_v10  ;;  %v12005_v10 = vld [vmem:[#allocation13 + $0x10] sm:$0xff] }
 0x794   :  { %13809 = vmatprep.subr.bf16.mxu0 %v13808_v18 }
 0x796   :  { %11885 = vmatpush1.bf16.msra.mxu1 %v14154_v24  ;;  %v12006_v24 = vld [vmem:[#allocation13 + $0x18] sm:$0xff] }
 0x797   :  { %11886 = vmatprep.subr.bf16.mxu1 %v14159_v14  ;;  %v12023_v14 = vld [vmem:[#allocation13 + $0xa0] sm:$0xff] }
 0x79a   :  { %11887 = vmatpush1.bf16.msra.mxu1 %v14157_v12  ;;  %v12024_v12 = vld [vmem:[#allocation13 + $0xa8] sm:$0xff] }
 0x79b   :  { %11888 = vmatprep.subr.bf16.mxu1 %v14162_v52  ;;  %v13810_v52 = vpack.c.bf16 %v12006_v24, %v12005_v10 }
 0x79d   :  { %13811 = vmatpush3.bf16.msra.mxu0 %v13810_v52 }
 0x79e   :  { %11889 = vmatpush1.bf16.msra.mxu1 %v14160_v15  ;;  %v14220_v15 = vld [vmem:[#allocation10 + $0x290] ss:$8 sps:$4 sm:$0xff]  }
 0x79f   :  { %11890 = vmatprep.subr.bf16.mxu1 %v14165_v48  ;;  %v13812_v48 = vpack.c.bf16 %v12024_v12, %v12023_v14 }
 0x7a1   :  { %13813 = vmatprep.subr.bf16.mxu0 %v13812_v48  ;;  %v14241_v48 = vld [vmem:[#allocation10 + $0x300] ss:$8 sps:$4 sm:$0xff]  }
 0x7a2   :  { %11891 = vmatpush1.bf16.msra.mxu1 %v14163_v16  ;;  %v12007_v16 = vld [vmem:[#allocation13 + $0x20] sm:$0xff] }
 0x7a3   :  { %11892 = vmatprep.subr.bf16.mxu1 %v14168_v23  ;;  %v12008_v23 = vld [vmem:[#allocation13 + $0x28] sm:$0xff] }
 0x7a6   :  { %11893 = vmatpush1.bf16.msra.mxu1 %v14166_v37  ;;  %v14225_v37 = vld [vmem:[#allocation10 + $0x2a4] ss:$8 sps:$4 sm:$0xff]  }
 0x7a7   :  { %11894 = vmatprep.subr.bf16.mxu1 %v14171_v26  ;;  %v12025_v26 = vld [vmem:[#allocation13 + $0xb0] sm:$0xff] }
 0x7aa   :  { %11895 = vmatpush1.bf16.msra.mxu1 %v14169_v27  ;;  %v12026_v27 = vld [vmem:[#allocation13 + $0xb8] sm:$0xff] }
 0x7ab   :  { %11896 = vmatprep.subr.bf16.mxu1 %v14174_v22  ;;  %v13814_v22 = vpack.c.bf16 %v12008_v23, %v12007_v16  ;;  %v14246_v23 = vld [vmem:[#allocation10 + $0x314] ss:$8 sps:$4 sm:$0xff]  }
 0x7ad   :  { %13815 = vmatpush3.bf16.msra.mxu0 %v13814_v22  ;;  %v14247_v22 = vld [vmem:[#allocation10 + $0x320] ss:$8 sps:$4 sm:$0xff]  }
 0x7ae   :  { %11897 = vmatpush1.bf16.msra.mxu1 %v14172_v19  ;;  %v14223_v19 = vld [vmem:[#allocation10 + $0x2a0] ss:$8 sps:$4 sm:$0xff]  }
 0x7af   :  { %11898 = vmatprep.subr.bf16.mxu1 %v14177_v42  ;;  %v13816_v42 = vpack.c.bf16 %v12026_v27, %v12025_v26  ;;  %v14244_v26 = vld [vmem:[#allocation10 + $0x310] ss:$8 sps:$4 sm:$0xff]   ;;  %v14249_v27 = vld [vmem:[#allocation10 + $0x324] ss:$8 sps:$4 sm:$0xff]  }
 0x7b1   :  { %13817 = vmatprep.subr.bf16.mxu0 %v13816_v42  ;;  %v14250_v42 = vld [vmem:[#allocation10 + $0x330] ss:$8 sps:$4 sm:$0xff]  }
 0x7b2   :  { %11899 = vmatpush1.bf16.msra.mxu1 %v14175_v28  ;;  %v12009_v28 = vld [vmem:[#allocation13 + $0x30] sm:$0xff] }
 0x7b3   :  { %11900 = vmatprep.subr.bf16.mxu1 %v14180_v30  ;;  %v12010_v30 = vld [vmem:[#allocation13 + $0x38] sm:$0xff] }
 0x7b4   :  { %v13818_v3 = vpack.c.bf16 %v12010_v30, %v12009_v28  ;;  %v14255_v28 = vld [vmem:[#allocation10 + $0x344] ss:$8 sps:$4 sm:$0xff]   ;;  %v14253_v30 = vld [vmem:[#allocation10 + $0x340] ss:$8 sps:$4 sm:$0xff]  }
 0x7b6   :  { %11901 = vmatpush1.bf16.msra.mxu1 %v14178_v0  ;;  %v14228_v0 = vld [vmem:[#allocation10 + $0x2b4] ss:$8 sps:$4 sm:$0xff]   ;;  %13819 = vmatpush3.bf16.msra.mxu0 %v13818_v3  ;;  %v14259_v3 = vld [vmem:[#allocation10 + $0x360] ss:$8 sps:$4 sm:$0xff]  }
 0x7b7   :  { %11902 = vmatprep.subr.bf16.mxu1 %v14183_v33  ;;  %v12027_v33 = vld [vmem:[#allocation13 + $0xc0] sm:$0xff] }
 0x7ba   :  { %11903 = vmatpush1.bf16.msra.mxu1 %v14181_v62  ;;  %v12028_v62 = vld [vmem:[#allocation13 + $0xc8] sm:$0xff] }
 0x7bb   :  { %11904 = vmatprep.subr.bf16.mxu1 %v14186_v58  ;;  %v14226_v58 = vld [vmem:[#allocation10 + $0x2b0] ss:$8 sps:$4 sm:$0xff]  }
 0x7be   :  { %11905 = vmatpush1.bf16.msra.mxu1 %v14184_v53  ;;  %v13820_v53 = vpack.c.bf16 %v12028_v62, %v12027_v33  ;;  %v14256_v33 = vld [vmem:[#allocation10 + $0x350] ss:$8 sps:$4 sm:$0xff]   ;;  %v14261_v62 = vld [vmem:[#allocation10 + $0x364] ss:$8 sps:$4 sm:$0xff]  }
 0x7bf   :  { %11906 = vmatprep.subr.bf16.mxu1 %v14189_v36  ;;  %v12012_v36 = vld [vmem:[#allocation13 + $0x48] sm:$0xff] }
 0x7c0   :  { %13821 = vmatprep.subr.bf16.mxu0 %v13820_v53  ;;  %v14262_v53 = vld [vmem:[#allocation10 + $0x370] ss:$8 sps:$4 sm:$0xff]  }
 0x7c2   :  { %11907 = vmatpush1.bf16.msra.mxu1 %v14187_v38  ;;  %v14231_v38 = vld [vmem:[#allocation10 + $0x2c4] ss:$8 sps:$4 sm:$0xff]  }
 0x7c3   :  { %11908 = vmatprep.subr.bf16.mxu1 %v14192_v7  ;;  %v12030_v7 = vld [vmem:[#allocation13 + $0xd8] sm:$0xff] }
 0x7c6   :  { %11909 = vmatpush1.bf16.msra.mxu1 %v14190_v40  ;;  %v13822_v40 = vpack.c.bf16 %v12012_v36, %v12011_v1  ;;  %v14267_v1 = vld [vmem:[#allocation10 + $0x384] ss:$8 sps:$4 sm:$0xff]   ;;  %v14265_v36 = vld [vmem:[#allocation10 + $0x380] ss:$8 sps:$4 sm:$0xff]  }
 0x7c7   :  { %11919 = vmatprep.subr.bf16.mxu1 %v14195_v5  ;;  %v13824_v5 = vpack.c.bf16 %v12030_v7, %v12029_v25  ;;  %v14268_v25 = vld [vmem:[#allocation10 + $0x390] ss:$8 sps:$4 sm:$0xff]   ;;  %v14273_v7 = vld [vmem:[#allocation10 + $0x3a4] ss:$8 sps:$4 sm:$0xff]  }
 0x7c8   :  { %13823 = vmatpush3.bf16.msra.mxu0 %v13822_v40  ;;  %v14271_v40 = vld [vmem:[#allocation10 + $0x3a0] ss:$8 sps:$4 sm:$0xff]  }
 0x7c9   :  { %11911 = vmatmul.mubr.bf16.vlgmr.msra.gmra.mrb[8].mxu1 %v11051_v32  ;;  %v12014_v32 = vld [vmem:[#allocation13 + $0x58] sm:$0xff]  ;;  %13825 = vmatprep.subr.bf16.mxu0 %v13824_v5 }
 0x7ca   :  { %11920 = vmatpush1.bf16.msra.mxu1 %v14193_v44  ;;  %v12013_v44 = vld [vmem:[#allocation13 + $0x50] sm:$0xff] }
 0x7cb   :  { %11921 = vmatprep.subr.bf16.mxu1 %v14198_v41  ;;  %v14234_v41 = vld [vmem:[#allocation10 + $0x2d4] ss:$8 sps:$4 sm:$0xff]   ;;  %v14274_v5 = vld [vmem:[#allocation10 + $0x3b0] ss:$8 sps:$4 sm:$0xff]  }
 0x7ce   :  { %11922 = vmatpush1.bf16.msra.mxu1 %v14196_v13  ;;  %v12031_v13 = vld [vmem:[#allocation13 + $0xe0] sm:$0xff] }
 0x7cf   :  { %11923 = vmatprep.subr.bf16.mxu1 %v14201_v49  ;;  %v12032_v49 = vld [vmem:[#allocation13 + $0xe8] sm:$0xff] }
 0x7d2   :  { %11924 = vmatpush1.bf16.msra.mxu1 %v14199_v50  ;;  %v13826_v50 = vpack.c.bf16 %v12014_v32, %v12013_v44  ;;  %v14279_v44 = vld [vmem:[#allocation10 + $0x3c4] ss:$8 sps:$4 sm:$0xff]   ;;  %v14277_v32 = vld [vmem:[#allocation10 + $0x3c0] ss:$8 sps:$4 sm:$0xff]  }
 0x7d3   :  { %11925 = vmatprep.subr.bf16.mxu1 %v14204_v34  ;;  %v14232_v34 = vld [vmem:[#allocation10 + $0x2d0] ss:$8 sps:$4 sm:$0xff]  }
 0x7d4   :  { %13827 = vmatpush3.bf16.msra.mxu0 %v13826_v50 }
 0x7d6   :  { %11926 = vmatpush1.bf16.msra.mxu1 %v14202_v51  ;;  %v13828_v51 = vpack.c.bf16 %v12032_v49, %v12031_v13  ;;  %v14282_v13 = vld [vmem:[#allocation10 + $0x3d4] ss:$8 sps:$4 sm:$0xff]   ;;  %v14280_v49 = vld [vmem:[#allocation10 + $0x3d0] ss:$8 sps:$4 sm:$0xff]  }
 0x7d7   :  { %11927 = vmatprep.subr.bf16.mxu1 %v14207_v55  ;;  %v14237_v55 = vld [vmem:[#allocation10 + $0x2e4] ss:$8 sps:$4 sm:$0xff]  }
 0x7d8   :  { %13829 = vmatprep.subr.bf16.mxu0 %v13828_v51  ;;  %v14283_v51 = vld [vmem:[#allocation10 + $0x3e0] ss:$8 sps:$4 sm:$0xff]  }
 0x7da   :  { %11928 = vmatpush1.bf16.msra.mxu1 %v14205_v20  ;;  %v14235_v20 = vld [vmem:[#allocation10 + $0x2e0] ss:$8 sps:$4 sm:$0xff]  }
 0x7db   :  { %11929 = vmatprep.subr.bf16.mxu1 %v14210_v39  ;;  %v14240_v39 = vld [vmem:[#allocation10 + $0x2f4] ss:$8 sps:$4 sm:$0xff]  }
 0x7de   :  { %11930 = vmatpush1.bf16.msra.mxu1 %v14208_v46  ;;  %v14238_v46 = vld [vmem:[#allocation10 + $0x2f0] ss:$8 sps:$4 sm:$0xff]  }
 0x7df   :  { %11931 = vmatprep.subr.bf16.mxu1 %v14213_v57  ;;  %v14243_v57 = vld [vmem:[#allocation10 + $0x304] ss:$8 sps:$4 sm:$0xff]  }
 0x7e2   :  { %11932 = vmatpush1.bf16.msra.mxu1 %v14211_v21  ;;  %v2175_v21 = vsub.s32 4, %v15165_v56 }
 0x7e3   :  { %11933 = vmatprep.subr.bf16.mxu1 %v14216_v59  ;;  %v2179_v59 = vsub.s32 5, %v15165_v56 }
 0x7e6   :  { %11934 = vmatpush1.bf16.msra.mxu1 %v14214_v61  ;;  %v2187_v61 = vsub.s32 7, %v15165_v56 }
 0x7e7   :  { %11935 = vmatprep.subr.bf16.mxu1 %v14219_v35  ;;  %v2176_v35 = vrot.slane %v15168_v4, %v2175_v21  ;;  %v12015_v21 = vld [vmem:[#allocation13 + $0x60] sm:$0xff] }
 0x7ea   :  { %11936 = vmatpush1.bf16.msra.mxu1 %v14217_v2  ;;  %v2180_v2 = vrot.slane %v15168_v4, %v2179_v59  ;;  %v12016_v59 = vld [vmem:[#allocation13 + $0x68] sm:$0xff] }
 0x7eb   :  { %11937 = vmatprep.subr.bf16.mxu1 %v14222_v47  ;;  %v2188_v47 = vrot.slane %v15168_v4, %v2187_v61  ;;  %v13830_v61 = vpack.c.bf16 %v12016_v59, %v12015_v21 }
 0x7ed   :  { %13831 = vmatpush3.bf16.msra.mxu0 %v13830_v61 }
 0x7ee   :  { %11938 = vmatpush1.bf16.msra.mxu1 %v14220_v15 }
 0x7ef   :  { %11939 = vmatprep.subr.bf16.mxu1 %v14225_v37 }
 0x7f2   :  { %11940 = vmatpush1.bf16.msra.mxu1 %v14223_v19  ;;  %v14252_v19 = vld [vmem:[#allocation10 + $0x334] ss:$8 sps:$4 sm:$0xff]  }
 0x7f3   :  { %11941 = vmatprep.subr.bf16.mxu1 %v14228_v0  ;;  %v14258_v0 = vld [vmem:[#allocation10 + $0x354] ss:$8 sps:$4 sm:$0xff]  }
 0x7f6   :  { %11942 = vmatpush1.bf16.msra.mxu1 %v14226_v58  ;;  %v14264_v58 = vld [vmem:[#allocation10 + $0x374] ss:$8 sps:$4 sm:$0xff]  }
 0x7f7   :  { %11943 = vmatprep.subr.bf16.mxu1 %v14231_v38  ;;  %v14270_v38 = vld [vmem:[#allocation10 + $0x394] ss:$8 sps:$4 sm:$0xff]  }
 0x7fa   :  { %11944 = vmatpush1.bf16.msra.mxu1 %v14229_v43  ;;  %v14276_v43 = vld [vmem:[#allocation10 + $0x3b4] ss:$8 sps:$4 sm:$0xff]  }
 0x7fb   :  { %11945 = vmatprep.subr.bf16.mxu1 %v14234_v41  ;;  %v2183_v41 = vsub.s32 6, %v15165_v56 }
 0x7fd   :  { %v2184_v50 = vrot.slane %v15168_v4, %v2183_v41  ;;  %v12033_v4 = vld [vmem:[#allocation13 + $0xf0] sm:$0xff] }
 0x7fe   :  { %11946 = vmatpush1.bf16.msra.mxu1 %v14232_v34  ;;  %v14285_v34 = vld [vmem:[#allocation10 + $0x3e4] ss:$8 sps:$4 sm:$0xff]  }
 0x7ff   :  { %11947 = vmatprep.subr.bf16.mxu1 %v14237_v55 }
 0x802   :  { %11948 = vmatpush1.bf16.msra.mxu1 %v14235_v20  ;;  %v14288_v20 = vld [vmem:[#allocation10 + $0x3f4] ss:$8 sps:$4 sm:$0xff]  }
 0x803   :  { %11949 = vmatprep.subr.bf16.mxu1 %v14240_v39  ;;  %v14286_v39 = vld [vmem:[#allocation10 + $0x3f0] ss:$8 sps:$4 sm:$0xff]  }
 0x806   :  { %11950 = vmatpush1.bf16.msra.mxu1 %v14238_v46 }
 0x807   :  { %11960 = vmatprep.subr.bf16.mxu1 %v14243_v57 }
 0x81c   :  { %v10583_v6 = vpop.f32.mrb[4].mxu1 }
 0x81d   :  { %v13862_v9 = vadd.f32 %v10583_v6, %v2176_v35  ;;  %v15193_v60 = vpop.f32.mrb[48].mxu0  ;;  %v10585_v8 = vpop.f32.mrb[5].mxu1  ;;  %v12034_v35 = vld [vmem:[#allocation13 + $0xf8] sm:$0xff] }
 0x81e   :  { %v13863_v17 = vadd.f32 %v10585_v8, %v2180_v2  ;;  %v11036_v11 = vpop.f32.mrb[49].mxu0  ;;  %v10587_v29 = vpop.f32.mrb[6].mxu1  ;;  %v13864_v55 = vadd.f32 %v15193_v60, %v2184_v50  ;;  %v13832_v2 = vpack.c.bf16 %v12034_v35, %v12033_v4  ;;  %v12018_v6 = vld [vmem:[#allocation13 + $0x78] sm:$0xff] }
 0x81f   :  { %v11045_v63 = vmax.f32 %v13862_v9, 0.0  ;;  %v13865_v18 = vadd.f32 %v11036_v11, %v2188_v47  ;;  %v11038_v10 = vpop.f32.mrb[50].mxu0  ;;  %v10588_v24 = vpop.f32.mrb[7].mxu1  ;;  %v12017_v47 = vld [vmem:[#allocation13 + $0x70] sm:$0xff]  ;;  %v11185_v60 = vld [vmem:[#allocation11] sm:$0x3] }
 0x820   :  { %v11046_v14 = vmax.f32 %v13863_v17, 0.0  ;;  %v11039_v12 = vpop.f32.mrb[51].mxu0  ;;  %v11047_v46 = vmax.f32 %v13864_v55, 0.0  ;;  %v13834_v9 = vpack.c.bf16 %v12018_v6, %v12017_v47  ;;  %13833 = vmatprep.subr.bf16.mxu0 %v13832_v2  ;;  %v11190_v8 = vrot.slane %v11185_v60, %v2159_v31 }
 0x821   :  { %v11048_v52 = vmax.f32 %v13865_v18, 0.0  ;;  %v11053_v16 = vpack.c.bf16 %v11045_v63, %v11045_v63  ;;  %v11194_v17 = vrot.slane %v11185_v60, %v2163_v54 }
 0x822   :  { %v11054_v15 = vpack.c.bf16 %v11046_v14, %v11046_v14  ;;  %v11055_v57 = vpack.c.bf16 %v11047_v46, %v11047_v46  ;;  %13835 = vmatpush3.bf16.msra.mxu0 %v13834_v9 }
 0x823   :  { %v11056_v37 = vpack.c.bf16 %v11048_v52, %v11048_v52 }
 0x824   :  { %11951 = vmatprep.mubr.bf16.mxu1 %v11054_v15  ;;  %v13672_v15 = vld [vmem:[#allocation14] ss:$0 sm:$0xff] }
 0x825   :  { %11952 = vmatmul.mubr.bf16.vlgmr.msra.gmra.mrb[8].mxu1 %v11053_v16  ;;  %v12114_v16 = vand.u32 127, %v2157_v45 }
 0x826   :  { %11961 = vmatpush1.bf16.msra.mxu1 %v14241_v48  ;;  %11992 = vmatprep.mubr.bf16.mxu1 %v11056_v37 }
 0x827   :  { %11962 = vmatprep.subr.bf16.mxu1 %v14246_v23  ;;  %vm12115_vm0 = vcmp.lt.s32.totalorder %v12114_v16, 4 }
 0x82a   :  { %11963 = vmatpush1.bf16.msra.mxu1 %v14244_v26 }
 0x82b   :  { %11964 = vmatprep.subr.bf16.mxu1 %v14249_v27 }
 0x82e   :  { %11965 = vmatpush1.bf16.msra.mxu1 %v14247_v22 }
 0x82f   :  { %11966 = vmatprep.subr.bf16.mxu1 %v14252_v19 }
 0x832   :  { %11967 = vmatpush1.bf16.msra.mxu1 %v14250_v42 }
 0x833   :  { %11968 = vmatprep.subr.bf16.mxu1 %v14255_v28 }
 0x836   :  { %11969 = vmatpush1.bf16.msra.mxu1 %v14253_v30 }
 0x837   :  { %11970 = vmatprep.subr.bf16.mxu1 %v14258_v0 }
 0x83a   :  { %11971 = vmatpush1.bf16.msra.mxu1 %v14256_v33 }
 0x83b   :  { %11972 = vmatprep.subr.bf16.mxu1 %v14261_v62 }
 0x83e   :  { %11973 = vmatpush1.bf16.msra.mxu1 %v14259_v3 }
 0x83f   :  { %11974 = vmatprep.subr.bf16.mxu1 %v14264_v58 }
 0x842   :  { %11975 = vmatpush1.bf16.msra.mxu1 %v14262_v53 }
 0x843   :  { %11976 = vmatprep.subr.bf16.mxu1 %v14267_v1 }
 0x846   :  { %11977 = vmatpush1.bf16.msra.mxu1 %v14265_v36 }
 0x847   :  { %11978 = vmatprep.subr.bf16.mxu1 %v14270_v38 }
 0x84a   :  { %11979 = vmatpush1.bf16.msra.mxu1 %v14268_v25 }
 0x84b   :  { %11980 = vmatprep.subr.bf16.mxu1 %v14273_v7 }
 0x84e   :  { %11981 = vmatpush1.bf16.msra.mxu1 %v14271_v40 }
 0x84f   :  { %11982 = vmatprep.subr.bf16.mxu1 %v14276_v43 }
 0x852   :  { %11983 = vmatpush1.bf16.msra.mxu1 %v14274_v5 }
 0x853   :  { %11984 = vmatprep.subr.bf16.mxu1 %v14279_v44 }
 0x856   :  { %11985 = vmatpush1.bf16.msra.mxu1 %v14277_v32 }
 0x857   :  { %11986 = vmatprep.subr.bf16.mxu1 %v14282_v13 }
 0x85a   :  { %11987 = vmatpush1.bf16.msra.mxu1 %v14280_v49 }
 0x85b   :  { %11988 = vmatprep.subr.bf16.mxu1 %v14285_v34 }
 0x85e   :  { %11989 = vmatpush1.bf16.msra.mxu1 %v14283_v51 }
 0x85f   :  { %11990 = vmatprep.subr.bf16.mxu1 %v14288_v20 }
 0x862   :  { %11991 = vmatpush1.bf16.msra.mxu1 %v14286_v39 }
 0x865   :  { %11993 = vmatmul.mubr.bf16.vlgmr.msra.gmra.mrb[8].mxu1 %v11055_v57 }
 0x938   :  { %v11994_v11 = vpop.f32.mrb[8].mxu1 }
 0x939   :  { %v13866_v29 = vadd.f32 %v11994_v11, %v11190_v8  ;;  %v11996_v63 = vpop.f32.mrb[9].mxu1 }
 0x93a   :  { %v13867_v18 = vadd.f32 %v11996_v63, %v11194_v17  ;;  %v11998_v10 = vpop.f32.mrb[10].mxu1 }
 0x93b   :  { %v11999_v24 = vpop.f32.mrb[11].mxu1  ;;  %v12001_v12 = vmax.f32 %v13866_v29, 0.0 }
 0x93c   :  { %v12002_v14 = vmax.f32 %v13867_v18, 0.0 }
 0x93e   :  { %12106 = vmatprep.mubr.f32.mxu0 %v12002_v14 }
 0x93f   :  { %12107 = vmatmul.mubr.f32.vlgmr.msra.gmra.mrb[52].mxu0 %v12001_v12 }
 0xa12   :  { %v13705_v52 = vpop.f32.mrb[52].mxu0 }
 0xa13   :  { %v13706_v48 = vpop.f32.mrb[53].mxu0 }
 0xa14   :  { %v13707_v23 = vadd.f32 %v13706_v48, %v13705_v52 }
 0xa16   :  { %v12109_v31 = vadd.f32 %v13707_v23, %v13672_v15 }
 0xa18   :  { %v12112_v56 = vmax.f32 %v12109_v31, 0.0 }
 0xa1a   :  { %v12116_v54 = vsel %vm12115_vm0, %v12112_v56, -inf }
 0xa1b   :  { %12117 = vmax.xlane.f32.xlu0 %v12116_v54 }
 0xaa8   :  { %v12118_v37 = vpop.xlane.xlu0 %12117 }
 0xaa9   :  { %v12119_v26 = vsub.f32 %v12116_v54, %v12118_v37 }
 0xaab   :  { %v12120_v27 = vmul.f32 1.442695, %v12119_v26 }
 0xaad   :  { %14289 = vpow2.f32 %v12120_v27 }
 0xab7   :  { %v14290_v22 = vpop.eup %14289 }
 0xab8   :  { %12122 = vadd.xlane.f32.xlu0 %v14290_v22 }
 0xb45   :  { %v12123_v19 = vpop.xlane.xlu0 %12122 }
 0xb46   :  { %14291 = vrcp.f32 %v12123_v19 }
 0xb50   :  { %v14292_v42 = vpop.eup %14291 }
 0xb51   :  { %v12125_v28 = vmul.f32 %v14292_v42, %v14290_v22 }
 0xb53   :  { %12126 = vst [vmem:[%s15215_s9] sm:$0xff] %v12125_v28 }
 0xb54   :  { %12131 = vsyncpa [#allocation4], 1 }
 0xb55   :  { %12132 = vsyncpa [#allocation6], 1 }
 0xb56   :  { %12133 = vsyncpa [#allocation9], 1 }
 0xb57   :  { %12134 = vsyncpa [#allocation12], 1 }
 0xb58   :  { %12135 = vsyncpa [#allocation15], 1 }

</bundles_post_ra>
